<compile_context>
chip_gen: v7x
topology: tpu7x:2x2x1
jax: 0.10.0
libtpu: 0.0.40
codegen_flags: <defaults>
</compile_context>

<pallas_src>
import functools

import jax
import jax.numpy as jnp
from jax.experimental import pallas as pl
from jax.experimental.pallas import tpu as pltpu


# ------------------------------ fused kernel --------------------------------
def _ghost_kernel(x_ref, w1_ref, gamma_ref, beta_ref, wd_ref,
                  x1_ref, x2_ref, patch_ref, x1p_ref, *, eps):
    # x_ref    : (N, H, W, Cin)      NHWC input (unpadded)
    # w1_ref   : (9*Cin, C)          conv1 weights, K ordered (kh, kw, cin)
    # gamma_ref, beta_ref : (1, C)   BatchNorm affine parameters
    # wd_ref   : (9, C)              depthwise 3x3 weights, rows ordered (kh, kw)
    # x1_ref   : (N, H, W, C)        out: relu(BN(conv1(x)))
    # x2_ref   : (N, H, W, C)        out: relu(dwconv3x3(x1))
    # patch_ref: (N, H, W, 9*Cin)    VMEM scratch: im2col patch for conv1
    # x1p_ref  : (N, H+2, W+2, C)    VMEM scratch: zero-padded x1
    N, H, W, Cin = x_ref.shape
    C = x1_ref.shape[3]
    NHW = N * H * W

    # -------- conv1: im2col + a single K = 9*Cin MXU contraction ------------
    # Zero once (grid=() -> one invocation). Out-of-range taps simply keep
    # their zeros, which implements padding=1 without a padded copy of x.
    patch_ref[...] = jnp.zeros_like(patch_ref)
    tap = 0
    for dh in (-1, 0, 1):
        for dw in (-1, 0, 1):
            hs, he = max(0, -dh), H - max(0, dh)     # valid output rows
            ws, we = max(0, -dw), W - max(0, dw)     # valid output cols
            patch_ref[:, hs:he, ws:we, tap * Cin:(tap + 1) * Cin] = (
                x_ref[:, hs + dh:he + dh, ws + dw:we + dw, :]
                .astype(jnp.float32))
            tap += 1
    y1 = jnp.dot(patch_ref[...].reshape(NHW, 9 * Cin), w1_ref[...],
                 preferred_element_type=jnp.float32)           # (NHW, C)

    # -------- fused BatchNorm (training-mode batch stats, biased var) + ReLU -
    inv_n = jnp.float32(1.0 / NHW)
    mean = jnp.sum(y1, axis=0, keepdims=True) * inv_n          # (1, C)
    var = jnp.sum(jnp.square(y1 - mean), axis=0, keepdims=True) * inv_n
    scale = gamma_ref[...] * jax.lax.rsqrt(var + eps)
    shift = beta_ref[...] - mean * scale
    x1 = jnp.maximum(y1 * scale + shift, 0.0)                  # (NHW, C)
    x1_4d = x1.reshape(N, H, W, C)
    x1_ref[...] = x1_4d.astype(x1_ref.dtype)                   # one dense store

    # -------- depthwise 3x3 + ReLU (pad scratch; zero the 1-px border only) --
    zh = jnp.zeros((N, 1, W + 2, C), jnp.float32)
    zw = jnp.zeros((N, H, 1, C), jnp.float32)
    x1p_ref[:, 0:1, :, :] = zh
    x1p_ref[:, H + 1:H + 2, :, :] = zh
    x1p_ref[:, 1:H + 1, 0:1, :] = zw
    x1p_ref[:, 1:H + 1, W + 1:W + 2, :] = zw
    x1p_ref[:, 1:H + 1, 1:W + 1, :] = x1_4d

    acc = x1p_ref[:, 0:H, 0:W, :] * wd_ref[0, :]
    for tap in range(1, 9):
        dh, dw = tap // 3, tap % 3
        acc = acc + x1p_ref[:, dh:dh + H, dw:dw + W, :] * wd_ref[tap, :]
    x2_ref[...] = jnp.maximum(acc, 0.0).astype(x2_ref.dtype)   # one dense store


# --------------------------------- wrapper ----------------------------------
def ghost_module_forward(x_nchw, w1_hwio, gamma, beta, wd_hwc, eps=1e-5):
    N, Cin, H, W = x_nchw.shape
    C = w1_hwio.shape[-1]

    x = jnp.transpose(x_nchw, (0, 2, 3, 1))            # NHWC (lane = channels)
    w1 = w1_hwio.reshape(9 * Cin, C)                   # K ordered (kh, kw, cin)
    wd = wd_hwc.reshape(9, C)                          # rows ordered (kh, kw)

    x1, x2 = pl.pallas_call(
        functools.partial(_ghost_kernel, eps=eps),
        out_shape=(jax.ShapeDtypeStruct((N, H, W, C), jnp.float32),
                   jax.ShapeDtypeStruct((N, H, W, C), jnp.float32)),
        scratch_shapes=[
            pltpu.VMEM((N, H, W, 9 * Cin), jnp.float32),   # im2col patch
            pltpu.VMEM((N, H + 2, W + 2, C), jnp.float32),  # padded x1
        ],
    )(x, w1, gamma.reshape(1, C), beta.reshape(1, C), wd)

    # torch.cat([x1, x2], dim=1) in NCHW; XLA must do the NHWC->NCHW relayout
    # anyway, so the channel concat rides along with it.
    return jnp.concatenate(
        [jnp.transpose(x1, (0, 3, 1, 2)), jnp.transpose(x2, (0, 3, 1, 2))],
        axis=1)


# ----------------------------- pure-JAX reference ---------------------------
def _reference(x_nchw, w1_hwio, gamma, beta, wd_hwc, eps=1e-5):
    x = jnp.transpose(x_nchw, (0, 2, 3, 1))
    y1 = jax.lax.conv_general_dilated(
        x, w1_hwio, (1, 1), ((1, 1), (1, 1)),
        dimension_numbers=("NHWC", "HWIO", "NHWC"))
    mean = jnp.mean(y1, axis=(0, 1, 2))
    var = jnp.mean((y1 - mean) ** 2, axis=(0, 1, 2))
    x1 = jax.nn.relu((y1 - mean) / jnp.sqrt(var + eps) * gamma + beta)
    Cmid = w1_hwio.shape[-1]
    wd = wd_hwc.reshape(3, 3, 1, Cmid)
    x2 = jax.nn.relu(jax.lax.conv_general_dilated(
        x1, wd, (1, 1), ((1, 1), (1, 1)),
        dimension_numbers=("NHWC", "HWIO", "NHWC"),
        feature_group_count=Cmid))
    out = jnp.concatenate([x1, x2], axis=-1)
    return jnp.transpose(out, (0, 3, 1, 2))


if __name__ == "__main__":
    # GhostModule(in_channels=4, out_channels=64) -> Cmid = 32
    N, Cin, H, W = 2, 4, 16, 16
    Cmid = 32

    key = jax.random.PRNGKey(0)
    k_x, k_w1, k_wd = jax.random.split(key, 3)

    x = jax.random.normal(k_x, (N, Cin, H, W), jnp.float32)              # NCHW
    w1 = jax.random.normal(k_w1, (3, 3, Cin, Cmid), jnp.float32) * 0.1   # HWIO
    wd = jax.random.normal(k_wd, (3, 3, Cmid), jnp.float32) * 0.1        # dw
    gamma = jnp.ones((Cmid,), jnp.float32)   # BatchNorm2d default init
    beta = jnp.zeros((Cmid,), jnp.float32)

    out = jax.block_until_ready(
        jax.jit(ghost_module_forward)(x, w1, gamma, beta, wd))
    ref = jax.block_until_ready(_reference(x, w1, gamma, beta, wd))

    assert out.shape == (N, 2 * Cmid, H, W), out.shape
    assert jnp.allclose(out, ref, atol=1e-4, rtol=1e-4), \
        float(jnp.max(jnp.abs(out - ref)))
    print("KERNEL_OK")
</pallas_src>

<mosaic_0001>
module attributes {stable_mosaic.version = 11 : i64} {
  func.func @_ghost_kernel(%arg0: memref<2x16x16x4xf32, #tpu.memory_space<vmem>>, %arg1: memref<36x32xf32, #tpu.memory_space<vmem>>, %arg2: memref<1x32xf32, #tpu.memory_space<vmem>>, %arg3: memref<1x32xf32, #tpu.memory_space<vmem>>, %arg4: memref<9x32xf32, #tpu.memory_space<vmem>>, %arg5: memref<2x16x16x32xf32, #tpu.memory_space<vmem>>, %arg6: memref<2x16x16x32xf32, #tpu.memory_space<vmem>>, %arg7: memref<2x16x16x36xf32, #tpu.memory_space<vmem>>, %arg8: memref<2x18x18x32xf32, #tpu.memory_space<vmem>>) attributes {dimension_semantics = [], scalar_prefetch = 0 : i64, scratch_operands = 2 : i64, tpu.core_type = #tpu.core_type<tc>} {
    %cst = arith.constant 0.000000e+00 : f32
    %0 = vector.broadcast %cst : f32 to vector<2x16x16x36xf32>
    %c0 = arith.constant 0 : index
    %c0_0 = arith.constant 0 : index
    %c0_1 = arith.constant 0 : index
    %c0_2 = arith.constant 0 : index
    %1 = vector.load %arg7[%c0, %c0_0, %c0_1, %c0_2] : memref<2x16x16x36xf32, #tpu.memory_space<vmem>>, vector<2x16x16x36xf32>
    tpu.vector_store %arg7[%c0, %c0_0, %c0_1, %c0_2], %0 {strides = array<i32>} : memref<2x16x16x36xf32, #tpu.memory_space<vmem>>, vector<2x16x16x36xf32>,
    %c0_3 = arith.constant 0 : index
    %c0_4 = arith.constant 0 : index
    %c0_5 = arith.constant 0 : index
    %c0_6 = arith.constant 0 : index
    %2 = vector.load %arg0[%c0_3, %c0_4, %c0_5, %c0_6] : memref<2x16x16x4xf32, #tpu.memory_space<vmem>>, vector<2x15x15x4xf32>
    %c0_7 = arith.constant 0 : index
    %c1 = arith.constant 1 : index
    %c1_8 = arith.constant 1 : index
    %c0_9 = arith.constant 0 : index
    %3 = vector.load %arg7[%c0_7, %c1, %c1_8, %c0_9] : memref<2x16x16x36xf32, #tpu.memory_space<vmem>>, vector<2x15x15x4xf32>
    tpu.vector_store %arg7[%c0_7, %c1, %c1_8, %c0_9], %2 {strides = array<i32>} : memref<2x16x16x36xf32, #tpu.memory_space<vmem>>, vector<2x15x15x4xf32>,
    %c0_10 = arith.constant 0 : index
    %c0_11 = arith.constant 0 : index
    %c0_12 = arith.constant 0 : index
    %c0_13 = arith.constant 0 : index
    %4 = vector.load %arg0[%c0_10, %c0_11, %c0_12, %c0_13] : memref<2x16x16x4xf32, #tpu.memory_space<vmem>>, vector<2x15x16x4xf32>
    %c0_14 = arith.constant 0 : index
    %c1_15 = arith.constant 1 : index
    %c0_16 = arith.constant 0 : index
    %c4 = arith.constant 4 : index
    %5 = vector.load %arg7[%c0_14, %c1_15, %c0_16, %c4] : memref<2x16x16x36xf32, #tpu.memory_space<vmem>>, vector<2x15x16x4xf32>
    tpu.vector_store %arg7[%c0_14, %c1_15, %c0_16, %c4], %4 {strides = array<i32>} : memref<2x16x16x36xf32, #tpu.memory_space<vmem>>, vector<2x15x16x4xf32>,
    %c0_17 = arith.constant 0 : index
    %c0_18 = arith.constant 0 : index
    %c1_19 = arith.constant 1 : index
    %c0_20 = arith.constant 0 : index
    %6 = vector.load %arg0[%c0_17, %c0_18, %c1_19, %c0_20] : memref<2x16x16x4xf32, #tpu.memory_space<vmem>>, vector<2x15x15x4xf32>
    %c0_21 = arith.constant 0 : index
    %c1_22 = arith.constant 1 : index
    %c0_23 = arith.constant 0 : index
    %c8 = arith.constant 8 : index
    %7 = vector.load %arg7[%c0_21, %c1_22, %c0_23, %c8] : memref<2x16x16x36xf32, #tpu.memory_space<vmem>>, vector<2x15x15x4xf32>
    tpu.vector_store %arg7[%c0_21, %c1_22, %c0_23, %c8], %6 {strides = array<i32>} : memref<2x16x16x36xf32, #tpu.memory_space<vmem>>, vector<2x15x15x4xf32>,
    %c0_24 = arith.constant 0 : index
    %c0_25 = arith.constant 0 : index
    %c0_26 = arith.constant 0 : index
    %c0_27 = arith.constant 0 : index
    %8 = vector.load %arg0[%c0_24, %c0_25, %c0_26, %c0_27] : memref<2x16x16x4xf32, #tpu.memory_space<vmem>>, vector<2x16x15x4xf32>
    %c0_28 = arith.constant 0 : index
    %c0_29 = arith.constant 0 : index
    %c1_30 = arith.constant 1 : index
    %c12 = arith.constant 12 : index
    %9 = vector.load %arg7[%c0_28, %c0_29, %c1_30, %c12] : memref<2x16x16x36xf32, #tpu.memory_space<vmem>>, vector<2x16x15x4xf32>
    tpu.vector_store %arg7[%c0_28, %c0_29, %c1_30, %c12], %8 {strides = array<i32>} : memref<2x16x16x36xf32, #tpu.memory_space<vmem>>, vector<2x16x15x4xf32>,
    %c0_31 = arith.constant 0 : index
    %c0_32 = arith.constant 0 : index
    %c0_33 = arith.constant 0 : index
    %c0_34 = arith.constant 0 : index
    %10 = vector.load %arg0[%c0_31, %c0_32, %c0_33, %c0_34] : memref<2x16x16x4xf32, #tpu.memory_space<vmem>>, vector<2x16x16x4xf32>
    %c0_35 = arith.constant 0 : index
    %c0_36 = arith.constant 0 : index
    %c0_37 = arith.constant 0 : index
    %c16 = arith.constant 16 : index
    %11 = vector.load %arg7[%c0_35, %c0_36, %c0_37, %c16] : memref<2x16x16x36xf32, #tpu.memory_space<vmem>>, vector<2x16x16x4xf32>
    tpu.vector_store %arg7[%c0_35, %c0_36, %c0_37, %c16], %10 {strides = array<i32>} : memref<2x16x16x36xf32, #tpu.memory_space<vmem>>, vector<2x16x16x4xf32>,
    %c0_38 = arith.constant 0 : index
    %c0_39 = arith.constant 0 : index
    %c1_40 = arith.constant 1 : index
    %c0_41 = arith.constant 0 : index
    %12 = vector.load %arg0[%c0_38, %c0_39, %c1_40, %c0_41] : memref<2x16x16x4xf32, #tpu.memory_space<vmem>>, vector<2x16x15x4xf32>
    %c0_42 = arith.constant 0 : index
    %c0_43 = arith.constant 0 : index
    %c0_44 = arith.constant 0 : index
    %c20 = arith.constant 20 : index
    %13 = vector.load %arg7[%c0_42, %c0_43, %c0_44, %c20] : memref<2x16x16x36xf32, #tpu.memory_space<vmem>>, vector<2x16x15x4xf32>
    tpu.vector_store %arg7[%c0_42, %c0_43, %c0_44, %c20], %12 {strides = array<i32>} : memref<2x16x16x36xf32, #tpu.memory_space<vmem>>, vector<2x16x15x4xf32>,
    %c0_45 = arith.constant 0 : index
    %c1_46 = arith.constant 1 : index
    %c0_47 = arith.constant 0 : index
    %c0_48 = arith.constant 0 : index
    %14 = vector.load %arg0[%c0_45, %c1_46, %c0_47, %c0_48] : memref<2x16x16x4xf32, #tpu.memory_space<vmem>>, vector<2x15x15x4xf32>
    %c0_49 = arith.constant 0 : index
    %c0_50 = arith.constant 0 : index
    %c1_51 = arith.constant 1 : index
    %c24 = arith.constant 24 : index
    %15 = vector.load %arg7[%c0_49, %c0_50, %c1_51, %c24] : memref<2x16x16x36xf32, #tpu.memory_space<vmem>>, vector<2x15x15x4xf32>
    tpu.vector_store %arg7[%c0_49, %c0_50, %c1_51, %c24], %14 {strides = array<i32>} : memref<2x16x16x36xf32, #tpu.memory_space<vmem>>, vector<2x15x15x4xf32>,
    %c0_52 = arith.constant 0 : index
    %c1_53 = arith.constant 1 : index
    %c0_54 = arith.constant 0 : index
    %c0_55 = arith.constant 0 : index
    %16 = vector.load %arg0[%c0_52, %c1_53, %c0_54, %c0_55] : memref<2x16x16x4xf32, #tpu.memory_space<vmem>>, vector<2x15x16x4xf32>
    %c0_56 = arith.constant 0 : index
    %c0_57 = arith.constant 0 : index
    %c0_58 = arith.constant 0 : index
    %c28 = arith.constant 28 : index
    %17 = vector.load %arg7[%c0_56, %c0_57, %c0_58, %c28] : memref<2x16x16x36xf32, #tpu.memory_space<vmem>>, vector<2x15x16x4xf32>
    tpu.vector_store %arg7[%c0_56, %c0_57, %c0_58, %c28], %16 {strides = array<i32>} : memref<2x16x16x36xf32, #tpu.memory_space<vmem>>, vector<2x15x16x4xf32>,
    %c0_59 = arith.constant 0 : index
    %c1_60 = arith.constant 1 : index
    %c1_61 = arith.constant 1 : index
    %c0_62 = arith.constant 0 : index
    %18 = vector.load %arg0[%c0_59, %c1_60, %c1_61, %c0_62] : memref<2x16x16x4xf32, #tpu.memory_space<vmem>>, vector<2x15x15x4xf32>
    %c0_63 = arith.constant 0 : index
    %c0_64 = arith.constant 0 : index
    %c0_65 = arith.constant 0 : index
    %c32 = arith.constant 32 : index
    %19 = vector.load %arg7[%c0_63, %c0_64, %c0_65, %c32] : memref<2x16x16x36xf32, #tpu.memory_space<vmem>>, vector<2x15x15x4xf32>
    tpu.vector_store %arg7[%c0_63, %c0_64, %c0_65, %c32], %18 {strides = array<i32>} : memref<2x16x16x36xf32, #tpu.memory_space<vmem>>, vector<2x15x15x4xf32>,
    %c0_66 = arith.constant 0 : index
    %c0_67 = arith.constant 0 : index
    %c0_68 = arith.constant 0 : index
    %c0_69 = arith.constant 0 : index
    %20 = vector.load %arg7[%c0_66, %c0_67, %c0_68, %c0_69] : memref<2x16x16x36xf32, #tpu.memory_space<vmem>>, vector<2x16x16x36xf32>
    %21 = vector.shape_cast %20 : vector<2x16x16x36xf32> to vector<512x36xf32>
    %c0_70 = arith.constant 0 : index
    %c0_71 = arith.constant 0 : index
    %22 = vector.load %arg1[%c0_70, %c0_71] : memref<36x32xf32, #tpu.memory_space<vmem>>, vector<36x32xf32>
    %cst_72 = arith.constant dense<0.000000e+00> : vector<512x32xf32>
    %23 = tpu.matmul %21, %22, %cst_72 {dimension_numbers = #tpu.dot_dimension_numbers<[1], [0], [0], [1], [0, 0, 1, 1], [], []>} : vector<512x36xf32>, vector<36x32xf32>, vector<512x32xf32> -> vector<512x32xf32>
    %cst_73 = arith.constant dense<0.000000e+00> : vector<32xf32>
    %24 = vector.multi_reduction <add>, %23, %cst_73 [0] : vector<512x32xf32> to vector<32xf32>
    %25 = vector.shape_cast %24 : vector<32xf32> to vector<1x32xf32>
    %cst_74 = arith.constant 0.001953125 : f32
    %26 = vector.broadcast %cst_74 : f32 to vector<1x32xf32>
    %27 = arith.mulf %25, %26 : vector<1x32xf32>
    %28 = vector.broadcast %27 : vector<1x32xf32> to vector<512x32xf32>
    %29 = arith.subf %23, %28 : vector<512x32xf32>
    %30 = arith.mulf %29, %29 : vector<512x32xf32>
    %cst_75 = arith.constant dense<0.000000e+00> : vector<32xf32>
    %31 = vector.multi_reduction <add>, %30, %cst_75 [0] : vector<512x32xf32> to vector<32xf32>
    %32 = vector.shape_cast %31 : vector<32xf32> to vector<1x32xf32>
    %cst_76 = arith.constant 0.001953125 : f32
    %33 = vector.broadcast %cst_76 : f32 to vector<1x32xf32>
    %34 = arith.mulf %32, %33 : vector<1x32xf32>
    %c0_77 = arith.constant 0 : index
    %c0_78 = arith.constant 0 : index
    %35 = vector.load %arg2[%c0_77, %c0_78] : memref<1x32xf32, #tpu.memory_space<vmem>>, vector<1x32xf32>
    %cst_79 = arith.constant 9.99999974E-6 : f32
    %36 = vector.broadcast %cst_79 : f32 to vector<1x32xf32>
    %37 = arith.addf %34, %36 : vector<1x32xf32>
    %38 = math.rsqrt %37 : vector<1x32xf32>
    %39 = arith.mulf %35, %38 : vector<1x32xf32>
    %c0_80 = arith.constant 0 : index
    %c0_81 = arith.constant 0 : index
    %40 = vector.load %arg3[%c0_80, %c0_81] : memref<1x32xf32, #tpu.memory_space<vmem>>, vector<1x32xf32>
    %41 = arith.mulf %27, %39 : vector<1x32xf32>
    %42 = arith.subf %40, %41 : vector<1x32xf32>
    %43 = vector.broadcast %39 : vector<1x32xf32> to vector<512x32xf32>
    %44 = arith.mulf %23, %43 : vector<512x32xf32>
    %45 = vector.broadcast %42 : vector<1x32xf32> to vector<512x32xf32>
    %46 = arith.addf %44, %45 : vector<512x32xf32>
    %cst_82 = arith.constant 0.000000e+00 : f32
    %47 = vector.broadcast %cst_82 : f32 to vector<512x32xf32>
    %48 = arith.maximumf %46, %47 : vector<512x32xf32>
    %49 = vector.shape_cast %48 : vector<512x32xf32> to vector<2x16x16x32xf32>
    %c0_83 = arith.constant 0 : index
    %c0_84 = arith.constant 0 : index
    %c0_85 = arith.constant 0 : index
    %c0_86 = arith.constant 0 : index
    %50 = vector.load %arg5[%c0_83, %c0_84, %c0_85, %c0_86] : memref<2x16x16x32xf32, #tpu.memory_space<vmem>>, vector<2x16x16x32xf32>
    tpu.vector_store %arg5[%c0_83, %c0_84, %c0_85, %c0_86], %49 {strides = array<i32>} : memref<2x16x16x32xf32, #tpu.memory_space<vmem>>, vector<2x16x16x32xf32>,
    %cst_87 = arith.constant 0.000000e+00 : f32
    %51 = vector.broadcast %cst_87 : f32 to vector<2x1x18x32xf32>
    %cst_88 = arith.constant 0.000000e+00 : f32
    %52 = vector.broadcast %cst_88 : f32 to vector<2x16x1x32xf32>
    %c0_89 = arith.constant 0 : index
    %c0_90 = arith.constant 0 : index
    %c0_91 = arith.constant 0 : index
    %c0_92 = arith.constant 0 : index
    %53 = vector.load %arg8[%c0_89, %c0_90, %c0_91, %c0_92] : memref<2x18x18x32xf32, #tpu.memory_space<vmem>>, vector<2x1x18x32xf32>
    tpu.vector_store %arg8[%c0_89, %c0_90, %c0_91, %c0_92], %51 {strides = array<i32>} : memref<2x18x18x32xf32, #tpu.memory_space<vmem>>, vector<2x1x18x32xf32>,
    %c0_93 = arith.constant 0 : index
    %c17 = arith.constant 17 : index
    %c0_94 = arith.constant 0 : index
    %c0_95 = arith.constant 0 : index
    %54 = vector.load %arg8[%c0_93, %c17, %c0_94, %c0_95] : memref<2x18x18x32xf32, #tpu.memory_space<vmem>>, vector<2x1x18x32xf32>
    tpu.vector_store %arg8[%c0_93, %c17, %c0_94, %c0_95], %51 {strides = array<i32>} : memref<2x18x18x32xf32, #tpu.memory_space<vmem>>, vector<2x1x18x32xf32>,
    %c0_96 = arith.constant 0 : index
    %c1_97 = arith.constant 1 : index
    %c0_98 = arith.constant 0 : index
    %c0_99 = arith.constant 0 : index
    %55 = vector.load %arg8[%c0_96, %c1_97, %c0_98, %c0_99] : memref<2x18x18x32xf32, #tpu.memory_space<vmem>>, vector<2x16x1x32xf32>
    tpu.vector_store %arg8[%c0_96, %c1_97, %c0_98, %c0_99], %52 {strides = array<i32>} : memref<2x18x18x32xf32, #tpu.memory_space<vmem>>, vector<2x16x1x32xf32>,
    %c0_100 = arith.constant 0 : index
    %c1_101 = arith.constant 1 : index
    %c17_102 = arith.constant 17 : index
    %c0_103 = arith.constant 0 : index
    %56 = vector.load %arg8[%c0_100, %c1_101, %c17_102, %c0_103] : memref<2x18x18x32xf32, #tpu.memory_space<vmem>>, vector<2x16x1x32xf32>
    tpu.vector_store %arg8[%c0_100, %c1_101, %c17_102, %c0_103], %52 {strides = array<i32>} : memref<2x18x18x32xf32, #tpu.memory_space<vmem>>, vector<2x16x1x32xf32>,
    %c0_104 = arith.constant 0 : index
    %c1_105 = arith.constant 1 : index
    %c1_106 = arith.constant 1 : index
    %c0_107 = arith.constant 0 : index
    %57 = vector.load %arg8[%c0_104, %c1_105, %c1_106, %c0_107] : memref<2x18x18x32xf32, #tpu.memory_space<vmem>>, vector<2x16x16x32xf32>
    tpu.vector_store %arg8[%c0_104, %c1_105, %c1_106, %c0_107], %49 {strides = array<i32>} : memref<2x18x18x32xf32, #tpu.memory_space<vmem>>, vector<2x16x16x32xf32>,
    %c0_108 = arith.constant 0 : index
    %c0_109 = arith.constant 0 : index
    %c0_110 = arith.constant 0 : index
    %c0_111 = arith.constant 0 : index
    %58 = vector.load %arg8[%c0_108, %c0_109, %c0_110, %c0_111] : memref<2x18x18x32xf32, #tpu.memory_space<vmem>>, vector<2x16x16x32xf32>
    %c0_112 = arith.constant 0 : index
    %c0_113 = arith.constant 0 : index
    %59 = vector.load %arg4[%c0_112, %c0_113] : memref<9x32xf32, #tpu.memory_space<vmem>>, vector<1x32xf32>
    %60 = vector.shape_cast %59 : vector<1x32xf32> to vector<32xf32>
    %61 = vector.shape_cast %60 : vector<32xf32> to vector<1x1x1x32xf32>
    %62 = vector.broadcast %61 : vector<1x1x1x32xf32> to vector<2x16x16x32xf32>
    %63 = arith.mulf %58, %62 : vector<2x16x16x32xf32>
    %c0_114 = arith.constant 0 : index
    %c0_115 = arith.constant 0 : index
    %c1_116 = arith.constant 1 : index
    %c0_117 = arith.constant 0 : index
    %64 = vector.load %arg8[%c0_114, %c0_115, %c1_116, %c0_117] : memref<2x18x18x32xf32, #tpu.memory_space<vmem>>, vector<2x16x16x32xf32>
    %c1_118 = arith.constant 1 : index
    %c0_119 = arith.constant 0 : index
    %65 = vector.load %arg4[%c1_118, %c0_119] : memref<9x32xf32, #tpu.memory_space<vmem>>, vector<1x32xf32>
    %66 = vector.shape_cast %65 : vector<1x32xf32> to vector<32xf32>
    %67 = vector.shape_cast %66 : vector<32xf32> to vector<1x1x1x32xf32>
    %68 = vector.broadcast %67 : vector<1x1x1x32xf32> to vector<2x16x16x32xf32>
    %69 = arith.mulf %64, %68 : vector<2x16x16x32xf32>
    %70 = arith.addf %63, %69 : vector<2x16x16x32xf32>
    %c0_120 = arith.constant 0 : index
    %c0_121 = arith.constant 0 : index
    %c2 = arith.constant 2 : index
    %c0_122 = arith.constant 0 : index
    %71 = vector.load %arg8[%c0_120, %c0_121, %c2, %c0_122] : memref<2x18x18x32xf32, #tpu.memory_space<vmem>>, vector<2x16x16x32xf32>
    %c2_123 = arith.constant 2 : index
    %c0_124 = arith.constant 0 : index
    %72 = vector.load %arg4[%c2_123, %c0_124] : memref<9x32xf32, #tpu.memory_space<vmem>>, vector<1x32xf32>
    %73 = vector.shape_cast %72 : vector<1x32xf32> to vector<32xf32>
    %74 = vector.shape_cast %73 : vector<32xf32> to vector<1x1x1x32xf32>
    %75 = vector.broadcast %74 : vector<1x1x1x32xf32> to vector<2x16x16x32xf32>
    %76 = arith.mulf %71, %75 : vector<2x16x16x32xf32>
    %77 = arith.addf %70, %76 : vector<2x16x16x32xf32>
    %c0_125 = arith.constant 0 : index
    %c1_126 = arith.constant 1 : index
    %c0_127 = arith.constant 0 : index
    %c0_128 = arith.constant 0 : index
    %78 = vector.load %arg8[%c0_125, %c1_126, %c0_127, %c0_128] : memref<2x18x18x32xf32, #tpu.memory_space<vmem>>, vector<2x16x16x32xf32>
    %c3 = arith.constant 3 : index
    %c0_129 = arith.constant 0 : index
    %79 = vector.load %arg4[%c3, %c0_129] : memref<9x32xf32, #tpu.memory_space<vmem>>, vector<1x32xf32>
    %80 = vector.shape_cast %79 : vector<1x32xf32> to vector<32xf32>
    %81 = vector.shape_cast %80 : vector<32xf32> to vector<1x1x1x32xf32>
    %82 = vector.broadcast %81 : vector<1x1x1x32xf32> to vector<2x16x16x32xf32>
    %83 = arith.mulf %78, %82 : vector<2x16x16x32xf32>
    %84 = arith.addf %77, %83 : vector<2x16x16x32xf32>
    %c0_130 = arith.constant 0 : index
    %c1_131 = arith.constant 1 : index
    %c1_132 = arith.constant 1 : index
    %c0_133 = arith.constant 0 : index
    %85 = vector.load %arg8[%c0_130, %c1_131, %c1_132, %c0_133] : memref<2x18x18x32xf32, #tpu.memory_space<vmem>>, vector<2x16x16x32xf32>
    %c4_134 = arith.constant 4 : index
    %c0_135 = arith.constant 0 : index
    %86 = vector.load %arg4[%c4_134, %c0_135] : memref<9x32xf32, #tpu.memory_space<vmem>>, vector<1x32xf32>
    %87 = vector.shape_cast %86 : vector<1x32xf32> to vector<32xf32>
    %88 = vector.shape_cast %87 : vector<32xf32> to vector<1x1x1x32xf32>
    %89 = vector.broadcast %88 : vector<1x1x1x32xf32> to vector<2x16x16x32xf32>
    %90 = arith.mulf %85, %89 : vector<2x16x16x32xf32>
    %91 = arith.addf %84, %90 : vector<2x16x16x32xf32>
    %c0_136 = arith.constant 0 : index
    %c1_137 = arith.constant 1 : index
    %c2_138 = arith.constant 2 : index
    %c0_139 = arith.constant 0 : index
    %92 = vector.load %arg8[%c0_136, %c1_137, %c2_138, %c0_139] : memref<2x18x18x32xf32, #tpu.memory_space<vmem>>, vector<2x16x16x32xf32>
    %c5 = arith.constant 5 : index
    %c0_140 = arith.constant 0 : index
    %93 = vector.load %arg4[%c5, %c0_140] : memref<9x32xf32, #tpu.memory_space<vmem>>, vector<1x32xf32>
    %94 = vector.shape_cast %93 : vector<1x32xf32> to vector<32xf32>
    %95 = vector.shape_cast %94 : vector<32xf32> to vector<1x1x1x32xf32>
    %96 = vector.broadcast %95 : vector<1x1x1x32xf32> to vector<2x16x16x32xf32>
    %97 = arith.mulf %92, %96 : vector<2x16x16x32xf32>
    %98 = arith.addf %91, %97 : vector<2x16x16x32xf32>
    %c0_141 = arith.constant 0 : index
    %c2_142 = arith.constant 2 : index
    %c0_143 = arith.constant 0 : index
    %c0_144 = arith.constant 0 : index
    %99 = vector.load %arg8[%c0_141, %c2_142, %c0_143, %c0_144] : memref<2x18x18x32xf32, #tpu.memory_space<vmem>>, vector<2x16x16x32xf32>
    %c6 = arith.constant 6 : index
    %c0_145 = arith.constant 0 : index
    %100 = vector.load %arg4[%c6, %c0_145] : memref<9x32xf32, #tpu.memory_space<vmem>>, vector<1x32xf32>
    %101 = vector.shape_cast %100 : vector<1x32xf32> to vector<32xf32>
    %102 = vector.shape_cast %101 : vector<32xf32> to vector<1x1x1x32xf32>
    %103 = vector.broadcast %102 : vector<1x1x1x32xf32> to vector<2x16x16x32xf32>
    %104 = arith.mulf %99, %103 : vector<2x16x16x32xf32>
    %105 = arith.addf %98, %104 : vector<2x16x16x32xf32>
    %c0_146 = arith.constant 0 : index
    %c2_147 = arith.constant 2 : index
    %c1_148 = arith.constant 1 : index
    %c0_149 = arith.constant 0 : index
    %106 = vector.load %arg8[%c0_146, %c2_147, %c1_148, %c0_149] : memref<2x18x18x32xf32, #tpu.memory_space<vmem>>, vector<2x16x16x32xf32>
    %c7 = arith.constant 7 : index
    %c0_150 = arith.constant 0 : index
    %107 = vector.load %arg4[%c7, %c0_150] : memref<9x32xf32, #tpu.memory_space<vmem>>, vector<1x32xf32>
    %108 = vector.shape_cast %107 : vector<1x32xf32> to vector<32xf32>
    %109 = vector.shape_cast %108 : vector<32xf32> to vector<1x1x1x32xf32>
    %110 = vector.broadcast %109 : vector<1x1x1x32xf32> to vector<2x16x16x32xf32>
    %111 = arith.mulf %106, %110 : vector<2x16x16x32xf32>
    %112 = arith.addf %105, %111 : vector<2x16x16x32xf32>
    %c0_151 = arith.constant 0 : index
    %c2_152 = arith.constant 2 : index
    %c2_153 = arith.constant 2 : index
    %c0_154 = arith.constant 0 : index
    %113 = vector.load %arg8[%c0_151, %c2_152, %c2_153, %c0_154] : memref<2x18x18x32xf32, #tpu.memory_space<vmem>>, vector<2x16x16x32xf32>
    %c8_155 = arith.constant 8 : index
    %c0_156 = arith.constant 0 : index
    %114 = vector.load %arg4[%c8_155, %c0_156] : memref<9x32xf32, #tpu.memory_space<vmem>>, vector<1x32xf32>
    %115 = vector.shape_cast %114 : vector<1x32xf32> to vector<32xf32>
    %116 = vector.shape_cast %115 : vector<32xf32> to vector<1x1x1x32xf32>
    %117 = vector.broadcast %116 : vector<1x1x1x32xf32> to vector<2x16x16x32xf32>
    %118 = arith.mulf %113, %117 : vector<2x16x16x32xf32>
    %119 = arith.addf %112, %118 : vector<2x16x16x32xf32>
    %cst_157 = arith.constant 0.000000e+00 : f32
    %120 = vector.broadcast %cst_157 : f32 to vector<2x16x16x32xf32>
    %121 = arith.maximumf %119, %120 : vector<2x16x16x32xf32>
    %c0_158 = arith.constant 0 : index
    %c0_159 = arith.constant 0 : index
    %c0_160 = arith.constant 0 : index
    %c0_161 = arith.constant 0 : index
    %122 = vector.load %arg6[%c0_158, %c0_159, %c0_160, %c0_161] : memref<2x16x16x32xf32, #tpu.memory_space<vmem>>, vector<2x16x16x32xf32>
    tpu.vector_store %arg6[%c0_158, %c0_159, %c0_160, %c0_161], %121 {strides = array<i32>} : memref<2x16x16x32xf32, #tpu.memory_space<vmem>>, vector<2x16x16x32xf32>,
    return
  }
}

</mosaic_0001>

<bundles_post_ra>
// kernel: ghost_module_forward.1
= control target key start
LH: loop header
LB: loop body
LE: loop exit
PB: predicated region body
PF: predicated region fallthrough
CT: control target
= control target key end

     0   :  { %vm22_vm0 = vcmask 293888   ;;  %vm148_vm1 = vcmask 31744   ;;  %v15176_v2 = vmov 0.0   ;;  %s6945_s25 = smov 4   ;;  %vm150_vm2 = vcmask 30720   ;;  %s6946_s21 = smov 8   ;;  %s15169_s0 = inlined_call_operand.vmem [shape: f32[2,16,16,4], index: 0, kind: input, shape index: {}]   ;;  %s15170_s1 = inlined_call_operand.vmem [shape: f32[36,32], index: 1, kind: input, shape index: {}]   ;;  %s15171_s4 = inlined_call_operand.vmem [shape: f32[9,32], index: 4, kind: input, shape index: {}]   ;;  %s15172_s2 = inlined_call_operand.vmem [shape: f32[1,32], index: 2, kind: input, shape index: {}]   ;;  %s15173_s3 = inlined_call_operand.vmem [shape: f32[1,32], index: 3, kind: input, shape index: {}]   ;;  %s15174_s5 = inlined_call_operand.vmem [shape: f32[2,16,16,32], index: 5, kind: output, shape index: {0}]   ;;  %s15175_s6 = inlined_call_operand.vmem [shape: f32[2,16,16,32], index: 6, kind: output, shape index: {1}]  }
   0x1   :  { %v6991_v0 = vld [vmem:[%s15169_s0 + $0x10] sm:$0xff]  ;;  %v6996_v1 = vld [vmem:[%s15169_s0] sm:$0xff]  ;;  %27 = vst.msk [vmem:[#allocation2 + $0x20] sm:$0xff] %vm22_vm0, %v15176_v2  ;;  %28 = vst.msk [vmem:[#allocation2 + $0x28] sm:$0xff] %vm22_vm0, %v15176_v2  ;;  %vm510_vm3 = vcmask 64544   ;;  %vm873_vm4 = vcmask 96320  }
   0x2   :  { %23 = vst.msk [vmem:[#allocation2] sm:$0xff] %vm22_vm0, %v15176_v2  ;;  %24 = vst.msk [vmem:[#allocation2 + $0x8] sm:$0xff] %vm22_vm0, %v15176_v2  ;;  %334 = vrot.lane.b32.xlu1 %v6991_v0, %s6945_s25  ;;  %330 = vrot.lane.b32.xlu0 %v6996_v1, %s6945_s25  ;;  %v213_v3 = vld [vmem:[%s15169_s0 + $0x18] sm:$0xff]  ;;  %v211_v4 = vld [vmem:[%s15169_s0 + $0x8] sm:$0xff]  ;;  %vm871_vm5 = vcmask 97344   ;;  %s6947_s27 = smov 12  }
   0x3   :  { %25 = vst.msk [vmem:[#allocation2 + $0x10] sm:$0xff] %vm22_vm0, %v15176_v2  ;;  %26 = vst.msk [vmem:[#allocation2 + $0x18] sm:$0xff] %vm22_vm0, %v15176_v2  ;;  %v214_v5 = vld [vmem:[%s15169_s0 + $0x20] sm:$0xff]  ;;  %v216_v6 = vld [vmem:[%s15169_s0 + $0x30] sm:$0xff]  ;;  %vm1255_vm6 = vcmask 129120   ;;  %vm1253_vm7 = vcmask 130144  }
   0x4   :  { %29 = vst.msk [vmem:[#allocation2 + $0x30] sm:$0xff] %vm22_vm0, %v15176_v2  ;;  %30 = vst.msk [vmem:[#allocation2 + $0x38] sm:$0xff] %vm22_vm0, %v15176_v2  ;;  %v218_v7 = vld [vmem:[%s15169_s0 + $0x40] sm:$0xff]  ;;  %v220_v8 = vld [vmem:[%s15169_s0 + $0x50] sm:$0xff]  ;;  %s6948_s30 = smov 16   ;;  %s6949_s11 = smov 20  }
   0x5   :  { %31 = vst.msk [vmem:[#allocation2 + $0x40] sm:$0xff] %vm22_vm0, %v15176_v2  ;;  %32 = vst.msk [vmem:[#allocation2 + $0x48] sm:$0xff] %vm22_vm0, %v15176_v2  ;;  %v7157_v9 = vld [vmem:[%s15169_s0 + $0x60] sm:$0xff]  ;;  %v7165_v10 = vld [vmem:[%s15169_s0 + $0x70] sm:$0xff]  ;;  %s6950_s18 = smov 24   ;;  %s6951_s23 = smov 28  }
   0x6   :  { %33 = vst.msk [vmem:[#allocation2 + $0x50] sm:$0xff] %vm22_vm0, %v15176_v2  ;;  %34 = vst.msk [vmem:[#allocation2 + $0x58] sm:$0xff] %vm22_vm0, %v15176_v2  ;;  %336 = vrot.lane.b32.xlu1 %v213_v3, %s6945_s25  ;;  %332 = vrot.lane.b32.xlu0 %v211_v4, %s6945_s25  ;;  %v215_v11 = vld [vmem:[%s15169_s0 + $0x28] sm:$0xff]  ;;  %v7176_v12 = vld [vmem:[%s15169_s0 + $0x80] sm:$0xff]  ;;  %vm3437_vm8 = vcmask 1043456   ;;  %s6952_s8 = smov 32  }
   0x7   :  { %35 = vst.msk [vmem:[#allocation2 + $0x60] sm:$0xff] %vm22_vm0, %v15176_v2  ;;  %36 = vst.msk [vmem:[#allocation2 + $0x68] sm:$0xff] %vm22_vm0, %v15176_v2  ;;  %v7183_v13 = vld [vmem:[%s15169_s0 + $0x90] sm:$0xff]  ;;  %v7188_v14 = vld [vmem:[%s15169_s0 + $0xa0] sm:$0xff]  ;;  %vm1639_vm9 = vcmask 162944   ;;  %vm2026_vm10 = vcmask 194720  }
   0x8   :  { %37 = vst.msk [vmem:[#allocation2 + $0x70] sm:$0xff] %vm22_vm0, %v15176_v2  ;;  %38 = vst.msk [vmem:[#allocation2 + $0x78] sm:$0xff] %vm22_vm0, %v15176_v2  ;;  %v7195_v15 = vld [vmem:[%s15169_s0 + $0xb0] sm:$0xff]  ;;  %v7206_v16 = vld [vmem:[%s15169_s0 + $0xc0] sm:$0xff]  ;;  %vm2024_vm11 = vcmask 195744   ;;  %vm2393_vm12 = vcmask 227520  }
   0x9   :  { %39 = vst.msk [vmem:[#allocation2 + $0x80] sm:$0xff] %vm22_vm0, %v15176_v2  ;;  %40 = vst.msk [vmem:[#allocation2 + $0x88] sm:$0xff] %vm22_vm0, %v15176_v2  ;;  %v217_v17 = vld [vmem:[%s15169_s0 + $0x38] sm:$0xff]  ;;  %v7216_v18 = vld [vmem:[%s15169_s0 + $0xd0] sm:$0xff]  ;;  %vm2391_vm13 = vcmask 228544   ;;  %vm2753_vm14 = vcmask 261344  }
   0xa   :  { %41 = vst.msk [vmem:[#allocation2 + $0x90] sm:$0xff] %vm22_vm0, %v15176_v2  ;;  %42 = vst.msk [vmem:[#allocation2 + $0x98] sm:$0xff] %vm22_vm0, %v15176_v2  ;;  %340 = vrot.lane.b32.xlu1 %v215_v11, %s6945_s25  ;;  %338 = vrot.lane.b32.xlu0 %v214_v5, %s6945_s25  ;;  %v7221_v19 = vld [vmem:[%s15169_s0 + $0xe0] sm:$0xff]  ;;  %v7237_v21 = vld [vmem:[%s15169_s0 + $0x110] sm:$0xff]  ;;  %vm3114_vm15 = vcmask 294144  }
   0xb   :  { %43 = vst.msk [vmem:[#allocation2 + $0xa0] sm:$0xff] %vm22_vm0, %v15176_v2  ;;  %44 = vst.msk [vmem:[#allocation2 + $0xa8] sm:$0xff] %vm22_vm0, %v15176_v2  ;;  %v7228_v20 = vld [vmem:[%s15169_s0 + $0x100] sm:$0xff]  ;;  %v7251_v23 = vld [vmem:[%s15169_s0 + $0x130] sm:$0xff] }
   0xc   :  { %45 = vst.msk [vmem:[#allocation2 + $0xb0] sm:$0xff] %vm22_vm0, %v15176_v2  ;;  %46 = vst.msk [vmem:[#allocation2 + $0xb8] sm:$0xff] %vm22_vm0, %v15176_v2  ;;  %v7242_v22 = vld [vmem:[%s15169_s0 + $0x120] sm:$0xff]  ;;  %v219_v24 = vld [vmem:[%s15169_s0 + $0x48] sm:$0xff] }
   0xd   :  { %47 = vst.msk [vmem:[#allocation2 + $0xc0] sm:$0xff] %vm22_vm0, %v15176_v2  ;;  %48 = vst.msk [vmem:[#allocation2 + $0xc8] sm:$0xff] %vm22_vm0, %v15176_v2  ;;  %v7263_v25 = vld [vmem:[%s15169_s0 + $0x140] sm:$0xff]  ;;  %v7270_v26 = vld [vmem:[%s15169_s0 + $0x150] sm:$0xff] }
   0xe   :  { %49 = vst.msk [vmem:[#allocation2 + $0xd0] sm:$0xff] %vm22_vm0, %v15176_v2  ;;  %50 = vst.msk [vmem:[#allocation2 + $0xd8] sm:$0xff] %vm22_vm0, %v15176_v2  ;;  %344 = vrot.lane.b32.xlu1 %v217_v17, %s6945_s25  ;;  %342 = vrot.lane.b32.xlu0 %v216_v6, %s6945_s25  ;;  %v7275_v27 = vld [vmem:[%s15169_s0 + $0x160] sm:$0xff]  ;;  %v7282_v28 = vld [vmem:[%s15169_s0 + $0x170] sm:$0xff] }
   0xf   :  { %51 = vst.msk [vmem:[#allocation2 + $0xe0] sm:$0xff] %vm22_vm0, %v15176_v2  ;;  %52 = vst.msk [vmem:[#allocation2 + $0xe8] sm:$0xff] %vm22_vm0, %v15176_v2  ;;  %v7293_v29 = vld [vmem:[%s15169_s0 + $0x180] sm:$0xff]  ;;  %v221_v30 = vld [vmem:[%s15169_s0 + $0x58] sm:$0xff] }
  0x10   :  { %53 = vst.msk [vmem:[#allocation2 + $0xf0] sm:$0xff] %vm22_vm0, %v15176_v2  ;;  %54 = vst.msk [vmem:[#allocation2 + $0xf8] sm:$0xff] %vm22_vm0, %v15176_v2  ;;  %v7303_v31 = vld [vmem:[%s15169_s0 + $0x190] sm:$0xff]  ;;  %v7308_v32 = vld [vmem:[%s15169_s0 + $0x1a0] sm:$0xff] }
  0x11   :  { %55 = vst.msk [vmem:[#allocation2 + $0x100] sm:$0xff] %vm22_vm0, %v15176_v2  ;;  %56 = vst.msk [vmem:[#allocation2 + $0x108] sm:$0xff] %vm22_vm0, %v15176_v2  ;;  %v7315_v33 = vld [vmem:[%s15169_s0 + $0x1b0] sm:$0xff]  ;;  %v7324_v34 = vld [vmem:[%s15169_s0 + $0x1c0] sm:$0xff] }
  0x12   :  { %57 = vst.msk [vmem:[#allocation2 + $0x110] sm:$0xff] %vm22_vm0, %v15176_v2  ;;  %58 = vst.msk [vmem:[#allocation2 + $0x118] sm:$0xff] %vm22_vm0, %v15176_v2  ;;  %348 = vrot.lane.b32.xlu1 %v219_v24, %s6945_s25  ;;  %346 = vrot.lane.b32.xlu0 %v218_v7, %s6945_s25  ;;  %v7329_v35 = vld [vmem:[%s15169_s0 + $0x1d0] sm:$0xff]  ;;  %v7338_v36 = vld [vmem:[%s15169_s0 + $0x1e0] sm:$0xff] }
  0x13   :  { %59 = vst.msk [vmem:[#allocation2 + $0x120] sm:$0xff] %vm22_vm0, %v15176_v2  ;;  %60 = vst.msk [vmem:[#allocation2 + $0x128] sm:$0xff] %vm22_vm0, %v15176_v2  ;;  %v223_v37 = vld [vmem:[%s15169_s0 + $0x68] sm:$0xff]  ;;  %v90_v38 = vld [vmem:[%s15169_s0 + $0x18] sm:$0x7f] }
  0x14   :  { %61 = vst.msk [vmem:[#allocation2 + $0x130] sm:$0xff] %vm22_vm0, %v15176_v2  ;;  %62 = vst.msk [vmem:[#allocation2 + $0x138] sm:$0xff] %vm22_vm0, %v15176_v2  ;;  %v88_v39 = vld [vmem:[%s15169_s0 + $0x8] sm:$0x7f]  ;;  %v94_v41 = vld [vmem:[%s15169_s0 + $0x38] sm:$0x7f] }
  0x15   :  { %63 = vst.msk [vmem:[#allocation2 + $0x140] sm:$0xff] %vm22_vm0, %v15176_v2  ;;  %64 = vst.msk [vmem:[#allocation2 + $0x148] sm:$0xff] %vm22_vm0, %v15176_v2  ;;  %v92_v40 = vld [vmem:[%s15169_s0 + $0x28] sm:$0x7f]  ;;  %v225_v43 = vld [vmem:[%s15169_s0 + $0x78] sm:$0xff] }
  0x16   :  { %65 = vst.msk [vmem:[#allocation2 + $0x150] sm:$0xff] %vm22_vm0, %v15176_v2  ;;  %66 = vst.msk [vmem:[#allocation2 + $0x158] sm:$0xff] %vm22_vm0, %v15176_v2  ;;  %352 = vrot.lane.b32.xlu1 %v221_v30, %s6945_s25  ;;  %350 = vrot.lane.b32.xlu0 %v220_v8, %s6945_s25  ;;  %v96_v42 = vld [vmem:[%s15169_s0 + $0x48] sm:$0x7f]  ;;  %v98_v44 = vld [vmem:[%s15169_s0 + $0x58] sm:$0x7f] }
  0x17   :  { %67 = vst.msk [vmem:[#allocation2 + $0x160] sm:$0xff] %vm22_vm0, %v15176_v2  ;;  %68 = vst.msk [vmem:[#allocation2 + $0x168] sm:$0xff] %vm22_vm0, %v15176_v2  ;;  %v100_v45 = vld [vmem:[%s15169_s0 + $0x68] sm:$0x7f]  ;;  %v102_v46 = vld [vmem:[%s15169_s0 + $0x78] sm:$0x7f] }
  0x18   :  { %69 = vst.msk [vmem:[#allocation2 + $0x170] sm:$0xff] %vm22_vm0, %v15176_v2  ;;  %70 = vst.msk [vmem:[#allocation2 + $0x178] sm:$0xff] %vm22_vm0, %v15176_v2  ;;  %v227_v47 = vld [vmem:[%s15169_s0 + $0x88] sm:$0xff]  ;;  %v106_v49 = vld [vmem:[%s15169_s0 + $0x98] sm:$0x7f] }
  0x19   :  { %71 = vst.msk [vmem:[#allocation2 + $0x180] sm:$0xff] %vm22_vm0, %v15176_v2  ;;  %72 = vst.msk [vmem:[#allocation2 + $0x188] sm:$0xff] %vm22_vm0, %v15176_v2  ;;  %v104_v48 = vld [vmem:[%s15169_s0 + $0x88] sm:$0x7f]  ;;  %v110_v51 = vld [vmem:[%s15169_s0 + $0xb8] sm:$0x7f] }
  0x1a   :  { %73 = vst.msk [vmem:[#allocation2 + $0x190] sm:$0xff] %vm22_vm0, %v15176_v2  ;;  %74 = vst.msk [vmem:[#allocation2 + $0x198] sm:$0xff] %vm22_vm0, %v15176_v2  ;;  %356 = vrot.lane.b32.xlu1 %v223_v37, %s6945_s25  ;;  %354 = vrot.lane.b32.xlu0 %v7157_v9, %s6945_s25  ;;  %v108_v50 = vld [vmem:[%s15169_s0 + $0xa8] sm:$0x7f]  ;;  %v229_v52 = vld [vmem:[%s15169_s0 + $0x98] sm:$0xff] }
  0x1b   :  { %75 = vst.msk [vmem:[#allocation2 + $0x1a0] sm:$0xff] %vm22_vm0, %v15176_v2  ;;  %76 = vst.msk [vmem:[#allocation2 + $0x1a8] sm:$0xff] %vm22_vm0, %v15176_v2  ;;  %v112_v53 = vld [vmem:[%s15169_s0 + $0xc8] sm:$0x7f]  ;;  %v114_v55 = vld [vmem:[%s15169_s0 + $0xd8] sm:$0x7f] }
  0x1c   :  { %77 = vst.msk [vmem:[#allocation2 + $0x1b0] sm:$0xff] %vm22_vm0, %v15176_v2  ;;  %78 = vst.msk [vmem:[#allocation2 + $0x1b8] sm:$0xff] %vm22_vm0, %v15176_v2  ;;  %v231_v54 = vld [vmem:[%s15169_s0 + $0xa8] sm:$0xff]  ;;  %v233_v56 = vld [vmem:[%s15169_s0 + $0xb8] sm:$0xff] }
  0x1d   :  { %79 = vst.msk [vmem:[#allocation2 + $0x1c0] sm:$0xff] %vm22_vm0, %v15176_v2  ;;  %80 = vst.msk [vmem:[#allocation2 + $0x1c8] sm:$0xff] %vm22_vm0, %v15176_v2  ;;  %v116_v57 = vld [vmem:[%s15169_s0 + $0xe8] sm:$0x7f]  ;;  %v237_v60 = vld [vmem:[%s15169_s0 + $0xd8] sm:$0xff] }
  0x1e   :  { %81 = vst.msk [vmem:[#allocation2 + $0x1d0] sm:$0xff] %vm22_vm0, %v15176_v2  ;;  %82 = vst.msk [vmem:[#allocation2 + $0x1d8] sm:$0xff] %vm22_vm0, %v15176_v2  ;;  %360 = vrot.lane.b32.xlu1 %v225_v43, %s6945_s25  ;;  %358 = vrot.lane.b32.xlu0 %v7165_v10, %s6945_s25  ;;  %v235_v58 = vld [vmem:[%s15169_s0 + $0xc8] sm:$0xff]  ;;  %v120_v61 = vld [vmem:[%s15169_s0 + $0x118] sm:$0x7f] }
  0x1f   :  { %83 = vst.msk [vmem:[#allocation2 + $0x1e0] sm:$0xff] %vm22_vm0, %v15176_v2  ;;  %84 = vst.msk [vmem:[#allocation2 + $0x1e8] sm:$0xff] %vm22_vm0, %v15176_v2  ;;  %v118_v59 = vld [vmem:[%s15169_s0 + $0x108] sm:$0x7f]  ;;  %v243_v3 = vld [vmem:[%s15169_s0 + $0x118] sm:$0xff] }
  0x20   :  { %85 = vst.msk [vmem:[#allocation2 + $0x1f0] sm:$0xff] %vm22_vm0, %v15176_v2  ;;  %86 = vst.msk [vmem:[#allocation2 + $0x1f8] sm:$0xff] %vm22_vm0, %v15176_v2  ;;  %v239_v62 = vld [vmem:[%s15169_s0 + $0xe8] sm:$0xff]  ;;  %v251_v11 = vld [vmem:[%s15169_s0 + $0x158] sm:$0xff] }
  0x21   :  { %152 = vst.msk [vmem:[#allocation2 + $0x21] sm:$0xff] %vm148_vm1, %v6991_v0  ;;  %149 = vst.msk [vmem:[#allocation2 + $0x11] sm:$0xff] %vm148_vm1, %v6996_v1  ;;  %v122_v63 = vld [vmem:[%s15169_s0 + $0x128] sm:$0x7f]  ;;  %v124_v1 = vld [vmem:[%s15169_s0 + $0x138] sm:$0x7f] }
  0x22   :  { %154 = vst.msk [vmem:[#allocation2 + $0x31] sm:$0xff] %vm148_vm1, %v214_v5  ;;  %156 = vst.msk [vmem:[#allocation2 + $0x41] sm:$0xff] %vm148_vm1, %v216_v6  ;;  %364 = vrot.lane.b32.xlu1 %v227_v47, %s6945_s25  ;;  %362 = vrot.lane.b32.xlu0 %v7176_v12, %s6945_s25  ;;  %v241_v0 = vld [vmem:[%s15169_s0 + $0x108] sm:$0xff]  ;;  %v128_v6 = vld [vmem:[%s15169_s0 + $0x158] sm:$0x7f] }
  0x23   :  { %158 = vst.msk [vmem:[#allocation2 + $0x51] sm:$0xff] %vm148_vm1, %v218_v7  ;;  %160 = vst.msk [vmem:[#allocation2 + $0x61] sm:$0xff] %vm148_vm1, %v220_v8  ;;  %v126_v4 = vld [vmem:[%s15169_s0 + $0x148] sm:$0x7f]  ;;  %v247_v7 = vld [vmem:[%s15169_s0 + $0x138] sm:$0xff] }
  0x24   :  { %162 = vst.msk [vmem:[#allocation2 + $0x71] sm:$0xff] %vm148_vm1, %v7157_v9  ;;  %164 = vst.msk [vmem:[#allocation2 + $0x81] sm:$0xff] %vm148_vm1, %v7165_v10  ;;  %v245_v5 = vld [vmem:[%s15169_s0 + $0x128] sm:$0xff]  ;;  %v132_v10 = vld [vmem:[%s15169_s0 + $0x178] sm:$0x7f] }
  0x25   :  { %166 = vst.msk [vmem:[#allocation2 + $0x91] sm:$0xff] %vm148_vm1, %v7176_v12  ;;  %168 = vst.msk [vmem:[#allocation2 + $0xa1] sm:$0xff] %vm148_vm1, %v7183_v13  ;;  %v130_v8 = vld [vmem:[%s15169_s0 + $0x168] sm:$0x7f]  ;;  %v577_v43 = vld [vmem:[%s15169_s0 + $0x31] sm:$0xff] }
  0x26   :  { %170 = vst.msk [vmem:[#allocation2 + $0xb1] sm:$0xff] %vm148_vm1, %v7188_v14  ;;  %172 = vst.msk [vmem:[#allocation2 + $0xc1] sm:$0xff] %vm148_vm1, %v7195_v15  ;;  %368 = vrot.lane.b32.xlu1 %v229_v52, %s6945_s25  ;;  %366 = vrot.lane.b32.xlu0 %v7183_v13, %s6945_s25  ;;  %v249_v9 = vld [vmem:[%s15169_s0 + $0x148] sm:$0xff] }
  0x27   :  { %174 = vst.msk [vmem:[#allocation2 + $0xd1] sm:$0xff] %vm148_vm1, %v7206_v16  ;;  %176 = vst.msk [vmem:[#allocation2 + $0xe1] sm:$0xff] %vm148_vm1, %v7216_v18  ;;  %v134_v12 = vld [vmem:[%s15169_s0 + $0x188] sm:$0x7f] }
  0x28   :  { %178 = vst.msk [vmem:[#allocation2 + $0xf1] sm:$0xff] %vm148_vm1, %v7221_v19  ;;  %180 = vst.msk [vmem:[#allocation2 + $0x111] sm:$0xff] %vm148_vm1, %v7228_v20  ;;  %v253_v13 = vld [vmem:[%s15169_s0 + $0x168] sm:$0xff] }
  0x29   :  { %182 = vst.msk [vmem:[#allocation2 + $0x121] sm:$0xff] %vm148_vm1, %v7237_v21  ;;  %184 = vst.msk [vmem:[#allocation2 + $0x131] sm:$0xff] %vm148_vm1, %v7242_v22  ;;  %v257_v17 = vld [vmem:[%s15169_s0 + $0x188] sm:$0xff] }
  0x2a   :  { %186 = vst.msk [vmem:[#allocation2 + $0x141] sm:$0xff] %vm148_vm1, %v7251_v23  ;;  %188 = vst.msk [vmem:[#allocation2 + $0x151] sm:$0xff] %vm148_vm1, %v7263_v25  ;;  %372 = vrot.lane.b32.xlu1 %v231_v54, %s6945_s25  ;;  %370 = vrot.lane.b32.xlu0 %v7188_v14, %s6945_s25  ;;  %v136_v14 = vld [vmem:[%s15169_s0 + $0x198] sm:$0x7f]  ;;  %v146_v24 = vld [vmem:[%s15169_s0 + $0x1e8] sm:$0x7f] }
  0x2b   :  { %190 = vst.msk [vmem:[#allocation2 + $0x161] sm:$0xff] %vm148_vm1, %v7270_v26  ;;  %192 = vst.msk [vmem:[#allocation2 + $0x171] sm:$0xff] %vm148_vm1, %v7275_v27  ;;  %v572_v30 = vld [vmem:[%s15169_s0 + $0x9] sm:$0x7f]  ;;  %v579_v47 = vld [vmem:[%s15169_s0 + $0x41] sm:$0xff] }
  0x2c   :  { %194 = vst.msk [vmem:[#allocation2 + $0x181] sm:$0xff] %vm148_vm1, %v7282_v28  ;;  %196 = vst.msk [vmem:[#allocation2 + $0x191] sm:$0xff] %vm148_vm1, %v7293_v29  ;;  %v584_v54 = vld [vmem:[%s15169_s0 + $0x69] sm:$0x7f] }
  0x2d   :  { %198 = vst.msk [vmem:[#allocation2 + $0x1a1] sm:$0xff] %vm148_vm1, %v7303_v31  ;;  %200 = vst.msk [vmem:[#allocation2 + $0x1b1] sm:$0xff] %vm148_vm1, %v7308_v32 }
  0x2e   :  { %202 = vst.msk [vmem:[#allocation2 + $0x1c1] sm:$0xff] %vm148_vm1, %v7315_v33  ;;  %204 = vst.msk [vmem:[#allocation2 + $0x1d1] sm:$0xff] %vm148_vm1, %v7324_v34  ;;  %376 = vrot.lane.b32.xlu1 %v233_v56, %s6945_s25  ;;  %374 = vrot.lane.b32.xlu0 %v7195_v15, %s6945_s25  ;;  %v255_v15 = vld [vmem:[%s15169_s0 + $0x178] sm:$0xff] }
  0x2f   :  { %206 = vst.msk [vmem:[#allocation2 + $0x1e1] sm:$0xff] %vm148_vm1, %v7329_v35  ;;  %208 = vst.msk [vmem:[#allocation2 + $0x1f1] sm:$0xff] %vm148_vm1, %v7338_v36  ;;  %vm3116_vm1 = vcmask 293120  }
  0x30   :  { %153 = vst.msk [vmem:[#allocation2 + $0x29] sm:$0x7f] %vm150_vm2, %v90_v38  ;;  %151 = vst.msk [vmem:[#allocation2 + $0x19] sm:$0x7f] %vm150_vm2, %v88_v39  ;;  %v576_v38 = vld [vmem:[%s15169_s0 + $0x29] sm:$0x7f] }
  0x31   :  { %155 = vst.msk [vmem:[#allocation2 + $0x39] sm:$0x7f] %vm150_vm2, %v92_v40  ;;  %157 = vst.msk [vmem:[#allocation2 + $0x49] sm:$0x7f] %vm150_vm2, %v94_v41  ;;  %v575_v39 = vld [vmem:[%s15169_s0 + $0x21] sm:$0xff] }
  0x32   :  { %159 = vst.msk [vmem:[#allocation2 + $0x59] sm:$0x7f] %vm150_vm2, %v96_v42  ;;  %161 = vst.msk [vmem:[#allocation2 + $0x69] sm:$0x7f] %vm150_vm2, %v98_v44  ;;  %380 = vrot.lane.b32.xlu1 %v235_v58, %s6945_s25  ;;  %378 = vrot.lane.b32.xlu0 %v7206_v16, %s6945_s25  ;;  %v138_v16 = vld [vmem:[%s15169_s0 + $0x1a8] sm:$0x7f] }
  0x33   :  { %163 = vst.msk [vmem:[#allocation2 + $0x79] sm:$0x7f] %vm150_vm2, %v100_v45  ;;  %165 = vst.msk [vmem:[#allocation2 + $0x89] sm:$0x7f] %vm150_vm2, %v102_v46  ;;  %v578_v42 = vld [vmem:[%s15169_s0 + $0x39] sm:$0x7f] }
  0x34   :  { %167 = vst.msk [vmem:[#allocation2 + $0x99] sm:$0x7f] %vm150_vm2, %v104_v48  ;;  %169 = vst.msk [vmem:[#allocation2 + $0xa9] sm:$0x7f] %vm150_vm2, %v106_v49  ;;  %v580_v46 = vld [vmem:[%s15169_s0 + $0x49] sm:$0x7f] }
  0x35   :  { %171 = vst.msk [vmem:[#allocation2 + $0xb9] sm:$0x7f] %vm150_vm2, %v108_v50  ;;  %173 = vst.msk [vmem:[#allocation2 + $0xc9] sm:$0x7f] %vm150_vm2, %v110_v51  ;;  %v582_v50 = vld [vmem:[%s15169_s0 + $0x59] sm:$0x7f] }
  0x36   :  { %175 = vst.msk [vmem:[#allocation2 + $0xd9] sm:$0x7f] %vm150_vm2, %v112_v53  ;;  %177 = vst.msk [vmem:[#allocation2 + $0xe9] sm:$0x7f] %vm150_vm2, %v114_v55  ;;  %384 = vrot.lane.b32.xlu1 %v237_v60, %s6945_s25  ;;  %382 = vrot.lane.b32.xlu0 %v7216_v18, %s6945_s25  ;;  %v140_v18 = vld [vmem:[%s15169_s0 + $0x1b8] sm:$0x7f] }
  0x37   :  { %179 = vst.msk [vmem:[#allocation2 + $0xf9] sm:$0x7f] %vm150_vm2, %v116_v57  ;;  %181 = vst.msk [vmem:[#allocation2 + $0x119] sm:$0x7f] %vm150_vm2, %v118_v59  ;;  %v581_v51 = vld [vmem:[%s15169_s0 + $0x51] sm:$0xff]  ;;  %v583_v55 = vld [vmem:[%s15169_s0 + $0x61] sm:$0xff] }
  0x38   :  { %183 = vst.msk [vmem:[#allocation2 + $0x129] sm:$0x7f] %vm150_vm2, %v120_v61  ;;  %185 = vst.msk [vmem:[#allocation2 + $0x139] sm:$0x7f] %vm150_vm2, %v122_v63  ;;  %v586_v58 = vld [vmem:[%s15169_s0 + $0x79] sm:$0x7f] }
  0x39   :  { %187 = vst.msk [vmem:[#allocation2 + $0x149] sm:$0x7f] %vm150_vm2, %v124_v1  ;;  %189 = vst.msk [vmem:[#allocation2 + $0x159] sm:$0x7f] %vm150_vm2, %v126_v4  ;;  %v585_v59 = vld [vmem:[%s15169_s0 + $0x71] sm:$0xff]  ;;  %v587_v63 = vld [vmem:[%s15169_s0 + $0x81] sm:$0xff] }
  0x3a   :  { %388 = vrot.lane.b32.xlu1 %v239_v62, %s6945_s25  ;;  %386 = vrot.lane.b32.xlu0 %v7221_v19, %s6945_s25  ;;  %191 = vst.msk [vmem:[#allocation2 + $0x169] sm:$0x7f] %vm150_vm2, %v128_v6  ;;  %193 = vst.msk [vmem:[#allocation2 + $0x179] sm:$0x7f] %vm150_vm2, %v130_v8  ;;  %v259_v19 = vld [vmem:[%s15169_s0 + $0x198] sm:$0xff]  ;;  %v591_v8 = vld [vmem:[%s15169_s0 + $0xa1] sm:$0xff] }
  0x3b   :  { %195 = vst.msk [vmem:[#allocation2 + $0x189] sm:$0x7f] %vm150_vm2, %v132_v10  ;;  %197 = vst.msk [vmem:[#allocation2 + $0x199] sm:$0x7f] %vm150_vm2, %v134_v12  ;;  %v588_v62 = vld [vmem:[%s15169_s0 + $0x89] sm:$0x7f] }
  0x3c   :  { %199 = vst.msk [vmem:[#allocation2 + $0x1a9] sm:$0x7f] %vm150_vm2, %v136_v14  ;;  %201 = vst.msk [vmem:[#allocation2 + $0x1b9] sm:$0x7f] %vm150_vm2, %v138_v16  ;;  %v589_v4 = vld [vmem:[%s15169_s0 + $0x91] sm:$0xff]  ;;  %v595_v16 = vld [vmem:[%s15169_s0 + $0xc1] sm:$0xff] }
  0x3d   :  { %203 = vst.msk [vmem:[#allocation2 + $0x1c9] sm:$0x7f] %vm150_vm2, %v140_v18  ;;  %209 = vst.msk [vmem:[#allocation2 + $0x1f9] sm:$0x7f] %vm150_vm2, %v146_v24  ;;  %v593_v12 = vld [vmem:[%s15169_s0 + $0xb1] sm:$0xff]  ;;  %v599_v24 = vld [vmem:[%s15169_s0 + $0xe1] sm:$0xff] }
  0x3e   :  { %392 = vrot.lane.b32.xlu1 %v241_v0, %s6945_s25  ;;  %390 = vrot.lane.b32.xlu0 %v7228_v20, %s6945_s25  ;;  %v142_v20 = vld [vmem:[%s15169_s0 + $0x1c8] sm:$0x7f] }
  0x3f   :  { %205 = vst.msk [vmem:[#allocation2 + $0x1d9] sm:$0x7f] %vm150_vm2, %v142_v20  ;;  %v597_v20 = vld [vmem:[%s15169_s0 + $0xd1] sm:$0xff] }
  0x42   :  { %396 = vrot.lane.b32.xlu1 %v243_v3, %s6945_s25  ;;  %394 = vrot.lane.b32.xlu0 %v7237_v21, %s6945_s25  ;;  %v261_v21 = vld [vmem:[%s15169_s0 + $0x1a8] sm:$0xff]  ;;  %v590_v3 = vld [vmem:[%s15169_s0 + $0x99] sm:$0x7f] }
  0x46   :  { %400 = vrot.lane.b32.xlu1 %v245_v5, %s6945_s25  ;;  %398 = vrot.lane.b32.xlu0 %v7242_v22, %s6945_s25  ;;  %v144_v22 = vld [vmem:[%s15169_s0 + $0x1d8] sm:$0x7f] }
  0x47   :  { %207 = vst.msk [vmem:[#allocation2 + $0x1e9] sm:$0x7f] %vm150_vm2, %v144_v22  ;;  %vm3826_vm2 = vcmask 261120  }
  0x48   :  { %4498 = vst.msk [vmem:[#allocation3] sm:$0xff] %vm3826_vm2, %v15176_v2  ;;  %4499 = vst.msk [vmem:[#allocation3 + $0x8] sm:$0xff] %vm3826_vm2, %v15176_v2 }
  0x49   :  { %4502 = vst.msk [vmem:[#allocation3 + $0x1b0] sm:$0xff] %vm3826_vm2, %v15176_v2  ;;  %4503 = vst.msk [vmem:[#allocation3 + $0x1b8] sm:$0xff] %vm3826_vm2, %v15176_v2 }
  0x4a   :  { %404 = vrot.lane.b32.xlu1 %v247_v7, %s6945_s25  ;;  %402 = vrot.lane.b32.xlu0 %v7251_v23, %s6945_s25  ;;  %v263_v23 = vld [vmem:[%s15169_s0 + $0x1b8] sm:$0xff]  ;;  %v592_v7 = vld [vmem:[%s15169_s0 + $0xa9] sm:$0x7f]  ;;  %4506 = vst.msk [vmem:[#allocation3 + $0x198] sm:$0xff] %vm3826_vm2, %v15176_v2  ;;  %4507 = vst.msk [vmem:[#allocation3 + $0x1a0] sm:$0xff] %vm3826_vm2, %v15176_v2 }
  0x4b   :  { %4509 = vst.msk [vmem:[#allocation3 + $0x348] sm:$0xff] %vm3826_vm2, %v15176_v2  ;;  %4510 = vst.msk [vmem:[#allocation3 + $0x350] sm:$0xff] %vm3826_vm2, %v15176_v2 }
  0x4e   :  { %408 = vrot.lane.b32.xlu1 %v249_v9, %s6945_s25  ;;  %406 = vrot.lane.b32.xlu0 %v7263_v25, %s6945_s25  ;;  %v265_v25 = vld [vmem:[%s15169_s0 + $0x1c8] sm:$0xff] }
  0x52   :  { %412 = vrot.lane.b32.xlu1 %v251_v11, %s6945_s25  ;;  %410 = vrot.lane.b32.xlu0 %v7270_v26, %s6945_s25  ;;  %v267_v26 = vld [vmem:[%s15169_s0 + $0x1d8] sm:$0xff] }
  0x53   :  { %v594_v11 = vld [vmem:[%s15169_s0 + $0xb9] sm:$0x7f] }
  0x56   :  { %416 = vrot.lane.b32.xlu1 %v253_v13, %s6945_s25  ;;  %414 = vrot.lane.b32.xlu0 %v7275_v27, %s6945_s25  ;;  %v269_v27 = vld [vmem:[%s15169_s0 + $0x1e8] sm:$0xff] }
  0x5a   :  { %420 = vrot.lane.b32.xlu1 %v255_v15, %s6945_s25  ;;  %418 = vrot.lane.b32.xlu0 %v7282_v28, %s6945_s25  ;;  %v596_v15 = vld [vmem:[%s15169_s0 + $0xc9] sm:$0x7f] }
  0x5e   :  { %424 = vrot.lane.b32.xlu1 %v257_v17, %s6945_s25  ;;  %422 = vrot.lane.b32.xlu0 %v7293_v29, %s6945_s25 }
  0x62   :  { %428 = vrot.lane.b32.xlu1 %v259_v19, %s6945_s25  ;;  %426 = vrot.lane.b32.xlu0 %v7303_v31, %s6945_s25  ;;  %v571_v31 = vld [vmem:[%s15169_s0 + $0x1] sm:$0xff]  ;;  %v598_v19 = vld [vmem:[%s15169_s0 + $0xd9] sm:$0x7f] }
  0x66   :  { %432 = vrot.lane.b32.xlu1 %v261_v21, %s6945_s25  ;;  %430 = vrot.lane.b32.xlu0 %v7308_v32, %s6945_s25 }
  0x6a   :  { %436 = vrot.lane.b32.xlu1 %v263_v23, %s6945_s25  ;;  %434 = vrot.lane.b32.xlu0 %v7315_v33, %s6945_s25  ;;  %v600_v23 = vld [vmem:[%s15169_s0 + $0xe9] sm:$0x7f] }
  0x6e   :  { %440 = vrot.lane.b32.xlu1 %v265_v25, %s6945_s25  ;;  %438 = vrot.lane.b32.xlu0 %v7324_v34, %s6945_s25  ;;  %v574_v34 = vld [vmem:[%s15169_s0 + $0x19] sm:$0x7f] }
  0x72   :  { %444 = vrot.lane.b32.xlu1 %v267_v26, %s6945_s25  ;;  %442 = vrot.lane.b32.xlu0 %v7329_v35, %s6945_s25  ;;  %v573_v35 = vld [vmem:[%s15169_s0 + $0x11] sm:$0xff] }
  0x74   :  { %v335_v28 = vpop.permute.xlu1 %334  ;;  %v331_v29 = vpop.permute.xlu0 %330 }
  0x75   :  { %513 = vst.msk [vmem:[#allocation2 + $0x20] sm:$0xff] %vm510_vm3, %v335_v28  ;;  %511 = vst.msk [vmem:[#allocation2 + $0x10] sm:$0xff] %vm510_vm3, %v331_v29  ;;  %v601_v28 = vld [vmem:[%s15169_s0 + $0x101] sm:$0xff] }
  0x76   :  { %448 = vrot.lane.b32.xlu1 %v269_v27, %s6945_s25  ;;  %446 = vrot.lane.b32.xlu0 %v7338_v36, %s6945_s25  ;;  %v602_v27 = vld [vmem:[%s15169_s0 + $0x109] sm:$0x7f] }
  0x78   :  { %v337_v32 = vpop.permute.xlu1 %336  ;;  %v333_v33 = vpop.permute.xlu0 %332 }
  0x79   :  { %514 = vst.msk [vmem:[#allocation2 + $0x28] sm:$0xff] %vm510_vm3, %v337_v32  ;;  %512 = vst.msk [vmem:[#allocation2 + $0x18] sm:$0xff] %vm510_vm3, %v333_v33  ;;  %v603_v32 = vld [vmem:[%s15169_s0 + $0x111] sm:$0xff] }
  0x7a   :  { %693 = vrot.lane.b32.xlu1 %v572_v30, %s6946_s21  ;;  %691 = vrot.lane.b32.xlu0 %v571_v31, %s6946_s21  ;;  %v604_v31 = vld [vmem:[%s15169_s0 + $0x119] sm:$0x7f] }
  0x7c   :  { %v341_v36 = vpop.permute.xlu1 %340  ;;  %v339_v37 = vpop.permute.xlu0 %338 }
  0x7d   :  { %516 = vst.msk [vmem:[#allocation2 + $0x38] sm:$0xff] %vm510_vm3, %v341_v36  ;;  %515 = vst.msk [vmem:[#allocation2 + $0x30] sm:$0xff] %vm510_vm3, %v339_v37  ;;  %v605_v36 = vld [vmem:[%s15169_s0 + $0x121] sm:$0xff] }
  0x7e   :  { %697 = vrot.lane.b32.xlu1 %v574_v34, %s6946_s21  ;;  %695 = vrot.lane.b32.xlu0 %v573_v35, %s6946_s21  ;;  %v606_v35 = vld [vmem:[%s15169_s0 + $0x129] sm:$0x7f] }
  0x80   :  { %v345_v40 = vpop.permute.xlu1 %344  ;;  %v343_v41 = vpop.permute.xlu0 %342 }
  0x81   :  { %518 = vst.msk [vmem:[#allocation2 + $0x48] sm:$0xff] %vm510_vm3, %v345_v40  ;;  %517 = vst.msk [vmem:[#allocation2 + $0x40] sm:$0xff] %vm510_vm3, %v343_v41  ;;  %v607_v40 = vld [vmem:[%s15169_s0 + $0x131] sm:$0xff] }
  0x82   :  { %701 = vrot.lane.b32.xlu1 %v576_v38, %s6946_s21  ;;  %699 = vrot.lane.b32.xlu0 %v575_v39, %s6946_s21  ;;  %v608_v39 = vld [vmem:[%s15169_s0 + $0x139] sm:$0x7f] }
  0x84   :  { %v349_v44 = vpop.permute.xlu1 %348  ;;  %v347_v45 = vpop.permute.xlu0 %346 }
  0x85   :  { %520 = vst.msk [vmem:[#allocation2 + $0x58] sm:$0xff] %vm510_vm3, %v349_v44  ;;  %519 = vst.msk [vmem:[#allocation2 + $0x50] sm:$0xff] %vm510_vm3, %v347_v45  ;;  %v609_v44 = vld [vmem:[%s15169_s0 + $0x141] sm:$0xff] }
  0x86   :  { %705 = vrot.lane.b32.xlu1 %v578_v42, %s6946_s21  ;;  %703 = vrot.lane.b32.xlu0 %v577_v43, %s6946_s21  ;;  %v610_v43 = vld [vmem:[%s15169_s0 + $0x149] sm:$0x7f] }
  0x88   :  { %v353_v48 = vpop.permute.xlu1 %352  ;;  %v351_v49 = vpop.permute.xlu0 %350 }
  0x89   :  { %522 = vst.msk [vmem:[#allocation2 + $0x68] sm:$0xff] %vm510_vm3, %v353_v48  ;;  %521 = vst.msk [vmem:[#allocation2 + $0x60] sm:$0xff] %vm510_vm3, %v351_v49  ;;  %v611_v48 = vld [vmem:[%s15169_s0 + $0x151] sm:$0xff] }
  0x8a   :  { %709 = vrot.lane.b32.xlu1 %v580_v46, %s6946_s21  ;;  %707 = vrot.lane.b32.xlu0 %v579_v47, %s6946_s21  ;;  %v612_v47 = vld [vmem:[%s15169_s0 + $0x159] sm:$0x7f] }
  0x8c   :  { %v357_v52 = vpop.permute.xlu1 %356  ;;  %v355_v53 = vpop.permute.xlu0 %354 }
  0x8d   :  { %524 = vst.msk [vmem:[#allocation2 + $0x78] sm:$0xff] %vm510_vm3, %v357_v52  ;;  %523 = vst.msk [vmem:[#allocation2 + $0x70] sm:$0xff] %vm510_vm3, %v355_v53  ;;  %v613_v52 = vld [vmem:[%s15169_s0 + $0x161] sm:$0xff] }
  0x8e   :  { %713 = vrot.lane.b32.xlu1 %v582_v50, %s6946_s21  ;;  %711 = vrot.lane.b32.xlu0 %v581_v51, %s6946_s21  ;;  %v614_v51 = vld [vmem:[%s15169_s0 + $0x169] sm:$0x7f] }
  0x90   :  { %v361_v56 = vpop.permute.xlu1 %360  ;;  %v359_v57 = vpop.permute.xlu0 %358 }
  0x91   :  { %526 = vst.msk [vmem:[#allocation2 + $0x88] sm:$0xff] %vm510_vm3, %v361_v56  ;;  %525 = vst.msk [vmem:[#allocation2 + $0x80] sm:$0xff] %vm510_vm3, %v359_v57  ;;  %v615_v56 = vld [vmem:[%s15169_s0 + $0x171] sm:$0xff] }
  0x92   :  { %717 = vrot.lane.b32.xlu1 %v584_v54, %s6946_s21  ;;  %715 = vrot.lane.b32.xlu0 %v583_v55, %s6946_s21  ;;  %v616_v55 = vld [vmem:[%s15169_s0 + $0x179] sm:$0x7f] }
  0x94   :  { %v365_v60 = vpop.permute.xlu1 %364  ;;  %v363_v61 = vpop.permute.xlu0 %362 }
  0x95   :  { %528 = vst.msk [vmem:[#allocation2 + $0x98] sm:$0xff] %vm510_vm3, %v365_v60  ;;  %527 = vst.msk [vmem:[#allocation2 + $0x90] sm:$0xff] %vm510_vm3, %v363_v61  ;;  %v617_v60 = vld [vmem:[%s15169_s0 + $0x181] sm:$0xff] }
  0x96   :  { %721 = vrot.lane.b32.xlu1 %v586_v58, %s6946_s21  ;;  %719 = vrot.lane.b32.xlu0 %v585_v59, %s6946_s21  ;;  %v618_v59 = vld [vmem:[%s15169_s0 + $0x189] sm:$0x7f] }
  0x98   :  { %v369_v0 = vpop.permute.xlu1 %368  ;;  %v367_v1 = vpop.permute.xlu0 %366 }
  0x99   :  { %530 = vst.msk [vmem:[#allocation2 + $0xa8] sm:$0xff] %vm510_vm3, %v369_v0  ;;  %529 = vst.msk [vmem:[#allocation2 + $0xa0] sm:$0xff] %vm510_vm3, %v367_v1  ;;  %v619_v0 = vld [vmem:[%s15169_s0 + $0x191] sm:$0xff] }
  0x9a   :  { %725 = vrot.lane.b32.xlu1 %v588_v62, %s6946_s21  ;;  %723 = vrot.lane.b32.xlu0 %v587_v63, %s6946_s21  ;;  %v620_v63 = vld [vmem:[%s15169_s0 + $0x199] sm:$0x7f] }
  0x9c   :  { %v373_v5 = vpop.permute.xlu1 %372  ;;  %v371_v6 = vpop.permute.xlu0 %370 }
  0x9d   :  { %532 = vst.msk [vmem:[#allocation2 + $0xb8] sm:$0xff] %vm510_vm3, %v373_v5  ;;  %531 = vst.msk [vmem:[#allocation2 + $0xb0] sm:$0xff] %vm510_vm3, %v371_v6  ;;  %v621_v5 = vld [vmem:[%s15169_s0 + $0x1a1] sm:$0xff] }
  0x9e   :  { %729 = vrot.lane.b32.xlu1 %v590_v3, %s6946_s21  ;;  %727 = vrot.lane.b32.xlu0 %v589_v4, %s6946_s21  ;;  %v622_v4 = vld [vmem:[%s15169_s0 + $0x1a9] sm:$0x7f] }
  0xa0   :  { %v377_v9 = vpop.permute.xlu1 %376  ;;  %v375_v10 = vpop.permute.xlu0 %374 }
  0xa1   :  { %534 = vst.msk [vmem:[#allocation2 + $0xc8] sm:$0xff] %vm510_vm3, %v377_v9  ;;  %533 = vst.msk [vmem:[#allocation2 + $0xc0] sm:$0xff] %vm510_vm3, %v375_v10  ;;  %v623_v9 = vld [vmem:[%s15169_s0 + $0x1b1] sm:$0xff] }
  0xa2   :  { %733 = vrot.lane.b32.xlu1 %v592_v7, %s6946_s21  ;;  %731 = vrot.lane.b32.xlu0 %v591_v8, %s6946_s21  ;;  %v624_v8 = vld [vmem:[%s15169_s0 + $0x1b9] sm:$0x7f] }
  0xa4   :  { %v381_v13 = vpop.permute.xlu1 %380  ;;  %v379_v14 = vpop.permute.xlu0 %378 }
  0xa5   :  { %536 = vst.msk [vmem:[#allocation2 + $0xd8] sm:$0xff] %vm510_vm3, %v381_v13  ;;  %535 = vst.msk [vmem:[#allocation2 + $0xd0] sm:$0xff] %vm510_vm3, %v379_v14  ;;  %v625_v13 = vld [vmem:[%s15169_s0 + $0x1c1] sm:$0xff] }
  0xa6   :  { %737 = vrot.lane.b32.xlu1 %v594_v11, %s6946_s21  ;;  %735 = vrot.lane.b32.xlu0 %v593_v12, %s6946_s21  ;;  %v626_v12 = vld [vmem:[%s15169_s0 + $0x1c9] sm:$0x7f] }
  0xa8   :  { %v385_v17 = vpop.permute.xlu1 %384  ;;  %v383_v18 = vpop.permute.xlu0 %382 }
  0xa9   :  { %538 = vst.msk [vmem:[#allocation2 + $0xe8] sm:$0xff] %vm510_vm3, %v385_v17  ;;  %537 = vst.msk [vmem:[#allocation2 + $0xe0] sm:$0xff] %vm510_vm3, %v383_v18  ;;  %v627_v17 = vld [vmem:[%s15169_s0 + $0x1d1] sm:$0xff] }
  0xaa   :  { %741 = vrot.lane.b32.xlu1 %v596_v15, %s6946_s21  ;;  %739 = vrot.lane.b32.xlu0 %v595_v16, %s6946_s21  ;;  %v628_v16 = vld [vmem:[%s15169_s0 + $0x1d9] sm:$0x7f] }
  0xac   :  { %v389_v21 = vpop.permute.xlu1 %388  ;;  %v387_v22 = vpop.permute.xlu0 %386 }
  0xad   :  { %540 = vst.msk [vmem:[#allocation2 + $0xf8] sm:$0xff] %vm510_vm3, %v389_v21  ;;  %539 = vst.msk [vmem:[#allocation2 + $0xf0] sm:$0xff] %vm510_vm3, %v387_v22  ;;  %v629_v21 = vld [vmem:[%s15169_s0 + $0x1e1] sm:$0xff] }
  0xae   :  { %745 = vrot.lane.b32.xlu1 %v598_v19, %s6946_s21  ;;  %743 = vrot.lane.b32.xlu0 %v597_v20, %s6946_s21  ;;  %v630_v20 = vld [vmem:[%s15169_s0 + $0x1e9] sm:$0x7f] }
  0xb0   :  { %v393_v25 = vpop.permute.xlu1 %392  ;;  %v391_v26 = vpop.permute.xlu0 %390 }
  0xb1   :  { %542 = vst.msk [vmem:[#allocation2 + $0x118] sm:$0xff] %vm510_vm3, %v393_v25  ;;  %541 = vst.msk [vmem:[#allocation2 + $0x110] sm:$0xff] %vm510_vm3, %v391_v26  ;;  %v7918_v25 = vld [vmem:[%s15169_s0] sm:$0xff] }
  0xb2   :  { %749 = vrot.lane.b32.xlu1 %v600_v23, %s6946_s21  ;;  %747 = vrot.lane.b32.xlu0 %v599_v24, %s6946_s21  ;;  %v934_v24 = vld [vmem:[%s15169_s0 + $0x8] sm:$0x7f] }
  0xb4   :  { %v397_v29 = vpop.permute.xlu1 %396  ;;  %v395_v30 = vpop.permute.xlu0 %394 }
  0xb5   :  { %544 = vst.msk [vmem:[#allocation2 + $0x128] sm:$0xff] %vm510_vm3, %v397_v29  ;;  %543 = vst.msk [vmem:[#allocation2 + $0x120] sm:$0xff] %vm510_vm3, %v395_v30  ;;  %v7931_v29 = vld [vmem:[%s15169_s0 + $0x10] sm:$0xff] }
  0xb6   :  { %753 = vrot.lane.b32.xlu1 %v602_v27, %s6946_s21  ;;  %751 = vrot.lane.b32.xlu0 %v601_v28, %s6946_s21  ;;  %v936_v28 = vld [vmem:[%s15169_s0 + $0x18] sm:$0x7f] }
  0xb8   :  { %v401_v33 = vpop.permute.xlu1 %400  ;;  %v399_v34 = vpop.permute.xlu0 %398 }
  0xb9   :  { %546 = vst.msk [vmem:[#allocation2 + $0x138] sm:$0xff] %vm510_vm3, %v401_v33  ;;  %545 = vst.msk [vmem:[#allocation2 + $0x130] sm:$0xff] %vm510_vm3, %v399_v34  ;;  %v7944_v33 = vld [vmem:[%s15169_s0 + $0x20] sm:$0xff] }
  0xba   :  { %757 = vrot.lane.b32.xlu1 %v604_v31, %s6946_s21  ;;  %755 = vrot.lane.b32.xlu0 %v603_v32, %s6946_s21  ;;  %v938_v32 = vld [vmem:[%s15169_s0 + $0x28] sm:$0x7f] }
  0xbc   :  { %v405_v37 = vpop.permute.xlu1 %404  ;;  %v403_v38 = vpop.permute.xlu0 %402 }
  0xbd   :  { %548 = vst.msk [vmem:[#allocation2 + $0x148] sm:$0xff] %vm510_vm3, %v405_v37  ;;  %547 = vst.msk [vmem:[#allocation2 + $0x140] sm:$0xff] %vm510_vm3, %v403_v38  ;;  %v7957_v37 = vld [vmem:[%s15169_s0 + $0x30] sm:$0xff] }
  0xbe   :  { %761 = vrot.lane.b32.xlu1 %v606_v35, %s6946_s21  ;;  %759 = vrot.lane.b32.xlu0 %v605_v36, %s6946_s21  ;;  %v940_v36 = vld [vmem:[%s15169_s0 + $0x38] sm:$0x7f] }
  0xc0   :  { %v409_v41 = vpop.permute.xlu1 %408  ;;  %v407_v42 = vpop.permute.xlu0 %406 }
  0xc1   :  { %550 = vst.msk [vmem:[#allocation2 + $0x158] sm:$0xff] %vm510_vm3, %v409_v41  ;;  %549 = vst.msk [vmem:[#allocation2 + $0x150] sm:$0xff] %vm510_vm3, %v407_v42  ;;  %v7970_v41 = vld [vmem:[%s15169_s0 + $0x40] sm:$0xff] }
  0xc2   :  { %765 = vrot.lane.b32.xlu1 %v608_v39, %s6946_s21  ;;  %763 = vrot.lane.b32.xlu0 %v607_v40, %s6946_s21  ;;  %v942_v40 = vld [vmem:[%s15169_s0 + $0x48] sm:$0x7f] }
  0xc4   :  { %v413_v45 = vpop.permute.xlu1 %412  ;;  %v411_v46 = vpop.permute.xlu0 %410 }
  0xc5   :  { %552 = vst.msk [vmem:[#allocation2 + $0x168] sm:$0xff] %vm510_vm3, %v413_v45  ;;  %551 = vst.msk [vmem:[#allocation2 + $0x160] sm:$0xff] %vm510_vm3, %v411_v46  ;;  %v7983_v45 = vld [vmem:[%s15169_s0 + $0x50] sm:$0xff] }
  0xc6   :  { %769 = vrot.lane.b32.xlu1 %v610_v43, %s6946_s21  ;;  %767 = vrot.lane.b32.xlu0 %v609_v44, %s6946_s21  ;;  %v944_v44 = vld [vmem:[%s15169_s0 + $0x58] sm:$0x7f] }
  0xc8   :  { %v417_v49 = vpop.permute.xlu1 %416  ;;  %v415_v50 = vpop.permute.xlu0 %414 }
  0xc9   :  { %554 = vst.msk [vmem:[#allocation2 + $0x178] sm:$0xff] %vm510_vm3, %v417_v49  ;;  %553 = vst.msk [vmem:[#allocation2 + $0x170] sm:$0xff] %vm510_vm3, %v415_v50  ;;  %v7996_v49 = vld [vmem:[%s15169_s0 + $0x60] sm:$0xff] }
  0xca   :  { %773 = vrot.lane.b32.xlu1 %v612_v47, %s6946_s21  ;;  %771 = vrot.lane.b32.xlu0 %v611_v48, %s6946_s21  ;;  %v946_v48 = vld [vmem:[%s15169_s0 + $0x68] sm:$0x7f] }
  0xcc   :  { %v421_v53 = vpop.permute.xlu1 %420  ;;  %v419_v54 = vpop.permute.xlu0 %418 }
  0xcd   :  { %556 = vst.msk [vmem:[#allocation2 + $0x188] sm:$0xff] %vm510_vm3, %v421_v53  ;;  %555 = vst.msk [vmem:[#allocation2 + $0x180] sm:$0xff] %vm510_vm3, %v419_v54  ;;  %v8009_v53 = vld [vmem:[%s15169_s0 + $0x70] sm:$0xff] }
  0xce   :  { %777 = vrot.lane.b32.xlu1 %v614_v51, %s6946_s21  ;;  %775 = vrot.lane.b32.xlu0 %v613_v52, %s6946_s21  ;;  %v948_v52 = vld [vmem:[%s15169_s0 + $0x78] sm:$0x7f] }
  0xd0   :  { %v425_v57 = vpop.permute.xlu1 %424  ;;  %v423_v58 = vpop.permute.xlu0 %422 }
  0xd1   :  { %558 = vst.msk [vmem:[#allocation2 + $0x198] sm:$0xff] %vm510_vm3, %v425_v57  ;;  %557 = vst.msk [vmem:[#allocation2 + $0x190] sm:$0xff] %vm510_vm3, %v423_v58  ;;  %v8022_v57 = vld [vmem:[%s15169_s0 + $0x80] sm:$0xff] }
  0xd2   :  { %781 = vrot.lane.b32.xlu1 %v616_v55, %s6946_s21  ;;  %779 = vrot.lane.b32.xlu0 %v615_v56, %s6946_s21  ;;  %v950_v56 = vld [vmem:[%s15169_s0 + $0x88] sm:$0x7f] }
  0xd4   :  { %v429_v61 = vpop.permute.xlu1 %428  ;;  %v427_v62 = vpop.permute.xlu0 %426 }
  0xd5   :  { %560 = vst.msk [vmem:[#allocation2 + $0x1a8] sm:$0xff] %vm510_vm3, %v429_v61  ;;  %559 = vst.msk [vmem:[#allocation2 + $0x1a0] sm:$0xff] %vm510_vm3, %v427_v62  ;;  %v951_v61 = vld [vmem:[%s15169_s0 + $0x90] sm:$0xff] }
  0xd6   :  { %785 = vrot.lane.b32.xlu1 %v618_v59, %s6946_s21  ;;  %783 = vrot.lane.b32.xlu0 %v617_v60, %s6946_s21  ;;  %v952_v60 = vld [vmem:[%s15169_s0 + $0x98] sm:$0x7f] }
  0xd8   :  { %v433_v1 = vpop.permute.xlu1 %432  ;;  %v431_v3 = vpop.permute.xlu0 %430 }
  0xd9   :  { %562 = vst.msk [vmem:[#allocation2 + $0x1b8] sm:$0xff] %vm510_vm3, %v433_v1  ;;  %561 = vst.msk [vmem:[#allocation2 + $0x1b0] sm:$0xff] %vm510_vm3, %v431_v3  ;;  %v953_v1 = vld [vmem:[%s15169_s0 + $0xa0] sm:$0xff] }
  0xda   :  { %789 = vrot.lane.b32.xlu1 %v620_v63, %s6946_s21  ;;  %787 = vrot.lane.b32.xlu0 %v619_v0, %s6946_s21  ;;  %v954_v0 = vld [vmem:[%s15169_s0 + $0xa8] sm:$0x7f] }
  0xdc   :  { %v437_v6 = vpop.permute.xlu1 %436  ;;  %v435_v7 = vpop.permute.xlu0 %434 }
  0xdd   :  { %564 = vst.msk [vmem:[#allocation2 + $0x1c8] sm:$0xff] %vm510_vm3, %v437_v6  ;;  %563 = vst.msk [vmem:[#allocation2 + $0x1c0] sm:$0xff] %vm510_vm3, %v435_v7  ;;  %v955_v6 = vld [vmem:[%s15169_s0 + $0xb0] sm:$0xff] }
  0xde   :  { %793 = vrot.lane.b32.xlu1 %v622_v4, %s6946_s21  ;;  %791 = vrot.lane.b32.xlu0 %v621_v5, %s6946_s21  ;;  %v956_v5 = vld [vmem:[%s15169_s0 + $0xb8] sm:$0x7f] }
  0xe0   :  { %v441_v10 = vpop.permute.xlu1 %440  ;;  %v439_v11 = vpop.permute.xlu0 %438 }
  0xe1   :  { %566 = vst.msk [vmem:[#allocation2 + $0x1d8] sm:$0xff] %vm510_vm3, %v441_v10  ;;  %565 = vst.msk [vmem:[#allocation2 + $0x1d0] sm:$0xff] %vm510_vm3, %v439_v11  ;;  %v957_v10 = vld [vmem:[%s15169_s0 + $0xc0] sm:$0xff] }
  0xe2   :  { %797 = vrot.lane.b32.xlu1 %v624_v8, %s6946_s21  ;;  %795 = vrot.lane.b32.xlu0 %v623_v9, %s6946_s21  ;;  %v958_v9 = vld [vmem:[%s15169_s0 + $0xc8] sm:$0x7f] }
  0xe4   :  { %v445_v14 = vpop.permute.xlu1 %444  ;;  %v443_v15 = vpop.permute.xlu0 %442 }
  0xe5   :  { %568 = vst.msk [vmem:[#allocation2 + $0x1e8] sm:$0xff] %vm510_vm3, %v445_v14  ;;  %567 = vst.msk [vmem:[#allocation2 + $0x1e0] sm:$0xff] %vm510_vm3, %v443_v15  ;;  %v959_v14 = vld [vmem:[%s15169_s0 + $0xd0] sm:$0xff] }
  0xe6   :  { %801 = vrot.lane.b32.xlu1 %v626_v12, %s6946_s21  ;;  %799 = vrot.lane.b32.xlu0 %v625_v13, %s6946_s21  ;;  %v960_v13 = vld [vmem:[%s15169_s0 + $0xd8] sm:$0x7f] }
  0xe8   :  { %v449_v18 = vpop.permute.xlu1 %448  ;;  %v447_v19 = vpop.permute.xlu0 %446 }
  0xe9   :  { %570 = vst.msk [vmem:[#allocation2 + $0x1f8] sm:$0xff] %vm510_vm3, %v449_v18  ;;  %569 = vst.msk [vmem:[#allocation2 + $0x1f0] sm:$0xff] %vm510_vm3, %v447_v19  ;;  %v961_v18 = vld [vmem:[%s15169_s0 + $0xe0] sm:$0xff]  ;;  %vm4513_vm3 = vcmask 253952  }
  0xea   :  { %805 = vrot.lane.b32.xlu1 %v628_v16, %s6946_s21  ;;  %803 = vrot.lane.b32.xlu0 %v627_v17, %s6946_s21  ;;  %v962_v17 = vld [vmem:[%s15169_s0 + $0xe8] sm:$0x7f] }
  0xec   :  { %v694_v22 = vpop.permute.xlu1 %693  ;;  %v692_v23 = vpop.permute.xlu0 %691 }
  0xed   :  { %874 = vst.msk [vmem:[#allocation2 + $0x18] sm:$0x7f] %vm873_vm4, %v694_v22  ;;  %v963_v22 = vld [vmem:[%s15169_s0 + $0xf0] sm:$0xff] }
  0xee   :  { %872 = vst.msk [vmem:[#allocation2 + $0x10] sm:$0xff] %vm871_vm5, %v692_v23  ;;  %809 = vrot.lane.b32.xlu1 %v630_v20, %s6946_s21  ;;  %807 = vrot.lane.b32.xlu0 %v629_v21, %s6946_s21  ;;  %v964_v21 = vld [vmem:[%s15169_s0 + $0xf8] sm:$0x7f] }
  0xf0   :  { %v698_v26 = vpop.permute.xlu1 %697  ;;  %v696_v27 = vpop.permute.xlu0 %695 }
  0xf1   :  { %876 = vst.msk [vmem:[#allocation2 + $0x28] sm:$0x7f] %vm873_vm4, %v698_v26  ;;  %v966_v26 = vld [vmem:[%s15169_s0 + $0x108] sm:$0x7f] }
  0xf2   :  { %875 = vst.msk [vmem:[#allocation2 + $0x20] sm:$0xff] %vm871_vm5, %v696_v27  ;;  %1063 = vrot.lane.b32.xlu1 %v934_v24, %s6947_s27  ;;  %1061 = vrot.lane.b32.xlu0 %v7918_v25, %s6947_s27  ;;  %v965_v27 = vld [vmem:[%s15169_s0 + $0x100] sm:$0xff] }
  0xf4   :  { %v702_v30 = vpop.permute.xlu1 %701  ;;  %v700_v31 = vpop.permute.xlu0 %699 }
  0xf5   :  { %878 = vst.msk [vmem:[#allocation2 + $0x38] sm:$0x7f] %vm873_vm4, %v702_v30 }
  0xf6   :  { %877 = vst.msk [vmem:[#allocation2 + $0x30] sm:$0xff] %vm871_vm5, %v700_v31  ;;  %1067 = vrot.lane.b32.xlu1 %v936_v28, %s6947_s27  ;;  %1065 = vrot.lane.b32.xlu0 %v7931_v29, %s6947_s27  ;;  %v968_v31 = vld [vmem:[%s15169_s0 + $0x118] sm:$0x7f] }
  0xf8   :  { %v706_v34 = vpop.permute.xlu1 %705  ;;  %v704_v35 = vpop.permute.xlu0 %703 }
  0xf9   :  { %880 = vst.msk [vmem:[#allocation2 + $0x48] sm:$0x7f] %vm873_vm4, %v706_v34 }
  0xfa   :  { %879 = vst.msk [vmem:[#allocation2 + $0x40] sm:$0xff] %vm871_vm5, %v704_v35  ;;  %1071 = vrot.lane.b32.xlu1 %v938_v32, %s6947_s27  ;;  %1069 = vrot.lane.b32.xlu0 %v7944_v33, %s6947_s27  ;;  %v967_v32 = vld [vmem:[%s15169_s0 + $0x110] sm:$0xff] }
  0xfc   :  { %v710_v38 = vpop.permute.xlu1 %709  ;;  %v708_v39 = vpop.permute.xlu0 %707 }
  0xfd   :  { %882 = vst.msk [vmem:[#allocation2 + $0x58] sm:$0x7f] %vm873_vm4, %v710_v38  ;;  %v969_v38 = vld [vmem:[%s15169_s0 + $0x120] sm:$0xff] }
  0xfe   :  { %881 = vst.msk [vmem:[#allocation2 + $0x50] sm:$0xff] %vm871_vm5, %v708_v39  ;;  %1075 = vrot.lane.b32.xlu1 %v940_v36, %s6947_s27  ;;  %1073 = vrot.lane.b32.xlu0 %v7957_v37, %s6947_s27  ;;  %v970_v36 = vld [vmem:[%s15169_s0 + $0x128] sm:$0x7f] }
 0x100   :  { %v714_v42 = vpop.permute.xlu1 %713  ;;  %v712_v43 = vpop.permute.xlu0 %711 }
 0x101   :  { %884 = vst.msk [vmem:[#allocation2 + $0x68] sm:$0x7f] %vm873_vm4, %v714_v42  ;;  %v972_v42 = vld [vmem:[%s15169_s0 + $0x138] sm:$0x7f] }
 0x102   :  { %883 = vst.msk [vmem:[#allocation2 + $0x60] sm:$0xff] %vm871_vm5, %v712_v43  ;;  %1079 = vrot.lane.b32.xlu1 %v942_v40, %s6947_s27  ;;  %1077 = vrot.lane.b32.xlu0 %v7970_v41, %s6947_s27  ;;  %v971_v43 = vld [vmem:[%s15169_s0 + $0x130] sm:$0xff] }
 0x104   :  { %v718_v46 = vpop.permute.xlu1 %717  ;;  %v716_v47 = vpop.permute.xlu0 %715 }
 0x105   :  { %886 = vst.msk [vmem:[#allocation2 + $0x78] sm:$0x7f] %vm873_vm4, %v718_v46 }
 0x106   :  { %885 = vst.msk [vmem:[#allocation2 + $0x70] sm:$0xff] %vm871_vm5, %v716_v47  ;;  %1083 = vrot.lane.b32.xlu1 %v944_v44, %s6947_s27  ;;  %1081 = vrot.lane.b32.xlu0 %v7983_v45, %s6947_s27  ;;  %v974_v47 = vld [vmem:[%s15169_s0 + $0x148] sm:$0x7f] }
 0x108   :  { %v722_v50 = vpop.permute.xlu1 %721  ;;  %v720_v51 = vpop.permute.xlu0 %719 }
 0x109   :  { %888 = vst.msk [vmem:[#allocation2 + $0x88] sm:$0x7f] %vm873_vm4, %v722_v50 }
 0x10a   :  { %887 = vst.msk [vmem:[#allocation2 + $0x80] sm:$0xff] %vm871_vm5, %v720_v51  ;;  %1087 = vrot.lane.b32.xlu1 %v946_v48, %s6947_s27  ;;  %1085 = vrot.lane.b32.xlu0 %v7996_v49, %s6947_s27  ;;  %v973_v48 = vld [vmem:[%s15169_s0 + $0x140] sm:$0xff] }
 0x10c   :  { %v726_v54 = vpop.permute.xlu1 %725  ;;  %v724_v55 = vpop.permute.xlu0 %723 }
 0x10d   :  { %890 = vst.msk [vmem:[#allocation2 + $0x98] sm:$0x7f] %vm873_vm4, %v726_v54  ;;  %v975_v54 = vld [vmem:[%s15169_s0 + $0x150] sm:$0xff] }
 0x10e   :  { %889 = vst.msk [vmem:[#allocation2 + $0x90] sm:$0xff] %vm871_vm5, %v724_v55  ;;  %1091 = vrot.lane.b32.xlu1 %v948_v52, %s6947_s27  ;;  %1089 = vrot.lane.b32.xlu0 %v8009_v53, %s6947_s27  ;;  %v976_v52 = vld [vmem:[%s15169_s0 + $0x158] sm:$0x7f] }
 0x110   :  { %v730_v58 = vpop.permute.xlu1 %729  ;;  %v728_v59 = vpop.permute.xlu0 %727 }
 0x111   :  { %892 = vst.msk [vmem:[#allocation2 + $0xa8] sm:$0x7f] %vm873_vm4, %v730_v58  ;;  %v978_v58 = vld [vmem:[%s15169_s0 + $0x168] sm:$0x7f] }
 0x112   :  { %891 = vst.msk [vmem:[#allocation2 + $0xa0] sm:$0xff] %vm871_vm5, %v728_v59  ;;  %1095 = vrot.lane.b32.xlu1 %v950_v56, %s6947_s27  ;;  %1093 = vrot.lane.b32.xlu0 %v8022_v57, %s6947_s27  ;;  %v977_v59 = vld [vmem:[%s15169_s0 + $0x160] sm:$0xff] }
 0x114   :  { %v734_v62 = vpop.permute.xlu1 %733  ;;  %v732_v63 = vpop.permute.xlu0 %731 }
 0x115   :  { %894 = vst.msk [vmem:[#allocation2 + $0xb8] sm:$0x7f] %vm873_vm4, %v734_v62  ;;  %v980_v62 = vld [vmem:[%s15169_s0 + $0x178] sm:$0x7f] }
 0x116   :  { %893 = vst.msk [vmem:[#allocation2 + $0xb0] sm:$0xff] %vm871_vm5, %v732_v63  ;;  %1099 = vrot.lane.b32.xlu1 %v952_v60, %s6947_s27  ;;  %1097 = vrot.lane.b32.xlu0 %v951_v61, %s6947_s27  ;;  %v979_v63 = vld [vmem:[%s15169_s0 + $0x170] sm:$0xff] }
 0x118   :  { %v738_v3 = vpop.permute.xlu1 %737  ;;  %v736_v4 = vpop.permute.xlu0 %735 }
 0x119   :  { %896 = vst.msk [vmem:[#allocation2 + $0xc8] sm:$0x7f] %vm873_vm4, %v738_v3  ;;  %v982_v3 = vld [vmem:[%s15169_s0 + $0x188] sm:$0x7f] }
 0x11a   :  { %895 = vst.msk [vmem:[#allocation2 + $0xc0] sm:$0xff] %vm871_vm5, %v736_v4  ;;  %1103 = vrot.lane.b32.xlu1 %v954_v0, %s6947_s27  ;;  %1101 = vrot.lane.b32.xlu0 %v953_v1, %s6947_s27  ;;  %v981_v4 = vld [vmem:[%s15169_s0 + $0x180] sm:$0xff] }
 0x11c   :  { %v742_v7 = vpop.permute.xlu1 %741  ;;  %v740_v8 = vpop.permute.xlu0 %739 }
 0x11d   :  { %898 = vst.msk [vmem:[#allocation2 + $0xd8] sm:$0x7f] %vm873_vm4, %v742_v7  ;;  %v984_v7 = vld [vmem:[%s15169_s0 + $0x198] sm:$0x7f] }
 0x11e   :  { %897 = vst.msk [vmem:[#allocation2 + $0xd0] sm:$0xff] %vm871_vm5, %v740_v8  ;;  %1107 = vrot.lane.b32.xlu1 %v956_v5, %s6947_s27  ;;  %1105 = vrot.lane.b32.xlu0 %v955_v6, %s6947_s27  ;;  %v983_v8 = vld [vmem:[%s15169_s0 + $0x190] sm:$0xff] }
 0x120   :  { %v746_v11 = vpop.permute.xlu1 %745  ;;  %v744_v12 = vpop.permute.xlu0 %743 }
 0x121   :  { %900 = vst.msk [vmem:[#allocation2 + $0xe8] sm:$0x7f] %vm873_vm4, %v746_v11  ;;  %v986_v11 = vld [vmem:[%s15169_s0 + $0x1a8] sm:$0x7f] }
 0x122   :  { %899 = vst.msk [vmem:[#allocation2 + $0xe0] sm:$0xff] %vm871_vm5, %v744_v12  ;;  %1111 = vrot.lane.b32.xlu1 %v958_v9, %s6947_s27  ;;  %1109 = vrot.lane.b32.xlu0 %v957_v10, %s6947_s27  ;;  %v985_v12 = vld [vmem:[%s15169_s0 + $0x1a0] sm:$0xff] }
 0x124   :  { %v750_v15 = vpop.permute.xlu1 %749  ;;  %v748_v16 = vpop.permute.xlu0 %747 }
 0x125   :  { %902 = vst.msk [vmem:[#allocation2 + $0xf8] sm:$0x7f] %vm873_vm4, %v750_v15  ;;  %v988_v15 = vld [vmem:[%s15169_s0 + $0x1b8] sm:$0x7f] }
 0x126   :  { %901 = vst.msk [vmem:[#allocation2 + $0xf0] sm:$0xff] %vm871_vm5, %v748_v16  ;;  %1115 = vrot.lane.b32.xlu1 %v960_v13, %s6947_s27  ;;  %1113 = vrot.lane.b32.xlu0 %v959_v14, %s6947_s27  ;;  %v987_v16 = vld [vmem:[%s15169_s0 + $0x1b0] sm:$0xff] }
 0x128   :  { %v754_v19 = vpop.permute.xlu1 %753  ;;  %v752_v20 = vpop.permute.xlu0 %751 }
 0x129   :  { %904 = vst.msk [vmem:[#allocation2 + $0x118] sm:$0x7f] %vm873_vm4, %v754_v19  ;;  %v990_v19 = vld [vmem:[%s15169_s0 + $0x1c8] sm:$0x7f] }
 0x12a   :  { %903 = vst.msk [vmem:[#allocation2 + $0x110] sm:$0xff] %vm871_vm5, %v752_v20  ;;  %1119 = vrot.lane.b32.xlu1 %v962_v17, %s6947_s27  ;;  %1117 = vrot.lane.b32.xlu0 %v961_v18, %s6947_s27  ;;  %v989_v20 = vld [vmem:[%s15169_s0 + $0x1c0] sm:$0xff] }
 0x12c   :  { %v758_v23 = vpop.permute.xlu1 %757  ;;  %v756_v24 = vpop.permute.xlu0 %755 }
 0x12d   :  { %906 = vst.msk [vmem:[#allocation2 + $0x128] sm:$0x7f] %vm873_vm4, %v758_v23  ;;  %v992_v23 = vld [vmem:[%s15169_s0 + $0x1d8] sm:$0x7f] }
 0x12e   :  { %905 = vst.msk [vmem:[#allocation2 + $0x120] sm:$0xff] %vm871_vm5, %v756_v24  ;;  %1123 = vrot.lane.b32.xlu1 %v964_v21, %s6947_s27  ;;  %1121 = vrot.lane.b32.xlu0 %v963_v22, %s6947_s27  ;;  %v991_v24 = vld [vmem:[%s15169_s0 + $0x1d0] sm:$0xff] }
 0x130   :  { %v762_v28 = vpop.permute.xlu1 %761  ;;  %v760_v30 = vpop.permute.xlu0 %759 }
 0x131   :  { %908 = vst.msk [vmem:[#allocation2 + $0x138] sm:$0x7f] %vm873_vm4, %v762_v28  ;;  %v1320_v28 = vld [vmem:[%s15169_s0 + $0x8] sm:$0xff] }
 0x132   :  { %907 = vst.msk [vmem:[#allocation2 + $0x130] sm:$0xff] %vm871_vm5, %v760_v30  ;;  %1127 = vrot.lane.b32.xlu1 %v966_v26, %s6947_s27  ;;  %1125 = vrot.lane.b32.xlu0 %v965_v27, %s6947_s27 }
 0x134   :  { %v766_v34 = vpop.permute.xlu1 %765  ;;  %v764_v35 = vpop.permute.xlu0 %763 }
 0x135   :  { %910 = vst.msk [vmem:[#allocation2 + $0x148] sm:$0x7f] %vm873_vm4, %v766_v34  ;;  %v1704_v34 = vld [vmem:[%s15169_s0 + $0x1] sm:$0xff] }
 0x136   :  { %909 = vst.msk [vmem:[#allocation2 + $0x140] sm:$0xff] %vm871_vm5, %v764_v35  ;;  %1131 = vrot.lane.b32.xlu1 %v968_v31, %s6947_s27  ;;  %1129 = vrot.lane.b32.xlu0 %v967_v32, %s6947_s27  ;;  %v1705_v32 = vld [vmem:[%s15169_s0 + $0x9] sm:$0x7f] }
 0x138   :  { %v770_v39 = vpop.permute.xlu1 %769  ;;  %v768_v40 = vpop.permute.xlu0 %767 }
 0x139   :  { %912 = vst.msk [vmem:[#allocation2 + $0x158] sm:$0x7f] %vm873_vm4, %v770_v39 }
 0x13a   :  { %911 = vst.msk [vmem:[#allocation2 + $0x150] sm:$0xff] %vm871_vm5, %v768_v40  ;;  %1135 = vrot.lane.b32.xlu1 %v970_v36, %s6947_s27  ;;  %1133 = vrot.lane.b32.xlu0 %v969_v38, %s6947_s27  ;;  %v3240_v40 = vld [vmem:[%s15170_s1] sm:$0xff] }
 0x13c   :  { %v774_v44 = vpop.permute.xlu1 %773  ;;  %v772_v46 = vpop.permute.xlu0 %771 }
 0x13d   :  { %914 = vst.msk [vmem:[#allocation2 + $0x168] sm:$0x7f] %vm873_vm4, %v774_v44 }
 0x13e   :  { %913 = vst.msk [vmem:[#allocation2 + $0x160] sm:$0xff] %vm871_vm5, %v772_v46  ;;  %1139 = vrot.lane.b32.xlu1 %v972_v42, %s6947_s27  ;;  %1137 = vrot.lane.b32.xlu0 %v971_v43, %s6947_s27  ;;  %v3241_v42 = vld [vmem:[%s15170_s1 + $0x8] sm:$0xff] }
 0x13f   :  { %v6917_v43 = vpack.c.bf16 %v3241_v42, %v3240_v40  ;;  %v6615_v42 = vld [vmem:[%s15169_s0 + $0x49] sm:$0x7f] }
 0x140   :  { %v778_v50 = vpop.permute.xlu1 %777  ;;  %v776_v51 = vpop.permute.xlu0 %775 }
 0x141   :  { %916 = vst.msk [vmem:[#allocation2 + $0x178] sm:$0x7f] %vm873_vm4, %v778_v50  ;;  %6918 = vmatprep.subr.bf16.mxu0 %v6917_v43  ;;  %6925 = vmatprep.subr.bf16.mxu1 %v6917_v43 }
 0x142   :  { %915 = vst.msk [vmem:[#allocation2 + $0x170] sm:$0xff] %vm871_vm5, %v776_v51  ;;  %1143 = vrot.lane.b32.xlu1 %v974_v47, %s6947_s27  ;;  %1141 = vrot.lane.b32.xlu0 %v973_v48, %s6947_s27  ;;  %v3242_v47 = vld [vmem:[%s15170_s1 + $0x10] sm:$0xff]  ;;  %v3243_v48 = vld [vmem:[%s15170_s1 + $0x18] sm:$0xff] }
 0x143   :  { %6920 = vmatpush3.bf16.msra.mxu0 %v6917_v43  ;;  %6928 = vmatpush3.bf16.msra.mxu1 %v6917_v43  ;;  %v6921_v50 = vpack.c.bf16 %v3243_v48, %v3242_v47  ;;  %v6549_v51 = vld [vmem:[%s15169_s0 + $0x18] sm:$0xff]  ;;  %v1713_v43 = vld [vmem:[%s15169_s0 + $0x49] sm:$0x7f] }
 0x144   :  { %v782_v55 = vpop.permute.xlu1 %781  ;;  %v780_v56 = vpop.permute.xlu0 %779  ;;  %v6497_v47 = vld [vmem:[%s15169_s0 + $0x58] sm:$0x7f] }
 0x145   :  { %918 = vst.msk [vmem:[#allocation2 + $0x188] sm:$0x7f] %vm873_vm4, %v782_v55  ;;  %6922 = vmatprep.subr.bf16.mxu0 %v6921_v50  ;;  %6926 = vmatprep.subr.bf16.mxu1 %v6921_v50  ;;  %v1706_v55 = vld [vmem:[%s15169_s0 + $0x11] sm:$0xff] }
 0x146   :  { %917 = vst.msk [vmem:[#allocation2 + $0x180] sm:$0xff] %vm871_vm5, %v780_v56  ;;  %1147 = vrot.lane.b32.xlu1 %v976_v52, %s6947_s27  ;;  %1145 = vrot.lane.b32.xlu0 %v975_v54, %s6947_s27 }
 0x147   :  { %6924 = vmatpush3.bf16.msra.mxu0 %v6921_v50  ;;  %6929 = vmatpush3.bf16.msra.mxu1 %v6921_v50 }
 0x148   :  { %v786_v60 = vpop.permute.xlu1 %785  ;;  %v784_v61 = vpop.permute.xlu0 %783 }
 0x149   :  { %920 = vst.msk [vmem:[#allocation2 + $0x198] sm:$0x7f] %vm873_vm4, %v786_v60  ;;  %v1707_v60 = vld [vmem:[%s15169_s0 + $0x19] sm:$0x7f] }
 0x14a   :  { %919 = vst.msk [vmem:[#allocation2 + $0x190] sm:$0xff] %vm871_vm5, %v784_v61  ;;  %1151 = vrot.lane.b32.xlu1 %v978_v58, %s6947_s27  ;;  %1149 = vrot.lane.b32.xlu0 %v977_v59, %s6947_s27  ;;  %v6609_v59 = vld [vmem:[%s15169_s0 + $0x19] sm:$0x7f] }
 0x14c   :  { %v790_v0 = vpop.permute.xlu1 %789  ;;  %v788_v1 = vpop.permute.xlu0 %787 }
 0x14d   :  { %922 = vst.msk [vmem:[#allocation2 + $0x1a8] sm:$0x7f] %vm873_vm4, %v790_v0 }
 0x14e   :  { %921 = vst.msk [vmem:[#allocation2 + $0x1a0] sm:$0xff] %vm871_vm5, %v788_v1  ;;  %1155 = vrot.lane.b32.xlu1 %v980_v62, %s6947_s27  ;;  %1153 = vrot.lane.b32.xlu0 %v979_v63, %s6947_s27  ;;  %v6491_v63 = vld [vmem:[%s15169_s0 + $0x28] sm:$0x7f] }
 0x150   :  { %v794_v5 = vpop.permute.xlu1 %793  ;;  %v792_v6 = vpop.permute.xlu0 %791 }
 0x151   :  { %924 = vst.msk [vmem:[#allocation2 + $0x1b8] sm:$0x7f] %vm873_vm4, %v794_v5  ;;  %v6551_v5 = vld [vmem:[%s15169_s0 + $0x28] sm:$0xff] }
 0x152   :  { %923 = vst.msk [vmem:[#allocation2 + $0x1b0] sm:$0xff] %vm871_vm5, %v792_v6  ;;  %1159 = vrot.lane.b32.xlu1 %v982_v3, %s6947_s27  ;;  %1157 = vrot.lane.b32.xlu0 %v981_v4, %s6947_s27 }
 0x154   :  { %v798_v9 = vpop.permute.xlu1 %797  ;;  %v796_v10 = vpop.permute.xlu0 %795 }
 0x155   :  { %926 = vst.msk [vmem:[#allocation2 + $0x1c8] sm:$0x7f] %vm873_vm4, %v798_v9 }
 0x156   :  { %925 = vst.msk [vmem:[#allocation2 + $0x1c0] sm:$0xff] %vm871_vm5, %v796_v10  ;;  %1163 = vrot.lane.b32.xlu1 %v984_v7, %s6947_s27  ;;  %1161 = vrot.lane.b32.xlu0 %v983_v8, %s6947_s27  ;;  %v1708_v8 = vld [vmem:[%s15169_s0 + $0x21] sm:$0xff]  ;;  %v6611_v10 = vld [vmem:[%s15169_s0 + $0x29] sm:$0x7f] }
 0x158   :  { %v802_v13 = vpop.permute.xlu1 %801  ;;  %v800_v14 = vpop.permute.xlu0 %799 }
 0x159   :  { %928 = vst.msk [vmem:[#allocation2 + $0x1d8] sm:$0x7f] %vm873_vm4, %v802_v13 }
 0x15a   :  { %927 = vst.msk [vmem:[#allocation2 + $0x1d0] sm:$0xff] %vm871_vm5, %v800_v14  ;;  %1167 = vrot.lane.b32.xlu1 %v986_v11, %s6947_s27  ;;  %1165 = vrot.lane.b32.xlu0 %v985_v12, %s6947_s27  ;;  %v1709_v11 = vld [vmem:[%s15169_s0 + $0x29] sm:$0x7f]  ;;  %v6493_v14 = vld [vmem:[%s15169_s0 + $0x38] sm:$0x7f] }
 0x15c   :  { %v806_v17 = vpop.permute.xlu1 %805  ;;  %v804_v18 = vpop.permute.xlu0 %803 }
 0x15d   :  { %930 = vst.msk [vmem:[#allocation2 + $0x1e8] sm:$0x7f] %vm873_vm4, %v806_v17 }
 0x15e   :  { %929 = vst.msk [vmem:[#allocation2 + $0x1e0] sm:$0xff] %vm871_vm5, %v804_v18  ;;  %1171 = vrot.lane.b32.xlu1 %v988_v15, %s6947_s27  ;;  %1169 = vrot.lane.b32.xlu0 %v987_v16, %s6947_s27 }
 0x160   :  { %v810_v21 = vpop.permute.xlu1 %809  ;;  %v808_v22 = vpop.permute.xlu0 %807 }
 0x161   :  { %932 = vst.msk [vmem:[#allocation2 + $0x1f8] sm:$0x7f] %vm873_vm4, %v810_v21 }
 0x162   :  { %931 = vst.msk [vmem:[#allocation2 + $0x1f0] sm:$0xff] %vm871_vm5, %v808_v22  ;;  %1175 = vrot.lane.b32.xlu1 %v990_v19, %s6947_s27  ;;  %1173 = vrot.lane.b32.xlu0 %v989_v20, %s6947_s27  ;;  %v6553_v19 = vld [vmem:[%s15169_s0 + $0x38] sm:$0xff] }
 0x163   :  { %v1710_v22 = vld [vmem:[%s15169_s0 + $0x31] sm:$0xff] }
 0x164   :  { %v1064_v26 = vpop.permute.xlu1 %1063  ;;  %v1062_v27 = vpop.permute.xlu0 %1061 }
 0x165   :  { %1256 = vst.msk [vmem:[#allocation2 + $0x9] sm:$0x7f] %vm1255_vm6, %v1064_v26  ;;  %v1711_v26 = vld [vmem:[%s15169_s0 + $0x39] sm:$0x7f] }
 0x166   :  { %1254 = vst.msk [vmem:[#allocation2 + $0x1] sm:$0xff] %vm1253_vm7, %v1062_v27  ;;  %1179 = vrot.lane.b32.xlu1 %v992_v23, %s6947_s27  ;;  %1177 = vrot.lane.b32.xlu0 %v991_v24, %s6947_s27  ;;  %v6613_v24 = vld [vmem:[%s15169_s0 + $0x39] sm:$0x7f] }
 0x168   :  { %v1068_v30 = vpop.permute.xlu1 %1067  ;;  %v1066_v31 = vpop.permute.xlu0 %1065 }
 0x169   :  { %1258 = vst.msk [vmem:[#allocation2 + $0x19] sm:$0x7f] %vm1255_vm6, %v1068_v30  ;;  %v6495_v30 = vld [vmem:[%s15169_s0 + $0x48] sm:$0x7f] }
 0x16a   :  { %1257 = vst.msk [vmem:[#allocation2 + $0x11] sm:$0xff] %vm1253_vm7, %v1066_v31  ;;  %1449 = vrot.lane.b32.xlu1 %v1320_v28, %s6948_s30  ;;  %1447 = vrot.lane.b32.xlu0 %v7918_v25, %s6948_s30  ;;  %v6489_v25 = vld [vmem:[%s15169_s0 + $0x18] sm:$0x7f] }
 0x16c   :  { %v1072_v35 = vpop.permute.xlu1 %1071  ;;  %v1070_v36 = vpop.permute.xlu0 %1069 }
 0x16d   :  { %1260 = vst.msk [vmem:[#allocation2 + $0x29] sm:$0x7f] %vm1255_vm6, %v1072_v35 }
 0x16e   :  { %1259 = vst.msk [vmem:[#allocation2 + $0x21] sm:$0xff] %vm1253_vm7, %v1070_v36  ;;  %1834 = vrot.lane.b32.xlu1 %v1705_v32, %s6949_s11  ;;  %1832 = vrot.lane.b32.xlu0 %v1704_v34, %s6949_s11  ;;  %v6555_v36 = vld [vmem:[%s15169_s0 + $0x48] sm:$0xff] }
 0x170   :  { %v1076_v38 = vpop.permute.xlu1 %1075  ;;  %v1074_v39 = vpop.permute.xlu0 %1073 }
 0x171   :  { %1262 = vst.msk [vmem:[#allocation2 + $0x39] sm:$0x7f] %vm1255_vm6, %v1076_v38 }
 0x172   :  { %1261 = vst.msk [vmem:[#allocation2 + $0x31] sm:$0xff] %vm1253_vm7, %v1074_v39  ;;  %2213 = vrot.lane.b32.xlu1 %v6489_v25, %s6950_s18  ;;  %2211 = vrot.lane.b32.xlu0 %v7931_v29, %s6950_s18  ;;  %v1712_v39 = vld [vmem:[%s15169_s0 + $0x41] sm:$0xff] }
 0x174   :  { %v1080_v44 = vpop.permute.xlu1 %1079  ;;  %v1078_v46 = vpop.permute.xlu0 %1077 }
 0x175   :  { %1264 = vst.msk [vmem:[#allocation2 + $0x49] sm:$0x7f] %vm1255_vm6, %v1080_v44 }
 0x176   :  { %1263 = vst.msk [vmem:[#allocation2 + $0x41] sm:$0xff] %vm1253_vm7, %v1078_v46  ;;  %1451 = vrot.lane.b32.xlu1 %v7931_v29, %s6948_s30  ;;  %2573 = vrot.lane.b32.xlu0 %v7931_v29, %s6951_s23  ;;  %v3244_v29 = vld [vmem:[%s15170_s1 + $0x20] sm:$0xf] }
 0x177   :  { %6819 = vmatprep.subr.msk.mxu0 %vm3437_vm8, %v3244_v29  ;;  %6927 = vmatprep.subr.msk.mxu1 %vm3437_vm8, %v3244_v29 }
 0x178   :  { %v1084_v52 = vpop.permute.xlu1 %1083  ;;  %v1082_v54 = vpop.permute.xlu0 %1081  ;;  %6820 = vmatpush3.msk.msra.mxu0 %vm3437_vm8, %v3244_v29  ;;  %6930 = vmatpush3.msk.msra.mxu1 %vm3437_vm8, %v3244_v29 }
 0x179   :  { %1266 = vst.msk [vmem:[#allocation2 + $0x59] sm:$0x7f] %vm1255_vm6, %v1084_v52 }
 0x17a   :  { %1265 = vst.msk [vmem:[#allocation2 + $0x51] sm:$0xff] %vm1253_vm7, %v1082_v54  ;;  %2575 = vrot.lane.b32.xlu1 %v6549_v51, %s6951_s23  ;;  %1453 = vrot.lane.b32.xlu0 %v6549_v51, %s6948_s30  ;;  %v6557_v54 = vld [vmem:[%s15169_s0 + $0x58] sm:$0xff] }
 0x17c   :  { %v1088_v56 = vpop.permute.xlu1 %1087  ;;  %v1086_v58 = vpop.permute.xlu0 %1085 }
 0x17d   :  { %1268 = vst.msk [vmem:[#allocation2 + $0x69] sm:$0x7f] %vm1255_vm6, %v1088_v56  ;;  %v1714_v56 = vld [vmem:[%s15169_s0 + $0x51] sm:$0xff] }
 0x17e   :  { %1267 = vst.msk [vmem:[#allocation2 + $0x61] sm:$0xff] %vm1253_vm7, %v1086_v58  ;;  %1836 = vrot.lane.b32.xlu1 %v1706_v55, %s6949_s11  ;;  %2934 = vrot.lane.b32.xlu0 %v1706_v55, %s6952_s8 }
 0x180   :  { %v1092_v61 = vpop.permute.xlu1 %1091  ;;  %v1090_v62 = vpop.permute.xlu0 %1089 }
 0x181   :  { %1270 = vst.msk [vmem:[#allocation2 + $0x79] sm:$0x7f] %vm1255_vm6, %v1092_v61 }
 0x182   :  { %1269 = vst.msk [vmem:[#allocation2 + $0x71] sm:$0xff] %vm1253_vm7, %v1090_v62  ;;  %2936 = vrot.lane.b32.xlu1 %v6609_v59, %s6952_s8  ;;  %1838 = vrot.lane.b32.xlu0 %v1707_v60, %s6949_s11  ;;  %v6617_v59 = vld [vmem:[%s15169_s0 + $0x59] sm:$0x7f] }
 0x183   :  { %v1715_v60 = vld [vmem:[%s15169_s0 + $0x59] sm:$0x7f] }
 0x184   :  { %v1096_v0 = vpop.permute.xlu1 %1095  ;;  %v1094_v1 = vpop.permute.xlu0 %1093 }
 0x185   :  { %1272 = vst.msk [vmem:[#allocation2 + $0x89] sm:$0x7f] %vm1255_vm6, %v1096_v0 }
 0x186   :  { %1271 = vst.msk [vmem:[#allocation2 + $0x81] sm:$0xff] %vm1253_vm7, %v1094_v1  ;;  %2217 = vrot.lane.b32.xlu1 %v6491_v63, %s6950_s18  ;;  %2215 = vrot.lane.b32.xlu0 %v7944_v33, %s6950_s18  ;;  %v6499_v63 = vld [vmem:[%s15169_s0 + $0x68] sm:$0x7f] }
 0x188   :  { %v1100_v3 = vpop.permute.xlu1 %1099  ;;  %v1098_v4 = vpop.permute.xlu0 %1097 }
 0x189   :  { %1274 = vst.msk [vmem:[#allocation2 + $0x99] sm:$0x7f] %vm1255_vm6, %v1100_v3 }
 0x18a   :  { %1273 = vst.msk [vmem:[#allocation2 + $0x91] sm:$0xff] %vm1253_vm7, %v1098_v4  ;;  %1455 = vrot.lane.b32.xlu1 %v7944_v33, %s6948_s30  ;;  %2577 = vrot.lane.b32.xlu0 %v7944_v33, %s6951_s23 }
 0x18c   :  { %v1104_v6 = vpop.permute.xlu1 %1103  ;;  %v1102_v7 = vpop.permute.xlu0 %1101 }
 0x18d   :  { %1276 = vst.msk [vmem:[#allocation2 + $0xa9] sm:$0x7f] %vm1255_vm6, %v1104_v6 }
 0x18e   :  { %1275 = vst.msk [vmem:[#allocation2 + $0xa1] sm:$0xff] %vm1253_vm7, %v1102_v7  ;;  %2579 = vrot.lane.b32.xlu1 %v6551_v5, %s6951_s23  ;;  %1457 = vrot.lane.b32.xlu0 %v6551_v5, %s6948_s30  ;;  %v6559_v5 = vld [vmem:[%s15169_s0 + $0x68] sm:$0xff] }
 0x190   :  { %v1108_v9 = vpop.permute.xlu1 %1107  ;;  %v1106_v33 = vpop.permute.xlu0 %1105 }
 0x191   :  { %1278 = vst.msk [vmem:[#allocation2 + $0xb9] sm:$0x7f] %vm1255_vm6, %v1108_v9 }
 0x192   :  { %1277 = vst.msk [vmem:[#allocation2 + $0xb1] sm:$0xff] %vm1253_vm7, %v1106_v33  ;;  %1840 = vrot.lane.b32.xlu1 %v1708_v8, %s6949_s11  ;;  %2938 = vrot.lane.b32.xlu0 %v1708_v8, %s6952_s8  ;;  %v6619_v33 = vld [vmem:[%s15169_s0 + $0x69] sm:$0x7f] }
 0x194   :  { %v1112_v12 = vpop.permute.xlu1 %1111  ;;  %v1110_v13 = vpop.permute.xlu0 %1109 }
 0x195   :  { %1280 = vst.msk [vmem:[#allocation2 + $0xc9] sm:$0x7f] %vm1255_vm6, %v1112_v12 }
 0x196   :  { %1279 = vst.msk [vmem:[#allocation2 + $0xc1] sm:$0xff] %vm1253_vm7, %v1110_v13  ;;  %2940 = vrot.lane.b32.xlu1 %v6611_v10, %s6952_s8  ;;  %1842 = vrot.lane.b32.xlu0 %v1709_v11, %s6949_s11  ;;  %v1717_v10 = vld [vmem:[%s15169_s0 + $0x69] sm:$0x7f]  ;;  %v6501_v13 = vld [vmem:[%s15169_s0 + $0x78] sm:$0x7f] }
 0x198   :  { %v1116_v15 = vpop.permute.xlu1 %1115  ;;  %v1114_v16 = vpop.permute.xlu0 %1113 }
 0x199   :  { %1282 = vst.msk [vmem:[#allocation2 + $0xd9] sm:$0x7f] %vm1255_vm6, %v1116_v15 }
 0x19a   :  { %1281 = vst.msk [vmem:[#allocation2 + $0xd1] sm:$0xff] %vm1253_vm7, %v1114_v16  ;;  %2221 = vrot.lane.b32.xlu1 %v6493_v14, %s6950_s18  ;;  %2219 = vrot.lane.b32.xlu0 %v7957_v37, %s6950_s18 }
 0x19c   :  { %v1120_v17 = vpop.permute.xlu1 %1119  ;;  %v1118_v18 = vpop.permute.xlu0 %1117 }
 0x19d   :  { %1284 = vst.msk [vmem:[#allocation2 + $0xe9] sm:$0x7f] %vm1255_vm6, %v1120_v17 }
 0x19e   :  { %1283 = vst.msk [vmem:[#allocation2 + $0xe1] sm:$0xff] %vm1253_vm7, %v1118_v18  ;;  %1459 = vrot.lane.b32.xlu1 %v7957_v37, %s6948_s30  ;;  %2581 = vrot.lane.b32.xlu0 %v7957_v37, %s6951_s23  ;;  %v6561_v18 = vld [vmem:[%s15169_s0 + $0x78] sm:$0xff] }
 0x1a0   :  { %v1124_v20 = vpop.permute.xlu1 %1123  ;;  %v1122_v21 = vpop.permute.xlu0 %1121 }
 0x1a1   :  { %1286 = vst.msk [vmem:[#allocation2 + $0xf9] sm:$0x7f] %vm1255_vm6, %v1124_v20 }
 0x1a2   :  { %1285 = vst.msk [vmem:[#allocation2 + $0xf1] sm:$0xff] %vm1253_vm7, %v1122_v21  ;;  %2583 = vrot.lane.b32.xlu1 %v6553_v19, %s6951_s23  ;;  %1461 = vrot.lane.b32.xlu0 %v6553_v19, %s6948_s30 }
 0x1a4   :  { %v1128_v23 = vpop.permute.xlu1 %1127  ;;  %v1126_v37 = vpop.permute.xlu0 %1125 }
 0x1a5   :  { %1288 = vst.msk [vmem:[#allocation2 + $0x109] sm:$0x7f] %vm1255_vm6, %v1128_v23  ;;  %v6621_v23 = vld [vmem:[%s15169_s0 + $0x79] sm:$0x7f] }
 0x1a6   :  { %1287 = vst.msk [vmem:[#allocation2 + $0x101] sm:$0xff] %vm1253_vm7, %v1126_v37  ;;  %1844 = vrot.lane.b32.xlu1 %v1710_v22, %s6949_s11  ;;  %2942 = vrot.lane.b32.xlu0 %v1710_v22, %s6952_s8  ;;  %v1719_v37 = vld [vmem:[%s15169_s0 + $0x79] sm:$0x7f] }
 0x1a8   :  { %v1132_v27 = vpop.permute.xlu1 %1131  ;;  %v1130_v28 = vpop.permute.xlu0 %1129 }
 0x1a9   :  { %1290 = vst.msk [vmem:[#allocation2 + $0x119] sm:$0x7f] %vm1255_vm6, %v1132_v27 }
 0x1aa   :  { %1289 = vst.msk [vmem:[#allocation2 + $0x111] sm:$0xff] %vm1253_vm7, %v1130_v28  ;;  %2944 = vrot.lane.b32.xlu1 %v6613_v24, %s6952_s8  ;;  %1846 = vrot.lane.b32.xlu0 %v1711_v26, %s6949_s11  ;;  %v6503_v28 = vld [vmem:[%s15169_s0 + $0x88] sm:$0x7f] }
 0x1ac   :  { %v1136_v31 = vpop.permute.xlu1 %1135  ;;  %v1134_v32 = vpop.permute.xlu0 %1133 }
 0x1ad   :  { %1292 = vst.msk [vmem:[#allocation2 + $0x129] sm:$0x7f] %vm1255_vm6, %v1136_v31 }
 0x1ae   :  { %1291 = vst.msk [vmem:[#allocation2 + $0x121] sm:$0xff] %vm1253_vm7, %v1134_v32  ;;  %2225 = vrot.lane.b32.xlu1 %v6495_v30, %s6950_s18  ;;  %2223 = vrot.lane.b32.xlu0 %v7970_v41, %s6950_s18 }
 0x1b0   :  { %v1140_v34 = vpop.permute.xlu1 %1139  ;;  %v1138_v35 = vpop.permute.xlu0 %1137 }
 0x1b1   :  { %1294 = vst.msk [vmem:[#allocation2 + $0x139] sm:$0x7f] %vm1255_vm6, %v1140_v34  ;;  %v6562_v34 = vld [vmem:[%s15169_s0 + $0x80] sm:$0xff] }
 0x1b2   :  { %1293 = vst.msk [vmem:[#allocation2 + $0x131] sm:$0xff] %vm1253_vm7, %v1138_v35  ;;  %1463 = vrot.lane.b32.xlu1 %v7970_v41, %s6948_s30  ;;  %2585 = vrot.lane.b32.xlu0 %v7970_v41, %s6951_s23 }
 0x1b4   :  { %v1144_v25 = vpop.permute.xlu1 %1143  ;;  %v1142_v38 = vpop.permute.xlu0 %1141 }
 0x1b5   :  { %1296 = vst.msk [vmem:[#allocation2 + $0x149] sm:$0x7f] %vm1255_vm6, %v1144_v25  ;;  %v6563_v25 = vld [vmem:[%s15169_s0 + $0x88] sm:$0xff] }
 0x1b6   :  { %1295 = vst.msk [vmem:[#allocation2 + $0x141] sm:$0xff] %vm1253_vm7, %v1142_v38  ;;  %2587 = vrot.lane.b32.xlu1 %v6555_v36, %s6951_s23  ;;  %1465 = vrot.lane.b32.xlu0 %v6555_v36, %s6948_s30 }
 0x1b8   :  { %v1148_v40 = vpop.permute.xlu1 %1147  ;;  %v1146_v41 = vpop.permute.xlu0 %1145 }
 0x1b9   :  { %1298 = vst.msk [vmem:[#allocation2 + $0x159] sm:$0x7f] %vm1255_vm6, %v1148_v40 }
 0x1ba   :  { %1297 = vst.msk [vmem:[#allocation2 + $0x151] sm:$0xff] %vm1253_vm7, %v1146_v41  ;;  %1848 = vrot.lane.b32.xlu1 %v1712_v39, %s6949_s11  ;;  %2946 = vrot.lane.b32.xlu0 %v1712_v39, %s6952_s8 }
 0x1bc   :  { %v1152_v44 = vpop.permute.xlu1 %1151  ;;  %v1150_v46 = vpop.permute.xlu0 %1149 }
 0x1bd   :  { %1300 = vst.msk [vmem:[#allocation2 + $0x169] sm:$0x7f] %vm1255_vm6, %v1152_v44 }
 0x1be   :  { %1299 = vst.msk [vmem:[#allocation2 + $0x161] sm:$0xff] %vm1253_vm7, %v1150_v46  ;;  %2948 = vrot.lane.b32.xlu1 %v6615_v42, %s6952_s8  ;;  %1850 = vrot.lane.b32.xlu0 %v1713_v43, %s6949_s11  ;;  %v6623_v42 = vld [vmem:[%s15169_s0 + $0x89] sm:$0x7f] }
 0x1bf   :  { %v1721_v43 = vld [vmem:[%s15169_s0 + $0x89] sm:$0x7f] }
 0x1c0   :  { %v1156_v48 = vpop.permute.xlu1 %1155  ;;  %v1154_v50 = vpop.permute.xlu0 %1153 }
 0x1c1   :  { %1302 = vst.msk [vmem:[#allocation2 + $0x179] sm:$0x7f] %vm1255_vm6, %v1156_v48  ;;  %v6505_v48 = vld [vmem:[%s15169_s0 + $0x98] sm:$0x7f] }
 0x1c2   :  { %1301 = vst.msk [vmem:[#allocation2 + $0x171] sm:$0xff] %vm1253_vm7, %v1154_v50  ;;  %2229 = vrot.lane.b32.xlu1 %v6497_v47, %s6950_s18  ;;  %2227 = vrot.lane.b32.xlu0 %v7983_v45, %s6950_s18  ;;  %v6504_v50 = vld [vmem:[%s15169_s0 + $0x90] sm:$0xff] }
 0x1c4   :  { %v1160_v51 = vpop.permute.xlu1 %1159  ;;  %v1158_v52 = vpop.permute.xlu0 %1157 }
 0x1c5   :  { %1304 = vst.msk [vmem:[#allocation2 + $0x189] sm:$0x7f] %vm1255_vm6, %v1160_v51 }
 0x1c6   :  { %1303 = vst.msk [vmem:[#allocation2 + $0x181] sm:$0xff] %vm1253_vm7, %v1158_v52  ;;  %1467 = vrot.lane.b32.xlu1 %v7983_v45, %s6948_s30  ;;  %2589 = vrot.lane.b32.xlu0 %v7983_v45, %s6951_s23 }
 0x1c8   :  { %v1164_v29 = vpop.permute.xlu1 %1163  ;;  %v1162_v55 = vpop.permute.xlu0 %1161 }
 0x1c9   :  { %1306 = vst.msk [vmem:[#allocation2 + $0x199] sm:$0x7f] %vm1255_vm6, %v1164_v29 }
 0x1ca   :  { %1305 = vst.msk [vmem:[#allocation2 + $0x191] sm:$0xff] %vm1253_vm7, %v1162_v55  ;;  %2591 = vrot.lane.b32.xlu1 %v6557_v54, %s6951_s23  ;;  %1469 = vrot.lane.b32.xlu0 %v6557_v54, %s6948_s30 }
 0x1cc   :  { %v1168_v58 = vpop.permute.xlu1 %1167  ;;  %v1166_v45 = vpop.permute.xlu0 %1165 }
 0x1cd   :  { %1308 = vst.msk [vmem:[#allocation2 + $0x1a9] sm:$0x7f] %vm1255_vm6, %v1168_v58 }
 0x1ce   :  { %1307 = vst.msk [vmem:[#allocation2 + $0x1a1] sm:$0xff] %vm1253_vm7, %v1166_v45  ;;  %1852 = vrot.lane.b32.xlu1 %v1714_v56, %s6949_s11  ;;  %2950 = vrot.lane.b32.xlu0 %v1714_v56, %s6952_s8  ;;  %v6565_v56 = vld [vmem:[%s15169_s0 + $0x98] sm:$0xff] }
 0x1d0   :  { %v1172_v61 = vpop.permute.xlu1 %1171  ;;  %v1170_v62 = vpop.permute.xlu0 %1169 }
 0x1d1   :  { %1310 = vst.msk [vmem:[#allocation2 + $0x1b9] sm:$0x7f] %vm1255_vm6, %v1172_v61 }
 0x1d2   :  { %1309 = vst.msk [vmem:[#allocation2 + $0x1b1] sm:$0xff] %vm1253_vm7, %v1170_v62  ;;  %2952 = vrot.lane.b32.xlu1 %v6617_v59, %s6952_s8  ;;  %1854 = vrot.lane.b32.xlu0 %v1715_v60, %s6949_s11  ;;  %v1722_v59 = vld [vmem:[%s15169_s0 + $0x91] sm:$0xff]  ;;  %v6625_v62 = vld [vmem:[%s15169_s0 + $0x99] sm:$0x7f] }
 0x1d4   :  { %v1176_v0 = vpop.permute.xlu1 %1175  ;;  %v1174_v1 = vpop.permute.xlu0 %1173 }
 0x1d5   :  { %1312 = vst.msk [vmem:[#allocation2 + $0x1c9] sm:$0x7f] %vm1255_vm6, %v1176_v0 }
 0x1d6   :  { %1311 = vst.msk [vmem:[#allocation2 + $0x1c1] sm:$0xff] %vm1253_vm7, %v1174_v1  ;;  %2233 = vrot.lane.b32.xlu1 %v6499_v63, %s6950_s18  ;;  %2231 = vrot.lane.b32.xlu0 %v7996_v49, %s6950_s18  ;;  %v1723_v63 = vld [vmem:[%s15169_s0 + $0x99] sm:$0x7f] }
 0x1d8   :  { %v1180_v3 = vpop.permute.xlu1 %1179  ;;  %v1178_v4 = vpop.permute.xlu0 %1177 }
 0x1d9   :  { %1314 = vst.msk [vmem:[#allocation2 + $0x1d9] sm:$0x7f] %vm1255_vm6, %v1180_v3 }
 0x1da   :  { %1313 = vst.msk [vmem:[#allocation2 + $0x1d1] sm:$0xff] %vm1253_vm7, %v1178_v4  ;;  %1471 = vrot.lane.b32.xlu1 %v7996_v49, %s6948_s30  ;;  %2593 = vrot.lane.b32.xlu0 %v7996_v49, %s6951_s23  ;;  %v1716_v49 = vld [vmem:[%s15169_s0 + $0x61] sm:$0xff] }
 0x1db   :  { %v6507_v4 = vld [vmem:[%s15169_s0 + $0xa8] sm:$0x7f] }
 0x1dc   :  { %v1450_v6 = vpop.permute.xlu1 %1449  ;;  %v1448_v7 = vpop.permute.xlu0 %1447 }
 0x1dd   :  { %1641 = vst.msk [vmem:[#allocation2 + $0x8] sm:$0xff] %vm1639_vm9, %v1450_v6  ;;  %1640 = vst.msk [vmem:[#allocation2] sm:$0xff] %vm1639_vm9, %v1448_v7 }
 0x1de   :  { %2595 = vrot.lane.b32.xlu1 %v6559_v5, %s6951_s23  ;;  %1473 = vrot.lane.b32.xlu0 %v6559_v5, %s6948_s30  ;;  %v6506_v5 = vld [vmem:[%s15169_s0 + $0xa0] sm:$0xff] }
 0x1e0   :  { %v1835_v8 = vpop.permute.xlu1 %1834  ;;  %v1833_v9 = vpop.permute.xlu0 %1832 }
 0x1e1   :  { %2027 = vst.msk [vmem:[#allocation2 + $0x8] sm:$0x7f] %vm2026_vm10, %v1835_v8 }
 0x1e2   :  { %2025 = vst.msk [vmem:[#allocation2] sm:$0xff] %vm2024_vm11, %v1833_v9  ;;  %1856 = vrot.lane.b32.xlu1 %v1716_v49, %s6949_s11  ;;  %2954 = vrot.lane.b32.xlu0 %v1716_v49, %s6952_s8 }
 0x1e4   :  { %v2214_v11 = vpop.permute.xlu1 %2213  ;;  %v2212_v12 = vpop.permute.xlu0 %2211 }
 0x1e5   :  { %2394 = vst.msk [vmem:[#allocation2 + $0x9] sm:$0x7f] %vm2393_vm12, %v2214_v11 }
 0x1e6   :  { %2392 = vst.msk [vmem:[#allocation2 + $0x1] sm:$0xff] %vm2391_vm13, %v2212_v12  ;;  %2956 = vrot.lane.b32.xlu1 %v6619_v33, %s6952_s8  ;;  %1858 = vrot.lane.b32.xlu0 %v1717_v10, %s6949_s11  ;;  %v6567_v33 = vld [vmem:[%s15169_s0 + $0xa8] sm:$0xff] }
 0x1e7   :  { %v1724_v12 = vld [vmem:[%s15169_s0 + $0xa1] sm:$0xff] }
 0x1e8   :  { %v1452_v14 = vpop.permute.xlu1 %1451  ;;  %v2574_v15 = vpop.permute.xlu0 %2573 }
 0x1e9   :  { %1642 = vst.msk [vmem:[#allocation2 + $0x10] sm:$0xff] %vm1639_vm9, %v1452_v14 }
 0x1ea   :  { %2754 = vst.msk [vmem:[#allocation2] sm:$0xff] %vm2753_vm14, %v2574_v15  ;;  %2237 = vrot.lane.b32.xlu1 %v6501_v13, %s6950_s18  ;;  %2235 = vrot.lane.b32.xlu0 %v8009_v53, %s6950_s18  ;;  %v6627_v15 = vld [vmem:[%s15169_s0 + $0xa9] sm:$0x7f] }
 0x1ec   :  { %v2576_v16 = vpop.permute.xlu1 %2575  ;;  %v1454_v17 = vpop.permute.xlu0 %1453 }
 0x1ed   :  { %2755 = vst.msk [vmem:[#allocation2 + $0x8] sm:$0xff] %vm2753_vm14, %v2576_v16  ;;  %v1725_v16 = vld [vmem:[%s15169_s0 + $0xa9] sm:$0x7f] }
 0x1ee   :  { %1643 = vst.msk [vmem:[#allocation2 + $0x18] sm:$0xff] %vm1639_vm9, %v1454_v17  ;;  %1475 = vrot.lane.b32.xlu1 %v8009_v53, %s6948_s30  ;;  %2597 = vrot.lane.b32.xlu0 %v8009_v53, %s6951_s23  ;;  %v1718_v53 = vld [vmem:[%s15169_s0 + $0x71] sm:$0xff] }
 0x1f0   :  { %v1837_v19 = vpop.permute.xlu1 %1836  ;;  %v2935_v20 = vpop.permute.xlu0 %2934 }
 0x1f1   :  { %2028 = vst.msk [vmem:[#allocation2 + $0x10] sm:$0xff] %vm2024_vm11, %v1837_v19 }
 0x1f2   :  { %3115 = vst.msk [vmem:[#allocation2] sm:$0xff] %vm3114_vm15, %v2935_v20  ;;  %2599 = vrot.lane.b32.xlu1 %v6561_v18, %s6951_s23  ;;  %1477 = vrot.lane.b32.xlu0 %v6561_v18, %s6948_s30  ;;  %v6509_v20 = vld [vmem:[%s15169_s0 + $0xb8] sm:$0x7f] }
 0x1f4   :  { %v2937_v21 = vpop.permute.xlu1 %2936  ;;  %v1839_v22 = vpop.permute.xlu0 %1838 }
 0x1f5   :  { %3117 = vst.msk [vmem:[#allocation2 + $0x8] sm:$0x7f] %vm3116_vm1, %v2937_v21 }
 0x1f6   :  { %2029 = vst.msk [vmem:[#allocation2 + $0x18] sm:$0x7f] %vm2026_vm10, %v1839_v22  ;;  %1860 = vrot.lane.b32.xlu1 %v1718_v53, %s6949_s11  ;;  %2958 = vrot.lane.b32.xlu0 %v1718_v53, %s6952_s8  ;;  %v6508_v53 = vld [vmem:[%s15169_s0 + $0xb0] sm:$0xff] }
 0x1f8   :  { %v2218_v24 = vpop.permute.xlu1 %2217  ;;  %v2216_v26 = vpop.permute.xlu0 %2215 }
 0x1f9   :  { %v3176_v27 = vld [vmem:[#allocation2] sm:$0xff]  ;;  %2396 = vst.msk [vmem:[#allocation2 + $0x19] sm:$0x7f] %vm2393_vm12, %v2218_v24 }
 0x1fa   :  { %2395 = vst.msk [vmem:[#allocation2 + $0x11] sm:$0xff] %vm2391_vm13, %v2216_v26  ;;  %6821 = vmatprep.mubr.msk.f32.mxu0 %vm22_vm0, %v3176_v27  ;;  %2960 = vrot.lane.b32.xlu1 %v6621_v23, %s6952_s8  ;;  %v6569_v26 = vld [vmem:[%s15169_s0 + $0xb8] sm:$0xff] }
 0x1fb   :  { %1862 = vrot.lane.b32.xlu0 %v1719_v37, %s6949_s11 }
 0x1fc   :  { %v1456_v30 = vpop.permute.xlu1 %1455  ;;  %v2578_v31 = vpop.permute.xlu0 %2577  ;;  %v3177_v32 = vld [vmem:[#allocation2 + $0x8] sm:$0xff] }
 0x1fd   :  { %1644 = vst.msk [vmem:[#allocation2 + $0x20] sm:$0xff] %vm1639_vm9, %v1456_v30  ;;  %6822 = vmatmul.mubr.msk.f32.vlgmr.msra.gmra.mrb[0].mxu0 %vm22_vm0, %v3177_v32  ;;  %v1726_v30 = vld [vmem:[%s15169_s0 + $0xb1] sm:$0xff] }
 0x1fe   :  { %2756 = vst.msk [vmem:[#allocation2 + $0x10] sm:$0xff] %vm2753_vm14, %v2578_v31  ;;  %2241 = vrot.lane.b32.xlu1 %v6503_v28, %s6950_s18 }
 0x1ff   :  { %2239 = vrot.lane.b32.xlu0 %v8022_v57, %s6950_s18 }
 0x200   :  { %v2580_v35 = vpop.permute.xlu1 %2579  ;;  %v1458_v36 = vpop.permute.xlu0 %1457 }
 0x201   :  { %2757 = vst.msk [vmem:[#allocation2 + $0x18] sm:$0xff] %vm2753_vm14, %v2580_v35  ;;  %v1727_v35 = vld [vmem:[%s15169_s0 + $0xb9] sm:$0x7f] }
 0x202   :  { %1645 = vst.msk [vmem:[#allocation2 + $0x28] sm:$0xff] %vm1639_vm9, %v1458_v36  ;;  %1479 = vrot.lane.b32.xlu1 %v8022_v57, %s6948_s30  ;;  %v1720_v57 = vld [vmem:[%s15169_s0 + $0x81] sm:$0xff] }
 0x203   :  { %2601 = vrot.lane.b32.xlu0 %v6562_v34, %s6951_s23  ;;  %v6629_v34 = vld [vmem:[%s15169_s0 + $0xb9] sm:$0x7f] }
 0x204   :  { %v1841_v38 = vpop.permute.xlu1 %1840  ;;  %v2939_v39 = vpop.permute.xlu0 %2938 }
 0x205   :  { %2030 = vst.msk [vmem:[#allocation2 + $0x20] sm:$0xff] %vm2024_vm11, %v1841_v38 }
 0x206   :  { %3118 = vst.msk [vmem:[#allocation2 + $0x10] sm:$0xff] %vm3114_vm15, %v2939_v39  ;;  %2603 = vrot.lane.b32.xlu1 %v6563_v25, %s6951_s23  ;;  %v6511_v39 = vld [vmem:[%s15169_s0 + $0xc8] sm:$0x7f] }
 0x207   :  { %1481 = vrot.lane.b32.xlu0 %v6563_v25, %s6948_s30 }
 0x208   :  { %v2941_v40 = vpop.permute.xlu1 %2940  ;;  %v1843_v41 = vpop.permute.xlu0 %1842 }
 0x209   :  { %3119 = vst.msk [vmem:[#allocation2 + $0x18] sm:$0x7f] %vm3116_vm1, %v2941_v40 }
 0x20a   :  { %2031 = vst.msk [vmem:[#allocation2 + $0x28] sm:$0x7f] %vm2026_vm10, %v1843_v41  ;;  %1864 = vrot.lane.b32.xlu1 %v1720_v57, %s6949_s11 }
 0x20b   :  { %2962 = vrot.lane.b32.xlu0 %v1720_v57, %s6952_s8  ;;  %v6510_v57 = vld [vmem:[%s15169_s0 + $0xc0] sm:$0xff] }
 0x20c   :  { %v2222_v44 = vpop.permute.xlu1 %2221  ;;  %v2220_v46 = vpop.permute.xlu0 %2219 }
 0x20d   :  { %v3178_v47 = vld [vmem:[#allocation2 + $0x10] sm:$0xff]  ;;  %2398 = vst.msk [vmem:[#allocation2 + $0x29] sm:$0x7f] %vm2393_vm12, %v2222_v44 }
 0x20e   :  { %2397 = vst.msk [vmem:[#allocation2 + $0x21] sm:$0xff] %vm2391_vm13, %v2220_v46  ;;  %6824 = vmatprep.mubr.msk.f32.mxu0 %vm22_vm0, %v3178_v47  ;;  %2964 = vrot.lane.b32.xlu1 %v6623_v42, %s6952_s8  ;;  %v6571_v46 = vld [vmem:[%s15169_s0 + $0xc8] sm:$0xff] }
 0x20f   :  { %1866 = vrot.lane.b32.xlu0 %v1721_v43, %s6949_s11 }
 0x210   :  { %v1460_v51 = vpop.permute.xlu1 %1459  ;;  %v2582_v52 = vpop.permute.xlu0 %2581  ;;  %v3179_v54 = vld [vmem:[#allocation2 + $0x18] sm:$0xff] }
 0x211   :  { %1646 = vst.msk [vmem:[#allocation2 + $0x30] sm:$0xff] %vm1639_vm9, %v1460_v51  ;;  %6825 = vmatmul.mubr.msk.f32.gmra.mrb[2].mxu0 %vm22_vm0, %v3179_v54  ;;  %v6631_v54 = vld [vmem:[%s15169_s0 + $0xc9] sm:$0x7f] }
 0x212   :  { %2758 = vst.msk [vmem:[#allocation2 + $0x20] sm:$0xff] %vm2753_vm14, %v2582_v52  ;;  %2245 = vrot.lane.b32.xlu1 %v6505_v48, %s6950_s18 }
 0x213   :  { %2243 = vrot.lane.b32.xlu0 %v6504_v50, %s6950_s18 }
 0x214   :  { %v2584_v29 = vpop.permute.xlu1 %2583  ;;  %v1462_v55 = vpop.permute.xlu0 %1461 }
 0x215   :  { %2759 = vst.msk [vmem:[#allocation2 + $0x28] sm:$0xff] %vm2753_vm14, %v2584_v29  ;;  %v1729_v29 = vld [vmem:[%s15169_s0 + $0xc9] sm:$0x7f] }
 0x216   :  { %1647 = vst.msk [vmem:[#allocation2 + $0x38] sm:$0xff] %vm1639_vm9, %v1462_v55  ;;  %1483 = vrot.lane.b32.xlu1 %v6504_v50, %s6948_s30 }
 0x217   :  { %2605 = vrot.lane.b32.xlu0 %v6504_v50, %s6951_s23  ;;  %v1728_v50 = vld [vmem:[%s15169_s0 + $0xc1] sm:$0xff] }
 0x218   :  { %v1845_v58 = vpop.permute.xlu1 %1844  ;;  %v2943_v45 = vpop.permute.xlu0 %2942 }
 0x219   :  { %2032 = vst.msk [vmem:[#allocation2 + $0x30] sm:$0xff] %vm2024_vm11, %v1845_v58 }
 0x21a   :  { %3120 = vst.msk [vmem:[#allocation2 + $0x20] sm:$0xff] %vm3114_vm15, %v2943_v45  ;;  %2607 = vrot.lane.b32.xlu1 %v6565_v56, %s6951_s23  ;;  %v6513_v45 = vld [vmem:[%s15169_s0 + $0xd8] sm:$0x7f] }
 0x21b   :  { %1485 = vrot.lane.b32.xlu0 %v6565_v56, %s6948_s30 }
 0x21c   :  { %v2945_v60 = vpop.permute.xlu1 %2944  ;;  %v1847_v61 = vpop.permute.xlu0 %1846 }
 0x21d   :  { %3121 = vst.msk [vmem:[#allocation2 + $0x28] sm:$0x7f] %vm3116_vm1, %v2945_v60 }
 0x21e   :  { %2033 = vst.msk [vmem:[#allocation2 + $0x38] sm:$0x7f] %vm2026_vm10, %v1847_v61  ;;  %1868 = vrot.lane.b32.xlu1 %v1722_v59, %s6949_s11 }
 0x21f   :  { %2966 = vrot.lane.b32.xlu0 %v1722_v59, %s6952_s8  ;;  %v6512_v59 = vld [vmem:[%s15169_s0 + $0xd0] sm:$0xff] }
 0x220   :  { %v2226_v0 = vpop.permute.xlu1 %2225  ;;  %v2224_v1 = vpop.permute.xlu0 %2223 }
 0x221   :  { %v3180_v3 = vld [vmem:[#allocation2 + $0x20] sm:$0xff]  ;;  %2400 = vst.msk [vmem:[#allocation2 + $0x39] sm:$0x7f] %vm2393_vm12, %v2226_v0 }
 0x222   :  { %2399 = vst.msk [vmem:[#allocation2 + $0x31] sm:$0xff] %vm2391_vm13, %v2224_v1  ;;  %6827 = vmatprep.mubr.msk.f32.mxu0 %vm22_vm0, %v3180_v3  ;;  %2968 = vrot.lane.b32.xlu1 %v6625_v62, %s6952_s8  ;;  %v6573_v1 = vld [vmem:[%s15169_s0 + $0xd8] sm:$0xff] }
 0x223   :  { %1870 = vrot.lane.b32.xlu0 %v1723_v63, %s6949_s11 }
 0x224   :  { %v1464_v6 = vpop.permute.xlu1 %1463  ;;  %v2586_v7 = vpop.permute.xlu0 %2585  ;;  %v3181_v49 = vld [vmem:[#allocation2 + $0x28] sm:$0xff] }
 0x225   :  { %1648 = vst.msk [vmem:[#allocation2 + $0x40] sm:$0xff] %vm1639_vm9, %v1464_v6  ;;  %6828 = vmatmul.mubr.msk.f32.gmra.mrb[4].mxu0 %vm22_vm0, %v3181_v49  ;;  %v6633_v49 = vld [vmem:[%s15169_s0 + $0xd9] sm:$0x7f] }
 0x226   :  { %2760 = vst.msk [vmem:[#allocation2 + $0x30] sm:$0xff] %vm2753_vm14, %v2586_v7  ;;  %2249 = vrot.lane.b32.xlu1 %v6507_v4, %s6950_s18 }
 0x227   :  { %2247 = vrot.lane.b32.xlu0 %v6506_v5, %s6950_s18 }
 0x228   :  { %v2588_v8 = vpop.permute.xlu1 %2587  ;;  %v1466_v9 = vpop.permute.xlu0 %1465 }
 0x229   :  { %2761 = vst.msk [vmem:[#allocation2 + $0x38] sm:$0xff] %vm2753_vm14, %v2588_v8  ;;  %v1731_v8 = vld [vmem:[%s15169_s0 + $0xd9] sm:$0x7f] }
 0x22a   :  { %1649 = vst.msk [vmem:[#allocation2 + $0x48] sm:$0xff] %vm1639_vm9, %v1466_v9  ;;  %1487 = vrot.lane.b32.xlu1 %v6506_v5, %s6948_s30 }
 0x22b   :  { %2609 = vrot.lane.b32.xlu0 %v6506_v5, %s6951_s23  ;;  %v1730_v5 = vld [vmem:[%s15169_s0 + $0xd1] sm:$0xff] }
 0x22c   :  { %v1849_v10 = vpop.permute.xlu1 %1848  ;;  %v2947_v11 = vpop.permute.xlu0 %2946 }
 0x22d   :  { %2034 = vst.msk [vmem:[#allocation2 + $0x40] sm:$0xff] %vm2024_vm11, %v1849_v10 }
 0x22e   :  { %3122 = vst.msk [vmem:[#allocation2 + $0x30] sm:$0xff] %vm3114_vm15, %v2947_v11  ;;  %2611 = vrot.lane.b32.xlu1 %v6567_v33, %s6951_s23  ;;  %v6515_v11 = vld [vmem:[%s15169_s0 + $0xe8] sm:$0x7f] }
 0x22f   :  { %1489 = vrot.lane.b32.xlu0 %v6567_v33, %s6948_s30 }
 0x230   :  { %v2949_v13 = vpop.permute.xlu1 %2948  ;;  %v1851_v14 = vpop.permute.xlu0 %1850 }
 0x231   :  { %3123 = vst.msk [vmem:[#allocation2 + $0x38] sm:$0x7f] %vm3116_vm1, %v2949_v13 }
 0x232   :  { %2035 = vst.msk [vmem:[#allocation2 + $0x48] sm:$0x7f] %vm2026_vm10, %v1851_v14  ;;  %1872 = vrot.lane.b32.xlu1 %v1724_v12, %s6949_s11 }
 0x233   :  { %2970 = vrot.lane.b32.xlu0 %v1724_v12, %s6952_s8  ;;  %v6514_v12 = vld [vmem:[%s15169_s0 + $0xe0] sm:$0xff] }
 0x234   :  { %v2230_v17 = vpop.permute.xlu1 %2229  ;;  %v2228_v18 = vpop.permute.xlu0 %2227 }
 0x235   :  { %v3182_v19 = vld [vmem:[#allocation2 + $0x30] sm:$0xff]  ;;  %2402 = vst.msk [vmem:[#allocation2 + $0x49] sm:$0x7f] %vm2393_vm12, %v2230_v17 }
 0x236   :  { %2401 = vst.msk [vmem:[#allocation2 + $0x41] sm:$0xff] %vm2391_vm13, %v2228_v18  ;;  %6830 = vmatprep.mubr.msk.f32.mxu0 %vm22_vm0, %v3182_v19  ;;  %2972 = vrot.lane.b32.xlu1 %v6627_v15, %s6952_s8  ;;  %v6575_v18 = vld [vmem:[%s15169_s0 + $0xe8] sm:$0xff] }
 0x237   :  { %1874 = vrot.lane.b32.xlu0 %v1725_v16, %s6949_s11 }
 0x238   :  { %v1468_v21 = vpop.permute.xlu1 %1467  ;;  %v2590_v22 = vpop.permute.xlu0 %2589  ;;  %v3183_v23 = vld [vmem:[#allocation2 + $0x38] sm:$0xff] }
 0x239   :  { %1650 = vst.msk [vmem:[#allocation2 + $0x50] sm:$0xff] %vm1639_vm9, %v1468_v21  ;;  %6831 = vmatmul.mubr.msk.f32.gmra.mrb[6].mxu0 %vm22_vm0, %v3183_v23  ;;  %v6635_v23 = vld [vmem:[%s15169_s0 + $0xe9] sm:$0x7f] }
 0x23a   :  { %2762 = vst.msk [vmem:[#allocation2 + $0x40] sm:$0xff] %vm2753_vm14, %v2590_v22  ;;  %2253 = vrot.lane.b32.xlu1 %v6509_v20, %s6950_s18 }
 0x23b   :  { %2251 = vrot.lane.b32.xlu0 %v6508_v53, %s6950_s18 }
 0x23c   :  { %v2592_v37 = vpop.permute.xlu1 %2591  ;;  %v1470_v24 = vpop.permute.xlu0 %1469 }
 0x23d   :  { %2763 = vst.msk [vmem:[#allocation2 + $0x48] sm:$0xff] %vm2753_vm14, %v2592_v37  ;;  %v1733_v37 = vld [vmem:[%s15169_s0 + $0xe9] sm:$0x7f] }
 0x23e   :  { %1651 = vst.msk [vmem:[#allocation2 + $0x58] sm:$0xff] %vm1639_vm9, %v1470_v24  ;;  %1491 = vrot.lane.b32.xlu1 %v6508_v53, %s6948_s30 }
 0x23f   :  { %2613 = vrot.lane.b32.xlu0 %v6508_v53, %s6951_s23  ;;  %v1732_v53 = vld [vmem:[%s15169_s0 + $0xe1] sm:$0xff] }
 0x240   :  { %v1853_v27 = vpop.permute.xlu1 %1852  ;;  %v2951_v28 = vpop.permute.xlu0 %2950 }
 0x241   :  { %2036 = vst.msk [vmem:[#allocation2 + $0x50] sm:$0xff] %vm2024_vm11, %v1853_v27 }
 0x242   :  { %3124 = vst.msk [vmem:[#allocation2 + $0x40] sm:$0xff] %vm3114_vm15, %v2951_v28  ;;  %2615 = vrot.lane.b32.xlu1 %v6569_v26, %s6951_s23  ;;  %v6517_v28 = vld [vmem:[%s15169_s0 + $0xf8] sm:$0x7f] }
 0x243   :  { %1493 = vrot.lane.b32.xlu0 %v6569_v26, %s6948_s30 }
 0x244   :  { %v2953_v31 = vpop.permute.xlu1 %2952  ;;  %v1855_v32 = vpop.permute.xlu0 %1854 }
 0x245   :  { %3125 = vst.msk [vmem:[#allocation2 + $0x48] sm:$0x7f] %vm3116_vm1, %v2953_v31 }
 0x246   :  { %2037 = vst.msk [vmem:[#allocation2 + $0x58] sm:$0x7f] %vm2026_vm10, %v1855_v32  ;;  %1876 = vrot.lane.b32.xlu1 %v1726_v30, %s6949_s11 }
 0x247   :  { %2974 = vrot.lane.b32.xlu0 %v1726_v30, %s6952_s8  ;;  %v6516_v30 = vld [vmem:[%s15169_s0 + $0xf0] sm:$0xff] }
 0x248   :  { %v2234_v36 = vpop.permute.xlu1 %2233  ;;  %v2232_v25 = vpop.permute.xlu0 %2231 }
 0x249   :  { %v3184_v38 = vld [vmem:[#allocation2 + $0x40] sm:$0xff]  ;;  %2404 = vst.msk [vmem:[#allocation2 + $0x59] sm:$0x7f] %vm2393_vm12, %v2234_v36 }
 0x24a   :  { %2403 = vst.msk [vmem:[#allocation2 + $0x51] sm:$0xff] %vm2391_vm13, %v2232_v25  ;;  %6833 = vmatprep.mubr.msk.f32.mxu0 %vm22_vm0, %v3184_v38  ;;  %2976 = vrot.lane.b32.xlu1 %v6629_v34, %s6952_s8  ;;  %v6637_v38 = vld [vmem:[%s15169_s0 + $0xf9] sm:$0x7f] }
 0x24b   :  { %1878 = vrot.lane.b32.xlu0 %v1727_v35, %s6949_s11  ;;  %v6577_v35 = vld [vmem:[%s15169_s0 + $0xf8] sm:$0xff] }
 0x24c   :  { %v1472_v40 = vpop.permute.xlu1 %1471  ;;  %v2594_v41 = vpop.permute.xlu0 %2593  ;;  %v3185_v42 = vld [vmem:[#allocation2 + $0x48] sm:$0xff] }
 0x24d   :  { %1652 = vst.msk [vmem:[#allocation2 + $0x60] sm:$0xff] %vm1639_vm9, %v1472_v40  ;;  %6834 = vmatmul.mubr.msk.f32.gmra.mrb[8].mxu0 %vm22_vm0, %v3185_v42 }
 0x24e   :  { %2764 = vst.msk [vmem:[#allocation2 + $0x50] sm:$0xff] %vm2753_vm14, %v2594_v41  ;;  %2257 = vrot.lane.b32.xlu1 %v6511_v39, %s6950_s18  ;;  %v6636_v39 = vld [vmem:[%s15169_s0 + $0xf1] sm:$0xff] }
 0x24f   :  { %2255 = vrot.lane.b32.xlu0 %v6510_v57, %s6950_s18 }
 0x250   :  { %v2596_v43 = vpop.permute.xlu1 %2595  ;;  %v1474_v44 = vpop.permute.xlu0 %1473 }
 0x251   :  { %2765 = vst.msk [vmem:[#allocation2 + $0x58] sm:$0xff] %vm2753_vm14, %v2596_v43  ;;  %v1352_v43 = vld [vmem:[%s15169_s0 + $0x108] sm:$0xff] }
 0x252   :  { %1653 = vst.msk [vmem:[#allocation2 + $0x68] sm:$0xff] %vm1639_vm9, %v1474_v44  ;;  %1495 = vrot.lane.b32.xlu1 %v6510_v57, %s6948_s30  ;;  %v1351_v44 = vld [vmem:[%s15169_s0 + $0x100] sm:$0xff] }
 0x253   :  { %2617 = vrot.lane.b32.xlu0 %v6510_v57, %s6951_s23 }
 0x254   :  { %v1857_v47 = vpop.permute.xlu1 %1856  ;;  %v2955_v48 = vpop.permute.xlu0 %2954 }
 0x255   :  { %2038 = vst.msk [vmem:[#allocation2 + $0x60] sm:$0xff] %vm2024_vm11, %v1857_v47 }
 0x256   :  { %3126 = vst.msk [vmem:[#allocation2 + $0x50] sm:$0xff] %vm3114_vm15, %v2955_v48  ;;  %2619 = vrot.lane.b32.xlu1 %v6571_v46, %s6951_s23 }
 0x257   :  { %1497 = vrot.lane.b32.xlu0 %v6571_v46, %s6948_s30 }
 0x258   :  { %v2957_v51 = vpop.permute.xlu1 %2956  ;;  %v1859_v52 = vpop.permute.xlu0 %1858 }
 0x259   :  { %3127 = vst.msk [vmem:[#allocation2 + $0x58] sm:$0x7f] %vm3116_vm1, %v2957_v51 }
 0x25a   :  { %2039 = vst.msk [vmem:[#allocation2 + $0x68] sm:$0x7f] %vm2026_vm10, %v1859_v52  ;;  %1880 = vrot.lane.b32.xlu1 %v1728_v50, %s6949_s11 }
 0x25b   :  { %2978 = vrot.lane.b32.xlu0 %v1728_v50, %s6952_s8  ;;  %v1735_v50 = vld [vmem:[%s15169_s0 + $0xf9] sm:$0x7f] }
 0x25c   :  { %v2238_v55 = vpop.permute.xlu1 %2237  ;;  %v2236_v56 = vpop.permute.xlu0 %2235 }
 0x25d   :  { %v3186_v58 = vld [vmem:[#allocation2 + $0x50] sm:$0xff]  ;;  %2406 = vst.msk [vmem:[#allocation2 + $0x69] sm:$0x7f] %vm2393_vm12, %v2238_v55  ;;  %v1736_v55 = vld [vmem:[%s15169_s0 + $0x101] sm:$0xff] }
 0x25e   :  { %2405 = vst.msk [vmem:[#allocation2 + $0x61] sm:$0xff] %vm2391_vm13, %v2236_v56  ;;  %6836 = vmatprep.mubr.msk.f32.mxu0 %vm22_vm0, %v3186_v58  ;;  %2980 = vrot.lane.b32.xlu1 %v6631_v54, %s6952_s8 }
 0x25f   :  { %1882 = vrot.lane.b32.xlu0 %v1729_v29, %s6949_s11  ;;  %v1737_v29 = vld [vmem:[%s15169_s0 + $0x109] sm:$0x7f] }
 0x260   :  { %v1476_v60 = vpop.permute.xlu1 %1475  ;;  %v2598_v61 = vpop.permute.xlu0 %2597  ;;  %v3187_v62 = vld [vmem:[#allocation2 + $0x58] sm:$0xff] }
 0x261   :  { %1654 = vst.msk [vmem:[#allocation2 + $0x70] sm:$0xff] %vm1639_vm9, %v1476_v60  ;;  %6837 = vmatmul.mubr.msk.f32.gmra.mrb[10].mxu0 %vm22_vm0, %v3187_v62 }
 0x262   :  { %2766 = vst.msk [vmem:[#allocation2 + $0x60] sm:$0xff] %vm2753_vm14, %v2598_v61  ;;  %2261 = vrot.lane.b32.xlu1 %v6513_v45, %s6950_s18  ;;  %v6519_v45 = vld [vmem:[%s15169_s0 + $0x118] sm:$0x7f] }
 0x263   :  { %2259 = vrot.lane.b32.xlu0 %v6512_v59, %s6950_s18 }
 0x264   :  { %v2600_v63 = vpop.permute.xlu1 %2599  ;;  %v1478_v0 = vpop.permute.xlu0 %1477 }
 0x265   :  { %2767 = vst.msk [vmem:[#allocation2 + $0x68] sm:$0xff] %vm2753_vm14, %v2600_v63 }
 0x266   :  { %1655 = vst.msk [vmem:[#allocation2 + $0x78] sm:$0xff] %vm1639_vm9, %v1478_v0  ;;  %1499 = vrot.lane.b32.xlu1 %v6512_v59, %s6948_s30  ;;  %v6579_v0 = vld [vmem:[%s15169_s0 + $0x118] sm:$0xff] }
 0x267   :  { %2621 = vrot.lane.b32.xlu0 %v6512_v59, %s6951_s23  ;;  %v6518_v59 = vld [vmem:[%s15169_s0 + $0x110] sm:$0xff] }
 0x268   :  { %v1861_v3 = vpop.permute.xlu1 %1860  ;;  %v2959_v4 = vpop.permute.xlu0 %2958 }
 0x269   :  { %2040 = vst.msk [vmem:[#allocation2 + $0x70] sm:$0xff] %vm2024_vm11, %v1861_v3 }
 0x26a   :  { %3128 = vst.msk [vmem:[#allocation2 + $0x60] sm:$0xff] %vm3114_vm15, %v2959_v4  ;;  %2623 = vrot.lane.b32.xlu1 %v6573_v1, %s6951_s23 }
 0x26b   :  { %1501 = vrot.lane.b32.xlu0 %v6573_v1, %s6948_s30 }
 0x26c   :  { %v2961_v6 = vpop.permute.xlu1 %2960 }
 0x26d   :  { %v1863_v7 = vpop.permute.xlu0 %1862  ;;  %3129 = vst.msk [vmem:[#allocation2 + $0x68] sm:$0x7f] %vm3116_vm1, %v2961_v6 }
 0x26e   :  { %2041 = vst.msk [vmem:[#allocation2 + $0x78] sm:$0x7f] %vm2026_vm10, %v1863_v7  ;;  %1884 = vrot.lane.b32.xlu1 %v1730_v5, %s6949_s11 }
 0x26f   :  { %2982 = vrot.lane.b32.xlu0 %v1730_v5, %s6952_s8  ;;  %v1738_v5 = vld [vmem:[%s15169_s0 + $0x111] sm:$0xff] }
 0x270   :  { %v2242_v9 = vpop.permute.xlu1 %2241 }
 0x271   :  { %v2240_v33 = vpop.permute.xlu0 %2239  ;;  %v3188_v10 = vld [vmem:[#allocation2 + $0x60] sm:$0xff]  ;;  %2408 = vst.msk [vmem:[#allocation2 + $0x79] sm:$0x7f] %vm2393_vm12, %v2242_v9  ;;  %v1739_v9 = vld [vmem:[%s15169_s0 + $0x119] sm:$0x7f] }
 0x272   :  { %2407 = vst.msk [vmem:[#allocation2 + $0x71] sm:$0xff] %vm2391_vm13, %v2240_v33  ;;  %6839 = vmatprep.mubr.msk.f32.mxu0 %vm22_vm0, %v3188_v10  ;;  %2984 = vrot.lane.b32.xlu1 %v6633_v49, %s6952_s8 }
 0x273   :  { %1886 = vrot.lane.b32.xlu0 %v1731_v8, %s6949_s11  ;;  %v6639_v8 = vld [vmem:[%s15169_s0 + $0x119] sm:$0x7f] }
 0x274   :  { %v1480_v13 = vpop.permute.xlu1 %1479  ;;  %v3189_v15 = vld [vmem:[#allocation2 + $0x68] sm:$0xff] }
 0x275   :  { %v2602_v14 = vpop.permute.xlu0 %2601  ;;  %1656 = vst.msk [vmem:[#allocation2 + $0x80] sm:$0xff] %vm1639_vm9, %v1480_v13  ;;  %6840 = vmatmul.mubr.msk.f32.gmra.mrb[12].mxu0 %vm22_vm0, %v3189_v15 }
 0x276   :  { %2768 = vst.msk [vmem:[#allocation2 + $0x70] sm:$0xff] %vm2753_vm14, %v2602_v14  ;;  %2265 = vrot.lane.b32.xlu1 %v6515_v11, %s6950_s18  ;;  %v6521_v11 = vld [vmem:[%s15169_s0 + $0x128] sm:$0x7f] }
 0x277   :  { %2263 = vrot.lane.b32.xlu0 %v6514_v12, %s6950_s18 }
 0x278   :  { %v2604_v16 = vpop.permute.xlu1 %2603 }
 0x279   :  { %v1482_v17 = vpop.permute.xlu0 %1481  ;;  %2769 = vst.msk [vmem:[#allocation2 + $0x78] sm:$0xff] %vm2753_vm14, %v2604_v16 }
 0x27a   :  { %1657 = vst.msk [vmem:[#allocation2 + $0x88] sm:$0xff] %vm1639_vm9, %v1482_v17  ;;  %1503 = vrot.lane.b32.xlu1 %v6514_v12, %s6948_s30  ;;  %v6581_v17 = vld [vmem:[%s15169_s0 + $0x128] sm:$0xff] }
 0x27b   :  { %2625 = vrot.lane.b32.xlu0 %v6514_v12, %s6951_s23  ;;  %v6520_v12 = vld [vmem:[%s15169_s0 + $0x120] sm:$0xff] }
 0x27c   :  { %v1865_v19 = vpop.permute.xlu1 %1864 }
 0x27d   :  { %v2963_v20 = vpop.permute.xlu0 %2962  ;;  %2042 = vst.msk [vmem:[#allocation2 + $0x80] sm:$0xff] %vm2024_vm11, %v1865_v19 }
 0x27e   :  { %3130 = vst.msk [vmem:[#allocation2 + $0x70] sm:$0xff] %vm3114_vm15, %v2963_v20  ;;  %2627 = vrot.lane.b32.xlu1 %v6575_v18, %s6951_s23 }
 0x27f   :  { %1505 = vrot.lane.b32.xlu0 %v6575_v18, %s6948_s30 }
 0x280   :  { %v2965_v21 = vpop.permute.xlu1 %2964 }
 0x281   :  { %v1867_v22 = vpop.permute.xlu0 %1866  ;;  %3131 = vst.msk [vmem:[#allocation2 + $0x78] sm:$0x7f] %vm3116_vm1, %v2965_v21 }
 0x282   :  { %2043 = vst.msk [vmem:[#allocation2 + $0x88] sm:$0x7f] %vm2026_vm10, %v1867_v22  ;;  %1888 = vrot.lane.b32.xlu1 %v1732_v53, %s6949_s11 }
 0x283   :  { %2986 = vrot.lane.b32.xlu0 %v1732_v53, %s6952_s8  ;;  %v1740_v53 = vld [vmem:[%s15169_s0 + $0x121] sm:$0xff] }
 0x284   :  { %v2246_v24 = vpop.permute.xlu1 %2245 }
 0x285   :  { %v2244_v26 = vpop.permute.xlu0 %2243  ;;  %v3190_v27 = vld [vmem:[#allocation2 + $0x70] sm:$0xff]  ;;  %2410 = vst.msk [vmem:[#allocation2 + $0x89] sm:$0x7f] %vm2393_vm12, %v2246_v24  ;;  %v1741_v24 = vld [vmem:[%s15169_s0 + $0x129] sm:$0x7f] }
 0x286   :  { %2409 = vst.msk [vmem:[#allocation2 + $0x81] sm:$0xff] %vm2391_vm13, %v2244_v26  ;;  %6842 = vmatprep.mubr.msk.f32.mxu0 %vm22_vm0, %v3190_v27  ;;  %2988 = vrot.lane.b32.xlu1 %v6635_v23, %s6952_s8 }
 0x287   :  { %1890 = vrot.lane.b32.xlu0 %v1733_v37, %s6949_s11  ;;  %v6641_v37 = vld [vmem:[%s15169_s0 + $0x129] sm:$0x7f] }
 0x288   :  { %v1484_v31 = vpop.permute.xlu1 %1483  ;;  %v3191_v34 = vld [vmem:[#allocation2 + $0x78] sm:$0xff] }
 0x289   :  { %v2606_v32 = vpop.permute.xlu0 %2605  ;;  %1658 = vst.msk [vmem:[#allocation2 + $0x90] sm:$0xff] %vm1639_vm9, %v1484_v31  ;;  %6843 = vmatmul.mubr.msk.f32.gmra.mrb[14].mxu0 %vm22_vm0, %v3191_v34 }
 0x28a   :  { %2770 = vst.msk [vmem:[#allocation2 + $0x80] sm:$0xff] %vm2753_vm14, %v2606_v32  ;;  %2269 = vrot.lane.b32.xlu1 %v6517_v28, %s6950_s18  ;;  %v6523_v28 = vld [vmem:[%s15169_s0 + $0x138] sm:$0x7f] }
 0x28b   :  { %2267 = vrot.lane.b32.xlu0 %v6516_v30, %s6950_s18 }
 0x28c   :  { %v2608_v36 = vpop.permute.xlu1 %2607 }
 0x28d   :  { %v1486_v25 = vpop.permute.xlu0 %1485  ;;  %2771 = vst.msk [vmem:[#allocation2 + $0x88] sm:$0xff] %vm2753_vm14, %v2608_v36 }
 0x28e   :  { %1659 = vst.msk [vmem:[#allocation2 + $0x98] sm:$0xff] %vm1639_vm9, %v1486_v25  ;;  %2631 = vrot.lane.b32.xlu1 %v6577_v35, %s6951_s23 }
 0x28f   :  { %2629 = vrot.lane.b32.xlu0 %v6516_v30, %s6951_s23 }
 0x290   :  { %v1869_v57 = vpop.permute.xlu1 %1868 }
 0x291   :  { %v2967_v40 = vpop.permute.xlu0 %2966  ;;  %2044 = vst.msk [vmem:[#allocation2 + $0x90] sm:$0xff] %vm2024_vm11, %v1869_v57 }
 0x292   :  { %3132 = vst.msk [vmem:[#allocation2 + $0x80] sm:$0xff] %vm3114_vm15, %v2967_v40  ;;  %2992 = vrot.lane.b32.xlu1 %v6637_v38, %s6952_s8  ;;  %v6583_v40 = vld [vmem:[%s15169_s0 + $0x138] sm:$0xff] }
 0x293   :  { %2990 = vrot.lane.b32.xlu0 %v6636_v39, %s6952_s8 }
 0x294   :  { %v2969_v41 = vpop.permute.xlu1 %2968 }
 0x295   :  { %v1871_v42 = vpop.permute.xlu0 %1870  ;;  %3133 = vst.msk [vmem:[#allocation2 + $0x88] sm:$0x7f] %vm3116_vm1, %v2969_v41 }
 0x296   :  { %2045 = vst.msk [vmem:[#allocation2 + $0x98] sm:$0x7f] %vm2026_vm10, %v1871_v42  ;;  %1509 = vrot.lane.b32.xlu1 %v6577_v35, %s6948_s30 }
 0x297   :  { %1507 = vrot.lane.b32.xlu0 %v6516_v30, %s6948_s30  ;;  %v6522_v30 = vld [vmem:[%s15169_s0 + $0x130] sm:$0xff] }
 0x298   :  { %v2250_v46 = vpop.permute.xlu1 %2249 }
 0x299   :  { %v2248_v47 = vpop.permute.xlu0 %2247  ;;  %v3192_v48 = vld [vmem:[#allocation2 + $0x80] sm:$0xff]  ;;  %2412 = vst.msk [vmem:[#allocation2 + $0x99] sm:$0x7f] %vm2393_vm12, %v2250_v46 }
 0x29a   :  { %2411 = vst.msk [vmem:[#allocation2 + $0x91] sm:$0xff] %vm2391_vm13, %v2248_v47  ;;  %6845 = vmatprep.mubr.msk.f32.mxu0 %vm22_vm0, %v3192_v48  ;;  %1513 = vrot.lane.b32.xlu1 %v1352_v43, %s6948_s30 }
 0x29b   :  { %1511 = vrot.lane.b32.xlu0 %v1351_v44, %s6948_s30  ;;  %v1742_v44 = vld [vmem:[%s15169_s0 + $0x131] sm:$0xff] }
 0x29c   :  { %v1488_v51 = vpop.permute.xlu1 %1487  ;;  %v3193_v54 = vld [vmem:[#allocation2 + $0x88] sm:$0xff] }
 0x29d   :  { %v2610_v52 = vpop.permute.xlu0 %2609  ;;  %1660 = vst.msk [vmem:[#allocation2 + $0xa0] sm:$0xff] %vm1639_vm9, %v1488_v51  ;;  %6846 = vmatmul.mubr.msk.f32.gmra.mrb[16].mxu0 %vm22_vm0, %v3193_v54  ;;  %v1743_v51 = vld [vmem:[%s15169_s0 + $0x139] sm:$0x7f] }
 0x29e   :  { %2772 = vst.msk [vmem:[#allocation2 + $0x90] sm:$0xff] %vm2753_vm14, %v2610_v52  ;;  %1894 = vrot.lane.b32.xlu1 %v1735_v50, %s6949_s11  ;;  %v6643_v50 = vld [vmem:[%s15169_s0 + $0x139] sm:$0x7f] }
 0x29f   :  { %1892 = vrot.lane.b32.xlu0 %v6636_v39, %s6949_s11 }
 0x2a0   :  { %v2612_v56 = vpop.permute.xlu1 %2611 }
 0x2a1   :  { %v1490_v58 = vpop.permute.xlu0 %1489  ;;  %2773 = vst.msk [vmem:[#allocation2 + $0x98] sm:$0xff] %vm2753_vm14, %v2612_v56 }
 0x2a2   :  { %1661 = vst.msk [vmem:[#allocation2 + $0xa8] sm:$0xff] %vm1639_vm9, %v1490_v58  ;;  %1898 = vrot.lane.b32.xlu1 %v1737_v29, %s6949_s11  ;;  %v6525_v29 = vld [vmem:[%s15169_s0 + $0x148] sm:$0x7f] }
 0x2a3   :  { %1896 = vrot.lane.b32.xlu0 %v1736_v55, %s6949_s11  ;;  %v6524_v55 = vld [vmem:[%s15169_s0 + $0x140] sm:$0xff] }
 0x2a4   :  { %v1873_v60 = vpop.permute.xlu1 %1872 }
 0x2a5   :  { %v2971_v61 = vpop.permute.xlu0 %2970  ;;  %2046 = vst.msk [vmem:[#allocation2 + $0xa0] sm:$0xff] %vm2024_vm11, %v1873_v60 }
 0x2a6   :  { %3134 = vst.msk [vmem:[#allocation2 + $0x90] sm:$0xff] %vm3114_vm15, %v2971_v61  ;;  %2273 = vrot.lane.b32.xlu1 %v6519_v45, %s6950_s18 }
 0x2a7   :  { %2271 = vrot.lane.b32.xlu0 %v6518_v59, %s6950_s18 }
 0x2a8   :  { %v2973_v62 = vpop.permute.xlu1 %2972 }
 0x2a9   :  { %v1875_v63 = vpop.permute.xlu0 %1874  ;;  %3135 = vst.msk [vmem:[#allocation2 + $0x98] sm:$0x7f] %vm3116_vm1, %v2973_v62 }
 0x2aa   :  { %2047 = vst.msk [vmem:[#allocation2 + $0xa8] sm:$0x7f] %vm2026_vm10, %v1875_v63  ;;  %1515 = vrot.lane.b32.xlu1 %v6518_v59, %s6948_s30 }
 0x2ab   :  { %2633 = vrot.lane.b32.xlu0 %v6518_v59, %s6951_s23 }
 0x2ac   :  { %v2254_v1 = vpop.permute.xlu1 %2253 }
 0x2ad   :  { %v2252_v3 = vpop.permute.xlu0 %2251  ;;  %v3194_v4 = vld [vmem:[#allocation2 + $0x90] sm:$0xff]  ;;  %2414 = vst.msk [vmem:[#allocation2 + $0xa9] sm:$0x7f] %vm2393_vm12, %v2254_v1 }
 0x2ae   :  { %2413 = vst.msk [vmem:[#allocation2 + $0xa1] sm:$0xff] %vm2391_vm13, %v2252_v3  ;;  %6848 = vmatprep.mubr.msk.f32.mxu0 %vm22_vm0, %v3194_v4  ;;  %2635 = vrot.lane.b32.xlu1 %v6579_v0, %s6951_s23 }
 0x2af   :  { %1517 = vrot.lane.b32.xlu0 %v6579_v0, %s6948_s30  ;;  %v6585_v0 = vld [vmem:[%s15169_s0 + $0x148] sm:$0xff] }
 0x2b0   :  { %v1492_v6 = vpop.permute.xlu1 %1491  ;;  %v3195_v49 = vld [vmem:[#allocation2 + $0x98] sm:$0xff] }
 0x2b1   :  { %v2614_v7 = vpop.permute.xlu0 %2613  ;;  %1662 = vst.msk [vmem:[#allocation2 + $0xb0] sm:$0xff] %vm1639_vm9, %v1492_v6  ;;  %6849 = vmatmul.mubr.msk.f32.gmra.mrb[18].mxu0 %vm22_vm0, %v3195_v49 }
 0x2b2   :  { %2774 = vst.msk [vmem:[#allocation2 + $0xa0] sm:$0xff] %vm2753_vm14, %v2614_v7  ;;  %1900 = vrot.lane.b32.xlu1 %v1738_v5, %s6949_s11  ;;  %v1744_v7 = vld [vmem:[%s15169_s0 + $0x141] sm:$0xff] }
 0x2b3   :  { %2994 = vrot.lane.b32.xlu0 %v1738_v5, %s6952_s8 }
 0x2b4   :  { %v2616_v33 = vpop.permute.xlu1 %2615 }
 0x2b5   :  { %v1494_v10 = vpop.permute.xlu0 %1493  ;;  %2775 = vst.msk [vmem:[#allocation2 + $0xa8] sm:$0xff] %vm2753_vm14, %v2616_v33  ;;  %v6645_v33 = vld [vmem:[%s15169_s0 + $0x149] sm:$0x7f] }
 0x2b6   :  { %1663 = vst.msk [vmem:[#allocation2 + $0xb8] sm:$0xff] %vm1639_vm9, %v1494_v10  ;;  %2996 = vrot.lane.b32.xlu1 %v6639_v8, %s6952_s8 }
 0x2b7   :  { %1902 = vrot.lane.b32.xlu0 %v1739_v9, %s6949_s11 }
 0x2b8   :  { %v1877_v13 = vpop.permute.xlu1 %1876 }
 0x2b9   :  { %v2975_v14 = vpop.permute.xlu0 %2974  ;;  %2048 = vst.msk [vmem:[#allocation2 + $0xb0] sm:$0xff] %vm2024_vm11, %v1877_v13  ;;  %v6527_v13 = vld [vmem:[%s15169_s0 + $0x158] sm:$0x7f] }
 0x2ba   :  { %3136 = vst.msk [vmem:[#allocation2 + $0xa0] sm:$0xff] %vm3114_vm15, %v2975_v14  ;;  %2277 = vrot.lane.b32.xlu1 %v6521_v11, %s6950_s18  ;;  %v1745_v11 = vld [vmem:[%s15169_s0 + $0x149] sm:$0x7f] }
 0x2bb   :  { %2275 = vrot.lane.b32.xlu0 %v6520_v12, %s6950_s18 }
 0x2bc   :  { %v2977_v15 = vpop.permute.xlu1 %2976 }
 0x2bd   :  { %v1879_v16 = vpop.permute.xlu0 %1878  ;;  %3137 = vst.msk [vmem:[#allocation2 + $0xa8] sm:$0x7f] %vm3116_vm1, %v2977_v15  ;;  %v6526_v15 = vld [vmem:[%s15169_s0 + $0x150] sm:$0xff] }
 0x2be   :  { %2049 = vst.msk [vmem:[#allocation2 + $0xb8] sm:$0x7f] %vm2026_vm10, %v1879_v16  ;;  %1519 = vrot.lane.b32.xlu1 %v6520_v12, %s6948_s30 }
 0x2bf   :  { %2637 = vrot.lane.b32.xlu0 %v6520_v12, %s6951_s23 }
 0x2c0   :  { %v2258_v18 = vpop.permute.xlu1 %2257 }
 0x2c1   :  { %v2256_v19 = vpop.permute.xlu0 %2255  ;;  %v3196_v20 = vld [vmem:[#allocation2 + $0xa0] sm:$0xff]  ;;  %2416 = vst.msk [vmem:[#allocation2 + $0xb9] sm:$0x7f] %vm2393_vm12, %v2258_v18 }
 0x2c2   :  { %2415 = vst.msk [vmem:[#allocation2 + $0xb1] sm:$0xff] %vm2391_vm13, %v2256_v19  ;;  %6851 = vmatprep.mubr.msk.f32.mxu0 %vm22_vm0, %v3196_v20  ;;  %2639 = vrot.lane.b32.xlu1 %v6581_v17, %s6951_s23 }
 0x2c3   :  { %1521 = vrot.lane.b32.xlu0 %v6581_v17, %s6948_s30 }
 0x2c4   :  { %v1496_v21 = vpop.permute.xlu1 %1495  ;;  %v3197_v23 = vld [vmem:[#allocation2 + $0xa8] sm:$0xff] }
 0x2c5   :  { %v2618_v22 = vpop.permute.xlu0 %2617  ;;  %1664 = vst.msk [vmem:[#allocation2 + $0xc0] sm:$0xff] %vm1639_vm9, %v1496_v21  ;;  %6852 = vmatmul.mubr.msk.f32.gmra.mrb[20].mxu0 %vm22_vm0, %v3197_v23 }
 0x2c6   :  { %2776 = vst.msk [vmem:[#allocation2 + $0xb0] sm:$0xff] %vm2753_vm14, %v2618_v22  ;;  %1904 = vrot.lane.b32.xlu1 %v1740_v53, %s6949_s11  ;;  %v6587_v22 = vld [vmem:[%s15169_s0 + $0x158] sm:$0xff] }
 0x2c7   :  { %2998 = vrot.lane.b32.xlu0 %v1740_v53, %s6952_s8 }
 0x2c8   :  { %v2620_v26 = vpop.permute.xlu1 %2619 }
 0x2c9   :  { %v1498_v27 = vpop.permute.xlu0 %1497  ;;  %2777 = vst.msk [vmem:[#allocation2 + $0xb8] sm:$0xff] %vm2753_vm14, %v2620_v26 }
 0x2ca   :  { %1665 = vst.msk [vmem:[#allocation2 + $0xc8] sm:$0xff] %vm1639_vm9, %v1498_v27  ;;  %3000 = vrot.lane.b32.xlu1 %v6641_v37, %s6952_s8 }
 0x2cb   :  { %1906 = vrot.lane.b32.xlu0 %v1741_v24, %s6949_s11 }
 0x2cc   :  { %v1881_v31 = vpop.permute.xlu1 %1880 }
 0x2cd   :  { %v2979_v32 = vpop.permute.xlu0 %2978  ;;  %2050 = vst.msk [vmem:[#allocation2 + $0xc0] sm:$0xff] %vm2024_vm11, %v1881_v31 }
 0x2ce   :  { %3138 = vst.msk [vmem:[#allocation2 + $0xb0] sm:$0xff] %vm3114_vm15, %v2979_v32  ;;  %2281 = vrot.lane.b32.xlu1 %v6523_v28, %s6950_s18  ;;  %v1746_v28 = vld [vmem:[%s15169_s0 + $0x151] sm:$0xff] }
 0x2cf   :  { %2279 = vrot.lane.b32.xlu0 %v6522_v30, %s6950_s18 }
 0x2d0   :  { %v2981_v34 = vpop.permute.xlu1 %2980  ;;  %v8988_v35 = vpop.f32.mrb[0].mxu0 }
 0x2d1   :  { %15221 = vst [vmem:[#allocation4_spill] sm:$0xff] %v8988_v35  ;;  %3139 = vst.msk [vmem:[#allocation2 + $0xb8] sm:$0x7f] %vm3116_vm1, %v2981_v34  ;;  %v3828_v36 = vsel %vm3826_vm2, %v8988_v35, 0.0  ;;  %v1883_v25 = vpop.permute.xlu0 %1882  ;;  %v8993_v38 = vpop.f32.mrb[1].mxu0 }
 0x2d2   :  { %2051 = vst.msk [vmem:[#allocation2 + $0xc8] sm:$0x7f] %vm2026_vm10, %v1883_v25  ;;  %v3827_v39 = vsel %vm3826_vm2, %v8993_v38, 0.0  ;;  %1523 = vrot.lane.b32.xlu1 %v6522_v30, %s6948_s30  ;;  %v6647_v34 = vld [vmem:[%s15169_s0 + $0x159] sm:$0x7f] }
 0x2d3   :  { %2641 = vrot.lane.b32.xlu0 %v6522_v30, %s6951_s23  ;;  %v3829_v57 = vadd.f32 %v3828_v36, %v3827_v39  ;;  %v1747_v25 = vld [vmem:[%s15169_s0 + $0x159] sm:$0x7f] }
 0x2d4   :  { %v2262_v41 = vpop.permute.xlu1 %2261 }
 0x2d5   :  { %v3198_v42 = vld [vmem:[#allocation2 + $0xb0] sm:$0xff]  ;;  %2418 = vst.msk [vmem:[#allocation2 + $0xc9] sm:$0x7f] %vm2393_vm12, %v2262_v41  ;;  %v2260_v43 = vpop.permute.xlu0 %2259  ;;  %v6528_v41 = vld [vmem:[%s15169_s0 + $0x160] sm:$0xff] }
 0x2d6   :  { %6854 = vmatprep.mubr.msk.f32.mxu0 %vm22_vm0, %v3198_v42  ;;  %2417 = vst.msk [vmem:[#allocation2 + $0xc1] sm:$0xff] %vm2391_vm13, %v2260_v43  ;;  %2643 = vrot.lane.b32.xlu1 %v6583_v40, %s6951_s23 }
 0x2d7   :  { %1525 = vrot.lane.b32.xlu0 %v6583_v40, %s6948_s30 }
 0x2d8   :  { %v1500_v46 = vpop.permute.xlu1 %1499  ;;  %v3199_v47 = vld [vmem:[#allocation2 + $0xb8] sm:$0xff] }
 0x2d9   :  { %1666 = vst.msk [vmem:[#allocation2 + $0xd0] sm:$0xff] %vm1639_vm9, %v1500_v46  ;;  %v2622_v48 = vpop.permute.xlu0 %2621  ;;  %6855 = vmatmul.mubr.msk.f32.gmra.mrb[22].mxu0 %vm22_vm0, %v3199_v47 }
 0x2da   :  { %2778 = vst.msk [vmem:[#allocation2 + $0xc0] sm:$0xff] %vm2753_vm14, %v2622_v48  ;;  %1908 = vrot.lane.b32.xlu1 %v1742_v44, %s6949_s11 }
 0x2db   :  { %3002 = vrot.lane.b32.xlu0 %v1742_v44, %s6952_s8 }
 0x2dc   :  { %v2624_v52 = vpop.permute.xlu1 %2623 }
 0x2dd   :  { %2779 = vst.msk [vmem:[#allocation2 + $0xc8] sm:$0xff] %vm2753_vm14, %v2624_v52  ;;  %v1502_v54 = vpop.permute.xlu0 %1501 }
 0x2de   :  { %1667 = vst.msk [vmem:[#allocation2 + $0xd8] sm:$0xff] %vm1639_vm9, %v1502_v54  ;;  %3004 = vrot.lane.b32.xlu1 %v6643_v50, %s6952_s8  ;;  %v6589_v54 = vld [vmem:[%s15169_s0 + $0x168] sm:$0xff] }
 0x2df   :  { %1910 = vrot.lane.b32.xlu0 %v1743_v51, %s6949_s11 }
 0x2e0   :  { %v1885_v56 = vpop.permute.xlu1 %1884 }
 0x2e1   :  { %2052 = vst.msk [vmem:[#allocation2 + $0xd0] sm:$0xff] %vm2024_vm11, %v1885_v56  ;;  %v2983_v58 = vpop.permute.xlu0 %2982 }
 0x2e2   :  { %3140 = vst.msk [vmem:[#allocation2 + $0xc0] sm:$0xff] %vm3114_vm15, %v2983_v58  ;;  %2285 = vrot.lane.b32.xlu1 %v6525_v29, %s6950_s18 }
 0x2e3   :  { %2283 = vrot.lane.b32.xlu0 %v6524_v55, %s6950_s18 }
 0x2e4   :  { %v2985_v45 = vpop.permute.xlu1 %2984  ;;  %v9036_v59 = vpop.f32.mrb[2].mxu0 }
 0x2e5   :  { %15222 = vst [vmem:[#allocation5_spill] sm:$0xff] %v9036_v59  ;;  %3141 = vst.msk [vmem:[#allocation2 + $0xc8] sm:$0x7f] %vm3116_vm1, %v2985_v45  ;;  %v1887_v60 = vpop.permute.xlu0 %1886  ;;  %v9039_v61 = vpop.f32.mrb[3].mxu0  ;;  %v3832_v1 = vsel %vm3826_vm2, %v9036_v59, 0.0  ;;  %v1748_v45 = vld [vmem:[%s15169_s0 + $0x161] sm:$0xff] }
 0x2e6   :  { %15223 = vst [vmem:[#allocation6_spill] sm:$0xff] %v9039_v61  ;;  %2053 = vst.msk [vmem:[#allocation2 + $0xd8] sm:$0x7f] %vm2026_vm10, %v1887_v60  ;;  %v3830_v62 = vsel %vm3826_vm2, %v9039_v61, 0.0  ;;  %1527 = vrot.lane.b32.xlu1 %v6524_v55, %s6948_s30 }
 0x2e7   :  { %2645 = vrot.lane.b32.xlu0 %v6524_v55, %s6951_s23  ;;  %v3831_v63 = vadd.f32 %v3830_v62, %v3829_v57  ;;  %v6529_v57 = vld [vmem:[%s15169_s0 + $0x168] sm:$0x7f] }
 0x2e8   :  { %v2266_v3 = vpop.permute.xlu1 %2265 }
 0x2e9   :  { %2420 = vst.msk [vmem:[#allocation2 + $0xd9] sm:$0x7f] %vm2393_vm12, %v2266_v3  ;;  %v2264_v4 = vpop.permute.xlu0 %2263  ;;  %v3200_v5 = vld [vmem:[#allocation2 + $0xc0] sm:$0xff]  ;;  %v3833_v6 = vadd.f32 %v3832_v1, %v3831_v63  ;;  %v6649_v63 = vld [vmem:[%s15169_s0 + $0x169] sm:$0x7f] }
 0x2ea   :  { %2419 = vst.msk [vmem:[#allocation2 + $0xd1] sm:$0xff] %vm2391_vm13, %v2264_v4  ;;  %6857 = vmatprep.mubr.msk.f32.mxu0 %vm22_vm0, %v3200_v5  ;;  %2647 = vrot.lane.b32.xlu1 %v6585_v0, %s6951_s23  ;;  %v1749_v1 = vld [vmem:[%s15169_s0 + $0x169] sm:$0x7f] }
 0x2eb   :  { %1529 = vrot.lane.b32.xlu0 %v6585_v0, %s6948_s30 }
 0x2ec   :  { %v1504_v49 = vpop.permute.xlu1 %1503  ;;  %v3201_v8 = vld [vmem:[#allocation2 + $0xc8] sm:$0xff] }
 0x2ed   :  { %1668 = vst.msk [vmem:[#allocation2 + $0xe0] sm:$0xff] %vm1639_vm9, %v1504_v49  ;;  %v2626_v9 = vpop.permute.xlu0 %2625  ;;  %6858 = vmatmul.mubr.msk.f32.gmra.mrb[24].mxu0 %vm22_vm0, %v3201_v8  ;;  %v6530_v49 = vld [vmem:[%s15169_s0 + $0x170] sm:$0xff] }
 0x2ee   :  { %2780 = vst.msk [vmem:[#allocation2 + $0xd0] sm:$0xff] %vm2753_vm14, %v2626_v9  ;;  %1912 = vrot.lane.b32.xlu1 %v1744_v7, %s6949_s11 }
 0x2ef   :  { %3006 = vrot.lane.b32.xlu0 %v1744_v7, %s6952_s8 }
 0x2f0   :  { %v2628_v10 = vpop.permute.xlu1 %2627 }
 0x2f1   :  { %2781 = vst.msk [vmem:[#allocation2 + $0xd8] sm:$0xff] %vm2753_vm14, %v2628_v10  ;;  %v1506_v12 = vpop.permute.xlu0 %1505 }
 0x2f2   :  { %1669 = vst.msk [vmem:[#allocation2 + $0xe8] sm:$0xff] %vm1639_vm9, %v1506_v12  ;;  %3008 = vrot.lane.b32.xlu1 %v6645_v33, %s6952_s8 }
 0x2f3   :  { %1914 = vrot.lane.b32.xlu0 %v1745_v11, %s6949_s11 }
 0x2f4   :  { %v1889_v14 = vpop.permute.xlu1 %1888 }
 0x2f5   :  { %2054 = vst.msk [vmem:[#allocation2 + $0xe0] sm:$0xff] %vm2024_vm11, %v1889_v14  ;;  %v2987_v16 = vpop.permute.xlu0 %2986  ;;  %v6591_v14 = vld [vmem:[%s15169_s0 + $0x178] sm:$0xff] }
 0x2f6   :  { %3142 = vst.msk [vmem:[#allocation2 + $0xd0] sm:$0xff] %vm3114_vm15, %v2987_v16  ;;  %2289 = vrot.lane.b32.xlu1 %v6527_v13, %s6950_s18 }
 0x2f7   :  { %2287 = vrot.lane.b32.xlu0 %v6526_v15, %s6950_s18 }
 0x2f8   :  { %v2989_v17 = vpop.permute.xlu1 %2988  ;;  %v9084_v18 = vpop.f32.mrb[4].mxu0 }
 0x2f9   :  { %15224 = vst [vmem:[#allocation7_spill] sm:$0xff] %v9084_v18  ;;  %3143 = vst.msk [vmem:[#allocation2 + $0xd8] sm:$0x7f] %vm3116_vm1, %v2989_v17  ;;  %v1891_v19 = vpop.permute.xlu0 %1890  ;;  %v9087_v20 = vpop.f32.mrb[5].mxu0  ;;  %v3836_v23 = vsel %vm3826_vm2, %v9084_v18, 0.0 }
 0x2fa   :  { %15225 = vst [vmem:[#allocation8_spill] sm:$0xff] %v9087_v20  ;;  %2055 = vst.msk [vmem:[#allocation2 + $0xe8] sm:$0x7f] %vm2026_vm10, %v1891_v19  ;;  %v3834_v53 = vsel %vm3826_vm2, %v9087_v20, 0.0  ;;  %1531 = vrot.lane.b32.xlu1 %v6526_v15, %s6948_s30 }
 0x2fb   :  { %v3835_v21 = vadd.f32 %v3834_v53, %v3833_v6  ;;  %2649 = vrot.lane.b32.xlu0 %v6526_v15, %s6951_s23  ;;  %v6531_v6 = vld [vmem:[%s15169_s0 + $0x178] sm:$0x7f] }
 0x2fc   :  { %v2270_v37 = vpop.permute.xlu1 %2269  ;;  %v1750_v53 = vld [vmem:[%s15169_s0 + $0x171] sm:$0xff] }
 0x2fd   :  { %2422 = vst.msk [vmem:[#allocation2 + $0xe9] sm:$0x7f] %vm2393_vm12, %v2270_v37  ;;  %v2268_v24 = vpop.permute.xlu0 %2267  ;;  %v3202_v26 = vld [vmem:[#allocation2 + $0xd0] sm:$0xff]  ;;  %v3837_v27 = vadd.f32 %v3836_v23, %v3835_v21  ;;  %v6651_v23 = vld [vmem:[%s15169_s0 + $0x179] sm:$0x7f] }
 0x2fe   :  { %2421 = vst.msk [vmem:[#allocation2 + $0xe1] sm:$0xff] %vm2391_vm13, %v2268_v24  ;;  %6860 = vmatprep.mubr.msk.f32.mxu0 %vm22_vm0, %v3202_v26  ;;  %2651 = vrot.lane.b32.xlu1 %v6587_v22, %s6951_s23  ;;  %v1751_v24 = vld [vmem:[%s15169_s0 + $0x179] sm:$0x7f] }
 0x2ff   :  { %1533 = vrot.lane.b32.xlu0 %v6587_v22, %s6948_s30 }
 0x300   :  { %v2632_v30 = vpop.permute.xlu1 %2631  ;;  %v3203_v31 = vld [vmem:[#allocation2 + $0xd8] sm:$0xff] }
 0x301   :  { %2783 = vst.msk [vmem:[#allocation2 + $0xe8] sm:$0xff] %vm2753_vm14, %v2632_v30  ;;  %v2630_v32 = vpop.permute.xlu0 %2629  ;;  %6861 = vmatmul.mubr.msk.f32.gmra.mrb[26].mxu0 %vm22_vm0, %v3203_v31 }
 0x302   :  { %2782 = vst.msk [vmem:[#allocation2 + $0xe0] sm:$0xff] %vm2753_vm14, %v2630_v32  ;;  %1916 = vrot.lane.b32.xlu1 %v1746_v28, %s6949_s11  ;;  %v6532_v32 = vld [vmem:[%s15169_s0 + $0x180] sm:$0xff] }
 0x303   :  { %3010 = vrot.lane.b32.xlu0 %v1746_v28, %s6952_s8  ;;  %v6533_v28 = vld [vmem:[%s15169_s0 + $0x188] sm:$0x7f] }
 0x304   :  { %v2993_v36 = vpop.permute.xlu1 %2992 }
 0x305   :  { %3145 = vst.msk [vmem:[#allocation2 + $0xe8] sm:$0x7f] %vm3116_vm1, %v2993_v36  ;;  %v2991_v39 = vpop.permute.xlu0 %2990 }
 0x306   :  { %3144 = vst.msk [vmem:[#allocation2 + $0xe0] sm:$0xff] %vm3114_vm15, %v2991_v39  ;;  %3012 = vrot.lane.b32.xlu1 %v6647_v34, %s6952_s8 }
 0x307   :  { %1918 = vrot.lane.b32.xlu0 %v1747_v25, %s6949_s11 }
 0x308   :  { %v1510_v40 = vpop.permute.xlu1 %1509 }
 0x309   :  { %1671 = vst.msk [vmem:[#allocation2 + $0xf8] sm:$0xff] %vm1639_vm9, %v1510_v40  ;;  %v1508_v42 = vpop.permute.xlu0 %1507 }
 0x30a   :  { %1670 = vst.msk [vmem:[#allocation2 + $0xf0] sm:$0xff] %vm1639_vm9, %v1508_v42  ;;  %2293 = vrot.lane.b32.xlu1 %v6529_v57, %s6950_s18  ;;  %v6593_v42 = vld [vmem:[%s15169_s0 + $0x188] sm:$0xff] }
 0x30b   :  { %2291 = vrot.lane.b32.xlu0 %v6528_v41, %s6950_s18 }
 0x30c   :  { %v1514_v43 = vpop.permute.xlu1 %1513  ;;  %v9132_v44 = vpop.f32.mrb[6].mxu0  ;;  %v3205_v46 = vld [vmem:[#allocation2 + $0xe8] sm:$0xff] }
 0x30d   :  { %1673 = vst.msk [vmem:[#allocation2 + $0x108] sm:$0xff] %vm1639_vm9, %v1514_v43  ;;  %v1512_v47 = vpop.permute.xlu0 %1511  ;;  %v9135_v48 = vpop.f32.mrb[7].mxu0  ;;  %v3204_v50 = vld [vmem:[#allocation2 + $0xe0] sm:$0xff]  ;;  %v3840_v29 = vsel %vm3826_vm2, %v9132_v44, 0.0 }
 0x30e   :  { %1672 = vst.msk [vmem:[#allocation2 + $0x100] sm:$0xff] %vm1639_vm9, %v1512_v47  ;;  %v3838_v51 = vsel %vm3826_vm2, %v9135_v48, 0.0  ;;  %6863 = vmatprep.mubr.msk.f32.mxu0 %vm22_vm0, %v3204_v50  ;;  %1535 = vrot.lane.b32.xlu1 %v6528_v41, %s6948_s30 }
 0x30f   :  { %v3839_v52 = vadd.f32 %v3838_v51, %v3837_v27  ;;  %2653 = vrot.lane.b32.xlu0 %v6528_v41, %s6951_s23  ;;  %6864 = vmatmul.mubr.msk.f32.gmra.mrb[28].mxu0 %vm22_vm0, %v3205_v46  ;;  %v1752_v51 = vld [vmem:[%s15169_s0 + $0x181] sm:$0xff] }
 0x310   :  { %v1895_v55 = vpop.permute.xlu1 %1894 }
 0x311   :  { %2057 = vst.msk [vmem:[#allocation2 + $0xf8] sm:$0x7f] %vm2026_vm10, %v1895_v55  ;;  %v1893_v56 = vpop.permute.xlu0 %1892  ;;  %v3841_v58 = vadd.f32 %v3840_v29, %v3839_v52  ;;  %v6653_v29 = vld [vmem:[%s15169_s0 + $0x189] sm:$0x7f] }
 0x312   :  { %2056 = vst.msk [vmem:[#allocation2 + $0xf0] sm:$0xff] %vm2024_vm11, %v1893_v56  ;;  %2655 = vrot.lane.b32.xlu1 %v6589_v54, %s6951_s23  ;;  %v1753_v56 = vld [vmem:[%s15169_s0 + $0x189] sm:$0x7f] }
 0x313   :  { %1537 = vrot.lane.b32.xlu0 %v6589_v54, %s6948_s30 }
 0x314   :  { %v1899_v60 = vpop.permute.xlu1 %1898 }
 0x315   :  { %2059 = vst.msk [vmem:[#allocation2 + $0x108] sm:$0x7f] %vm2026_vm10, %v1899_v60  ;;  %v1897_v62 = vpop.permute.xlu0 %1896  ;;  %v6535_v60 = vld [vmem:[%s15169_s0 + $0x198] sm:$0x7f] }
 0x316   :  { %2058 = vst.msk [vmem:[#allocation2 + $0x100] sm:$0xff] %vm2024_vm11, %v1897_v62  ;;  %1920 = vrot.lane.b32.xlu1 %v1748_v45, %s6949_s11 }
 0x317   :  { %3014 = vrot.lane.b32.xlu0 %v1748_v45, %s6952_s8 }
 0x318   :  { %v2274_v0 = vpop.permute.xlu1 %2273  ;;  %v3207_v3 = vld [vmem:[#allocation2 + $0xf8] sm:$0xff] }
 0x319   :  { %2424 = vst.msk [vmem:[#allocation2 + $0x109] sm:$0x7f] %vm2393_vm12, %v2274_v0  ;;  %v2272_v4 = vpop.permute.xlu0 %2271  ;;  %v3206_v5 = vld [vmem:[#allocation2 + $0xf0] sm:$0xff] }
 0x31a   :  { %2423 = vst.msk [vmem:[#allocation2 + $0x101] sm:$0xff] %vm2391_vm13, %v2272_v4  ;;  %6866 = vmatprep.mubr.msk.f32.mxu0 %vm22_vm0, %v3206_v5  ;;  %3016 = vrot.lane.b32.xlu1 %v6649_v63, %s6952_s8  ;;  %v6534_v0 = vld [vmem:[%s15169_s0 + $0x190] sm:$0xff] }
 0x31b   :  { %1922 = vrot.lane.b32.xlu0 %v1749_v1, %s6949_s11  ;;  %6867 = vmatmul.mubr.msk.f32.gmra.mrb[30].mxu0 %vm22_vm0, %v3207_v3 }
 0x31c   :  { %v1516_v7 = vpop.permute.xlu1 %1515 }
 0x31d   :  { %1674 = vst.msk [vmem:[#allocation2 + $0x110] sm:$0xff] %vm1639_vm9, %v1516_v7  ;;  %v2634_v8 = vpop.permute.xlu0 %2633 }
 0x31e   :  { %2784 = vst.msk [vmem:[#allocation2 + $0x100] sm:$0xff] %vm2753_vm14, %v2634_v8  ;;  %2297 = vrot.lane.b32.xlu1 %v6531_v6, %s6950_s18  ;;  %v6595_v8 = vld [vmem:[%s15169_s0 + $0x198] sm:$0xff] }
 0x31f   :  { %2295 = vrot.lane.b32.xlu0 %v6530_v49, %s6950_s18 }
 0x320   :  { %v2636_v9 = vpop.permute.xlu1 %2635  ;;  %v9182_v33 = vpop.f32.mrb[8].mxu0 }
 0x321   :  { %2785 = vst.msk [vmem:[#allocation2 + $0x108] sm:$0xff] %vm2753_vm14, %v2636_v9  ;;  %v1518_v10 = vpop.permute.xlu0 %1517  ;;  %v9185_v11 = vpop.f32.mrb[9].mxu0  ;;  %v3844_v15 = vsel %vm3826_vm2, %v9182_v33, 0.0 }
 0x322   :  { %1675 = vst.msk [vmem:[#allocation2 + $0x118] sm:$0xff] %vm1639_vm9, %v1518_v10  ;;  %v3842_v12 = vsel %vm3826_vm2, %v9185_v11, 0.0  ;;  %1539 = vrot.lane.b32.xlu1 %v6530_v49, %s6948_s30 }
 0x323   :  { %v3843_v13 = vadd.f32 %v3842_v12, %v3841_v58  ;;  %2657 = vrot.lane.b32.xlu0 %v6530_v49, %s6951_s23 }
 0x324   :  { %v1901_v16 = vpop.permute.xlu1 %1900 }
 0x325   :  { %2060 = vst.msk [vmem:[#allocation2 + $0x110] sm:$0xff] %vm2024_vm11, %v1901_v16  ;;  %v2995_v17 = vpop.permute.xlu0 %2994  ;;  %v3845_v19 = vadd.f32 %v3844_v15, %v3843_v13 }
 0x326   :  { %3146 = vst.msk [vmem:[#allocation2 + $0x100] sm:$0xff] %vm3114_vm15, %v2995_v17  ;;  %2659 = vrot.lane.b32.xlu1 %v6591_v14, %s6951_s23  ;;  %v6655_v17 = vld [vmem:[%s15169_s0 + $0x199] sm:$0x7f] }
 0x327   :  { %1541 = vrot.lane.b32.xlu0 %v6591_v14, %s6948_s30  ;;  %v1754_v14 = vld [vmem:[%s15169_s0 + $0x191] sm:$0xff] }
 0x328   :  { %v2997_v21 = vpop.permute.xlu1 %2996 }
 0x329   :  { %3147 = vst.msk [vmem:[#allocation2 + $0x108] sm:$0x7f] %vm3116_vm1, %v2997_v21  ;;  %v1903_v22 = vpop.permute.xlu0 %1902 }
 0x32a   :  { %2061 = vst.msk [vmem:[#allocation2 + $0x118] sm:$0x7f] %vm2026_vm10, %v1903_v22  ;;  %1924 = vrot.lane.b32.xlu1 %v1750_v53, %s6949_s11 }
 0x32b   :  { %3018 = vrot.lane.b32.xlu0 %v1750_v53, %s6952_s8  ;;  %v1755_v53 = vld [vmem:[%s15169_s0 + $0x199] sm:$0x7f] }
 0x32c   :  { %v2278_v37 = vpop.permute.xlu1 %2277 }
 0x32d   :  { %2426 = vst.msk [vmem:[#allocation2 + $0x119] sm:$0x7f] %vm2393_vm12, %v2278_v37  ;;  %v2276_v26 = vpop.permute.xlu0 %2275  ;;  %v3208_v27 = vld [vmem:[#allocation2 + $0x100] sm:$0xff] }
 0x32e   :  { %2425 = vst.msk [vmem:[#allocation2 + $0x111] sm:$0xff] %vm2391_vm13, %v2276_v26  ;;  %6869 = vmatprep.mubr.msk.f32.mxu1 %vm22_vm0, %v3208_v27  ;;  %3020 = vrot.lane.b32.xlu1 %v6651_v23, %s6952_s8  ;;  %v6537_v23 = vld [vmem:[%s15169_s0 + $0x1a8] sm:$0x7f]  ;;  %v6536_v26 = vld [vmem:[%s15169_s0 + $0x1a0] sm:$0xff] }
 0x32f   :  { %1926 = vrot.lane.b32.xlu0 %v1751_v24, %s6949_s11 }
 0x330   :  { %v1520_v30 = vpop.permute.xlu1 %1519  ;;  %v3209_v31 = vld [vmem:[#allocation2 + $0x108] sm:$0xff] }
 0x331   :  { %1676 = vst.msk [vmem:[#allocation2 + $0x120] sm:$0xff] %vm1639_vm9, %v1520_v30  ;;  %v2638_v34 = vpop.permute.xlu0 %2637  ;;  %6870 = vmatmul.mubr.msk.f32.vlgmr.msra.gmra.mrb[0].mxu1 %vm22_vm0, %v3209_v31 }
 0x332   :  { %2786 = vst.msk [vmem:[#allocation2 + $0x110] sm:$0xff] %vm2753_vm14, %v2638_v34  ;;  %2301 = vrot.lane.b32.xlu1 %v6533_v28, %s6950_s18 }
 0x333   :  { %2299 = vrot.lane.b32.xlu0 %v6532_v32, %s6950_s18 }
 0x334   :  { %v2640_v36 = vpop.permute.xlu1 %2639  ;;  %v9230_v25 = vpop.f32.mrb[10].mxu0 }
 0x335   :  { %2787 = vst.msk [vmem:[#allocation2 + $0x118] sm:$0xff] %vm2753_vm14, %v2640_v36  ;;  %v1522_v39 = vpop.permute.xlu0 %1521  ;;  %v9233_v57 = vpop.f32.mrb[11].mxu0  ;;  %v3848_v43 = vsel %vm3826_vm2, %v9230_v25, 0.0 }
 0x336   :  { %1677 = vst.msk [vmem:[#allocation2 + $0x128] sm:$0xff] %vm1639_vm9, %v1522_v39  ;;  %v3846_v40 = vsel %vm3826_vm2, %v9233_v57, 0.0  ;;  %1543 = vrot.lane.b32.xlu1 %v6532_v32, %s6948_s30  ;;  %v6597_v39 = vld [vmem:[%s15169_s0 + $0x1a8] sm:$0xff] }
 0x337   :  { %v3847_v41 = vadd.f32 %v3846_v40, %v3845_v19  ;;  %2661 = vrot.lane.b32.xlu0 %v6532_v32, %s6951_s23 }
 0x338   :  { %v1905_v46 = vpop.permute.xlu1 %1904 }
 0x339   :  { %2062 = vst.msk [vmem:[#allocation2 + $0x120] sm:$0xff] %vm2024_vm11, %v1905_v46  ;;  %v2999_v47 = vpop.permute.xlu0 %2998  ;;  %v3849_v50 = vadd.f32 %v3848_v43, %v3847_v41  ;;  %v1756_v46 = vld [vmem:[%s15169_s0 + $0x1a1] sm:$0xff] }
 0x33a   :  { %3148 = vst.msk [vmem:[#allocation2 + $0x110] sm:$0xff] %vm3114_vm15, %v2999_v47  ;;  %2663 = vrot.lane.b32.xlu1 %v6593_v42, %s6951_s23 }
 0x33b   :  { %1545 = vrot.lane.b32.xlu0 %v6593_v42, %s6948_s30 }
 0x33c   :  { %v3001_v52 = vpop.permute.xlu1 %3000 }
 0x33d   :  { %3149 = vst.msk [vmem:[#allocation2 + $0x118] sm:$0x7f] %vm3116_vm1, %v3001_v52  ;;  %v1907_v54 = vpop.permute.xlu0 %1906 }
 0x33e   :  { %2063 = vst.msk [vmem:[#allocation2 + $0x128] sm:$0x7f] %vm2026_vm10, %v1907_v54  ;;  %1928 = vrot.lane.b32.xlu1 %v1752_v51, %s6949_s11  ;;  %v1757_v54 = vld [vmem:[%s15169_s0 + $0x1a9] sm:$0x7f] }
 0x33f   :  { %3022 = vrot.lane.b32.xlu0 %v1752_v51, %s6952_s8  ;;  %v6657_v51 = vld [vmem:[%s15169_s0 + $0x1a9] sm:$0x7f] }
 0x340   :  { %v2282_v55 = vpop.permute.xlu1 %2281 }
 0x341   :  { %2428 = vst.msk [vmem:[#allocation2 + $0x129] sm:$0x7f] %vm2393_vm12, %v2282_v55  ;;  %v2280_v58 = vpop.permute.xlu0 %2279  ;;  %v3210_v45 = vld [vmem:[#allocation2 + $0x110] sm:$0xff] }
 0x342   :  { %2427 = vst.msk [vmem:[#allocation2 + $0x121] sm:$0xff] %vm2391_vm13, %v2280_v58  ;;  %6872 = vmatprep.mubr.msk.f32.mxu1 %vm22_vm0, %v3210_v45  ;;  %3024 = vrot.lane.b32.xlu1 %v6653_v29, %s6952_s8 }
 0x343   :  { %1930 = vrot.lane.b32.xlu0 %v1753_v56, %s6949_s11  ;;  %v6539_v56 = vld [vmem:[%s15169_s0 + $0x1b8] sm:$0x7f] }
 0x344   :  { %v1524_v62 = vpop.permute.xlu1 %1523  ;;  %v3211_v63 = vld [vmem:[#allocation2 + $0x118] sm:$0xff] }
 0x345   :  { %1678 = vst.msk [vmem:[#allocation2 + $0x130] sm:$0xff] %vm1639_vm9, %v1524_v62  ;;  %v2642_v1 = vpop.permute.xlu0 %2641  ;;  %6873 = vmatmul.mubr.msk.f32.gmra.mrb[2].mxu1 %vm22_vm0, %v3211_v63 }
 0x346   :  { %2788 = vst.msk [vmem:[#allocation2 + $0x120] sm:$0xff] %vm2753_vm14, %v2642_v1  ;;  %2305 = vrot.lane.b32.xlu1 %v6535_v60, %s6950_s18  ;;  %v6538_v60 = vld [vmem:[%s15169_s0 + $0x1b0] sm:$0xff] }
 0x347   :  { %2303 = vrot.lane.b32.xlu0 %v6534_v0, %s6950_s18 }
 0x348   :  { %v2644_v3 = vpop.permute.xlu1 %2643  ;;  %v9278_v4 = vpop.f32.mrb[12].mxu0 }
 0x349   :  { %2789 = vst.msk [vmem:[#allocation2 + $0x128] sm:$0xff] %vm2753_vm14, %v2644_v3  ;;  %v1526_v5 = vpop.permute.xlu0 %1525  ;;  %v9281_v6 = vpop.f32.mrb[13].mxu0  ;;  %v3852_v9 = vsel %vm3826_vm2, %v9278_v4, 0.0 }
 0x34a   :  { %1679 = vst.msk [vmem:[#allocation2 + $0x138] sm:$0xff] %vm1639_vm9, %v1526_v5  ;;  %v3850_v7 = vsel %vm3826_vm2, %v9281_v6, 0.0  ;;  %1547 = vrot.lane.b32.xlu1 %v6534_v0, %s6948_s30 }
 0x34b   :  { %v3851_v49 = vadd.f32 %v3850_v7, %v3849_v50  ;;  %2665 = vrot.lane.b32.xlu0 %v6534_v0, %s6951_s23 }
 0x34c   :  { %v1909_v10 = vpop.permute.xlu1 %1908 }
 0x34d   :  { %2064 = vst.msk [vmem:[#allocation2 + $0x130] sm:$0xff] %vm2024_vm11, %v1909_v10  ;;  %v3003_v12 = vpop.permute.xlu0 %3002  ;;  %v3853_v13 = vadd.f32 %v3852_v9, %v3851_v49  ;;  %v6599_v49 = vld [vmem:[%s15169_s0 + $0x1b8] sm:$0xff] }
 0x34e   :  { %3150 = vst.msk [vmem:[#allocation2 + $0x120] sm:$0xff] %vm3114_vm15, %v3003_v12  ;;  %2667 = vrot.lane.b32.xlu1 %v6595_v8, %s6951_s23 }
 0x34f   :  { %1549 = vrot.lane.b32.xlu0 %v6595_v8, %s6948_s30 }
 0x350   :  { %v3005_v15 = vpop.permute.xlu1 %3004 }
 0x351   :  { %3151 = vst.msk [vmem:[#allocation2 + $0x128] sm:$0x7f] %vm3116_vm1, %v3005_v15  ;;  %v1911_v16 = vpop.permute.xlu0 %1910 }
 0x352   :  { %2065 = vst.msk [vmem:[#allocation2 + $0x138] sm:$0x7f] %vm2026_vm10, %v1911_v16  ;;  %1932 = vrot.lane.b32.xlu1 %v1754_v14, %s6949_s11  ;;  %v6659_v16 = vld [vmem:[%s15169_s0 + $0x1b9] sm:$0x7f] }
 0x353   :  { %3026 = vrot.lane.b32.xlu0 %v1754_v14, %s6952_s8 }
 0x354   :  { %v2286_v19 = vpop.permute.xlu1 %2285 }
 0x355   :  { %2430 = vst.msk [vmem:[#allocation2 + $0x139] sm:$0x7f] %vm2393_vm12, %v2286_v19  ;;  %v2284_v21 = vpop.permute.xlu0 %2283  ;;  %v3212_v22 = vld [vmem:[#allocation2 + $0x120] sm:$0xff]  ;;  %v1759_v19 = vld [vmem:[%s15169_s0 + $0x1b9] sm:$0x7f] }
 0x356   :  { %2429 = vst.msk [vmem:[#allocation2 + $0x131] sm:$0xff] %vm2391_vm13, %v2284_v21  ;;  %6875 = vmatprep.mubr.msk.f32.mxu1 %vm22_vm0, %v3212_v22  ;;  %3028 = vrot.lane.b32.xlu1 %v6655_v17, %s6952_s8  ;;  %v6541_v22 = vld [vmem:[%s15169_s0 + $0x1c8] sm:$0x7f] }
 0x357   :  { %1934 = vrot.lane.b32.xlu0 %v1755_v53, %s6949_s11 }
 0x358   :  { %v1528_v37 = vpop.permute.xlu1 %1527  ;;  %v3213_v24 = vld [vmem:[#allocation2 + $0x128] sm:$0xff] }
 0x359   :  { %1680 = vst.msk [vmem:[#allocation2 + $0x140] sm:$0xff] %vm1639_vm9, %v1528_v37  ;;  %v2646_v27 = vpop.permute.xlu0 %2645  ;;  %6876 = vmatmul.mubr.msk.f32.gmra.mrb[4].mxu1 %vm22_vm0, %v3213_v24  ;;  %v6540_v24 = vld [vmem:[%s15169_s0 + $0x1c0] sm:$0xff] }
 0x35a   :  { %2790 = vst.msk [vmem:[#allocation2 + $0x130] sm:$0xff] %vm2753_vm14, %v2646_v27  ;;  %2309 = vrot.lane.b32.xlu1 %v6537_v23, %s6950_s18 }
 0x35b   :  { %2307 = vrot.lane.b32.xlu0 %v6536_v26, %s6950_s18 }
 0x35c   :  { %v2648_v28 = vpop.permute.xlu1 %2647  ;;  %v9326_v30 = vpop.f32.mrb[14].mxu0 }
 0x35d   :  { %2791 = vst.msk [vmem:[#allocation2 + $0x138] sm:$0xff] %vm2753_vm14, %v2648_v28  ;;  %v1530_v31 = vpop.permute.xlu0 %1529  ;;  %v9329_v32 = vpop.f32.mrb[15].mxu0  ;;  %v3856_v40 = vsel %vm3826_vm2, %v9326_v30, 0.0 }
 0x35e   :  { %1681 = vst.msk [vmem:[#allocation2 + $0x148] sm:$0xff] %vm1639_vm9, %v1530_v31  ;;  %v3854_v34 = vsel %vm3826_vm2, %v9329_v32, 0.0  ;;  %1551 = vrot.lane.b32.xlu1 %v6536_v26, %s6948_s30 }
 0x35f   :  { %v3855_v36 = vadd.f32 %v3854_v34, %v3853_v13  ;;  %2669 = vrot.lane.b32.xlu0 %v6536_v26, %s6951_s23  ;;  %v1758_v13 = vld [vmem:[%s15169_s0 + $0x1b1] sm:$0xff] }
 0x360   :  { %v1913_v41 = vpop.permute.xlu1 %1912 }
 0x361   :  { %2066 = vst.msk [vmem:[#allocation2 + $0x140] sm:$0xff] %vm2024_vm11, %v1913_v41  ;;  %v3007_v42 = vpop.permute.xlu0 %3006  ;;  %v3857_v43 = vadd.f32 %v3856_v40, %v3855_v36  ;;  %v6601_v40 = vld [vmem:[%s15169_s0 + $0x1c8] sm:$0xff] }
 0x362   :  { %3152 = vst.msk [vmem:[#allocation2 + $0x130] sm:$0xff] %vm3114_vm15, %v3007_v42  ;;  %2671 = vrot.lane.b32.xlu1 %v6597_v39, %s6951_s23 }
 0x363   :  { %1553 = vrot.lane.b32.xlu0 %v6597_v39, %s6948_s30 }
 0x364   :  { %v3009_v47 = vpop.permute.xlu1 %3008 }
 0x365   :  { %3153 = vst.msk [vmem:[#allocation2 + $0x138] sm:$0x7f] %vm3116_vm1, %v3009_v47  ;;  %v1915_v50 = vpop.permute.xlu0 %1914  ;;  %v1760_v47 = vld [vmem:[%s15169_s0 + $0x1c1] sm:$0xff] }
 0x366   :  { %2067 = vst.msk [vmem:[#allocation2 + $0x148] sm:$0x7f] %vm2026_vm10, %v1915_v50  ;;  %1936 = vrot.lane.b32.xlu1 %v1756_v46, %s6949_s11 }
 0x367   :  { %3030 = vrot.lane.b32.xlu0 %v1756_v46, %s6952_s8 }
 0x368   :  { %v2290_v52 = vpop.permute.xlu1 %2289 }
 0x369   :  { %2432 = vst.msk [vmem:[#allocation2 + $0x149] sm:$0x7f] %vm2393_vm12, %v2290_v52  ;;  %v2288_v29 = vpop.permute.xlu0 %2287  ;;  %v3214_v55 = vld [vmem:[#allocation2 + $0x130] sm:$0xff]  ;;  %v6661_v52 = vld [vmem:[%s15169_s0 + $0x1c9] sm:$0x7f] }
 0x36a   :  { %2431 = vst.msk [vmem:[#allocation2 + $0x141] sm:$0xff] %vm2391_vm13, %v2288_v29  ;;  %6878 = vmatprep.mubr.msk.f32.mxu1 %vm22_vm0, %v3214_v55  ;;  %3032 = vrot.lane.b32.xlu1 %v6657_v51, %s6952_s8  ;;  %v1761_v29 = vld [vmem:[%s15169_s0 + $0x1c9] sm:$0x7f] }
 0x36b   :  { %1938 = vrot.lane.b32.xlu0 %v1757_v54, %s6949_s11 }
 0x36c   :  { %v1532_v58 = vpop.permute.xlu1 %1531  ;;  %v3215_v45 = vld [vmem:[#allocation2 + $0x138] sm:$0xff] }
 0x36d   :  { %1682 = vst.msk [vmem:[#allocation2 + $0x150] sm:$0xff] %vm1639_vm9, %v1532_v58  ;;  %v2650_v62 = vpop.permute.xlu0 %2649  ;;  %6879 = vmatmul.mubr.msk.f32.gmra.mrb[6].mxu1 %vm22_vm0, %v3215_v45  ;;  %v6543_v58 = vld [vmem:[%s15169_s0 + $0x1d8] sm:$0x7f] }
 0x36e   :  { %2792 = vst.msk [vmem:[#allocation2 + $0x140] sm:$0xff] %vm2753_vm14, %v2650_v62  ;;  %2313 = vrot.lane.b32.xlu1 %v6539_v56, %s6950_s18  ;;  %v6542_v62 = vld [vmem:[%s15169_s0 + $0x1d0] sm:$0xff] }
 0x36f   :  { %2311 = vrot.lane.b32.xlu0 %v6538_v60, %s6950_s18 }
 0x370   :  { %v2652_v63 = vpop.permute.xlu1 %2651  ;;  %v9374_v0 = vpop.f32.mrb[16].mxu0 }
 0x371   :  { %2793 = vst.msk [vmem:[#allocation2 + $0x148] sm:$0xff] %vm2753_vm14, %v2652_v63  ;;  %v1534_v1 = vpop.permute.xlu0 %1533  ;;  %v9377_v3 = vpop.f32.mrb[17].mxu0  ;;  %v3860_v8 = vsel %vm3826_vm2, %v9374_v0, 0.0 }
 0x372   :  { %1683 = vst.msk [vmem:[#allocation2 + $0x158] sm:$0xff] %vm1639_vm9, %v1534_v1  ;;  %v3858_v5 = vsel %vm3826_vm2, %v9377_v3, 0.0  ;;  %1555 = vrot.lane.b32.xlu1 %v6538_v60, %s6948_s30 }
 0x373   :  { %v3859_v7 = vadd.f32 %v3858_v5, %v3857_v43  ;;  %2673 = vrot.lane.b32.xlu0 %v6538_v60, %s6951_s23 }
 0x374   :  { %v1917_v9 = vpop.permute.xlu1 %1916 }
 0x375   :  { %2068 = vst.msk [vmem:[#allocation2 + $0x150] sm:$0xff] %vm2024_vm11, %v1917_v9  ;;  %v3011_v10 = vpop.permute.xlu0 %3010  ;;  %v3861_v12 = vadd.f32 %v3860_v8, %v3859_v7 }
 0x376   :  { %3154 = vst.msk [vmem:[#allocation2 + $0x140] sm:$0xff] %vm3114_vm15, %v3011_v10  ;;  %2675 = vrot.lane.b32.xlu1 %v6599_v49, %s6951_s23  ;;  %v6603_v10 = vld [vmem:[%s15169_s0 + $0x1d8] sm:$0xff] }
 0x377   :  { %1557 = vrot.lane.b32.xlu0 %v6599_v49, %s6948_s30 }
 0x378   :  { %v3013_v14 = vpop.permute.xlu1 %3012 }
 0x379   :  { %3155 = vst.msk [vmem:[#allocation2 + $0x148] sm:$0x7f] %vm3116_vm1, %v3013_v14  ;;  %v1919_v15 = vpop.permute.xlu0 %1918 }
 0x37a   :  { %2069 = vst.msk [vmem:[#allocation2 + $0x158] sm:$0x7f] %vm2026_vm10, %v1919_v15  ;;  %1940 = vrot.lane.b32.xlu1 %v1758_v13, %s6949_s11 }
 0x37b   :  { %3034 = vrot.lane.b32.xlu0 %v1758_v13, %s6952_s8 }
 0x37c   :  { %v2294_v17 = vpop.permute.xlu1 %2293 }
 0x37d   :  { %2434 = vst.msk [vmem:[#allocation2 + $0x159] sm:$0x7f] %vm2393_vm12, %v2294_v17  ;;  %v2292_v53 = vpop.permute.xlu0 %2291  ;;  %v3216_v21 = vld [vmem:[#allocation2 + $0x140] sm:$0xff] }
 0x37e   :  { %2433 = vst.msk [vmem:[#allocation2 + $0x151] sm:$0xff] %vm2391_vm13, %v2292_v53  ;;  %6881 = vmatprep.mubr.msk.f32.mxu1 %vm22_vm0, %v3216_v21  ;;  %3036 = vrot.lane.b32.xlu1 %v6659_v16, %s6952_s8  ;;  %v1762_v16 = vld [vmem:[%s15169_s0 + $0x1d1] sm:$0xff]  ;;  %v6663_v53 = vld [vmem:[%s15169_s0 + $0x1d9] sm:$0x7f] }
 0x37f   :  { %1942 = vrot.lane.b32.xlu0 %v1759_v19, %s6949_s11 }
 0x380   :  { %v1536_v23 = vpop.permute.xlu1 %1535  ;;  %v3217_v37 = vld [vmem:[#allocation2 + $0x148] sm:$0xff] }
 0x381   :  { %1684 = vst.msk [vmem:[#allocation2 + $0x160] sm:$0xff] %vm1639_vm9, %v1536_v23  ;;  %v2654_v26 = vpop.permute.xlu0 %2653  ;;  %6882 = vmatmul.mubr.msk.f32.gmra.mrb[8].mxu1 %vm22_vm0, %v3217_v37 }
 0x382   :  { %2794 = vst.msk [vmem:[#allocation2 + $0x150] sm:$0xff] %vm2753_vm14, %v2654_v26  ;;  %2317 = vrot.lane.b32.xlu1 %v6541_v22, %s6950_s18  ;;  %v1763_v22 = vld [vmem:[%s15169_s0 + $0x1d9] sm:$0x7f] }
 0x383   :  { %2315 = vrot.lane.b32.xlu0 %v6540_v24, %s6950_s18 }
 0x384   :  { %v2656_v27 = vpop.permute.xlu1 %2655  ;;  %v9422_v28 = vpop.f32.mrb[18].mxu0 }
 0x385   :  { %2795 = vst.msk [vmem:[#allocation2 + $0x158] sm:$0xff] %vm2753_vm14, %v2656_v27  ;;  %v1538_v31 = vpop.permute.xlu0 %1537  ;;  %v9425_v34 = vpop.f32.mrb[19].mxu0  ;;  %v3864_v41 = vsel %vm3826_vm2, %v9422_v28, 0.0 }
 0x386   :  { %1685 = vst.msk [vmem:[#allocation2 + $0x168] sm:$0xff] %vm1639_vm9, %v1538_v31  ;;  %v3862_v36 = vsel %vm3826_vm2, %v9425_v34, 0.0  ;;  %1559 = vrot.lane.b32.xlu1 %v6540_v24, %s6948_s30 }
 0x387   :  { %v3863_v39 = vadd.f32 %v3862_v36, %v3861_v12  ;;  %2677 = vrot.lane.b32.xlu0 %v6540_v24, %s6951_s23  ;;  %v993_v24 = vld [vmem:[%s15169_s0 + $0x1e0] sm:$0xff]  ;;  %v6545_v36 = vld [vmem:[%s15169_s0 + $0x1e8] sm:$0x7f] }
 0x388   :  { %v1921_v42 = vpop.permute.xlu1 %1920 }
 0x389   :  { %2070 = vst.msk [vmem:[#allocation2 + $0x160] sm:$0xff] %vm2024_vm11, %v1921_v42  ;;  %v3015_v43 = vpop.permute.xlu0 %3014  ;;  %v3865_v46 = vadd.f32 %v3864_v41, %v3863_v39  ;;  %v994_v41 = vld [vmem:[%s15169_s0 + $0x1e8] sm:$0x7f] }
 0x38a   :  { %3156 = vst.msk [vmem:[#allocation2 + $0x150] sm:$0xff] %vm3114_vm15, %v3015_v43  ;;  %2679 = vrot.lane.b32.xlu1 %v6601_v40, %s6951_s23 }
 0x38b   :  { %1561 = vrot.lane.b32.xlu0 %v6601_v40, %s6948_s30 }
 0x38c   :  { %v3017_v50 = vpop.permute.xlu1 %3016 }
 0x38d   :  { %3157 = vst.msk [vmem:[#allocation2 + $0x158] sm:$0x7f] %vm3116_vm1, %v3017_v50  ;;  %v1923_v51 = vpop.permute.xlu0 %1922 }
 0x38e   :  { %2071 = vst.msk [vmem:[#allocation2 + $0x168] sm:$0x7f] %vm2026_vm10, %v1923_v51  ;;  %1944 = vrot.lane.b32.xlu1 %v1760_v47, %s6949_s11 }
 0x38f   :  { %3038 = vrot.lane.b32.xlu0 %v1760_v47, %s6952_s8 }
 0x390   :  { %v2298_v54 = vpop.permute.xlu1 %2297 }
 0x391   :  { %2436 = vst.msk [vmem:[#allocation2 + $0x169] sm:$0x7f] %vm2393_vm12, %v2298_v54  ;;  %v2296_v55 = vpop.permute.xlu0 %2295  ;;  %v3218_v56 = vld [vmem:[#allocation2 + $0x150] sm:$0xff] }
 0x392   :  { %2435 = vst.msk [vmem:[#allocation2 + $0x161] sm:$0xff] %vm2391_vm13, %v2296_v55  ;;  %6884 = vmatprep.mubr.msk.f32.mxu1 %vm22_vm0, %v3218_v56  ;;  %3040 = vrot.lane.b32.xlu1 %v6661_v52, %s6952_s8 }
 0x393   :  { %1946 = vrot.lane.b32.xlu0 %v1761_v29, %s6949_s11  ;;  %v6605_v29 = vld [vmem:[%s15169_s0 + $0x1e8] sm:$0xff] }
 0x394   :  { %v1540_v45 = vpop.permute.xlu1 %1539  ;;  %v3219_v60 = vld [vmem:[#allocation2 + $0x158] sm:$0xff] }
 0x395   :  { %1686 = vst.msk [vmem:[#allocation2 + $0x170] sm:$0xff] %vm1639_vm9, %v1540_v45  ;;  %v2658_v63 = vpop.permute.xlu0 %2657  ;;  %6885 = vmatmul.mubr.msk.f32.gmra.mrb[10].mxu1 %vm22_vm0, %v3219_v60 }
 0x396   :  { %2796 = vst.msk [vmem:[#allocation2 + $0x160] sm:$0xff] %vm2753_vm14, %v2658_v63  ;;  %2321 = vrot.lane.b32.xlu1 %v6543_v58, %s6950_s18  ;;  %v1764_v58 = vld [vmem:[%s15169_s0 + $0x1e1] sm:$0xff]  ;;  %v6665_v63 = vld [vmem:[%s15169_s0 + $0x1e9] sm:$0x7f] }
 0x397   :  { %2319 = vrot.lane.b32.xlu0 %v6542_v62, %s6950_s18 }
 0x398   :  { %v2660_v1 = vpop.permute.xlu1 %2659  ;;  %v9470_v5 = vpop.f32.mrb[20].mxu0 }
 0x399   :  { %2797 = vst.msk [vmem:[#allocation2 + $0x168] sm:$0xff] %vm2753_vm14, %v2660_v1  ;;  %v1542_v7 = vpop.permute.xlu0 %1541  ;;  %v9473_v49 = vpop.f32.mrb[21].mxu0  ;;  %v3868_v12 = vsel %vm3826_vm2, %v9470_v5, 0.0 }
 0x39a   :  { %1687 = vst.msk [vmem:[#allocation2 + $0x178] sm:$0xff] %vm1639_vm9, %v1542_v7  ;;  %v3866_v8 = vsel %vm3826_vm2, %v9473_v49, 0.0  ;;  %1563 = vrot.lane.b32.xlu1 %v6542_v62, %s6948_s30 }
 0x39b   :  { %v3867_v9 = vadd.f32 %v3866_v8, %v3865_v46  ;;  %2681 = vrot.lane.b32.xlu0 %v6542_v62, %s6951_s23  ;;  %v1765_v8 = vld [vmem:[%s15169_s0 + $0x1e9] sm:$0x7f] }
 0x39c   :  { %v1925_v13 = vpop.permute.xlu1 %1924 }
 0x39d   :  { %2072 = vst.msk [vmem:[#allocation2 + $0x170] sm:$0xff] %vm2024_vm11, %v1925_v13  ;;  %v3019_v14 = vpop.permute.xlu0 %3018  ;;  %v3869_v15 = vadd.f32 %v3868_v12, %v3867_v9 }
 0x39e   :  { %3158 = vst.msk [vmem:[#allocation2 + $0x160] sm:$0xff] %vm3114_vm15, %v3019_v14  ;;  %2683 = vrot.lane.b32.xlu1 %v6603_v10, %s6951_s23  ;;  %v6546_v14 = vld [vmem:[%s15169_s0 + $0x1f0] sm:$0xff] }
 0x39f   :  { %1565 = vrot.lane.b32.xlu0 %v6603_v10, %s6948_s30  ;;  %v6547_v10 = vld [vmem:[%s15169_s0 + $0x1f8] sm:$0x7f] }
 0x3a0   :  { %v3021_v17 = vpop.permute.xlu1 %3020 }
 0x3a1   :  { %3159 = vst.msk [vmem:[#allocation2 + $0x168] sm:$0x7f] %vm3116_vm1, %v3021_v17  ;;  %v1927_v19 = vpop.permute.xlu0 %1926 }
 0x3a2   :  { %2073 = vst.msk [vmem:[#allocation2 + $0x178] sm:$0x7f] %vm2026_vm10, %v1927_v19  ;;  %1948 = vrot.lane.b32.xlu1 %v1762_v16, %s6949_s11 }
 0x3a3   :  { %3042 = vrot.lane.b32.xlu0 %v1762_v16, %s6952_s8 }
 0x3a4   :  { %v2302_v21 = vpop.permute.xlu1 %2301 }
 0x3a5   :  { %2438 = vst.msk [vmem:[#allocation2 + $0x179] sm:$0x7f] %vm2393_vm12, %v2302_v21  ;;  %v2300_v23 = vpop.permute.xlu0 %2299  ;;  %v3220_v37 = vld [vmem:[#allocation2 + $0x160] sm:$0xff] }
 0x3a6   :  { %2437 = vst.msk [vmem:[#allocation2 + $0x171] sm:$0xff] %vm2391_vm13, %v2300_v23  ;;  %6887 = vmatprep.mubr.msk.f32.mxu1 %vm22_vm0, %v3220_v37  ;;  %3044 = vrot.lane.b32.xlu1 %v6663_v53, %s6952_s8  ;;  %v6607_v53 = vld [vmem:[%s15169_s0 + $0x1f8] sm:$0xff] }
 0x3a7   :  { %1950 = vrot.lane.b32.xlu0 %v1763_v22, %s6949_s11 }
 0x3a8   :  { %v1544_v26 = vpop.permute.xlu1 %1543  ;;  %v3221_v27 = vld [vmem:[#allocation2 + $0x168] sm:$0xff] }
 0x3a9   :  { %1688 = vst.msk [vmem:[#allocation2 + $0x180] sm:$0xff] %vm1639_vm9, %v1544_v26  ;;  %v2662_v31 = vpop.permute.xlu0 %2661  ;;  %6888 = vmatmul.mubr.msk.f32.gmra.mrb[12].mxu1 %vm22_vm0, %v3221_v27  ;;  %v6666_v27 = vld [vmem:[%s15169_s0 + $0x1f1] sm:$0xff] }
 0x3aa   :  { %2798 = vst.msk [vmem:[#allocation2 + $0x170] sm:$0xff] %vm2753_vm14, %v2662_v31  ;;  %1181 = vrot.lane.b32.xlu1 %v993_v24, %s6947_s27 }
 0x3ab   :  { %2323 = vrot.lane.b32.xlu0 %v993_v24, %s6950_s18 }
 0x3ac   :  { %v2664_v39 = vpop.permute.xlu1 %2663  ;;  %v9518_v40 = vpop.f32.mrb[22].mxu0 }
 0x3ad   :  { %2799 = vst.msk [vmem:[#allocation2 + $0x178] sm:$0xff] %vm2753_vm14, %v2664_v39  ;;  %v1546_v42 = vpop.permute.xlu0 %1545  ;;  %v9524_v43 = vpop.f32.mrb[23].mxu0  ;;  %v3872_v50 = vsel %vm3826_vm2, %v9518_v40, 0.0 }
 0x3ae   :  { %1689 = vst.msk [vmem:[#allocation2 + $0x188] sm:$0xff] %vm1639_vm9, %v1546_v42  ;;  %v3870_v46 = vsel %vm3826_vm2, %v9524_v43, 0.0  ;;  %2325 = vrot.lane.b32.xlu1 %v6545_v36, %s6950_s18  ;;  %v996_v36 = vld [vmem:[%s15169_s0 + $0x1f8] sm:$0x7f] }
 0x3af   :  { %v3871_v47 = vadd.f32 %v3870_v46, %v3869_v15  ;;  %1183 = vrot.lane.b32.xlu0 %v994_v41, %s6947_s27 }
 0x3b0   :  { %v1929_v51 = vpop.permute.xlu1 %1928 }
 0x3b1   :  { %2074 = vst.msk [vmem:[#allocation2 + $0x180] sm:$0xff] %vm2024_vm11, %v1929_v51  ;;  %v3023_v52 = vpop.permute.xlu0 %3022  ;;  %v3873_v54 = vadd.f32 %v3872_v50, %v3871_v47  ;;  %v1767_v51 = vld [vmem:[%s15169_s0 + $0x1f9] sm:$0x7f] }
 0x3b2   :  { %3160 = vst.msk [vmem:[#allocation2 + $0x170] sm:$0xff] %vm3114_vm15, %v3023_v52  ;;  %1567 = vrot.lane.b32.xlu1 %v993_v24, %s6948_s30 }
 0x3b3   :  { %2685 = vrot.lane.b32.xlu0 %v993_v24, %s6951_s23  ;;  %v6667_v24 = vld [vmem:[%s15169_s0 + $0x1f9] sm:$0x7f] }
 0x3b4   :  { %v3025_v55 = vpop.permute.xlu1 %3024 }
 0x3b5   :  { %3161 = vst.msk [vmem:[#allocation2 + $0x178] sm:$0x7f] %vm3116_vm1, %v3025_v55  ;;  %v1931_v56 = vpop.permute.xlu0 %1930 }
 0x3b6   :  { %2075 = vst.msk [vmem:[#allocation2 + $0x188] sm:$0x7f] %vm2026_vm10, %v1931_v56  ;;  %2687 = vrot.lane.b32.xlu1 %v6605_v29, %s6951_s23 }
 0x3b7   :  { %1569 = vrot.lane.b32.xlu0 %v6605_v29, %s6948_s30 }
 0x3b8   :  { %v2306_v45 = vpop.permute.xlu1 %2305 }
 0x3b9   :  { %2440 = vst.msk [vmem:[#allocation2 + $0x189] sm:$0x7f] %vm2393_vm12, %v2306_v45  ;;  %v2304_v60 = vpop.permute.xlu0 %2303  ;;  %v3222_v62 = vld [vmem:[#allocation2 + $0x170] sm:$0xff] }
 0x3ba   :  { %2439 = vst.msk [vmem:[#allocation2 + $0x181] sm:$0xff] %vm2391_vm13, %v2304_v60  ;;  %6890 = vmatprep.mubr.msk.f32.mxu1 %vm22_vm0, %v3222_v62  ;;  %1952 = vrot.lane.b32.xlu1 %v1764_v58, %s6949_s11 }
 0x3bb   :  { %3046 = vrot.lane.b32.xlu0 %v1764_v58, %s6952_s8 }
 0x3bc   :  { %v1548_v1 = vpop.permute.xlu1 %1547  ;;  %v3223_v7 = vld [vmem:[#allocation2 + $0x178] sm:$0xff] }
 0x3bd   :  { %1690 = vst.msk [vmem:[#allocation2 + $0x190] sm:$0xff] %vm1639_vm9, %v1548_v1  ;;  %v2666_v9 = vpop.permute.xlu0 %2665  ;;  %6891 = vmatmul.mubr.msk.f32.gmra.mrb[14].mxu1 %vm22_vm0, %v3223_v7 }
 0x3be   :  { %2800 = vst.msk [vmem:[#allocation2 + $0x180] sm:$0xff] %vm2753_vm14, %v2666_v9  ;;  %3048 = vrot.lane.b32.xlu1 %v6665_v63, %s6952_s8 }
 0x3bf   :  { %1954 = vrot.lane.b32.xlu0 %v1765_v8, %s6949_s11 }
 0x3c0   :  { %v2668_v12 = vpop.permute.xlu1 %2667  ;;  %v9566_v13 = vpop.f32.mrb[24].mxu0 }
 0x3c1   :  { %2801 = vst.msk [vmem:[#allocation2 + $0x188] sm:$0xff] %vm2753_vm14, %v2668_v12  ;;  %v1550_v15 = vpop.permute.xlu0 %1549  ;;  %v9572_v16 = vpop.f32.mrb[25].mxu0  ;;  %v3876_v21 = vsel %vm3826_vm2, %v9566_v13, 0.0 }
 0x3c2   :  { %1691 = vst.msk [vmem:[#allocation2 + $0x198] sm:$0xff] %vm1639_vm9, %v1550_v15  ;;  %v3874_v17 = vsel %vm3826_vm2, %v9572_v16, 0.0  ;;  %2329 = vrot.lane.b32.xlu1 %v6547_v10, %s6950_s18 }
 0x3c3   :  { %v3875_v19 = vadd.f32 %v3874_v17, %v3873_v54  ;;  %2327 = vrot.lane.b32.xlu0 %v6546_v14, %s6950_s18 }
 0x3c4   :  { %v1933_v22 = vpop.permute.xlu1 %1932 }
 0x3c5   :  { %2076 = vst.msk [vmem:[#allocation2 + $0x190] sm:$0xff] %vm2024_vm11, %v1933_v22  ;;  %v3027_v23 = vpop.permute.xlu0 %3026  ;;  %v3877_v37 = vadd.f32 %v3876_v21, %v3875_v19 }
 0x3c6   :  { %3162 = vst.msk [vmem:[#allocation2 + $0x180] sm:$0xff] %vm3114_vm15, %v3027_v23  ;;  %2691 = vrot.lane.b32.xlu1 %v6607_v53, %s6951_s23 }
 0x3c7   :  { %2689 = vrot.lane.b32.xlu0 %v6546_v14, %s6951_s23 }
 0x3c8   :  { %v3029_v26 = vpop.permute.xlu1 %3028 }
 0x3c9   :  { %3163 = vst.msk [vmem:[#allocation2 + $0x188] sm:$0x7f] %vm3116_vm1, %v3029_v26  ;;  %v1935_v31 = vpop.permute.xlu0 %1934 }
 0x3ca   :  { %2077 = vst.msk [vmem:[#allocation2 + $0x198] sm:$0x7f] %vm2026_vm10, %v1935_v31  ;;  %3052 = vrot.lane.b32.xlu1 %v6667_v24, %s6952_s8 }
 0x3cb   :  { %3050 = vrot.lane.b32.xlu0 %v6666_v27, %s6952_s8 }
 0x3cc   :  { %v2310_v39 = vpop.permute.xlu1 %2309 }
 0x3cd   :  { %2442 = vst.msk [vmem:[#allocation2 + $0x199] sm:$0x7f] %vm2393_vm12, %v2310_v39  ;;  %v2308_v41 = vpop.permute.xlu0 %2307  ;;  %v3224_v42 = vld [vmem:[#allocation2 + $0x180] sm:$0xff] }
 0x3ce   :  { %2441 = vst.msk [vmem:[#allocation2 + $0x191] sm:$0xff] %vm2391_vm13, %v2308_v41  ;;  %6893 = vmatprep.mubr.msk.f32.mxu1 %vm22_vm0, %v3224_v42  ;;  %1187 = vrot.lane.b32.xlu1 %v996_v36, %s6947_s27 }
 0x3cf   :  { %1185 = vrot.lane.b32.xlu0 %v6546_v14, %s6947_s27 }
 0x3d0   :  { %v1552_v46 = vpop.permute.xlu1 %1551  ;;  %v3225_v47 = vld [vmem:[#allocation2 + $0x188] sm:$0xff] }
 0x3d1   :  { %1692 = vst.msk [vmem:[#allocation2 + $0x1a0] sm:$0xff] %vm1639_vm9, %v1552_v46  ;;  %v2670_v50 = vpop.permute.xlu0 %2669  ;;  %6894 = vmatmul.mubr.msk.f32.gmra.mrb[16].mxu1 %vm22_vm0, %v3225_v47 }
 0x3d2   :  { %2802 = vst.msk [vmem:[#allocation2 + $0x190] sm:$0xff] %vm2753_vm14, %v2670_v50  ;;  %1573 = vrot.lane.b32.xlu1 %v6607_v53, %s6948_s30 }
 0x3d3   :  { %1571 = vrot.lane.b32.xlu0 %v6546_v14, %s6948_s30 }
 0x3d4   :  { %v2672_v52 = vpop.permute.xlu1 %2671  ;;  %v9614_v54 = vpop.f32.mrb[26].mxu0 }
 0x3d5   :  { %2803 = vst.msk [vmem:[#allocation2 + $0x198] sm:$0xff] %vm2753_vm14, %v2672_v52  ;;  %v1554_v29 = vpop.permute.xlu0 %1553  ;;  %v9617_v55 = vpop.f32.mrb[27].mxu0  ;;  %v3880_v45 = vsel %vm3826_vm2, %v9614_v54, 0.0 }
 0x3d6   :  { %1693 = vst.msk [vmem:[#allocation2 + $0x1a8] sm:$0xff] %vm1639_vm9, %v1554_v29  ;;  %v3878_v56 = vsel %vm3826_vm2, %v9617_v55, 0.0  ;;  %1958 = vrot.lane.b32.xlu1 %v1767_v51, %s6949_s11 }
 0x3d7   :  { %v3879_v58 = vadd.f32 %v3878_v56, %v3877_v37  ;;  %1956 = vrot.lane.b32.xlu0 %v6666_v27, %s6949_s11 }
 0x3d8   :  { %v1937_v60 = vpop.permute.xlu1 %1936 }
 0x3d9   :  { %2078 = vst.msk [vmem:[#allocation2 + $0x1a0] sm:$0xff] %vm2024_vm11, %v1937_v60  ;;  %v3031_v62 = vpop.permute.xlu0 %3030  ;;  %v3881_v63 = vadd.f32 %v3880_v45, %v3879_v58 }
 0x3da   :  { %3164 = vst.msk [vmem:[#allocation2 + $0x190] sm:$0xff] %vm3114_vm15, %v3031_v62 }
 0x3dc   :  { %v3033_v1 = vpop.permute.xlu1 %3032 }
 0x3dd   :  { %3165 = vst.msk [vmem:[#allocation2 + $0x198] sm:$0x7f] %vm3116_vm1, %v3033_v1  ;;  %v1939_v7 = vpop.permute.xlu0 %1938 }
 0x3de   :  { %2079 = vst.msk [vmem:[#allocation2 + $0x1a8] sm:$0x7f] %vm2026_vm10, %v1939_v7 }
 0x3e0   :  { %v2314_v8 = vpop.permute.xlu1 %2313 }
 0x3e1   :  { %2444 = vst.msk [vmem:[#allocation2 + $0x1a9] sm:$0x7f] %vm2393_vm12, %v2314_v8  ;;  %v2312_v9 = vpop.permute.xlu0 %2311  ;;  %v3226_v10 = vld [vmem:[#allocation2 + $0x190] sm:$0xff] }
 0x3e2   :  { %2443 = vst.msk [vmem:[#allocation2 + $0x1a1] sm:$0xff] %vm2391_vm13, %v2312_v9  ;;  %v9632_v12 = vpop.f32.mrb[28].mxu0  ;;  %6896 = vmatprep.mubr.msk.f32.mxu1 %vm22_vm0, %v3226_v10 }
 0x3e3   :  { %v9635_v14 = vpop.f32.mrb[29].mxu0  ;;  %v3884_v22 = vsel %vm3826_vm2, %v9632_v12, 0.0 }
 0x3e4   :  { %v3882_v15 = vsel %vm3826_vm2, %v9635_v14, 0.0  ;;  %v1556_v17 = vpop.permute.xlu1 %1555  ;;  %v3227_v19 = vld [vmem:[#allocation2 + $0x198] sm:$0xff] }
 0x3e5   :  { %v3883_v53 = vadd.f32 %v3882_v15, %v3881_v63  ;;  %1694 = vst.msk [vmem:[#allocation2 + $0x1b0] sm:$0xff] %vm1639_vm9, %v1556_v17  ;;  %v2674_v21 = vpop.permute.xlu0 %2673  ;;  %6897 = vmatmul.mubr.msk.f32.gmra.mrb[18].mxu1 %vm22_vm0, %v3227_v19 }
 0x3e6   :  { %2804 = vst.msk [vmem:[#allocation2 + $0x1a0] sm:$0xff] %vm2753_vm14, %v2674_v21 }
 0x3e7   :  { %v3885_v23 = vadd.f32 %v3884_v22, %v3883_v53 }
 0x3e8   :  { %v2676_v37 = vpop.permute.xlu1 %2675 }
 0x3e9   :  { %2805 = vst.msk [vmem:[#allocation2 + $0x1a8] sm:$0xff] %vm2753_vm14, %v2676_v37  ;;  %v1558_v24 = vpop.permute.xlu0 %1557 }
 0x3ea   :  { %1695 = vst.msk [vmem:[#allocation2 + $0x1b8] sm:$0xff] %vm1639_vm9, %v1558_v24 }
 0x3ec   :  { %v1941_v26 = vpop.permute.xlu1 %1940 }
 0x3ed   :  { %2080 = vst.msk [vmem:[#allocation2 + $0x1b0] sm:$0xff] %vm2024_vm11, %v1941_v26  ;;  %v3035_v27 = vpop.permute.xlu0 %3034 }
 0x3ee   :  { %3166 = vst.msk [vmem:[#allocation2 + $0x1a0] sm:$0xff] %vm3114_vm15, %v3035_v27  ;;  %v9648_v31 = vpop.f32.mrb[30].mxu0 }
 0x3ef   :  { %v9650_v36 = vpop.f32.mrb[31].mxu0  ;;  %v3888_v47 = vsel %vm3826_vm2, %v9648_v31, 0.0 }
 0x3f0   :  { %v3886_v39 = vsel %vm3826_vm2, %v9650_v36, 0.0  ;;  %v3037_v41 = vpop.permute.xlu1 %3036 }
 0x3f1   :  { %v3887_v42 = vadd.f32 %v3886_v39, %v3885_v23  ;;  %3167 = vst.msk [vmem:[#allocation2 + $0x1a8] sm:$0x7f] %vm3116_vm1, %v3037_v41  ;;  %v1943_v46 = vpop.permute.xlu0 %1942 }
 0x3f2   :  { %2081 = vst.msk [vmem:[#allocation2 + $0x1b8] sm:$0x7f] %vm2026_vm10, %v1943_v46 }
 0x3f3   :  { %v3889_v50 = vadd.f32 %v3888_v47, %v3887_v42 }
 0x3f4   :  { %v2318_v51 = vpop.permute.xlu1 %2317 }
 0x3f5   :  { %2446 = vst.msk [vmem:[#allocation2 + $0x1b9] sm:$0x7f] %vm2393_vm12, %v2318_v51  ;;  %v2316_v52 = vpop.permute.xlu0 %2315  ;;  %v3228_v29 = vld [vmem:[#allocation2 + $0x1a0] sm:$0xff] }
 0x3f6   :  { %2445 = vst.msk [vmem:[#allocation2 + $0x1b1] sm:$0xff] %vm2391_vm13, %v2316_v52  ;;  %6899 = vmatprep.mubr.msk.f32.mxu1 %vm22_vm0, %v3228_v29 }
 0x3f8   :  { %v1560_v56 = vpop.permute.xlu1 %1559  ;;  %v3229_v58 = vld [vmem:[#allocation2 + $0x1a8] sm:$0xff] }
 0x3f9   :  { %1696 = vst.msk [vmem:[#allocation2 + $0x1c0] sm:$0xff] %vm1639_vm9, %v1560_v56  ;;  %v2678_v45 = vpop.permute.xlu0 %2677  ;;  %6900 = vmatmul.mubr.msk.f32.gmra.mrb[20].mxu1 %vm22_vm0, %v3229_v58 }
 0x3fa   :  { %2806 = vst.msk [vmem:[#allocation2 + $0x1b0] sm:$0xff] %vm2753_vm14, %v2678_v45 }
 0x3fc   :  { %v2680_v60 = vpop.permute.xlu1 %2679 }
 0x3fd   :  { %2807 = vst.msk [vmem:[#allocation2 + $0x1b8] sm:$0xff] %vm2753_vm14, %v2680_v60  ;;  %v1562_v62 = vpop.permute.xlu0 %1561 }
 0x3fe   :  { %1697 = vst.msk [vmem:[#allocation2 + $0x1c8] sm:$0xff] %vm1639_vm9, %v1562_v62 }
 0x400   :  { %v1945_v63 = vpop.permute.xlu1 %1944 }
 0x401   :  { %2082 = vst.msk [vmem:[#allocation2 + $0x1c0] sm:$0xff] %vm2024_vm11, %v1945_v63  ;;  %v3039_v1 = vpop.permute.xlu0 %3038 }
 0x402   :  { %3168 = vst.msk [vmem:[#allocation2 + $0x1b0] sm:$0xff] %vm3114_vm15, %v3039_v1 }
 0x404   :  { %v3041_v7 = vpop.permute.xlu1 %3040  ;;  %v9668_v8 = vpop.f32.mrb[0].mxu1 }
 0x405   :  { %3169 = vst.msk [vmem:[#allocation2 + $0x1b8] sm:$0x7f] %vm3116_vm1, %v3041_v7  ;;  %v1947_v9 = vpop.permute.xlu0 %1946  ;;  %v9671_v10 = vpop.f32.mrb[1].mxu1  ;;  %v3892_v19 = vsel %vm3826_vm2, %v9668_v8, 0.0 }
 0x406   :  { %2083 = vst.msk [vmem:[#allocation2 + $0x1c8] sm:$0x7f] %vm2026_vm10, %v1947_v9  ;;  %v3890_v15 = vsel %vm3826_vm2, %v9671_v10, 0.0 }
 0x407   :  { %v3891_v17 = vadd.f32 %v3890_v15, %v3889_v50 }
 0x408   :  { %v2322_v53 = vpop.permute.xlu1 %2321 }
 0x409   :  { %2448 = vst.msk [vmem:[#allocation2 + $0x1c9] sm:$0x7f] %vm2393_vm12, %v2322_v53  ;;  %v2320_v21 = vpop.permute.xlu0 %2319  ;;  %v3230_v22 = vld [vmem:[#allocation2 + $0x1b0] sm:$0xff]  ;;  %v3893_v23 = vadd.f32 %v3892_v19, %v3891_v17 }
 0x40a   :  { %2447 = vst.msk [vmem:[#allocation2 + $0x1c1] sm:$0xff] %vm2391_vm13, %v2320_v21  ;;  %6902 = vmatprep.mubr.msk.f32.mxu1 %vm22_vm0, %v3230_v22 }
 0x40c   :  { %v1564_v37 = vpop.permute.xlu1 %1563  ;;  %v3231_v24 = vld [vmem:[#allocation2 + $0x1b8] sm:$0xff] }
 0x40d   :  { %1698 = vst.msk [vmem:[#allocation2 + $0x1d0] sm:$0xff] %vm1639_vm9, %v1564_v37  ;;  %v2682_v26 = vpop.permute.xlu0 %2681  ;;  %6903 = vmatmul.mubr.msk.f32.gmra.mrb[22].mxu1 %vm22_vm0, %v3231_v24 }
 0x40e   :  { %2808 = vst.msk [vmem:[#allocation2 + $0x1c0] sm:$0xff] %vm2753_vm14, %v2682_v26 }
 0x410   :  { %v2684_v27 = vpop.permute.xlu1 %2683 }
 0x411   :  { %2809 = vst.msk [vmem:[#allocation2 + $0x1c8] sm:$0xff] %vm2753_vm14, %v2684_v27  ;;  %v1566_v39 = vpop.permute.xlu0 %1565 }
 0x412   :  { %1699 = vst.msk [vmem:[#allocation2 + $0x1d8] sm:$0xff] %vm1639_vm9, %v1566_v39 }
 0x414   :  { %v1949_v41 = vpop.permute.xlu1 %1948 }
 0x415   :  { %2084 = vst.msk [vmem:[#allocation2 + $0x1d0] sm:$0xff] %vm2024_vm11, %v1949_v41  ;;  %v3043_v42 = vpop.permute.xlu0 %3042 }
 0x416   :  { %3170 = vst.msk [vmem:[#allocation2 + $0x1c0] sm:$0xff] %vm3114_vm15, %v3043_v42 }
 0x418   :  { %v3045_v46 = vpop.permute.xlu1 %3044  ;;  %v9688_v47 = vpop.f32.mrb[2].mxu1 }
 0x419   :  { %3171 = vst.msk [vmem:[#allocation2 + $0x1c8] sm:$0x7f] %vm3116_vm1, %v3045_v46  ;;  %v1951_v50 = vpop.permute.xlu0 %1950  ;;  %v9691_v51 = vpop.f32.mrb[3].mxu1  ;;  %v3896_v56 = vsel %vm3826_vm2, %v9688_v47, 0.0 }
 0x41a   :  { %2085 = vst.msk [vmem:[#allocation2 + $0x1d8] sm:$0x7f] %vm2026_vm10, %v1951_v50  ;;  %v3894_v52 = vsel %vm3826_vm2, %v9691_v51, 0.0 }
 0x41b   :  { %v3895_v29 = vadd.f32 %v3894_v52, %v3893_v23 }
 0x41c   :  { %v1182_v58 = vpop.permute.xlu1 %1181 }
 0x41d   :  { %1315 = vst.msk [vmem:[#allocation2 + $0x1e1] sm:$0xff] %vm1253_vm7, %v1182_v58  ;;  %v2324_v45 = vpop.permute.xlu0 %2323  ;;  %v3232_v60 = vld [vmem:[#allocation2 + $0x1c0] sm:$0xff]  ;;  %v3897_v62 = vadd.f32 %v3896_v56, %v3895_v29 }
 0x41e   :  { %2449 = vst.msk [vmem:[#allocation2 + $0x1d1] sm:$0xff] %vm2391_vm13, %v2324_v45  ;;  %6905 = vmatprep.mubr.msk.f32.mxu1 %vm22_vm0, %v3232_v60 }
 0x420   :  { %v2326_v63 = vpop.permute.xlu1 %2325  ;;  %v3233_v1 = vld [vmem:[#allocation2 + $0x1c8] sm:$0xff] }
 0x421   :  { %2450 = vst.msk [vmem:[#allocation2 + $0x1d9] sm:$0x7f] %vm2393_vm12, %v2326_v63  ;;  %v1184_v7 = vpop.permute.xlu0 %1183  ;;  %6906 = vmatmul.mubr.msk.f32.gmra.mrb[24].mxu1 %vm22_vm0, %v3233_v1 }
 0x422   :  { %1316 = vst.msk [vmem:[#allocation2 + $0x1e9] sm:$0x7f] %vm1255_vm6, %v1184_v7 }
 0x424   :  { %v1568_v9 = vpop.permute.xlu1 %1567 }
 0x425   :  { %1700 = vst.msk [vmem:[#allocation2 + $0x1e0] sm:$0xff] %vm1639_vm9, %v1568_v9  ;;  %v2686_v15 = vpop.permute.xlu0 %2685 }
 0x426   :  { %2810 = vst.msk [vmem:[#allocation2 + $0x1d0] sm:$0xff] %vm2753_vm14, %v2686_v15 }
 0x428   :  { %v2688_v17 = vpop.permute.xlu1 %2687 }
 0x429   :  { %2811 = vst.msk [vmem:[#allocation2 + $0x1d8] sm:$0xff] %vm2753_vm14, %v2688_v17  ;;  %v1570_v19 = vpop.permute.xlu0 %1569 }
 0x42a   :  { %1701 = vst.msk [vmem:[#allocation2 + $0x1e8] sm:$0xff] %vm1639_vm9, %v1570_v19 }
 0x42c   :  { %v1953_v53 = vpop.permute.xlu1 %1952  ;;  %v9708_v21 = vpop.f32.mrb[4].mxu1 }
 0x42d   :  { %2086 = vst.msk [vmem:[#allocation2 + $0x1e0] sm:$0xff] %vm2024_vm11, %v1953_v53  ;;  %v3047_v22 = vpop.permute.xlu0 %3046  ;;  %v9711_v23 = vpop.f32.mrb[5].mxu1  ;;  %v3900_v26 = vsel %vm3826_vm2, %v9708_v21, 0.0 }
 0x42e   :  { %3172 = vst.msk [vmem:[#allocation2 + $0x1d0] sm:$0xff] %vm3114_vm15, %v3047_v22  ;;  %v3898_v37 = vsel %vm3826_vm2, %v9711_v23, 0.0 }
 0x42f   :  { %v3899_v24 = vadd.f32 %v3898_v37, %v3897_v62 }
 0x430   :  { %v3049_v27 = vpop.permute.xlu1 %3048 }
 0x431   :  { %3173 = vst.msk [vmem:[#allocation2 + $0x1d8] sm:$0x7f] %vm3116_vm1, %v3049_v27  ;;  %v1955_v39 = vpop.permute.xlu0 %1954  ;;  %v3901_v41 = vadd.f32 %v3900_v26, %v3899_v24 }
 0x432   :  { %2087 = vst.msk [vmem:[#allocation2 + $0x1e8] sm:$0x7f] %vm2026_vm10, %v1955_v39 }
 0x434   :  { %v2330_v42 = vpop.permute.xlu1 %2329 }
 0x435   :  { %2452 = vst.msk [vmem:[#allocation2 + $0x1e9] sm:$0x7f] %vm2393_vm12, %v2330_v42  ;;  %v2328_v46 = vpop.permute.xlu0 %2327  ;;  %v3234_v50 = vld [vmem:[#allocation2 + $0x1d0] sm:$0xff] }
 0x436   :  { %2451 = vst.msk [vmem:[#allocation2 + $0x1e1] sm:$0xff] %vm2391_vm13, %v2328_v46  ;;  %6908 = vmatprep.mubr.msk.f32.mxu1 %vm22_vm0, %v3234_v50 }
 0x438   :  { %v2692_v52 = vpop.permute.xlu1 %2691  ;;  %v3235_v29 = vld [vmem:[#allocation2 + $0x1d8] sm:$0xff] }
 0x439   :  { %2813 = vst.msk [vmem:[#allocation2 + $0x1e8] sm:$0xff] %vm2753_vm14, %v2692_v52  ;;  %v2690_v56 = vpop.permute.xlu0 %2689  ;;  %6909 = vmatmul.mubr.msk.f32.gmra.mrb[26].mxu1 %vm22_vm0, %v3235_v29 }
 0x43a   :  { %2812 = vst.msk [vmem:[#allocation2 + $0x1e0] sm:$0xff] %vm2753_vm14, %v2690_v56 }
 0x43c   :  { %v3053_v58 = vpop.permute.xlu1 %3052 }
 0x43d   :  { %3175 = vst.msk [vmem:[#allocation2 + $0x1e8] sm:$0x7f] %vm3116_vm1, %v3053_v58  ;;  %v3051_v45 = vpop.permute.xlu0 %3050 }
 0x43e   :  { %3174 = vst.msk [vmem:[#allocation2 + $0x1e0] sm:$0xff] %vm3114_vm15, %v3051_v45 }
 0x440   :  { %v1188_v60 = vpop.permute.xlu1 %1187  ;;  %v9728_v62 = vpop.f32.mrb[6].mxu1 }
 0x441   :  { %1318 = vst.msk [vmem:[#allocation2 + $0x1f9] sm:$0x7f] %vm1255_vm6, %v1188_v60  ;;  %v1186_v63 = vpop.permute.xlu0 %1185  ;;  %v9731_v1 = vpop.f32.mrb[7].mxu1  ;;  %v3904_v15 = vsel %vm3826_vm2, %v9728_v62, 0.0 }
 0x442   :  { %1317 = vst.msk [vmem:[#allocation2 + $0x1f1] sm:$0xff] %vm1253_vm7, %v1186_v63  ;;  %v3902_v7 = vsel %vm3826_vm2, %v9731_v1, 0.0 }
 0x443   :  { %v3903_v9 = vadd.f32 %v3902_v7, %v3901_v41 }
 0x444   :  { %v1574_v17 = vpop.permute.xlu1 %1573  ;;  %v3237_v19 = vld [vmem:[#allocation2 + $0x1e8] sm:$0xff] }
 0x445   :  { %1703 = vst.msk [vmem:[#allocation2 + $0x1f8] sm:$0xff] %vm1639_vm9, %v1574_v17  ;;  %v1572_v53 = vpop.permute.xlu0 %1571  ;;  %v3236_v22 = vld [vmem:[#allocation2 + $0x1e0] sm:$0xff]  ;;  %v3905_v37 = vadd.f32 %v3904_v15, %v3903_v9 }
 0x446   :  { %1702 = vst.msk [vmem:[#allocation2 + $0x1f0] sm:$0xff] %vm1639_vm9, %v1572_v53  ;;  %6911 = vmatprep.mubr.msk.f32.mxu1 %vm22_vm0, %v3236_v22 }
 0x447   :  { %6912 = vmatmul.mubr.msk.f32.gmra.mrb[28].mxu1 %vm22_vm0, %v3237_v19 }
 0x448   :  { %v1959_v24 = vpop.permute.xlu1 %1958 }
 0x449   :  { %2089 = vst.msk [vmem:[#allocation2 + $0x1f8] sm:$0x7f] %vm2026_vm10, %v1959_v24  ;;  %v1957_v26 = vpop.permute.xlu0 %1956 }
 0x44a   :  { %2088 = vst.msk [vmem:[#allocation2 + $0x1f0] sm:$0xff] %vm2024_vm11, %v1957_v26 }
 0x450   :  { %v3239_v27 = vld [vmem:[#allocation2 + $0x1f8] sm:$0xff] }
 0x451   :  { %v3238_v39 = vld [vmem:[#allocation2 + $0x1f0] sm:$0xff] }
 0x452   :  { %6914 = vmatprep.mubr.msk.f32.mxu1 %vm22_vm0, %v3238_v39 }
 0x453   :  { %6915 = vmatmul.mubr.msk.f32.gmra.mrb[30].mxu1 %vm22_vm0, %v3239_v27  ;;  %vm4500_vm0 = vcmask 254976  }
 0x454   :  { %v9746_v41 = vpop.f32.mrb[8].mxu1 }
 0x455   :  { %v9748_v42 = vpop.f32.mrb[9].mxu1  ;;  %v3908_v52 = vsel %vm3826_vm2, %v9746_v41, 0.0 }
 0x456   :  { %v3906_v46 = vsel %vm3826_vm2, %v9748_v42, 0.0 }
 0x457   :  { %v3907_v50 = vadd.f32 %v3906_v46, %v3905_v37 }
 0x459   :  { %v3909_v29 = vadd.f32 %v3908_v52, %v3907_v50 }
 0x468   :  { %v9754_v56 = vpop.f32.mrb[10].mxu1 }
 0x469   :  { %v9756_v58 = vpop.f32.mrb[11].mxu1  ;;  %v3912_v63 = vsel %vm3826_vm2, %v9754_v56, 0.0 }
 0x46a   :  { %v3910_v45 = vsel %vm3826_vm2, %v9756_v58, 0.0 }
 0x46b   :  { %v3911_v60 = vadd.f32 %v3910_v45, %v3909_v29 }
 0x46d   :  { %v3913_v7 = vadd.f32 %v3912_v63, %v3911_v60 }
 0x47c   :  { %v9762_v9 = vpop.f32.mrb[12].mxu1 }
 0x47d   :  { %15226 = vst [vmem:[#allocation9_spill] sm:$0xff] %v9762_v9  ;;  %v9764_v15 = vpop.f32.mrb[13].mxu1  ;;  %v3916_v53 = vsel %vm3826_vm2, %v9762_v9, 0.0 }
 0x47e   :  { %v3914_v17 = vsel %vm3826_vm2, %v9764_v15, 0.0 }
 0x47f   :  { %v3915_v19 = vadd.f32 %v3914_v17, %v3913_v7 }
 0x481   :  { %v3917_v22 = vadd.f32 %v3916_v53, %v3915_v19 }
 0x490   :  { %v9770_v37 = vpop.f32.mrb[14].mxu1 }
 0x491   :  { %15227 = vst [vmem:[#allocation10_spill] sm:$0xff] %v9770_v37  ;;  %v9772_v24 = vpop.f32.mrb[15].mxu1  ;;  %v3920_v39 = vsel %vm3826_vm2, %v9770_v37, 0.0 }
 0x492   :  { %15228 = vst [vmem:[#allocation11_spill] sm:$0xff] %v9772_v24  ;;  %v3918_v26 = vsel %vm3826_vm2, %v9772_v24, 0.0 }
 0x493   :  { %v3919_v27 = vadd.f32 %v3918_v26, %v3917_v22 }
 0x495   :  { %v3921_v46 = vadd.f32 %v3920_v39, %v3919_v27 }
 0x4a4   :  { %v9778_v50 = vpop.f32.mrb[16].mxu1 }
 0x4a5   :  { %15229 = vst [vmem:[#allocation12_spill] sm:$0xff] %v9778_v50  ;;  %v9780_v52 = vpop.f32.mrb[17].mxu1  ;;  %v3924_v60 = vsel %vm3826_vm2, %v9778_v50, 0.0 }
 0x4a6   :  { %15230 = vst [vmem:[#allocation13_spill] sm:$0xff] %v9780_v52  ;;  %v3922_v29 = vsel %vm3826_vm2, %v9780_v52, 0.0 }
 0x4a7   :  { %v3923_v45 = vadd.f32 %v3922_v29, %v3921_v46 }
 0x4a9   :  { %v3925_v63 = vadd.f32 %v3924_v60, %v3923_v45 }
 0x4b8   :  { %v9786_v7 = vpop.f32.mrb[18].mxu1 }
 0x4b9   :  { %15231 = vst [vmem:[#allocation14_spill] sm:$0xff] %v9786_v7  ;;  %v9788_v17 = vpop.f32.mrb[19].mxu1  ;;  %v3928_v22 = vsel %vm3826_vm2, %v9786_v7, 0.0 }
 0x4ba   :  { %15232 = vst [vmem:[#allocation15_spill] sm:$0xff] %v9788_v17  ;;  %v3926_v19 = vsel %vm3826_vm2, %v9788_v17, 0.0 }
 0x4bb   :  { %v3927_v53 = vadd.f32 %v3926_v19, %v3925_v63 }
 0x4bd   :  { %v3929_v26 = vadd.f32 %v3928_v22, %v3927_v53 }
 0x4cc   :  { %v9794_v27 = vpop.f32.mrb[20].mxu1 }
 0x4cd   :  { %15233 = vst [vmem:[#allocation16_spill] sm:$0xff] %v9794_v27  ;;  %v9796_v39 = vpop.f32.mrb[21].mxu1  ;;  %v3932_v45 = vsel %vm3826_vm2, %v9794_v27, 0.0 }
 0x4ce   :  { %15234 = vst [vmem:[#allocation17_spill] sm:$0xff] %v9796_v39  ;;  %v3930_v46 = vsel %vm3826_vm2, %v9796_v39, 0.0 }
 0x4cf   :  { %v3931_v29 = vadd.f32 %v3930_v46, %v3929_v26 }
 0x4d1   :  { %v3933_v60 = vadd.f32 %v3932_v45, %v3931_v29 }
 0x4e0   :  { %v9802_v2 = vpop.f32.mrb[22].mxu1 }
 0x4e1   :  { %15235 = vst [vmem:[#allocation18_spill] sm:$0xff] %v9802_v2  ;;  %v9804_v17 = vpop.f32.mrb[23].mxu1  ;;  %v3936_v53 = vsel %vm3826_vm2, %v9802_v2, 0.0 }
 0x4e2   :  { %15236 = vst [vmem:[#allocation19_spill] sm:$0xff] %v9804_v17  ;;  %v3934_v63 = vsel %vm3826_vm2, %v9804_v17, 0.0 }
 0x4e3   :  { %v3935_v19 = vadd.f32 %v3934_v63, %v3933_v60 }
 0x4e5   :  { %v3937_v22 = vadd.f32 %v3936_v53, %v3935_v19 }
 0x4f4   :  { %v9810_v7 = vpop.f32.mrb[24].mxu1 }
 0x4f5   :  { %15237 = vst [vmem:[#allocation20_spill] sm:$0xff] %v9810_v7  ;;  %v9812_v39 = vpop.f32.mrb[25].mxu1  ;;  %v3940_v29 = vsel %vm3826_vm2, %v9810_v7, 0.0 }
 0x4f6   :  { %15238 = vst [vmem:[#allocation21_spill] sm:$0xff] %v9812_v39  ;;  %v3938_v26 = vsel %vm3826_vm2, %v9812_v39, 0.0 }
 0x4f7   :  { %v3939_v46 = vadd.f32 %v3938_v26, %v3937_v22 }
 0x4f9   :  { %v3941_v45 = vadd.f32 %v3940_v29, %v3939_v46 }
 0x50c   :  { %v9818_v27 = vpop.f32.mrb[26].mxu1 }
 0x50d   :  { %15239 = vst [vmem:[#allocation22_spill] sm:$0xff] %v9818_v27  ;;  %v9820_v17 = vpop.f32.mrb[27].mxu1  ;;  %v3944_v19 = vsel %vm3826_vm2, %v9818_v27, 0.0 }
 0x50e   :  { %15240 = vst [vmem:[#allocation23_spill] sm:$0xff] %v9820_v17  ;;  %v3942_v60 = vsel %vm3826_vm2, %v9820_v17, 0.0 }
 0x50f   :  { %v3943_v63 = vadd.f32 %v3942_v60, %v3941_v45 }
 0x511   :  { %v3945_v53 = vadd.f32 %v3944_v19, %v3943_v63 }
 0x51a   :  { %v9826_v2 = vpop.f32.mrb[28].mxu1 }
 0x51b   :  { %15241 = vst [vmem:[#allocation24_spill] sm:$0xff] %v9826_v2  ;;  %v9828_v39 = vpop.f32.mrb[29].mxu1  ;;  %v3948_v46 = vsel %vm3826_vm2, %v9826_v2, 0.0 }
 0x51c   :  { %15242 = vst [vmem:[#allocation25_spill] sm:$0xff] %v9828_v39  ;;  %v3946_v22 = vsel %vm3826_vm2, %v9828_v39, 0.0 }
 0x51d   :  { %v3947_v26 = vadd.f32 %v3946_v22, %v3945_v53 }
 0x51f   :  { %v3949_v29 = vadd.f32 %v3948_v46, %v3947_v26 }
 0x526   :  { %v9834_v7 = vpop.f32.mrb[30].mxu1 }
 0x527   :  { %15243 = vst [vmem:[#allocation26_spill] sm:$0xff] %v9834_v7  ;;  %v9836_v17 = vpop.f32.mrb[31].mxu1  ;;  %v3952_v63 = vsel %vm3826_vm2, %v9834_v7, 0.0 }
 0x528   :  { %15244 = vst [vmem:[#allocation27_spill] sm:$0xff] %v9836_v17  ;;  %v3950_v45 = vsel %vm3826_vm2, %v9836_v17, 0.0 }
 0x529   :  { %v3951_v60 = vadd.f32 %v3950_v45, %v3949_v29 }
 0x52b   :  { %v3953_v19 = vadd.f32 %v3952_v63, %v3951_v60 }
 0x52d   :  { %v3954_v27 = vrot.slane %v3953_v19, 4 }
 0x52f   :  { %v3955_v50 = vadd.f32 %v3954_v27, %v3953_v19 }
 0x531   :  { %v3956_v39 = vrot.slane %v3955_v50, 2 }
 0x533   :  { %v3957_v53 = vadd.f32 %v3956_v39, %v3955_v50 }
 0x535   :  { %v3958_v22 = vrot.slane %v3957_v53, 1 }
 0x537   :  { %v3959_v52 = vadd.f32 %v3958_v22, %v3957_v53 }
 0x539   :  { %v9842_v2 = vmul.f32 0.001953125, %v3959_v52 }
 0x53b   :  { %v3961_v26 = vsub.f32 %v8993_v38, %v9842_v2  ;;  %v3962_v46 = vsub.f32 %v8988_v35, %v9842_v2  ;;  %v3963_v29 = vsub.f32 %v9039_v61, %v9842_v2  ;;  %v3964_v45 = vsub.f32 %v9036_v59, %v9842_v2 }
 0x53c   :  { %v3965_v50 = vsub.f32 %v9087_v20, %v9842_v2  ;;  %v3966_v52 = vsub.f32 %v9084_v18, %v9842_v2  ;;  %v3967_v61 = vsub.f32 %v9135_v48, %v9842_v2  ;;  %v3968_v20 = vsub.f32 %v9132_v44, %v9842_v2 }
 0x53d   :  { %v4025_v60 = vmul.f32 %v3961_v26, %v3961_v26  ;;  %v4026_v27 = vmul.f32 %v3962_v46, %v3962_v46  ;;  %v4027_v39 = vmul.f32 %v3963_v29, %v3963_v29  ;;  %v4028_v63 = vmul.f32 %v3964_v45, %v3964_v45 }
 0x53e   :  { %v4029_v35 = vmul.f32 %v3965_v50, %v3965_v50  ;;  %v4030_v29 = vmul.f32 %v3966_v52, %v3966_v52  ;;  %v3969_v45 = vsub.f32 %v9185_v11, %v9842_v2  ;;  %v3970_v50 = vsub.f32 %v9182_v33, %v9842_v2 }
 0x53f   :  { %v4089_v19 = vsel %vm3826_vm2, %v4025_v60, 0.0  ;;  %v4090_v53 = vsel %vm3826_vm2, %v4026_v27, 0.0  ;;  %v4092_v26 = vsel %vm3826_vm2, %v4027_v39, 0.0  ;;  %v4094_v59 = vsel %vm3826_vm2, %v4028_v63, 0.0 }
 0x540   :  { %v4091_v22 = vadd.f32 %v4090_v53, %v4089_v19  ;;  %v4031_v60 = vmul.f32 %v3967_v61, %v3967_v61  ;;  %v4096_v27 = vsel %vm3826_vm2, %v4029_v35, 0.0  ;;  %v4032_v53 = vmul.f32 %v3968_v20, %v3968_v20 }
 0x541   :  { %v4098_v39 = vsel %vm3826_vm2, %v4030_v29, 0.0  ;;  %v3971_v52 = vsub.f32 %v9233_v57, %v9842_v2  ;;  %v3972_v61 = vsub.f32 %v9230_v25, %v9842_v2  ;;  %v3973_v20 = vsub.f32 %v9281_v6, %v9842_v2 }
 0x542   :  { %v4093_v46 = vadd.f32 %v4092_v26, %v4091_v22  ;;  %v4033_v26 = vmul.f32 %v3969_v45, %v3969_v45  ;;  %v4102_v35 = vsel %vm3826_vm2, %v4032_v53, 0.0  ;;  %v3974_v45 = vsub.f32 %v9278_v4, %v9842_v2 }
 0x544   :  { %v4095_v18 = vadd.f32 %v4094_v59, %v4093_v46  ;;  %v4100_v59 = vsel %vm3826_vm2, %v4031_v60, 0.0  ;;  %v4034_v46 = vmul.f32 %v3970_v50, %v3970_v50  ;;  %v4104_v29 = vsel %vm3826_vm2, %v4033_v26, 0.0 }
 0x545   :  { %v3975_v50 = vsub.f32 %v9329_v32, %v9842_v2 }
 0x546   :  { %v4097_v19 = vadd.f32 %v4096_v27, %v4095_v18  ;;  %v4035_v27 = vmul.f32 %v3971_v52, %v3971_v52  ;;  %v4106_v60 = vsel %vm3826_vm2, %v4034_v46, 0.0  ;;  %v3976_v52 = vsub.f32 %v9326_v30, %v9842_v2 }
 0x548   :  { %v4099_v22 = vadd.f32 %v4098_v39, %v4097_v19  ;;  %v4036_v39 = vmul.f32 %v3972_v61, %v3972_v61  ;;  %v4108_v53 = vsel %vm3826_vm2, %v4035_v27, 0.0  ;;  %v3977_v61 = vsub.f32 %v9377_v3, %v9842_v2 }
 0x54a   :  { %v4101_v63 = vadd.f32 %v4100_v59, %v4099_v22  ;;  %v4037_v59 = vmul.f32 %v3973_v20, %v3973_v20  ;;  %v4110_v26 = vsel %vm3826_vm2, %v4036_v39, 0.0  ;;  %v3978_v20 = vsub.f32 %v9374_v0, %v9842_v2 }
 0x54c   :  { %v4103_v18 = vadd.f32 %v4102_v35, %v4101_v63  ;;  %v4038_v35 = vmul.f32 %v3974_v45, %v3974_v45  ;;  %v4112_v46 = vsel %vm3826_vm2, %v4037_v59, 0.0  ;;  %v3979_v45 = vsub.f32 %v9425_v34, %v9842_v2 }
 0x54e   :  { %v4105_v19 = vadd.f32 %v4104_v29, %v4103_v18  ;;  %v4039_v29 = vmul.f32 %v3975_v50, %v3975_v50  ;;  %v4114_v27 = vsel %vm3826_vm2, %v4038_v35, 0.0  ;;  %v3980_v50 = vsub.f32 %v9422_v28, %v9842_v2 }
 0x550   :  { %v4107_v22 = vadd.f32 %v4106_v60, %v4105_v19  ;;  %v4040_v60 = vmul.f32 %v3976_v52, %v3976_v52  ;;  %v4116_v39 = vsel %vm3826_vm2, %v4039_v29, 0.0  ;;  %v3981_v52 = vsub.f32 %v9473_v49, %v9842_v2 }
 0x552   :  { %v4109_v63 = vadd.f32 %v4108_v53, %v4107_v22  ;;  %v4041_v53 = vmul.f32 %v3977_v61, %v3977_v61  ;;  %v4118_v59 = vsel %vm3826_vm2, %v4040_v60, 0.0  ;;  %v3982_v61 = vsub.f32 %v9470_v5, %v9842_v2 }
 0x554   :  { %v4111_v18 = vadd.f32 %v4110_v26, %v4109_v63  ;;  %v4042_v26 = vmul.f32 %v3978_v20, %v3978_v20  ;;  %v4120_v35 = vsel %vm3826_vm2, %v4041_v53, 0.0  ;;  %v3983_v20 = vsub.f32 %v9524_v43, %v9842_v2 }
 0x556   :  { %v4113_v19 = vadd.f32 %v4112_v46, %v4111_v18  ;;  %v4043_v46 = vmul.f32 %v3979_v45, %v3979_v45  ;;  %v4122_v29 = vsel %vm3826_vm2, %v4042_v26, 0.0  ;;  %v3984_v45 = vsub.f32 %v9518_v40, %v9842_v2 }
 0x558   :  { %v4115_v22 = vadd.f32 %v4114_v27, %v4113_v19  ;;  %v4044_v27 = vmul.f32 %v3980_v50, %v3980_v50  ;;  %v4124_v60 = vsel %vm3826_vm2, %v4043_v46, 0.0  ;;  %v3985_v50 = vsub.f32 %v9572_v16, %v9842_v2 }
 0x55a   :  { %v4117_v63 = vadd.f32 %v4116_v39, %v4115_v22  ;;  %v4045_v39 = vmul.f32 %v3981_v52, %v3981_v52  ;;  %v4126_v53 = vsel %vm3826_vm2, %v4044_v27, 0.0  ;;  %v3986_v52 = vsub.f32 %v9566_v13, %v9842_v2 }
 0x55c   :  { %v4119_v18 = vadd.f32 %v4118_v59, %v4117_v63  ;;  %v4046_v59 = vmul.f32 %v3982_v61, %v3982_v61  ;;  %v4128_v26 = vsel %vm3826_vm2, %v4045_v39, 0.0  ;;  %v3987_v61 = vsub.f32 %v9617_v55, %v9842_v2 }
 0x55e   :  { %v4121_v19 = vadd.f32 %v4120_v35, %v4119_v18  ;;  %v4047_v35 = vmul.f32 %v3983_v20, %v3983_v20  ;;  %v4130_v46 = vsel %vm3826_vm2, %v4046_v59, 0.0  ;;  %v3988_v20 = vsub.f32 %v9614_v54, %v9842_v2 }
 0x560   :  { %v4123_v22 = vadd.f32 %v4122_v29, %v4121_v19  ;;  %v4048_v29 = vmul.f32 %v3984_v45, %v3984_v45  ;;  %v4132_v27 = vsel %vm3826_vm2, %v4047_v35, 0.0  ;;  %v3989_v45 = vsub.f32 %v9635_v14, %v9842_v2 }
 0x562   :  { %v4125_v63 = vadd.f32 %v4124_v60, %v4123_v22  ;;  %v4049_v60 = vmul.f32 %v3985_v50, %v3985_v50  ;;  %v4134_v39 = vsel %vm3826_vm2, %v4048_v29, 0.0  ;;  %v3990_v50 = vsub.f32 %v9632_v12, %v9842_v2 }
 0x564   :  { %v4127_v18 = vadd.f32 %v4126_v53, %v4125_v63  ;;  %v4050_v53 = vmul.f32 %v3986_v52, %v3986_v52  ;;  %v4136_v59 = vsel %vm3826_vm2, %v4049_v60, 0.0  ;;  %v3991_v52 = vsub.f32 %v9650_v36, %v9842_v2 }
 0x566   :  { %v4129_v19 = vadd.f32 %v4128_v26, %v4127_v18  ;;  %v4051_v26 = vmul.f32 %v3987_v61, %v3987_v61  ;;  %v4138_v35 = vsel %vm3826_vm2, %v4050_v53, 0.0  ;;  %v3992_v61 = vsub.f32 %v9648_v31, %v9842_v2 }
 0x568   :  { %v4131_v22 = vadd.f32 %v4130_v46, %v4129_v19  ;;  %v4052_v46 = vmul.f32 %v3988_v20, %v3988_v20  ;;  %v4140_v29 = vsel %vm3826_vm2, %v4051_v26, 0.0  ;;  %v3993_v20 = vsub.f32 %v9671_v10, %v9842_v2 }
 0x56a   :  { %v4133_v63 = vadd.f32 %v4132_v27, %v4131_v22  ;;  %v4053_v27 = vmul.f32 %v3989_v45, %v3989_v45  ;;  %v4142_v60 = vsel %vm3826_vm2, %v4052_v46, 0.0  ;;  %v3994_v45 = vsub.f32 %v9668_v8, %v9842_v2 }
 0x56c   :  { %v4135_v18 = vadd.f32 %v4134_v39, %v4133_v63  ;;  %v4054_v39 = vmul.f32 %v3990_v50, %v3990_v50  ;;  %v4144_v53 = vsel %vm3826_vm2, %v4053_v27, 0.0  ;;  %v3995_v50 = vsub.f32 %v9691_v51, %v9842_v2 }
 0x56e   :  { %v4137_v19 = vadd.f32 %v4136_v59, %v4135_v18  ;;  %v4055_v59 = vmul.f32 %v3991_v52, %v3991_v52  ;;  %v4146_v26 = vsel %vm3826_vm2, %v4054_v39, 0.0  ;;  %v3996_v52 = vsub.f32 %v9688_v47, %v9842_v2 }
 0x570   :  { %v4139_v22 = vadd.f32 %v4138_v35, %v4137_v19  ;;  %v4056_v35 = vmul.f32 %v3992_v61, %v3992_v61  ;;  %v4148_v46 = vsel %vm3826_vm2, %v4055_v59, 0.0  ;;  %v3997_v61 = vsub.f32 %v9711_v23, %v9842_v2 }
 0x572   :  { %v4141_v63 = vadd.f32 %v4140_v29, %v4139_v22  ;;  %v4057_v29 = vmul.f32 %v3993_v20, %v3993_v20  ;;  %v4150_v27 = vsel %vm3826_vm2, %v4056_v35, 0.0  ;;  %v3998_v20 = vsub.f32 %v9708_v21, %v9842_v2 }
 0x574   :  { %v4143_v18 = vadd.f32 %v4142_v60, %v4141_v63  ;;  %v4058_v60 = vmul.f32 %v3994_v45, %v3994_v45  ;;  %v4152_v39 = vsel %vm3826_vm2, %v4057_v29, 0.0  ;;  %v3999_v45 = vsub.f32 %v9731_v1, %v9842_v2 }
 0x576   :  { %v4145_v19 = vadd.f32 %v4144_v53, %v4143_v18  ;;  %v4059_v53 = vmul.f32 %v3995_v50, %v3995_v50  ;;  %v4154_v59 = vsel %vm3826_vm2, %v4058_v60, 0.0  ;;  %v4000_v50 = vsub.f32 %v9728_v62, %v9842_v2 }
 0x578   :  { %v4147_v22 = vadd.f32 %v4146_v26, %v4145_v19  ;;  %v4060_v26 = vmul.f32 %v3996_v52, %v3996_v52  ;;  %v4156_v35 = vsel %vm3826_vm2, %v4059_v53, 0.0  ;;  %v4001_v52 = vsub.f32 %v9748_v42, %v9842_v2 }
 0x57a   :  { %v4149_v63 = vadd.f32 %v4148_v46, %v4147_v22  ;;  %v4061_v46 = vmul.f32 %v3997_v61, %v3997_v61  ;;  %v4158_v29 = vsel %vm3826_vm2, %v4060_v26, 0.0  ;;  %v4002_v61 = vsub.f32 %v9746_v41, %v9842_v2 }
 0x57c   :  { %v4151_v18 = vadd.f32 %v4150_v27, %v4149_v63  ;;  %v4062_v27 = vmul.f32 %v3998_v20, %v3998_v20  ;;  %v4160_v60 = vsel %vm3826_vm2, %v4061_v46, 0.0  ;;  %v4003_v20 = vsub.f32 %v9756_v58, %v9842_v2 }
 0x57e   :  { %v4153_v19 = vadd.f32 %v4152_v39, %v4151_v18  ;;  %v4063_v39 = vmul.f32 %v3999_v45, %v3999_v45  ;;  %v4162_v53 = vsel %vm3826_vm2, %v4062_v27, 0.0  ;;  %v4004_v45 = vsub.f32 %v9754_v56, %v9842_v2 }
 0x57f   :  { %v9980_v27 = vmul.f32 %v4003_v20, %v4003_v20 }
 0x580   :  { %v4155_v22 = vadd.f32 %v4154_v59, %v4153_v19  ;;  %v4064_v59 = vmul.f32 %v4000_v50, %v4000_v50  ;;  %v4164_v26 = vsel %vm3826_vm2, %v4063_v39, 0.0  ;;  %v9978_v50 = vsub.f32 %v9764_v15, %v9842_v2 }
 0x582   :  { %v4157_v63 = vadd.f32 %v4156_v35, %v4155_v22  ;;  %v4065_v35 = vmul.f32 %v4001_v52, %v4001_v52  ;;  %v4166_v46 = vsel %vm3826_vm2, %v4064_v59, 0.0  ;;  %v4069_v20 = vmul.f32 %v9978_v50, %v9978_v50 }
 0x584   :  { %v4159_v18 = vadd.f32 %v4158_v29, %v4157_v63  ;;  %v4066_v29 = vmul.f32 %v4002_v61, %v4002_v61  ;;  %v4168_v52 = vsel %vm3826_vm2, %v4065_v35, 0.0  ;;  %v9987_v61 = vmul.f32 %v4004_v45, %v4004_v45 }
 0x585   :  { %v4172_v35 = vsel %vm3826_vm2, %v9980_v27, 0.0  ;;  %v4176_v50 = vsel %vm3826_vm2, %v4069_v20, 0.0  ;;  %v15247_v27 = vld [vmem:[#allocation12_spill] sm:$0xff] }
 0x586   :  { %v4161_v19 = vadd.f32 %v4160_v60, %v4159_v18  ;;  %v15245_v60 = vmov 0.0   ;;  %v4170_v59 = vsel %vm3826_vm2, %v4066_v29, 0.0  ;;  %v4174_v29 = vsel %vm3826_vm2, %v9987_v61, 0.0 }
 0x587   :  { %4501 = vst.msk [vmem:[#allocation3 + $0x10] sm:$0x3] %vm4500_vm0, %v15245_v60  ;;  %4504 = vst.msk [vmem:[#allocation3 + $0x1c0] sm:$0x3] %vm4500_vm0, %v15245_v60 }
 0x588   :  { %v4163_v22 = vadd.f32 %v4162_v53, %v4161_v19  ;;  %4508 = vst.msk [vmem:[#allocation3 + $0x1a8] sm:$0x3] %vm4500_vm0, %v15245_v60  ;;  %4511 = vst.msk [vmem:[#allocation3 + $0x358] sm:$0x3] %vm4500_vm0, %v15245_v60  ;;  %v9985_v19 = vsub.f32 %v9762_v9, %v9842_v2 }
 0x589   :  { %4514 = vst.msk [vmem:[#allocation3 + $0x18] sm:$0x1] %vm4513_vm3, %v15245_v60  ;;  %4515 = vst.msk [vmem:[#allocation3 + $0x30] sm:$0x1] %vm4513_vm3, %v15245_v60 }
 0x58a   :  { %v4165_v63 = vadd.f32 %v4164_v26, %v4163_v22  ;;  %4516 = vst.msk [vmem:[#allocation3 + $0x48] sm:$0x1] %vm4513_vm3, %v15245_v60  ;;  %4517 = vst.msk [vmem:[#allocation3 + $0x60] sm:$0x1] %vm4513_vm3, %v15245_v60  ;;  %v4007_v22 = vsub.f32 %v9772_v24, %v9842_v2  ;;  %v4070_v45 = vmul.f32 %v9985_v19, %v9985_v19  ;;  %v15248_v19 = vld [vmem:[#allocation15_spill] sm:$0xff] }
 0x58b   :  { %4518 = vst.msk [vmem:[#allocation3 + $0x78] sm:$0x1] %vm4513_vm3, %v15245_v60  ;;  %4519 = vst.msk [vmem:[#allocation3 + $0x90] sm:$0x1] %vm4513_vm3, %v15245_v60  ;;  %v4011_v24 = vsub.f32 %v15248_v19, %v9842_v2 }
 0x58c   :  { %v4167_v18 = vadd.f32 %v4166_v46, %v4165_v63  ;;  %4520 = vst.msk [vmem:[#allocation3 + $0xa8] sm:$0x1] %vm4513_vm3, %v15245_v60  ;;  %4521 = vst.msk [vmem:[#allocation3 + $0xc0] sm:$0x1] %vm4513_vm3, %v15245_v60  ;;  %v4008_v63 = vsub.f32 %v9770_v37, %v9842_v2 }
 0x58d   :  { %4522 = vst.msk [vmem:[#allocation3 + $0xd8] sm:$0x1] %vm4513_vm3, %v15245_v60  ;;  %4523 = vst.msk [vmem:[#allocation3 + $0xf0] sm:$0x1] %vm4513_vm3, %v15245_v60 }
 0x58e   :  { %v4169_v39 = vadd.f32 %v4168_v52, %v4167_v18  ;;  %4524 = vst.msk [vmem:[#allocation3 + $0x108] sm:$0x1] %vm4513_vm3, %v15245_v60  ;;  %4525 = vst.msk [vmem:[#allocation3 + $0x120] sm:$0x1] %vm4513_vm3, %v15245_v60  ;;  %v15246_v18 = vld [vmem:[#allocation13_spill] sm:$0xff]  ;;  %v4071_v52 = vmul.f32 %v4007_v22, %v4007_v22 }
 0x58f   :  { %4526 = vst.msk [vmem:[#allocation3 + $0x138] sm:$0x1] %vm4513_vm3, %v15245_v60  ;;  %4527 = vst.msk [vmem:[#allocation3 + $0x150] sm:$0x1] %vm4513_vm3, %v15245_v60 }
 0x590   :  { %v9990_v53 = vadd.f32 %v4170_v59, %v4169_v39  ;;  %4528 = vst.msk [vmem:[#allocation3 + $0x168] sm:$0x1] %vm4513_vm3, %v15245_v60  ;;  %4529 = vst.msk [vmem:[#allocation3 + $0x180] sm:$0x1] %vm4513_vm3, %v15245_v60  ;;  %v4010_v59 = vsub.f32 %v15247_v27, %v9842_v2  ;;  %v4180_v61 = vsel %vm3826_vm2, %v4071_v52, 0.0  ;;  %v4075_v27 = vmul.f32 %v4011_v24, %v4011_v24 }
 0x591   :  { %4530 = vst.msk [vmem:[#allocation3 + $0x1c8] sm:$0x1] %vm4513_vm3, %v15245_v60  ;;  %4531 = vst.msk [vmem:[#allocation3 + $0x1e0] sm:$0x1] %vm4513_vm3, %v15245_v60 }
 0x592   :  { %4532 = vst.msk [vmem:[#allocation3 + $0x1f8] sm:$0x1] %vm4513_vm3, %v15245_v60  ;;  %4533 = vst.msk [vmem:[#allocation3 + $0x210] sm:$0x1] %vm4513_vm3, %v15245_v60  ;;  %v4173_v26 = vadd.f32 %v4172_v35, %v9990_v53  ;;  %v4072_v53 = vmul.f32 %v4008_v63, %v4008_v63  ;;  %v4178_v35 = vsel %vm3826_vm2, %v4070_v45, 0.0 }
 0x593   :  { %4534 = vst.msk [vmem:[#allocation3 + $0x228] sm:$0x1] %vm4513_vm3, %v15245_v60  ;;  %4535 = vst.msk [vmem:[#allocation3 + $0x240] sm:$0x1] %vm4513_vm3, %v15245_v60 }
 0x594   :  { %4536 = vst.msk [vmem:[#allocation3 + $0x258] sm:$0x1] %vm4513_vm3, %v15245_v60  ;;  %4537 = vst.msk [vmem:[#allocation3 + $0x270] sm:$0x1] %vm4513_vm3, %v15245_v60  ;;  %v4175_v46 = vadd.f32 %v4174_v29, %v4173_v26  ;;  %v15249_v29 = vld [vmem:[#allocation14_spill] sm:$0xff]  ;;  %v4182_v20 = vsel %vm3826_vm2, %v4072_v53, 0.0 }
 0x595   :  { %4538 = vst.msk [vmem:[#allocation3 + $0x288] sm:$0x1] %vm4513_vm3, %v15245_v60  ;;  %4539 = vst.msk [vmem:[#allocation3 + $0x2a0] sm:$0x1] %vm4513_vm3, %v15245_v60  ;;  %v4012_v22 = vsub.f32 %v15249_v29, %v9842_v2  ;;  %v4188_v53 = vsel %vm3826_vm2, %v4075_v27, 0.0 }
 0x596   :  { %4540 = vst.msk [vmem:[#allocation3 + $0x2b8] sm:$0x1] %vm4513_vm3, %v15245_v60  ;;  %4541 = vst.msk [vmem:[#allocation3 + $0x2d0] sm:$0x1] %vm4513_vm3, %v15245_v60  ;;  %v4177_v39 = vadd.f32 %v4176_v50, %v4175_v46  ;;  %v15250_v50 = vld [vmem:[#allocation17_spill] sm:$0xff] }
 0x597   :  { %4542 = vst.msk [vmem:[#allocation3 + $0x2e8] sm:$0x1] %vm4513_vm3, %v15245_v60  ;;  %4543 = vst.msk [vmem:[#allocation3 + $0x300] sm:$0x1] %vm4513_vm3, %v15245_v60  ;;  %v4013_v63 = vsub.f32 %v15250_v50, %v9842_v2  ;;  %v4076_v19 = vmul.f32 %v4012_v22, %v4012_v22 }
 0x598   :  { %4544 = vst.msk [vmem:[#allocation3 + $0x318] sm:$0x1] %vm4513_vm3, %v15245_v60  ;;  %4545 = vst.msk [vmem:[#allocation3 + $0x330] sm:$0x1] %vm4513_vm3, %v15245_v60  ;;  %v4179_v37 = vadd.f32 %v4178_v35, %v4177_v39  ;;  %v15251_v35 = vld [vmem:[#allocation16_spill] sm:$0xff] }
 0x599   :  { %4546 = vst.msk [vmem:[#allocation3 + $0x29] sm:$0x1] %vm4513_vm3, %v15245_v60  ;;  %4547 = vst.msk [vmem:[#allocation3 + $0x41] sm:$0x1] %vm4513_vm3, %v15245_v60  ;;  %v4077_v29 = vmul.f32 %v4013_v63, %v4013_v63 }
 0x59a   :  { %4548 = vst.msk [vmem:[#allocation3 + $0x59] sm:$0x1] %vm4513_vm3, %v15245_v60  ;;  %4549 = vst.msk [vmem:[#allocation3 + $0x71] sm:$0x1] %vm4513_vm3, %v15245_v60  ;;  %v4181_v26 = vadd.f32 %v4180_v61, %v4179_v37  ;;  %v15252_v61 = vld [vmem:[#allocation19_spill] sm:$0xff] }
 0x59b   :  { %4550 = vst.msk [vmem:[#allocation3 + $0x89] sm:$0x1] %vm4513_vm3, %v15245_v60  ;;  %4551 = vst.msk [vmem:[#allocation3 + $0xa1] sm:$0x1] %vm4513_vm3, %v15245_v60 }
 0x59c   :  { %4552 = vst.msk [vmem:[#allocation3 + $0xb9] sm:$0x1] %vm4513_vm3, %v15245_v60  ;;  %4553 = vst.msk [vmem:[#allocation3 + $0xd1] sm:$0x1] %vm4513_vm3, %v15245_v60  ;;  %v4183_v46 = vadd.f32 %v4182_v20, %v4181_v26  ;;  %v15253_v20 = vld [vmem:[#allocation18_spill] sm:$0xff] }
 0x59d   :  { %4554 = vst.msk [vmem:[#allocation3 + $0xe9] sm:$0x1] %vm4513_vm3, %v15245_v60  ;;  %4555 = vst.msk [vmem:[#allocation3 + $0x101] sm:$0x1] %vm4513_vm3, %v15245_v60  ;;  %v4016_v24 = vsub.f32 %v15253_v20, %v9842_v2 }
 0x59e   :  { %4556 = vst.msk [vmem:[#allocation3 + $0x119] sm:$0x1] %vm4513_vm3, %v15245_v60  ;;  %4557 = vst.msk [vmem:[#allocation3 + $0x131] sm:$0x1] %vm4513_vm3, %v15245_v60 }
 0x59f   :  { %4558 = vst.msk [vmem:[#allocation3 + $0x149] sm:$0x1] %vm4513_vm3, %v15245_v60  ;;  %4559 = vst.msk [vmem:[#allocation3 + $0x161] sm:$0x1] %vm4513_vm3, %v15245_v60 }
 0x5a0   :  { %4560 = vst.msk [vmem:[#allocation3 + $0x179] sm:$0x1] %vm4513_vm3, %v15245_v60  ;;  %4561 = vst.msk [vmem:[#allocation3 + $0x191] sm:$0x1] %vm4513_vm3, %v15245_v60 }
 0x5a1   :  { %4562 = vst.msk [vmem:[#allocation3 + $0x1d9] sm:$0x1] %vm4513_vm3, %v15245_v60  ;;  %4563 = vst.msk [vmem:[#allocation3 + $0x1f1] sm:$0x1] %vm4513_vm3, %v15245_v60 }
 0x5a2   :  { %4564 = vst.msk [vmem:[#allocation3 + $0x209] sm:$0x1] %vm4513_vm3, %v15245_v60  ;;  %4565 = vst.msk [vmem:[#allocation3 + $0x221] sm:$0x1] %vm4513_vm3, %v15245_v60 }
 0x5a3   :  { %4566 = vst.msk [vmem:[#allocation3 + $0x239] sm:$0x1] %vm4513_vm3, %v15245_v60  ;;  %4567 = vst.msk [vmem:[#allocation3 + $0x251] sm:$0x1] %vm4513_vm3, %v15245_v60 }
 0x5a4   :  { %4568 = vst.msk [vmem:[#allocation3 + $0x269] sm:$0x1] %vm4513_vm3, %v15245_v60  ;;  %4569 = vst.msk [vmem:[#allocation3 + $0x281] sm:$0x1] %vm4513_vm3, %v15245_v60 }
 0x5a5   :  { %4570 = vst.msk [vmem:[#allocation3 + $0x299] sm:$0x1] %vm4513_vm3, %v15245_v60  ;;  %4571 = vst.msk [vmem:[#allocation3 + $0x2b1] sm:$0x1] %vm4513_vm3, %v15245_v60 }
 0x5a6   :  { %4572 = vst.msk [vmem:[#allocation3 + $0x2c9] sm:$0x1] %vm4513_vm3, %v15245_v60  ;;  %4573 = vst.msk [vmem:[#allocation3 + $0x2e1] sm:$0x1] %vm4513_vm3, %v15245_v60 }
 0x5a7   :  { %4574 = vst.msk [vmem:[#allocation3 + $0x2f9] sm:$0x1] %vm4513_vm3, %v15245_v60  ;;  %4575 = vst.msk [vmem:[#allocation3 + $0x311] sm:$0x1] %vm4513_vm3, %v15245_v60 }
 0x5a8   :  { %4576 = vst.msk [vmem:[#allocation3 + $0x329] sm:$0x1] %vm4513_vm3, %v15245_v60  ;;  %4577 = vst.msk [vmem:[#allocation3 + $0x341] sm:$0x1] %vm4513_vm3, %v15245_v60  ;;  %v4009_v60 = vsub.f32 %v15246_v18, %v9842_v2  ;;  %v4074_v18 = vmul.f32 %v4010_v59, %v4010_v59  ;;  %v4015_v59 = vsub.f32 %v15252_v61, %v9842_v2 }
 0x5a9   :  { %v4080_v61 = vmul.f32 %v4016_v24, %v4016_v24 }
 0x5aa   :  { %v4073_v9 = vmul.f32 %v4009_v60, %v4009_v60  ;;  %v4014_v60 = vsub.f32 %v15251_v35, %v9842_v2  ;;  %v4186_v37 = vsel %vm3826_vm2, %v4074_v18, 0.0  ;;  %v4079_v35 = vmul.f32 %v4015_v59, %v4015_v59 }
 0x5ab   :  { %v4192_v18 = vsel %vm3826_vm2, %v4077_v29, 0.0  ;;  %v4198_v29 = vsel %vm3826_vm2, %v4080_v61, 0.0 }
 0x5ac   :  { %v4184_v45 = vsel %vm3826_vm2, %v4073_v9, 0.0  ;;  %v4078_v50 = vmul.f32 %v4014_v60, %v4014_v60  ;;  %v4190_v9 = vsel %vm3826_vm2, %v4076_v19, 0.0  ;;  %v4196_v19 = vsel %vm3826_vm2, %v4079_v35, 0.0 }
 0x5ad   :  { %v4185_v39 = vadd.f32 %v4184_v45, %v4183_v46  ;;  %v15254_v45 = vld [vmem:[#allocation21_spill] sm:$0xff] }
 0x5ae   :  { %v4017_v22 = vsub.f32 %v15254_v45, %v9842_v2  ;;  %v4194_v27 = vsel %vm3826_vm2, %v4078_v50, 0.0 }
 0x5af   :  { %v4187_v52 = vadd.f32 %v4186_v37, %v4185_v39  ;;  %v15255_v37 = vld [vmem:[#allocation20_spill] sm:$0xff] }
 0x5b0   :  { %v4018_v63 = vsub.f32 %v15255_v37, %v9842_v2  ;;  %v4081_v20 = vmul.f32 %v4017_v22, %v4017_v22 }
 0x5b1   :  { %v4189_v26 = vadd.f32 %v4188_v53, %v4187_v52  ;;  %v15256_v53 = vld [vmem:[#allocation23_spill] sm:$0xff] }
 0x5b2   :  { %v4019_v60 = vsub.f32 %v15256_v53, %v9842_v2  ;;  %v4082_v45 = vmul.f32 %v4018_v63, %v4018_v63  ;;  %v4200_v50 = vsel %vm3826_vm2, %v4081_v20, 0.0  ;;  %v4023_v63 = vsub.f32 %v9836_v17, %v9842_v2 }
 0x5b3   :  { %v4191_v46 = vadd.f32 %v4190_v9, %v4189_v26  ;;  %v15257_v9 = vld [vmem:[#allocation22_spill] sm:$0xff] }
 0x5b4   :  { %v4020_v59 = vsub.f32 %v15257_v9, %v9842_v2  ;;  %v4083_v37 = vmul.f32 %v4019_v60, %v4019_v60  ;;  %v4202_v35 = vsel %vm3826_vm2, %v4082_v45, 0.0  ;;  %v4024_v60 = vsub.f32 %v9834_v7, %v9842_v2 }
 0x5b5   :  { %v4193_v39 = vadd.f32 %v4192_v18, %v4191_v46  ;;  %v15258_v18 = vld [vmem:[#allocation25_spill] sm:$0xff] }
 0x5b6   :  { %v4021_v24 = vsub.f32 %v15258_v18, %v9842_v2  ;;  %v4084_v53 = vmul.f32 %v4020_v59, %v4020_v59  ;;  %v4204_v61 = vsel %vm3826_vm2, %v4083_v37, 0.0  ;;  %v4088_v45 = vmul.f32 %v4024_v60, %v4024_v60 }
 0x5b7   :  { %v4195_v52 = vadd.f32 %v4194_v27, %v4193_v39  ;;  %v15259_v27 = vld [vmem:[#allocation24_spill] sm:$0xff] }
 0x5b8   :  { %v4022_v22 = vsub.f32 %v15259_v27, %v9842_v2  ;;  %v4206_v20 = vsel %vm3826_vm2, %v4084_v53, 0.0  ;;  %v4214_v37 = vsel %vm3826_vm2, %v4088_v45, 0.0 }
 0x5b9   :  { %v4197_v26 = vadd.f32 %v4196_v19, %v4195_v52  ;;  %v4085_v19 = vmul.f32 %v4021_v24, %v4021_v24 }
 0x5bb   :  { %v4199_v46 = vadd.f32 %v4198_v29, %v4197_v26  ;;  %v4086_v29 = vmul.f32 %v4022_v22, %v4022_v22  ;;  %v4208_v59 = vsel %vm3826_vm2, %v4085_v19, 0.0  ;;  %v4231_v19 = vlaneseq }
 0x5bd   :  { %v4201_v39 = vadd.f32 %v4200_v50, %v4199_v46  ;;  %v4087_v50 = vmul.f32 %v4023_v63, %v4023_v63  ;;  %v10185_v60 = vshrl.u32 %v4231_v19, 7 }
 0x5bf   :  { %v4203_v52 = vadd.f32 %v4202_v35, %v4201_v39  ;;  %v4210_v39 = vsel %vm3826_vm2, %v4086_v29, 0.0  ;;  %v4212_v24 = vsel %vm3826_vm2, %v4087_v50, 0.0  ;;  %v4642_v29 = vld [vmem:[#allocation3] sm:$0xff]  ;;  %v4776_v50 = vld [vmem:[#allocation3 + $0x9] sm:$0xff] }
 0x5c1   :  { %v4205_v26 = vadd.f32 %v4204_v61, %v4203_v52 }
 0x5c3   :  { %v4207_v46 = vadd.f32 %v4206_v20, %v4205_v26 }
 0x5c5   :  { %v4209_v27 = vadd.f32 %v4208_v59, %v4207_v46  ;;  %v10190_v46 = vld [vmem:[%s15171_s4] ss:$0 sm:$0xff]  ;;  %v15216_v59 = vsub.s32 0, %v10185_v60 }
 0x5c6   :  { %15260 = vst [vmem:[#allocation22_spill] sm:$0xff] %v10190_v46 }
 0x5c7   :  { %v4211_v35 = vadd.f32 %v4210_v39, %v4209_v27  ;;  %v4643_v27 = vld [vmem:[#allocation3 + $0x8] sm:$0xff]  ;;  %v4674_v39 = vld [vmem:[#allocation3 + $0x1b0] sm:$0xff] }
 0x5c9   :  { %v4213_v17 = vadd.f32 %v4212_v24, %v4211_v35  ;;  %v4675_v35 = vld [vmem:[#allocation3 + $0x1b8] sm:$0xff]  ;;  %v4711_v24 = vmul.f32 %v10190_v46, %v4642_v29  ;;  %v10218_v29 = vmul.f32 %v10190_v46, %v4674_v39 }
 0x5cb   :  { %v4215_v52 = vadd.f32 %v4214_v37, %v4213_v17  ;;  %v4775_v17 = vld [vmem:[#allocation3 + $0x1] sm:$0xff]  ;;  %v4712_v37 = vmul.f32 %v10190_v46, %v4643_v27  ;;  %v10221_v27 = vmul.f32 %v10190_v46, %v4675_v35 }
 0x5cc   :  { %v15264_v35 = vld [vmem:[#allocation4_spill] sm:$0xff]  ;;  %v15280_v46 = vld [vmem:[#allocation13_spill] sm:$0xff] }
 0x5cd   :  { %v4216_v61 = vrot.slane %v4215_v52, 4 }
 0x5cf   :  { %v4217_v7 = vadd.f32 %v4216_v61, %v4215_v52 }
 0x5d1   :  { %v4218_v22 = vrot.slane %v4217_v7, 2 }
 0x5d3   :  { %v4219_v18 = vadd.f32 %v4218_v22, %v4217_v7  ;;  %v10195_v7 = vld [vmem:[%s15171_s4 + $0x1] ss:$0 sm:$0xff] }
 0x5d4   :  { %15261 = vst [vmem:[#allocation28_spill] sm:$0xff] %v10195_v7  ;;  %v4844_v52 = vmul.f32 %v10195_v7, %v4775_v17  ;;  %v4845_v61 = vmul.f32 %v10195_v7, %v4776_v50 }
 0x5d5   :  { %v4220_v53 = vrot.slane %v4219_v18, 1 }
 0x5d7   :  { %v4221_v26 = vadd.f32 %v4220_v53, %v4219_v18  ;;  %v4223_v18 = vld [vmem:[%s15172_s2] sm:$0x1]  ;;  %v4807_v53 = vld [vmem:[#allocation3 + $0x1b1] sm:$0xff] }
 0x5d8   :  { %v10224_v17 = vmul.f32 %v10195_v7, %v4807_v53  ;;  %v15265_v53 = vld [vmem:[#allocation6_spill] sm:$0xff] }
 0x5d9   :  { %v4222_v63 = vmul.f32 0.001953125, %v4221_v26  ;;  %v4808_v26 = vld [vmem:[#allocation3 + $0x1b9] sm:$0xff] }
 0x5da   :  { %v10227_v50 = vmul.f32 %v10195_v7, %v4808_v26  ;;  %v15268_v26 = vld [vmem:[#allocation7_spill] sm:$0xff] }
 0x5db   :  { %v4224_v20 = vadd.f32 1e-05, %v4222_v63  ;;  %v10208_v63 = vld [vmem:[%s15173_s3] sm:$0x1]  ;;  %v15276_v7 = vld [vmem:[#allocation11_spill] sm:$0xff] }
 0x5dd   :  { %6940 = vrsqrt.f32 %v4224_v20 }
 0x5e7   :  { %v6941_v45 = vpop.eup %6940 }
 0x5e8   :  { %v4226_v22 = vmul.f32 %v6941_v45, %v4223_v18  ;;  %v10229_v18 = vadd.f32 %v4844_v52, %v4711_v24  ;;  %v15266_v24 = vld [vmem:[#allocation5_spill] sm:$0xff] }
 0x5e9   :  { %v15274_v45 = vld [vmem:[#allocation9_spill] sm:$0xff] }
 0x5ea   :  { %v10211_v20 = vmul.f32 %v4226_v22, %v9842_v2  ;;  %v10215_v19 = vrot.slane %v4226_v22, %v15216_v59  ;;  %15262 = vst [vmem:[#allocation29_spill] sm:$0xff] %v10229_v18  ;;  %v10231_v2 = vadd.f32 %v4845_v61, %v4712_v37  ;;  %v15267_v37 = vld [vmem:[#allocation8_spill] sm:$0xff] }
 0x5eb   :  { %v15282_v18 = vld [vmem:[#allocation12_spill] sm:$0xff] }
 0x5ec   :  { %15263 = vst [vmem:[#allocation30_spill] sm:$0xff] %v10231_v2  ;;  %v10237_v39 = vmul.f32 %v10215_v19, %v8993_v38  ;;  %v10241_v22 = vmul.f32 %v15264_v35, %v10215_v19  ;;  %v10245_v59 = vmul.f32 %v10215_v19, %v15265_v53  ;;  %v10249_v52 = vmul.f32 %v15266_v24, %v10215_v19  ;;  %v15278_v2 = vld [vmem:[#allocation10_spill] sm:$0xff] }
 0x5ed   :  { %v10253_v61 = vmul.f32 %v10215_v19, %v15267_v37  ;;  %v10257_v38 = vmul.f32 %v15268_v26, %v10215_v19  ;;  %v10261_v35 = vmul.f32 %v10215_v19, %v9135_v48  ;;  %v10265_v53 = vmul.f32 %v9132_v44, %v10215_v19 }
 0x5ee   :  { %v10269_v24 = vmul.f32 %v10215_v19, %v9185_v11  ;;  %v10273_v37 = vmul.f32 %v9182_v33, %v10215_v19  ;;  %v10277_v26 = vmul.f32 %v10215_v19, %v9233_v57  ;;  %v10281_v48 = vmul.f32 %v9230_v25, %v10215_v19 }
 0x5ef   :  { %v10285_v44 = vmul.f32 %v10215_v19, %v9281_v6  ;;  %v10289_v11 = vmul.f32 %v9278_v4, %v10215_v19  ;;  %v10293_v33 = vmul.f32 %v10215_v19, %v9329_v32  ;;  %v10297_v57 = vmul.f32 %v9326_v30, %v10215_v19 }
 0x5f0   :  { %v10301_v25 = vmul.f32 %v10215_v19, %v9377_v3  ;;  %v10305_v6 = vmul.f32 %v9374_v0, %v10215_v19  ;;  %v10309_v4 = vmul.f32 %v10215_v19, %v9425_v34  ;;  %v10313_v32 = vmul.f32 %v9422_v28, %v10215_v19 }
 0x5f1   :  { %v10317_v30 = vmul.f32 %v10215_v19, %v9473_v49  ;;  %v10321_v3 = vmul.f32 %v9470_v5, %v10215_v19  ;;  %v10325_v0 = vmul.f32 %v10215_v19, %v9524_v43  ;;  %v10329_v34 = vmul.f32 %v9518_v40, %v10215_v19 }
 0x5f2   :  { %v10333_v28 = vmul.f32 %v10215_v19, %v9572_v16  ;;  %v10337_v49 = vmul.f32 %v9566_v13, %v10215_v19  ;;  %v10341_v5 = vmul.f32 %v10215_v19, %v9617_v55  ;;  %v10345_v43 = vmul.f32 %v9614_v54, %v10215_v19 }
 0x5f3   :  { %v10349_v40 = vmul.f32 %v10215_v19, %v9635_v14  ;;  %v10353_v16 = vmul.f32 %v9632_v12, %v10215_v19  ;;  %v10357_v13 = vmul.f32 %v10215_v19, %v9650_v36  ;;  %v10361_v55 = vmul.f32 %v9648_v31, %v10215_v19 }
 0x5f4   :  { %v10365_v54 = vmul.f32 %v10215_v19, %v9671_v10  ;;  %v10369_v14 = vmul.f32 %v9668_v8, %v10215_v19  ;;  %v10373_v12 = vmul.f32 %v10215_v19, %v9691_v51  ;;  %v10377_v36 = vmul.f32 %v9688_v47, %v10215_v19 }
 0x5f5   :  { %v10381_v31 = vmul.f32 %v10215_v19, %v9711_v23  ;;  %v10385_v10 = vmul.f32 %v9708_v21, %v10215_v19  ;;  %v10389_v8 = vmul.f32 %v10215_v19, %v9731_v1  ;;  %v10393_v51 = vmul.f32 %v9728_v62, %v10215_v19 }
 0x5f6   :  { %v10397_v47 = vmul.f32 %v10215_v19, %v9748_v42  ;;  %v10401_v23 = vmul.f32 %v9746_v41, %v10215_v19  ;;  %v10405_v21 = vmul.f32 %v10215_v19, %v9756_v58  ;;  %v10409_v1 = vmul.f32 %v9754_v56, %v10215_v19 }
 0x5f7   :  { %v10413_v62 = vmul.f32 %v10215_v19, %v9764_v15  ;;  %v10417_v42 = vmul.f32 %v15274_v45, %v10215_v19  ;;  %v10421_v41 = vmul.f32 %v10215_v19, %v15276_v7  ;;  %v10425_v58 = vmul.f32 %v15278_v2, %v10215_v19 }
 0x5f8   :  { %15269 = vst [vmem:[#allocation4_spill] sm:$0xff] %v10397_v47  ;;  %15270 = vst [vmem:[#allocation6_spill] sm:$0xff] %v10401_v23  ;;  %v10429_v56 = vmul.f32 %v10215_v19, %v15280_v46  ;;  %v10433_v15 = vmul.f32 %v15282_v18, %v10215_v19  ;;  %v15308_v47 = vsub.s32 0, %v10185_v60 }
 0x5f9   :  { %15271 = vst [vmem:[#allocation5_spill] sm:$0xff] %v10405_v21  ;;  %15272 = vst [vmem:[#allocation8_spill] sm:$0xff] %v10409_v1  ;;  %v4973_v1 = vld [vmem:[#allocation3 + $0xa] sm:$0xff]  ;;  %v6735_v21 = vld [vmem:[%s15171_s4 + $0x2] ss:$0 sm:$0xff] }
 0x5fa   :  { %15273 = vst [vmem:[#allocation7_spill] sm:$0xff] %v10413_v62  ;;  %15275 = vst [vmem:[#allocation9_spill] sm:$0xff] %v10417_v42  ;;  %v15284_v62 = vld [vmem:[#allocation15_spill] sm:$0xff]  ;;  %v15286_v42 = vld [vmem:[#allocation14_spill] sm:$0xff] }
 0x5fb   :  { %15277 = vst [vmem:[#allocation11_spill] sm:$0xff] %v10421_v41  ;;  %15279 = vst [vmem:[#allocation10_spill] sm:$0xff] %v10425_v58  ;;  %v10437_v45 = vmul.f32 %v10215_v19, %v15284_v62  ;;  %v10441_v7 = vmul.f32 %v15286_v42, %v10215_v19  ;;  %v15288_v41 = vld [vmem:[#allocation17_spill] sm:$0xff]  ;;  %v15290_v58 = vld [vmem:[#allocation16_spill] sm:$0xff] }
 0x5fc   :  { %15281 = vst [vmem:[#allocation13_spill] sm:$0xff] %v10429_v56  ;;  %15283 = vst [vmem:[#allocation12_spill] sm:$0xff] %v10433_v15  ;;  %v10445_v2 = vmul.f32 %v10215_v19, %v15288_v41  ;;  %v10449_v46 = vmul.f32 %v15290_v58, %v10215_v19  ;;  %v15292_v56 = vld [vmem:[#allocation19_spill] sm:$0xff]  ;;  %v4972_v15 = vld [vmem:[#allocation3 + $0x2] sm:$0xff] }
 0x5fd   :  { %15285 = vst [vmem:[#allocation15_spill] sm:$0xff] %v10437_v45  ;;  %15287 = vst [vmem:[#allocation14_spill] sm:$0xff] %v10441_v7  ;;  %v10453_v18 = vmul.f32 %v10215_v19, %v15292_v56  ;;  %v15294_v62 = vld [vmem:[#allocation18_spill] sm:$0xff]  ;;  %v15296_v42 = vld [vmem:[#allocation21_spill] sm:$0xff] }
 0x5fe   :  { %15289 = vst [vmem:[#allocation17_spill] sm:$0xff] %v10445_v2  ;;  %15291 = vst [vmem:[#allocation16_spill] sm:$0xff] %v10449_v46  ;;  %v10457_v45 = vmul.f32 %v15294_v62, %v10215_v19  ;;  %v10461_v7 = vmul.f32 %v10215_v19, %v15296_v42  ;;  %v15298_v41 = vld [vmem:[#allocation20_spill] sm:$0xff]  ;;  %v15300_v58 = vld [vmem:[#allocation23_spill] sm:$0xff]  ;;  %v10476_v62 = vmul.f32 %v15257_v9, %v10215_v19 }
 0x5ff   :  { %15293 = vst [vmem:[#allocation19_spill] sm:$0xff] %v10453_v18  ;;  %v10465_v2 = vmul.f32 %v15298_v41, %v10215_v19  ;;  %v10469_v46 = vmul.f32 %v10215_v19, %v15300_v58  ;;  %v5004_v56 = vld [vmem:[#allocation3 + $0x1b2] sm:$0xff]  ;;  %v5005_v18 = vld [vmem:[#allocation3 + $0x1ba] sm:$0xff]  ;;  %v15303_v42 = vld [vmem:[#allocation25_spill] sm:$0xff]  ;;  %v15309_v9 = vsub.f32 %v10208_v63, %v10211_v20 }
 0x600   :  { %15295 = vst [vmem:[#allocation18_spill] sm:$0xff] %v10457_v45  ;;  %15297 = vst [vmem:[#allocation21_spill] sm:$0xff] %v10461_v7  ;;  %v10480_v7 = vmul.f32 %v10215_v19, %v15303_v42  ;;  %v15304_v41 = vld [vmem:[#allocation24_spill] sm:$0xff]  ;;  %v15305_v58 = vld [vmem:[#allocation27_spill] sm:$0xff]  ;;  %v10503_v42 = vadd.f32 %v10224_v17, %v10218_v29  ;;  %v10515_v60 = vmul.f32 %v6735_v21, %v5005_v18 }
 0x601   :  { %15299 = vst [vmem:[#allocation20_spill] sm:$0xff] %v10465_v2  ;;  %15301 = vst [vmem:[#allocation23_spill] sm:$0xff] %v10469_v46  ;;  %v10484_v2 = vmul.f32 %v15304_v41, %v10215_v19  ;;  %v10488_v46 = vmul.f32 %v10215_v19, %v15305_v58  ;;  %v15307_v45 = vld [vmem:[#allocation26_spill] sm:$0xff]  ;;  %v10507_v41 = vadd.f32 %v10227_v50, %v10221_v27 }
 0x602   :  { %15302 = vst [vmem:[#allocation31_spill] sm:$0xff] %v10476_v62  ;;  %v10492_v23 = vmul.f32 %v15307_v45, %v10215_v19  ;;  %v10499_v62 = vrot.slane %v15309_v9, %v15308_v47  ;;  %15310 = vst [vmem:[#allocation24_spill] sm:$0xff] %v10503_v42  ;;  %v10509_v58 = vmul.f32 %v6735_v21, %v4972_v15  ;;  %v15317_v47 = vld [vmem:[#allocation6_spill] sm:$0xff]  ;;  %v15320_v15 = vld [vmem:[#allocation7_spill] sm:$0xff] }
 0x603   :  { %15306 = vst [vmem:[#allocation25_spill] sm:$0xff] %v10488_v46  ;;  %15311 = vst [vmem:[#allocation27_spill] sm:$0xff] %v10507_v41  ;;  %v10511_v46 = vmul.f32 %v6735_v21, %v4973_v1  ;;  %v10513_v19 = vmul.f32 %v6735_v21, %v5004_v56  ;;  %v15318_v21 = vld [vmem:[#allocation5_spill] sm:$0xff]  ;;  %v15319_v1 = vld [vmem:[#allocation8_spill] sm:$0xff] }
 0x604   :  { %15312 = vst [vmem:[#allocation26_spill] sm:$0xff] %v10509_v58  ;;  %15315 = vst [vmem:[#allocation34_spill] sm:$0xff] %v10515_v60  ;;  %v10519_v63 = vadd.f32 %v10499_v62, %v10237_v39  ;;  %v10523_v20 = vadd.f32 %v10499_v62, %v10241_v22  ;;  %v10527_v29 = vadd.f32 %v10499_v62, %v10245_v59  ;;  %v15321_v45 = vld [vmem:[#allocation9_spill] sm:$0xff]  ;;  %v15322_v56 = vld [vmem:[#allocation11_spill] sm:$0xff] }
 0x605   :  { %15313 = vst [vmem:[#allocation32_spill] sm:$0xff] %v10511_v46  ;;  %15314 = vst [vmem:[#allocation33_spill] sm:$0xff] %v10513_v19  ;;  %v10531_v27 = vadd.f32 %v10499_v62, %v10249_v52  ;;  %v10535_v17 = vadd.f32 %v10499_v62, %v10253_v61  ;;  %v10539_v50 = vadd.f32 %v10499_v62, %v10257_v38  ;;  %v15325_v60 = vld [vmem:[#allocation12_spill] sm:$0xff]  ;;  %v15327_v41 = vld [vmem:[#allocation15_spill] sm:$0xff] }
 0x606   :  { %v10543_v39 = vadd.f32 %v10499_v62, %v10261_v35  ;;  %v10547_v59 = vadd.f32 %v10499_v62, %v10265_v53  ;;  %v10551_v22 = vadd.f32 %v10499_v62, %v10269_v24  ;;  %v10555_v52 = vadd.f32 %v10499_v62, %v10273_v37  ;;  %v15329_v19 = vld [vmem:[#allocation14_spill] sm:$0xff]  ;;  %v15331_v42 = vld [vmem:[#allocation17_spill] sm:$0xff]  ;;  %v15333_v46 = vld [vmem:[#allocation16_spill] sm:$0xff] }
 0x607   :  { %v10559_v61 = vadd.f32 %v10499_v62, %v10277_v26  ;;  %v10563_v38 = vadd.f32 %v10499_v62, %v10281_v48  ;;  %v10567_v35 = vadd.f32 %v10499_v62, %v10285_v44  ;;  %v10571_v53 = vadd.f32 %v10499_v62, %v10289_v11  ;;  %v15335_v58 = vld [vmem:[#allocation19_spill] sm:$0xff] }
 0x608   :  { %v10575_v24 = vadd.f32 %v10499_v62, %v10293_v33  ;;  %v10579_v37 = vadd.f32 %v10499_v62, %v10297_v57  ;;  %v10583_v26 = vadd.f32 %v10499_v62, %v10301_v25  ;;  %v10587_v48 = vadd.f32 %v10499_v62, %v10305_v6 }
 0x609   :  { %v10591_v44 = vadd.f32 %v10499_v62, %v10309_v4  ;;  %v10595_v11 = vadd.f32 %v10499_v62, %v10313_v32  ;;  %v10599_v33 = vadd.f32 %v10499_v62, %v10317_v30  ;;  %v10603_v57 = vadd.f32 %v10499_v62, %v10321_v3 }
 0x60a   :  { %v10607_v25 = vadd.f32 %v10499_v62, %v10325_v0  ;;  %v10611_v6 = vadd.f32 %v10499_v62, %v10329_v34  ;;  %v10615_v4 = vadd.f32 %v10499_v62, %v10333_v28  ;;  %v10619_v32 = vadd.f32 %v10499_v62, %v10337_v49 }
 0x60b   :  { %v10623_v30 = vadd.f32 %v10499_v62, %v10341_v5  ;;  %v10627_v3 = vadd.f32 %v10499_v62, %v10345_v43  ;;  %v10631_v0 = vadd.f32 %v10499_v62, %v10349_v40  ;;  %v10635_v34 = vadd.f32 %v10499_v62, %v10353_v16 }
 0x60c   :  { %v10639_v28 = vadd.f32 %v10499_v62, %v10357_v13  ;;  %v10643_v49 = vadd.f32 %v10499_v62, %v10361_v55  ;;  %v10647_v5 = vadd.f32 %v10499_v62, %v10365_v54  ;;  %v10651_v43 = vadd.f32 %v10499_v62, %v10369_v14 }
 0x60d   :  { %v10655_v40 = vadd.f32 %v10499_v62, %v10373_v12  ;;  %v10659_v16 = vadd.f32 %v10499_v62, %v10377_v36  ;;  %v10663_v13 = vadd.f32 %v10499_v62, %v10381_v31  ;;  %v10667_v55 = vadd.f32 %v10499_v62, %v10385_v10  ;;  %v15316_v12 = vld [vmem:[#allocation4_spill] sm:$0xff] }
 0x60e   :  { %v10671_v54 = vadd.f32 %v10499_v62, %v10389_v8  ;;  %v10675_v14 = vadd.f32 %v10499_v62, %v10393_v51  ;;  %v10679_v36 = vadd.f32 %v10499_v62, %v15316_v12  ;;  %v10683_v31 = vadd.f32 %v10499_v62, %v15317_v47  ;;  %v15323_v12 = vld [vmem:[#allocation10_spill] sm:$0xff] }
 0x60f   :  { %v10687_v10 = vadd.f32 %v10499_v62, %v15318_v21  ;;  %v10691_v8 = vadd.f32 %v10499_v62, %v15319_v1  ;;  %v10695_v51 = vadd.f32 %v10499_v62, %v15320_v15  ;;  %v10699_v18 = vadd.f32 %v10499_v62, %v15321_v45  ;;  %v15324_v21 = vld [vmem:[#allocation13_spill] sm:$0xff] }
 0x610   :  { %v10703_v9 = vadd.f32 %v10499_v62, %v15322_v56  ;;  %v10707_v47 = vadd.f32 %v10499_v62, %v15323_v12  ;;  %v10711_v1 = vadd.f32 %v10499_v62, %v15324_v21  ;;  %v10715_v15 = vadd.f32 %v10499_v62, %v15325_v60 }
 0x611   :  { %v10719_v45 = vadd.f32 %v10499_v62, %v15327_v41  ;;  %v10723_v56 = vadd.f32 %v10499_v62, %v15329_v19  ;;  %v10727_v12 = vadd.f32 %v10499_v62, %v15331_v42  ;;  %v10731_v21 = vadd.f32 %v10499_v62, %v15333_v46 }
 0x612   :  { %15326 = vst [vmem:[#allocation4_spill] sm:$0xff] %v10715_v15  ;;  %v10735_v60 = vadd.f32 %v10499_v62, %v15335_v58  ;;  %v15336_v15 = vld [vmem:[#allocation18_spill] sm:$0xff] }
 0x613   :  { %15328 = vst [vmem:[#allocation6_spill] sm:$0xff] %v10719_v45  ;;  %15330 = vst [vmem:[#allocation5_spill] sm:$0xff] %v10723_v56  ;;  %v10739_v41 = vadd.f32 %v10499_v62, %v15336_v15  ;;  %v15337_v45 = vld [vmem:[#allocation21_spill] sm:$0xff]  ;;  %v15339_v56 = vld [vmem:[#allocation20_spill] sm:$0xff]  ;;  %v10759_v15 = vadd.f32 %v10499_v62, %v10480_v7  ;;  %v4373_v7 = vmax.f32 %v10531_v27, 0.0  ;;  %v4384_v27 = vmax.f32 %v10575_v24, 0.0 }
 0x614   :  { %15332 = vst [vmem:[#allocation8_spill] sm:$0xff] %v10727_v12  ;;  %15334 = vst [vmem:[#allocation7_spill] sm:$0xff] %v10731_v21  ;;  %v10743_v19 = vadd.f32 %v10499_v62, %v15337_v45  ;;  %v10747_v42 = vadd.f32 %v10499_v62, %v15339_v56  ;;  %v15340_v12 = vld [vmem:[#allocation23_spill] sm:$0xff]  ;;  %v10763_v45 = vadd.f32 %v10499_v62, %v10484_v2  ;;  %v4375_v2 = vmax.f32 %v10539_v50, 0.0 }
 0x615   :  { %v10751_v46 = vadd.f32 %v10499_v62, %v15340_v12  ;;  %v15342_v21 = vld [vmem:[#allocation31_spill] sm:$0xff]  ;;  %15344 = vst [vmem:[#allocation13_spill] sm:$0xff] %v10759_v15  ;;  %v10771_v12 = vadd.f32 %v10499_v62, %v10492_v23  ;;  %v4374_v15 = vmax.f32 %v10535_v17, 0.0  ;;  %v4379_v23 = vmax.f32 %v10555_v52, 0.0  ;;  %4437 = vst.msk [vmem:[%s15174_s5 + $0x18] sm:$0xff] %vm3826_vm2, %v4373_v7 }
 0x616   :  { %15338 = vst [vmem:[#allocation9_spill] sm:$0xff] %v10743_v19  ;;  %v10755_v58 = vadd.f32 %v10499_v62, %v15342_v21  ;;  %15345 = vst [vmem:[#allocation12_spill] sm:$0xff] %v10763_v45  ;;  %v15346_v19 = vld [vmem:[#allocation25_spill] sm:$0xff]  ;;  %v4371_v21 = vmax.f32 %v10523_v20, 0.0  ;;  %v4376_v45 = vmax.f32 %v10543_v39, 0.0  ;;  %v4382_v20 = vmax.f32 %v10567_v35, 0.0 }
 0x617   :  { %15341 = vst [vmem:[#allocation11_spill] sm:$0xff] %v10751_v46  ;;  %v10767_v56 = vadd.f32 %v10499_v62, %v15346_v19  ;;  %v4370_v46 = vmax.f32 %v10519_v63, 0.0  ;;  %v4377_v19 = vmax.f32 %v10547_v59, 0.0  ;;  %v4380_v62 = vmax.f32 %v10559_v61, 0.0  ;;  %4581 = vst.msk [vmem:[#allocation3 + $0x39] sm:$0xff] %vm3826_vm2, %v4373_v7 }
 0x618   :  { %15343 = vst [vmem:[#allocation10_spill] sm:$0xff] %v10755_v58  ;;  %v4372_v58 = vmax.f32 %v10527_v29, 0.0  ;;  %v4381_v63 = vmax.f32 %v10563_v38, 0.0  ;;  %4435 = vst.msk [vmem:[%s15174_s5 + $0x8] sm:$0xff] %vm3826_vm2, %v4371_v21  ;;  %v4383_v29 = vmax.f32 %v10571_v53, 0.0  ;;  %v4385_v17 = vmax.f32 %v10579_v37, 0.0 }
 0x619   :  { %15347 = vst [vmem:[#allocation15_spill] sm:$0xff] %v10767_v56  ;;  %v4378_v56 = vmax.f32 %v10551_v22, 0.0  ;;  %4434 = vst.msk [vmem:[%s15174_s5] sm:$0xff] %vm3826_vm2, %v4370_v46  ;;  %v4386_v50 = vmax.f32 %v10583_v26, 0.0  ;;  %v4387_v39 = vmax.f32 %v10587_v48, 0.0  ;;  %v4388_v59 = vmax.f32 %v10591_v44, 0.0 }
 0x61a   :  { %4436 = vst.msk [vmem:[%s15174_s5 + $0x10] sm:$0xff] %vm3826_vm2, %v4372_v58  ;;  %4578 = vst.msk [vmem:[#allocation3 + $0x19] sm:$0xff] %vm3826_vm2, %v4370_v46  ;;  %v4389_v22 = vmax.f32 %v10595_v11, 0.0  ;;  %v4390_v52 = vmax.f32 %v10599_v33, 0.0  ;;  %v4391_v61 = vmax.f32 %v10603_v57, 0.0  ;;  %v4392_v38 = vmax.f32 %v10607_v25, 0.0 }
 0x61b   :  { %4579 = vst.msk [vmem:[#allocation3 + $0x21] sm:$0xff] %vm3826_vm2, %v4371_v21  ;;  %4580 = vst.msk [vmem:[#allocation3 + $0x31] sm:$0xff] %vm3826_vm2, %v4372_v58  ;;  %v4393_v35 = vmax.f32 %v10611_v6, 0.0  ;;  %v4394_v53 = vmax.f32 %v10615_v4, 0.0  ;;  %v4395_v24 = vmax.f32 %v10619_v32, 0.0  ;;  %v4396_v37 = vmax.f32 %v10623_v30, 0.0 }
 0x61c   :  { %4438 = vst.msk [vmem:[%s15174_s5 + $0x20] sm:$0xff] %vm3826_vm2, %v4374_v15  ;;  %4439 = vst.msk [vmem:[%s15174_s5 + $0x28] sm:$0xff] %vm3826_vm2, %v4375_v2  ;;  %v4397_v26 = vmax.f32 %v10627_v3, 0.0  ;;  %v4398_v48 = vmax.f32 %v10631_v0, 0.0  ;;  %v4399_v44 = vmax.f32 %v10635_v34, 0.0  ;;  %v4400_v11 = vmax.f32 %v10639_v28, 0.0 }
 0x61d   :  { %4440 = vst.msk [vmem:[%s15174_s5 + $0x30] sm:$0xff] %vm3826_vm2, %v4376_v45  ;;  %4441 = vst.msk [vmem:[%s15174_s5 + $0x38] sm:$0xff] %vm3826_vm2, %v4377_v19  ;;  %v4401_v33 = vmax.f32 %v10643_v49, 0.0  ;;  %v4402_v57 = vmax.f32 %v10647_v5, 0.0  ;;  %v4403_v25 = vmax.f32 %v10651_v43, 0.0  ;;  %v4404_v6 = vmax.f32 %v10655_v40, 0.0 }
 0x61e   :  { %4582 = vst.msk [vmem:[#allocation3 + $0x49] sm:$0xff] %vm3826_vm2, %v4374_v15  ;;  %4583 = vst.msk [vmem:[#allocation3 + $0x51] sm:$0xff] %vm3826_vm2, %v4375_v2  ;;  %v4405_v4 = vmax.f32 %v10659_v16, 0.0  ;;  %v4406_v32 = vmax.f32 %v10663_v13, 0.0  ;;  %v4407_v30 = vmax.f32 %v10667_v55, 0.0  ;;  %v4408_v3 = vmax.f32 %v10671_v54, 0.0 }
 0x61f   :  { %4584 = vst.msk [vmem:[#allocation3 + $0x61] sm:$0xff] %vm3826_vm2, %v4376_v45  ;;  %4585 = vst.msk [vmem:[#allocation3 + $0x69] sm:$0xff] %vm3826_vm2, %v4377_v19  ;;  %v4409_v0 = vmax.f32 %v10675_v14, 0.0  ;;  %v4410_v34 = vmax.f32 %v10679_v36, 0.0  ;;  %v4411_v28 = vmax.f32 %v10683_v31, 0.0  ;;  %v4412_v49 = vmax.f32 %v10687_v10, 0.0 }
 0x620   :  { %4442 = vst.msk [vmem:[%s15174_s5 + $0x40] sm:$0xff] %vm3826_vm2, %v4378_v56  ;;  %4443 = vst.msk [vmem:[%s15174_s5 + $0x48] sm:$0xff] %vm3826_vm2, %v4379_v23  ;;  %v4413_v5 = vmax.f32 %v10691_v8, 0.0  ;;  %v4414_v43 = vmax.f32 %v10695_v51, 0.0  ;;  %v4415_v40 = vmax.f32 %v10699_v18, 0.0  ;;  %v4416_v16 = vmax.f32 %v10703_v9, 0.0 }
 0x621   :  { %4444 = vst.msk [vmem:[%s15174_s5 + $0x50] sm:$0xff] %vm3826_vm2, %v4380_v62  ;;  %4445 = vst.msk [vmem:[%s15174_s5 + $0x58] sm:$0xff] %vm3826_vm2, %v4381_v63  ;;  %v4417_v13 = vmax.f32 %v10707_v47, 0.0  ;;  %v4418_v55 = vmax.f32 %v10711_v1, 0.0  ;;  %v15348_v54 = vld [vmem:[#allocation4_spill] sm:$0xff]  ;;  %v15349_v36 = vld [vmem:[#allocation6_spill] sm:$0xff] }
 0x622   :  { %4586 = vst.msk [vmem:[#allocation3 + $0x79] sm:$0xff] %vm3826_vm2, %v4378_v56  ;;  %4587 = vst.msk [vmem:[#allocation3 + $0x81] sm:$0xff] %vm3826_vm2, %v4379_v23  ;;  %v4419_v14 = vmax.f32 %v15348_v54, 0.0  ;;  %v4420_v31 = vmax.f32 %v15349_v36, 0.0  ;;  %v15350_v10 = vld [vmem:[#allocation5_spill] sm:$0xff]  ;;  %v11045_v51 = vld [vmem:[#allocation3 + $0x18] sm:$0xff] }
 0x623   :  { %4588 = vst.msk [vmem:[#allocation3 + $0x91] sm:$0xff] %vm3826_vm2, %v4380_v62  ;;  %4589 = vst.msk [vmem:[#allocation3 + $0x99] sm:$0xff] %vm3826_vm2, %v4381_v63  ;;  %v4421_v8 = vmax.f32 %v15350_v10, 0.0  ;;  %v15351_v18 = vld [vmem:[#allocation8_spill] sm:$0xff]  ;;  %v15352_v47 = vld [vmem:[#allocation7_spill] sm:$0xff]  ;;  %v4424_v46 = vmax.f32 %v10735_v60, 0.0 }
 0x624   :  { %4446 = vst.msk [vmem:[%s15174_s5 + $0x60] sm:$0xff] %vm3826_vm2, %v4382_v20  ;;  %4447 = vst.msk [vmem:[%s15174_s5 + $0x68] sm:$0xff] %vm3826_vm2, %v4383_v29  ;;  %v4422_v9 = vmax.f32 %v15351_v18, 0.0  ;;  %v4423_v1 = vmax.f32 %v15352_v47, 0.0  ;;  %v4425_v58 = vmax.f32 %v10739_v41, 0.0  ;;  %v11071_v60 = vld [vmem:[#allocation3 + $0x20] sm:$0xff] }
 0x625   :  { %4448 = vst.msk [vmem:[%s15174_s5 + $0x70] sm:$0xff] %vm3826_vm2, %v4384_v27  ;;  %4449 = vst.msk [vmem:[%s15174_s5 + $0x78] sm:$0xff] %vm3826_vm2, %v4385_v17  ;;  %v11073_v41 = vld [vmem:[#allocation3 + $0x30] sm:$0xff]  ;;  %v11075_v15 = vld [vmem:[#allocation3 + $0x38] sm:$0xff]  ;;  %v4427_v7 = vmax.f32 %v10747_v42, 0.0 }
 0x626   :  { %4590 = vst.msk [vmem:[#allocation3 + $0xa9] sm:$0xff] %vm3826_vm2, %v4382_v20  ;;  %4591 = vst.msk [vmem:[#allocation3 + $0xb1] sm:$0xff] %vm3826_vm2, %v4383_v29  ;;  %v11077_v45 = vld [vmem:[#allocation3 + $0x48] sm:$0xff]  ;;  %v15354_v2 = vld [vmem:[#allocation11_spill] sm:$0xff] }
 0x627   :  { %4592 = vst.msk [vmem:[#allocation3 + $0xc1] sm:$0xff] %vm3826_vm2, %v4384_v27  ;;  %4593 = vst.msk [vmem:[#allocation3 + $0xc9] sm:$0xff] %vm3826_vm2, %v4385_v17  ;;  %v15353_v56 = vld [vmem:[#allocation9_spill] sm:$0xff]  ;;  %v4428_v19 = vmax.f32 %v15354_v2, 0.0  ;;  %v15355_v23 = vld [vmem:[#allocation10_spill] sm:$0xff] }
 0x628   :  { %4450 = vst.msk [vmem:[%s15174_s5 + $0x80] sm:$0xff] %vm3826_vm2, %v4386_v50  ;;  %4451 = vst.msk [vmem:[%s15174_s5 + $0x88] sm:$0xff] %vm3826_vm2, %v4387_v39  ;;  %v4426_v21 = vmax.f32 %v15353_v56, 0.0  ;;  %v4429_v62 = vmax.f32 %v15355_v23, 0.0  ;;  %v4649_v42 = vld [vmem:[#allocation3 + $0x50] sm:$0xff]  ;;  %v4650_v63 = vld [vmem:[#allocation3 + $0x60] sm:$0xff] }
 0x629   :  { %4452 = vst.msk [vmem:[%s15174_s5 + $0x90] sm:$0xff] %vm3826_vm2, %v4388_v59  ;;  %4453 = vst.msk [vmem:[%s15174_s5 + $0x98] sm:$0xff] %vm3826_vm2, %v4389_v22  ;;  %v4651_v20 = vld [vmem:[#allocation3 + $0x68] sm:$0xff]  ;;  %v4652_v29 = vld [vmem:[#allocation3 + $0x78] sm:$0xff] }
 0x62a   :  { %4594 = vst.msk [vmem:[#allocation3 + $0xd9] sm:$0xff] %vm3826_vm2, %v4386_v50  ;;  %4595 = vst.msk [vmem:[#allocation3 + $0xe1] sm:$0xff] %vm3826_vm2, %v4387_v39  ;;  %v15356_v27 = vld [vmem:[#allocation13_spill] sm:$0xff]  ;;  %v15357_v50 = vld [vmem:[#allocation12_spill] sm:$0xff] }
 0x62b   :  { %4596 = vst.msk [vmem:[#allocation3 + $0xf1] sm:$0xff] %vm3826_vm2, %v4388_v59  ;;  %4597 = vst.msk [vmem:[#allocation3 + $0xf9] sm:$0xff] %vm3826_vm2, %v4389_v22  ;;  %v4430_v17 = vmax.f32 %v15356_v27, 0.0  ;;  %v4431_v39 = vmax.f32 %v15357_v50, 0.0  ;;  %v15358_v59 = vld [vmem:[#allocation15_spill] sm:$0xff] }
 0x62c   :  { %4454 = vst.msk [vmem:[%s15174_s5 + $0xa0] sm:$0xff] %vm3826_vm2, %v4390_v52  ;;  %4455 = vst.msk [vmem:[%s15174_s5 + $0xa8] sm:$0xff] %vm3826_vm2, %v4391_v61  ;;  %v4432_v22 = vmax.f32 %v15358_v59, 0.0 }
 0x62d   :  { %4456 = vst.msk [vmem:[%s15174_s5 + $0xb0] sm:$0xff] %vm3826_vm2, %v4392_v38  ;;  %4457 = vst.msk [vmem:[%s15174_s5 + $0xb8] sm:$0xff] %vm3826_vm2, %v4393_v35 }
 0x62e   :  { %4598 = vst.msk [vmem:[#allocation3 + $0x109] sm:$0xff] %vm3826_vm2, %v4390_v52  ;;  %4599 = vst.msk [vmem:[#allocation3 + $0x111] sm:$0xff] %vm3826_vm2, %v4391_v61  ;;  %v4433_v52 = vmax.f32 %v10771_v12, 0.0  ;;  %v4653_v12 = vld [vmem:[#allocation3 + $0x80] sm:$0xff]  ;;  %v4654_v61 = vld [vmem:[#allocation3 + $0x90] sm:$0xff] }
 0x62f   :  { %4600 = vst.msk [vmem:[#allocation3 + $0x121] sm:$0xff] %vm3826_vm2, %v4392_v38  ;;  %4601 = vst.msk [vmem:[#allocation3 + $0x129] sm:$0xff] %vm3826_vm2, %v4393_v35  ;;  %v4655_v38 = vld [vmem:[#allocation3 + $0x98] sm:$0xff]  ;;  %v4656_v35 = vld [vmem:[#allocation3 + $0xa8] sm:$0xff] }
 0x630   :  { %4458 = vst.msk [vmem:[%s15174_s5 + $0xc0] sm:$0xff] %vm3826_vm2, %v4394_v53  ;;  %4459 = vst.msk [vmem:[%s15174_s5 + $0xc8] sm:$0xff] %vm3826_vm2, %v4395_v24 }
 0x631   :  { %4460 = vst.msk [vmem:[%s15174_s5 + $0xd0] sm:$0xff] %vm3826_vm2, %v4396_v37  ;;  %4461 = vst.msk [vmem:[%s15174_s5 + $0xd8] sm:$0xff] %vm3826_vm2, %v4397_v26 }
 0x632   :  { %4602 = vst.msk [vmem:[#allocation3 + $0x139] sm:$0xff] %vm3826_vm2, %v4394_v53  ;;  %4603 = vst.msk [vmem:[#allocation3 + $0x141] sm:$0xff] %vm3826_vm2, %v4395_v24  ;;  %v4657_v53 = vld [vmem:[#allocation3 + $0xb0] sm:$0xff]  ;;  %v4658_v24 = vld [vmem:[#allocation3 + $0xc0] sm:$0xff] }
 0x633   :  { %4604 = vst.msk [vmem:[#allocation3 + $0x151] sm:$0xff] %vm3826_vm2, %v4396_v37  ;;  %4605 = vst.msk [vmem:[#allocation3 + $0x159] sm:$0xff] %vm3826_vm2, %v4397_v26  ;;  %v4659_v37 = vld [vmem:[#allocation3 + $0xc8] sm:$0xff]  ;;  %v4660_v26 = vld [vmem:[#allocation3 + $0xd8] sm:$0xff] }
 0x634   :  { %4462 = vst.msk [vmem:[%s15174_s5 + $0xe0] sm:$0xff] %vm3826_vm2, %v4398_v48  ;;  %4463 = vst.msk [vmem:[%s15174_s5 + $0xe8] sm:$0xff] %vm3826_vm2, %v4399_v44 }
 0x635   :  { %4464 = vst.msk [vmem:[%s15174_s5 + $0xf0] sm:$0xff] %vm3826_vm2, %v4400_v11  ;;  %4465 = vst.msk [vmem:[%s15174_s5 + $0xf8] sm:$0xff] %vm3826_vm2, %v4401_v33 }
 0x636   :  { %4606 = vst.msk [vmem:[#allocation3 + $0x169] sm:$0xff] %vm3826_vm2, %v4398_v48  ;;  %4607 = vst.msk [vmem:[#allocation3 + $0x171] sm:$0xff] %vm3826_vm2, %v4399_v44  ;;  %v15359_v48 = vld [vmem:[#allocation29_spill] sm:$0xff]  ;;  %v15360_v44 = vld [vmem:[#allocation26_spill] sm:$0xff] }
 0x637   :  { %4608 = vst.msk [vmem:[#allocation3 + $0x181] sm:$0xff] %vm3826_vm2, %v4400_v11  ;;  %4609 = vst.msk [vmem:[#allocation3 + $0x189] sm:$0xff] %vm3826_vm2, %v4401_v33  ;;  %v11149_v11 = vadd.f32 %v15360_v44, %v15359_v48  ;;  %v4661_v33 = vld [vmem:[#allocation3 + $0xe0] sm:$0xff] }
 0x638   :  { %4466 = vst.msk [vmem:[%s15174_s5 + $0x100] sm:$0xff] %vm3826_vm2, %v4402_v57  ;;  %4467 = vst.msk [vmem:[%s15174_s5 + $0x108] sm:$0xff] %vm3826_vm2, %v4403_v25 }
 0x639   :  { %4468 = vst.msk [vmem:[%s15174_s5 + $0x110] sm:$0xff] %vm3826_vm2, %v4404_v6  ;;  %4469 = vst.msk [vmem:[%s15174_s5 + $0x118] sm:$0xff] %vm3826_vm2, %v4405_v4  ;;  %v4668_v10 = vld [vmem:[#allocation3 + $0x138] sm:$0xff] }
 0x63a   :  { %4610 = vst.msk [vmem:[#allocation3 + $0x1c9] sm:$0xff] %vm3826_vm2, %v4402_v57  ;;  %4611 = vst.msk [vmem:[#allocation3 + $0x1d1] sm:$0xff] %vm3826_vm2, %v4403_v25  ;;  %v4662_v57 = vld [vmem:[#allocation3 + $0xf0] sm:$0xff]  ;;  %v4663_v25 = vld [vmem:[#allocation3 + $0xf8] sm:$0xff] }
 0x63b   :  { %4612 = vst.msk [vmem:[#allocation3 + $0x1e1] sm:$0xff] %vm3826_vm2, %v4404_v6  ;;  %4613 = vst.msk [vmem:[#allocation3 + $0x1e9] sm:$0xff] %vm3826_vm2, %v4405_v4  ;;  %v15362_v6 = vld [vmem:[#allocation22_spill] sm:$0xff] }
 0x63c   :  { %4470 = vst.msk [vmem:[%s15174_s5 + $0x120] sm:$0xff] %vm3826_vm2, %v4406_v32  ;;  %4471 = vst.msk [vmem:[%s15174_s5 + $0x128] sm:$0xff] %vm3826_vm2, %v4407_v30  ;;  %v11173_v4 = vmul.f32 %v15362_v6, %v11045_v51  ;;  %v11193_v54 = vmul.f32 %v15362_v6, %v11073_v41  ;;  %v11201_v36 = vmul.f32 %v15362_v6, %v11077_v45 }
 0x63d   :  { %4472 = vst.msk [vmem:[%s15174_s5 + $0x130] sm:$0xff] %vm3826_vm2, %v4408_v3  ;;  %4473 = vst.msk [vmem:[%s15174_s5 + $0x138] sm:$0xff] %vm3826_vm2, %v4409_v0  ;;  %v11204_v51 = vmul.f32 %v15362_v6, %v4649_v42  ;;  %v11207_v18 = vmul.f32 %v15362_v6, %v4650_v63  ;;  %v11213_v47 = vmul.f32 %v15362_v6, %v4652_v29  ;;  %v4673_v56 = vld [vmem:[#allocation3 + $0x170] sm:$0xff] }
 0x63e   :  { %4614 = vst.msk [vmem:[#allocation3 + $0x1f9] sm:$0xff] %vm3826_vm2, %v4406_v32  ;;  %4615 = vst.msk [vmem:[#allocation3 + $0x201] sm:$0xff] %vm3826_vm2, %v4407_v30  ;;  %v15363_v32 = vld [vmem:[#allocation30_spill] sm:$0xff]  ;;  %v15364_v30 = vld [vmem:[#allocation32_spill] sm:$0xff]  ;;  %v11219_v41 = vmul.f32 %v15362_v6, %v4654_v61  ;;  %v11225_v45 = vmul.f32 %v15362_v6, %v4656_v35  ;;  %v11228_v2 = vmul.f32 %v15362_v6, %v4657_v53 }
 0x63f   :  { %4616 = vst.msk [vmem:[#allocation3 + $0x211] sm:$0xff] %vm3826_vm2, %v4408_v3  ;;  %4617 = vst.msk [vmem:[#allocation3 + $0x219] sm:$0xff] %vm3826_vm2, %v4409_v0  ;;  %v11177_v3 = vadd.f32 %v15364_v30, %v15363_v32  ;;  %v15366_v0 = vld [vmem:[#allocation24_spill] sm:$0xff]  ;;  %v11234_v23 = vmul.f32 %v15362_v6, %v4659_v37  ;;  %v11240_v29 = vmul.f32 %v15362_v6, %v4661_v33 }
 0x640   :  { %4474 = vst.msk [vmem:[%s15174_s5 + $0x140] sm:$0xff] %vm3826_vm2, %v4410_v34  ;;  %4475 = vst.msk [vmem:[%s15174_s5 + $0x148] sm:$0xff] %vm3826_vm2, %v4411_v28  ;;  %v11243_v27 = vmul.f32 %v15362_v6, %v4662_v57  ;;  %v11276_v32 = vmul.f32 %v15362_v6, %v4673_v56 }
 0x641   :  { %4476 = vst.msk [vmem:[%s15174_s5 + $0x150] sm:$0xff] %vm3826_vm2, %v4412_v49  ;;  %4477 = vst.msk [vmem:[%s15174_s5 + $0x158] sm:$0xff] %vm3826_vm2, %v4413_v5 }
 0x642   :  { %4618 = vst.msk [vmem:[#allocation3 + $0x229] sm:$0xff] %vm3826_vm2, %v4410_v34  ;;  %4619 = vst.msk [vmem:[#allocation3 + $0x231] sm:$0xff] %vm3826_vm2, %v4411_v28  ;;  %v15367_v34 = vld [vmem:[#allocation33_spill] sm:$0xff]  ;;  %v4678_v42 = vld [vmem:[#allocation3 + $0x1e0] sm:$0xff] }
 0x643   :  { %4620 = vst.msk [vmem:[#allocation3 + $0x241] sm:$0xff] %vm3826_vm2, %v4412_v49  ;;  %4621 = vst.msk [vmem:[#allocation3 + $0x249] sm:$0xff] %vm3826_vm2, %v4413_v5  ;;  %v11181_v28 = vadd.f32 %v15367_v34, %v15366_v0  ;;  %v15369_v49 = vld [vmem:[#allocation27_spill] sm:$0xff]  ;;  %v15370_v5 = vld [vmem:[#allocation34_spill] sm:$0xff]  ;;  %v11285_v34 = vmul.f32 %v15362_v6, %v4678_v42 }
 0x644   :  { %4478 = vst.msk [vmem:[%s15174_s5 + $0x160] sm:$0xff] %vm3826_vm2, %v4414_v43  ;;  %4479 = vst.msk [vmem:[%s15174_s5 + $0x168] sm:$0xff] %vm3826_vm2, %v4415_v40  ;;  %v4679_v63 = vld [vmem:[#allocation3 + $0x1e8] sm:$0xff] }
 0x645   :  { %4480 = vst.msk [vmem:[%s15174_s5 + $0x170] sm:$0xff] %vm3826_vm2, %v4416_v16  ;;  %4481 = vst.msk [vmem:[%s15174_s5 + $0x178] sm:$0xff] %vm3826_vm2, %v4417_v13 }
 0x646   :  { %4622 = vst.msk [vmem:[#allocation3 + $0x259] sm:$0xff] %vm3826_vm2, %v4414_v43  ;;  %4623 = vst.msk [vmem:[#allocation3 + $0x261] sm:$0xff] %vm3826_vm2, %v4415_v40  ;;  %v11185_v43 = vadd.f32 %v15370_v5, %v15369_v49  ;;  %v4664_v40 = vld [vmem:[#allocation3 + $0x108] sm:$0xff]  ;;  %v4682_v59 = vld [vmem:[#allocation3 + $0x210] sm:$0xff] }
 0x647   :  { %4624 = vst.msk [vmem:[#allocation3 + $0x271] sm:$0xff] %vm3826_vm2, %v4416_v16  ;;  %4625 = vst.msk [vmem:[#allocation3 + $0x279] sm:$0xff] %vm3826_vm2, %v4417_v13  ;;  %v4665_v16 = vld [vmem:[#allocation3 + $0x110] sm:$0xff]  ;;  %v4666_v13 = vld [vmem:[#allocation3 + $0x120] sm:$0xff]  ;;  %v11249_v50 = vmul.f32 %v15362_v6, %v4664_v40 }
 0x648   :  { %4482 = vst.msk [vmem:[%s15174_s5 + $0x180] sm:$0xff] %vm3826_vm2, %v4418_v55  ;;  %4483 = vst.msk [vmem:[%s15174_s5 + $0x188] sm:$0xff] %vm3826_vm2, %v4419_v14 }
 0x649   :  { %4484 = vst.msk [vmem:[%s15174_s5 + $0x190] sm:$0xff] %vm3826_vm2, %v4420_v31  ;;  %4485 = vst.msk [vmem:[%s15174_s5 + $0x198] sm:$0xff] %vm3826_vm2, %v4421_v8  ;;  %v4684_v35 = vld [vmem:[#allocation3 + $0x228] sm:$0xff]  ;;  %v4685_v53 = vld [vmem:[#allocation3 + $0x230] sm:$0xff] }
 0x64a   :  { %4626 = vst.msk [vmem:[#allocation3 + $0x289] sm:$0xff] %vm3826_vm2, %v4418_v55  ;;  %4627 = vst.msk [vmem:[#allocation3 + $0x291] sm:$0xff] %vm3826_vm2, %v4419_v14  ;;  %v11189_v55 = vmul.f32 %v15362_v6, %v11071_v60  ;;  %v11197_v14 = vmul.f32 %v15362_v6, %v11075_v15  ;;  %v11216_v60 = vmul.f32 %v15362_v6, %v4653_v12  ;;  %v4687_v33 = vld [vmem:[#allocation3 + $0x248] sm:$0xff] }
 0x64b   :  { %4628 = vst.msk [vmem:[#allocation3 + $0x2a1] sm:$0xff] %vm3826_vm2, %v4420_v31  ;;  %4629 = vst.msk [vmem:[#allocation3 + $0x2a9] sm:$0xff] %vm3826_vm2, %v4421_v8  ;;  %v4667_v31 = vld [vmem:[#allocation3 + $0x128] sm:$0xff]  ;;  %v4669_v8 = vld [vmem:[#allocation3 + $0x140] sm:$0xff]  ;;  %v11222_v15 = vmul.f32 %v15362_v6, %v4655_v38  ;;  %v11255_v12 = vmul.f32 %v15362_v6, %v4666_v13  ;;  %v11261_v38 = vmul.f32 %v15362_v6, %v4668_v10 }
 0x64c   :  { %4486 = vst.msk [vmem:[%s15174_s5 + $0x1a0] sm:$0xff] %vm3826_vm2, %v4422_v9  ;;  %4487 = vst.msk [vmem:[%s15174_s5 + $0x1a8] sm:$0xff] %vm3826_vm2, %v4423_v1  ;;  %v11258_v61 = vmul.f32 %v15362_v6, %v4667_v31  ;;  %v11264_v37 = vmul.f32 %v15362_v6, %v4669_v8  ;;  %v11297_v10 = vmul.f32 %v15362_v6, %v4682_v59 }
 0x64d   :  { %4488 = vst.msk [vmem:[%s15174_s5 + $0x1b0] sm:$0xff] %vm3826_vm2, %v4424_v46  ;;  %4489 = vst.msk [vmem:[%s15174_s5 + $0x1b8] sm:$0xff] %vm3826_vm2, %v4425_v58  ;;  %v4688_v57 = vld [vmem:[#allocation3 + $0x258] sm:$0xff]  ;;  %v11303_v56 = vmul.f32 %v15362_v6, %v4684_v35 }
 0x64e   :  { %4630 = vst.msk [vmem:[#allocation3 + $0x2b9] sm:$0xff] %vm3826_vm2, %v4422_v9  ;;  %4631 = vst.msk [vmem:[#allocation3 + $0x2c1] sm:$0xff] %vm3826_vm2, %v4423_v1  ;;  %v11210_v9 = vmul.f32 %v15362_v6, %v4651_v20  ;;  %v4670_v1 = vld [vmem:[#allocation3 + $0x150] sm:$0xff]  ;;  %v4680_v20 = vld [vmem:[#allocation3 + $0x1f8] sm:$0xff]  ;;  %v11315_v59 = vmul.f32 %v15362_v6, %v4688_v57 }
 0x64f   :  { %4632 = vst.msk [vmem:[#allocation3 + $0x2d1] sm:$0xff] %vm3826_vm2, %v4424_v46  ;;  %4633 = vst.msk [vmem:[#allocation3 + $0x2d9] sm:$0xff] %vm3826_vm2, %v4425_v58  ;;  %v4671_v46 = vld [vmem:[#allocation3 + $0x158] sm:$0xff]  ;;  %v4672_v58 = vld [vmem:[#allocation3 + $0x168] sm:$0xff]  ;;  %v11291_v13 = vmul.f32 %v15362_v6, %v4680_v20 }
 0x650   :  { %4490 = vst.msk [vmem:[%s15174_s5 + $0x1c0] sm:$0xff] %vm3826_vm2, %v4426_v21  ;;  %4491 = vst.msk [vmem:[%s15174_s5 + $0x1c8] sm:$0xff] %vm3826_vm2, %v4427_v7  ;;  %v11270_v48 = vmul.f32 %v15362_v6, %v4671_v46  ;;  %v11273_v44 = vmul.f32 %v15362_v6, %v4672_v58  ;;  %v4690_v49 = vld [vmem:[#allocation3 + $0x270] sm:$0xff]  ;;  %v4691_v5 = vld [vmem:[#allocation3 + $0x278] sm:$0xff] }
 0x651   :  { %4492 = vst.msk [vmem:[%s15174_s5 + $0x1d0] sm:$0xff] %vm3826_vm2, %v4428_v19  ;;  %4493 = vst.msk [vmem:[%s15174_s5 + $0x1d8] sm:$0xff] %vm3826_vm2, %v4429_v62  ;;  %v4692_v40 = vld [vmem:[#allocation3 + $0x288] sm:$0xff]  ;;  %v4693_v8 = vld [vmem:[#allocation3 + $0x290] sm:$0xff]  ;;  %v11321_v35 = vmul.f32 %v15362_v6, %v4690_v49 }
 0x652   :  { %4634 = vst.msk [vmem:[#allocation3 + $0x2e9] sm:$0xff] %vm3826_vm2, %v4426_v21  ;;  %4635 = vst.msk [vmem:[#allocation3 + $0x2f1] sm:$0xff] %vm3826_vm2, %v4427_v7  ;;  %v4676_v21 = vld [vmem:[#allocation3 + $0x1c8] sm:$0xff]  ;;  %v4677_v7 = vld [vmem:[#allocation3 + $0x1d0] sm:$0xff] }
 0x653   :  { %4636 = vst.msk [vmem:[#allocation3 + $0x301] sm:$0xff] %vm3826_vm2, %v4428_v19  ;;  %4637 = vst.msk [vmem:[#allocation3 + $0x309] sm:$0xff] %vm3826_vm2, %v4429_v62  ;;  %v11231_v19 = vmul.f32 %v15362_v6, %v4658_v24  ;;  %v11237_v62 = vmul.f32 %v15362_v6, %v4660_v26  ;;  %v4686_v24 = vld [vmem:[#allocation3 + $0x240] sm:$0xff]  ;;  %v11267_v26 = vmul.f32 %v15362_v6, %v4670_v1  ;;  %v4695_v46 = vld [vmem:[#allocation3 + $0x2a8] sm:$0xff] }
 0x654   :  { %15361 = vst [vmem:[#allocation14_spill] sm:$0xff] %v11149_v11  ;;  %4494 = vst.msk [vmem:[%s15174_s5 + $0x1e0] sm:$0xff] %vm3826_vm2, %v4430_v17  ;;  %v11279_v30 = vmul.f32 %v15362_v6, %v4676_v21  ;;  %v11282_v0 = vmul.f32 %v15362_v6, %v4677_v7  ;;  %v4694_v1 = vld [vmem:[#allocation3 + $0x2a0] sm:$0xff]  ;;  %v11306_v21 = vmul.f32 %v15362_v6, %v4685_v53 }
 0x655   :  { %4495 = vst.msk [vmem:[%s15174_s5 + $0x1e8] sm:$0xff] %vm3826_vm2, %v4431_v39  ;;  %4496 = vst.msk [vmem:[%s15174_s5 + $0x1f0] sm:$0xff] %vm3826_vm2, %v4432_v22  ;;  %v11309_v7 = vmul.f32 %v15362_v6, %v4686_v24  ;;  %v4696_v42 = vld [vmem:[#allocation3 + $0x2b8] sm:$0xff]  ;;  %v11324_v24 = vmul.f32 %v15362_v6, %v4691_v5  ;;  %v11333_v57 = vmul.f32 %v15362_v6, %v4694_v1 }
 0x656   :  { %4497 = vst.msk [vmem:[%s15174_s5 + $0x1f8] sm:$0xff] %vm3826_vm2, %v4433_v52  ;;  %4638 = vst.msk [vmem:[#allocation3 + $0x319] sm:$0xff] %vm3826_vm2, %v4430_v17  ;;  %v11246_v17 = vmul.f32 %v15362_v6, %v4663_v25  ;;  %v4689_v25 = vld [vmem:[#allocation3 + $0x260] sm:$0xff]  ;;  %v4698_v20 = vld [vmem:[#allocation3 + $0x2d0] sm:$0xff]  ;;  %v11336_v49 = vmul.f32 %v15362_v6, %v4695_v46 }
 0x657   :  { %4639 = vst.msk [vmem:[#allocation3 + $0x321] sm:$0xff] %vm3826_vm2, %v4431_v39  ;;  %4640 = vst.msk [vmem:[#allocation3 + $0x331] sm:$0xff] %vm3826_vm2, %v4432_v22  ;;  %v4681_v39 = vld [vmem:[#allocation3 + $0x200] sm:$0xff]  ;;  %v4683_v22 = vld [vmem:[#allocation3 + $0x218] sm:$0xff] }
 0x658   :  { %4641 = vst.msk [vmem:[#allocation3 + $0x339] sm:$0xff] %vm3826_vm2, %v4433_v52  ;;  %15365 = vst [vmem:[#allocation17_spill] sm:$0xff] %v11177_v3  ;;  %v11252_v52 = vmul.f32 %v15362_v6, %v4665_v16  ;;  %v11288_v16 = vmul.f32 %v15362_v6, %v4679_v63  ;;  %v11294_v31 = vmul.f32 %v15362_v6, %v4681_v39  ;;  %v4697_v63 = vld [vmem:[#allocation3 + $0x2c0] sm:$0xff]  ;;  %v4699_v53 = vld [vmem:[#allocation3 + $0x2d8] sm:$0xff] }
 0x659   :  { %15368 = vst [vmem:[#allocation16_spill] sm:$0xff] %v11181_v28  ;;  %15371 = vst [vmem:[#allocation19_spill] sm:$0xff] %v11185_v43  ;;  %v11300_v58 = vmul.f32 %v15362_v6, %v4683_v22  ;;  %v11312_v39 = vmul.f32 %v15362_v6, %v4687_v33  ;;  %v11318_v22 = vmul.f32 %v15362_v6, %v4689_v25  ;;  %v4700_v43 = vld [vmem:[#allocation3 + $0x2e8] sm:$0xff]  ;;  %v4701_v28 = vld [vmem:[#allocation3 + $0x2f0] sm:$0xff] }
 0x65a   :  { %15372 = vst [vmem:[#allocation18_spill] sm:$0xff] %v11288_v16  ;;  %15373 = vst [vmem:[#allocation21_spill] sm:$0xff] %v11291_v13  ;;  %v11327_v3 = vmul.f32 %v15362_v6, %v4692_v40  ;;  %v11330_v33 = vmul.f32 %v15362_v6, %v4693_v8  ;;  %v4702_v25 = vld [vmem:[#allocation3 + $0x300] sm:$0xff]  ;;  %v4703_v11 = vld [vmem:[#allocation3 + $0x308] sm:$0xff]  ;;  %v11342_v5 = vmul.f32 %v15362_v6, %v4697_v63 }
 0x65b   :  { %15374 = vst [vmem:[#allocation20_spill] sm:$0xff] %v11294_v31  ;;  %15375 = vst [vmem:[#allocation23_spill] sm:$0xff] %v11297_v10  ;;  %v11345_v40 = vmul.f32 %v15362_v6, %v4698_v20  ;;  %v11351_v1 = vmul.f32 %v15362_v6, %v4700_v43  ;;  %v11357_v46 = vmul.f32 %v15362_v6, %v4702_v25  ;;  %v4782_v25 = vld [vmem:[#allocation3 + $0x51] sm:$0xff]  ;;  %v4813_v31 = vld [vmem:[#allocation3 + $0x1f9] sm:$0xff] }
 0x65c   :  { %15376 = vst [vmem:[#allocation31_spill] sm:$0xff] %v11300_v58  ;;  %15377 = vst [vmem:[#allocation25_spill] sm:$0xff] %v11303_v56  ;;  %v11360_v63 = vmul.f32 %v15362_v6, %v4703_v11  ;;  %v4802_v56 = vld [vmem:[#allocation3 + $0x141] sm:$0xff]  ;;  %v4805_v58 = vld [vmem:[#allocation3 + $0x169] sm:$0xff] }
 0x65d   :  { %15378 = vst [vmem:[#allocation4_spill] sm:$0xff] %v11306_v21  ;;  %15379 = vst [vmem:[#allocation6_spill] sm:$0xff] %v11309_v7  ;;  %v4793_v7 = vld [vmem:[#allocation3 + $0xd9] sm:$0xff]  ;;  %v4799_v21 = vld [vmem:[#allocation3 + $0x121] sm:$0xff] }
 0x65e   :  { %15380 = vst [vmem:[#allocation5_spill] sm:$0xff] %v11312_v39  ;;  %15381 = vst [vmem:[#allocation8_spill] sm:$0xff] %v11315_v59  ;;  %v4705_v8 = vld [vmem:[#allocation3 + $0x320] sm:$0xff]  ;;  %v4790_v59 = vld [vmem:[#allocation3 + $0xb1] sm:$0xff] }
 0x65f   :  { %15382 = vst [vmem:[#allocation7_spill] sm:$0xff] %v11318_v22  ;;  %15383 = vst [vmem:[#allocation9_spill] sm:$0xff] %v11321_v35  ;;  %v4704_v22 = vld [vmem:[#allocation3 + $0x318] sm:$0xff]  ;;  %v11339_v35 = vmul.f32 %v15362_v6, %v4696_v42  ;;  %v4819_v16 = vld [vmem:[#allocation3 + $0x241] sm:$0xff] }
 0x660   :  { %15384 = vst [vmem:[#allocation11_spill] sm:$0xff] %v11324_v24  ;;  %15385 = vst [vmem:[#allocation10_spill] sm:$0xff] %v11327_v3  ;;  %v4777_v42 = vld [vmem:[#allocation3 + $0x19] sm:$0xff]  ;;  %v11363_v20 = vmul.f32 %v15362_v6, %v4704_v22  ;;  %v4787_v3 = vld [vmem:[#allocation3 + $0x91] sm:$0xff] }
 0x661   :  { %15386 = vst [vmem:[#allocation13_spill] sm:$0xff] %v11330_v33  ;;  %15387 = vst [vmem:[#allocation12_spill] sm:$0xff] %v11333_v57  ;;  %v11348_v33 = vmul.f32 %v15362_v6, %v4699_v53  ;;  %v11354_v57 = vmul.f32 %v15362_v6, %v4701_v28  ;;  %v4780_v53 = vld [vmem:[#allocation3 + $0x39] sm:$0xff]  ;;  %v11368_v28 = vmul.f32 %v15362_v6, %v4705_v8  ;;  %v4810_v10 = vld [vmem:[#allocation3 + $0x1d1] sm:$0xff] }
 0x662   :  { %15388 = vst [vmem:[#allocation15_spill] sm:$0xff] %v11336_v49  ;;  %15389 = vst [vmem:[#allocation29_spill] sm:$0xff] %v11339_v35  ;;  %v4778_v35 = vld [vmem:[#allocation3 + $0x21] sm:$0xff]  ;;  %v4788_v8 = vld [vmem:[#allocation3 + $0x99] sm:$0xff] }
 0x663   :  { %15390 = vst [vmem:[#allocation26_spill] sm:$0xff] %v11342_v5  ;;  %15391 = vst [vmem:[#allocation22_spill] sm:$0xff] %v11345_v40  ;;  %v4779_v40 = vld [vmem:[#allocation3 + $0x31] sm:$0xff]  ;;  %v15398_v5 = vld [vmem:[#allocation28_spill] sm:$0xff] }
 0x664   :  { %15392 = vst [vmem:[#allocation30_spill] sm:$0xff] %v11348_v33  ;;  %15393 = vst [vmem:[#allocation32_spill] sm:$0xff] %v11351_v1  ;;  %v4781_v33 = vld [vmem:[#allocation3 + $0x49] sm:$0xff]  ;;  %v4846_v43 = vmul.f32 %v15398_v5, %v4777_v42  ;;  %v4847_v1 = vmul.f32 %v15398_v5, %v4778_v35  ;;  %v4848_v49 = vmul.f32 %v15398_v5, %v4779_v40  ;;  %v4816_v13 = vld [vmem:[#allocation3 + $0x219] sm:$0xff] }
 0x665   :  { %15394 = vst [vmem:[#allocation24_spill] sm:$0xff] %v11354_v57  ;;  %15395 = vst [vmem:[#allocation33_spill] sm:$0xff] %v11357_v46  ;;  %v4783_v46 = vld [vmem:[#allocation3 + $0x61] sm:$0xff]  ;;  %v4784_v57 = vld [vmem:[#allocation3 + $0x69] sm:$0xff]  ;;  %v4849_v11 = vmul.f32 %v15398_v5, %v4780_v53  ;;  %v4850_v22 = vmul.f32 %v15398_v5, %v4781_v33  ;;  %v4851_v24 = vmul.f32 %v15398_v5, %v4782_v25 }
 0x666   :  { %15396 = vst [vmem:[#allocation27_spill] sm:$0xff] %v11360_v63  ;;  %15397 = vst [vmem:[#allocation34_spill] sm:$0xff] %v11363_v20  ;;  %v4785_v20 = vld [vmem:[#allocation3 + $0x79] sm:$0xff]  ;;  %v4786_v63 = vld [vmem:[#allocation3 + $0x81] sm:$0xff]  ;;  %v4852_v42 = vmul.f32 %v15398_v5, %v4783_v46  ;;  %v4853_v35 = vmul.f32 %v15398_v5, %v4784_v57  ;;  %v11377_v6 = vadd.f32 %v4846_v43, %v11173_v4 }
 0x667   :  { %15399 = vst [vmem:[#allocation28_spill] sm:$0xff] %v11368_v28  ;;  %v4789_v28 = vld [vmem:[#allocation3 + $0xa9] sm:$0xff]  ;;  %v4854_v40 = vmul.f32 %v15398_v5, %v4785_v20  ;;  %v4855_v53 = vmul.f32 %v15398_v5, %v4786_v63  ;;  %v11382_v33 = vmul.f32 %v15398_v5, %v4787_v3  ;;  %v11385_v39 = vadd.f32 %v4847_v1, %v11189_v55  ;;  %v4791_v25 = vld [vmem:[#allocation3 + $0xc1] sm:$0xff]  ;;  %v4795_v63 = vld [vmem:[#allocation3 + $0xf1] sm:$0xff] }
 0x668   :  { %15400 = vst [vmem:[#allocation35_spill] sm:$0xff] %v11377_v6  ;;  %v4792_v46 = vld [vmem:[#allocation3 + $0xc9] sm:$0xff]  ;;  %v11388_v57 = vmul.f32 %v15398_v5, %v4788_v8  ;;  %v11393_v4 = vld [vmem:[%s15171_s4 + $0x1] ss:$0 sm:$0xff]  ;;  %v11402_v55 = vadd.f32 %v4848_v49, %v11193_v54  ;;  %v4796_v43 = vld [vmem:[#allocation3 + $0xf9] sm:$0xff] }
 0x669   :  { %15401 = vst [vmem:[#allocation36_spill] sm:$0xff] %v11385_v39  ;;  %v11396_v20 = vmul.f32 %v11393_v4, %v4789_v28  ;;  %v11399_v3 = vmul.f32 %v11393_v4, %v4790_v59  ;;  %v4794_v1 = vld [vmem:[#allocation3 + $0xe1] sm:$0xff]  ;;  %v11405_v5 = vmul.f32 %v11393_v4, %v4791_v25  ;;  %v11408_v8 = vmul.f32 %v11393_v4, %v4792_v46  ;;  %v4797_v59 = vld [vmem:[#allocation3 + $0x109] sm:$0xff]  ;;  %v4798_v6 = vld [vmem:[#allocation3 + $0x111] sm:$0xff] }
 0x66a   :  { %15402 = vst [vmem:[#allocation37_spill] sm:$0xff] %v11402_v55  ;;  %v11411_v39 = vmul.f32 %v11393_v4, %v4793_v7  ;;  %v11414_v28 = vadd.f32 %v4849_v11, %v11197_v14  ;;  %v11417_v54 = vmul.f32 %v11393_v4, %v4794_v1  ;;  %v11420_v49 = vmul.f32 %v11393_v4, %v4795_v63  ;;  %v4800_v7 = vld [vmem:[#allocation3 + $0x129] sm:$0xff]  ;;  %v4801_v55 = vld [vmem:[#allocation3 + $0x139] sm:$0xff] }
 0x66b   :  { %v11423_v25 = vmul.f32 %v11393_v4, %v4796_v43  ;;  %v11426_v46 = vadd.f32 %v4850_v22, %v11201_v36  ;;  %v11429_v14 = vmul.f32 %v11393_v4, %v4797_v59  ;;  %v11432_v11 = vmul.f32 %v11393_v4, %v4798_v6  ;;  %v4803_v43 = vld [vmem:[#allocation3 + $0x151] sm:$0xff] }
 0x66c   :  { %15403 = vst [vmem:[#allocation38_spill] sm:$0xff] %v11414_v28  ;;  %v11435_v1 = vmul.f32 %v11393_v4, %v4799_v21  ;;  %v11438_v63 = vadd.f32 %v4851_v24, %v11204_v51  ;;  %v4804_v28 = vld [vmem:[#allocation3 + $0x159] sm:$0xff]  ;;  %v11441_v36 = vmul.f32 %v11393_v4, %v4800_v7  ;;  %v11444_v22 = vmul.f32 %v11393_v4, %v4801_v55  ;;  %v4806_v21 = vld [vmem:[#allocation3 + $0x171] sm:$0xff] }
 0x66d   :  { %15404 = vst [vmem:[#allocation39_spill] sm:$0xff] %v11426_v46  ;;  %v11447_v59 = vmul.f32 %v11393_v4, %v4802_v56  ;;  %v11450_v6 = vadd.f32 %v4852_v42, %v11207_v18  ;;  %v4809_v46 = vld [vmem:[#allocation3 + $0x1c9] sm:$0xff]  ;;  %v11453_v51 = vmul.f32 %v11393_v4, %v4803_v43  ;;  %v11456_v24 = vmul.f32 %v11393_v4, %v4804_v28  ;;  %v4811_v56 = vld [vmem:[#allocation3 + $0x1e1] sm:$0xff] }
 0x66e   :  { %15405 = vst [vmem:[#allocation40_spill] sm:$0xff] %v11438_v63  ;;  %v11459_v7 = vmul.f32 %v11393_v4, %v4805_v58  ;;  %v11462_v55 = vadd.f32 %v4853_v35, %v11210_v9  ;;  %v4812_v63 = vld [vmem:[#allocation3 + $0x1e9] sm:$0xff]  ;;  %v11465_v18 = vmul.f32 %v11393_v4, %v4806_v21  ;;  %v11468_v42 = vmul.f32 %v11393_v4, %v4809_v46  ;;  %v4814_v58 = vld [vmem:[#allocation3 + $0x201] sm:$0xff] }
 0x66f   :  { %15406 = vst [vmem:[#allocation41_spill] sm:$0xff] %v11450_v6  ;;  %v11471_v43 = vmul.f32 %v11393_v4, %v4810_v10  ;;  %v11474_v28 = vadd.f32 %v4854_v40, %v11213_v47  ;;  %v4815_v6 = vld [vmem:[#allocation3 + $0x211] sm:$0xff]  ;;  %v11477_v9 = vmul.f32 %v11393_v4, %v4811_v56  ;;  %v11480_v35 = vmul.f32 %v11393_v4, %v4812_v63  ;;  %v4817_v10 = vld [vmem:[#allocation3 + $0x229] sm:$0xff] }
 0x670   :  { %15407 = vst [vmem:[#allocation42_spill] sm:$0xff] %v11462_v55  ;;  %v11483_v21 = vmul.f32 %v11393_v4, %v4813_v31  ;;  %v11486_v46 = vadd.f32 %v4855_v53, %v11216_v60  ;;  %v4818_v55 = vld [vmem:[#allocation3 + $0x231] sm:$0xff]  ;;  %v11489_v47 = vmul.f32 %v11393_v4, %v4814_v58  ;;  %v11492_v40 = vmul.f32 %v11393_v4, %v4815_v6  ;;  %v4820_v31 = vld [vmem:[#allocation3 + $0x249] sm:$0xff]  ;;  %v4822_v60 = vld [vmem:[#allocation3 + $0x261] sm:$0xff] }
 0x671   :  { %15408 = vst [vmem:[#allocation43_spill] sm:$0xff] %v11474_v28  ;;  %v11495_v56 = vmul.f32 %v11393_v4, %v4816_v13  ;;  %v11499_v63 = vadd.f32 %v11382_v33, %v11219_v41  ;;  %v4821_v28 = vld [vmem:[#allocation3 + $0x259] sm:$0xff]  ;;  %v11502_v53 = vmul.f32 %v11393_v4, %v4817_v10  ;;  %v11508_v58 = vmul.f32 %v11393_v4, %v4819_v16  ;;  %v4823_v6 = vld [vmem:[#allocation3 + $0x271] sm:$0xff]  ;;  %v4825_v41 = vld [vmem:[#allocation3 + $0x289] sm:$0xff] }
 0x672   :  { %15409 = vst [vmem:[#allocation44_spill] sm:$0xff] %v11483_v21  ;;  %15410 = vst [vmem:[#allocation45_spill] sm:$0xff] %v11486_v46  ;;  %v11505_v46 = vmul.f32 %v11393_v4, %v4818_v55  ;;  %v11512_v13 = vadd.f32 %v11388_v57, %v11222_v15  ;;  %v4889_v33 = vmul.f32 %v11393_v4, %v4820_v31  ;;  %v4827_v16 = vld [vmem:[#allocation3 + $0x2a1] sm:$0xff] }
 0x673   :  { %15411 = vst [vmem:[#allocation46_spill] sm:$0xff] %v11489_v47  ;;  %15412 = vst [vmem:[#allocation47_spill] sm:$0xff] %v11492_v40  ;;  %v4891_v10 = vmul.f32 %v11393_v4, %v4822_v60  ;;  %v11519_v55 = vadd.f32 %v11396_v20, %v11225_v45  ;;  %v4894_v57 = vmul.f32 %v11393_v4, %v4825_v41  ;;  %v4831_v60 = vld [vmem:[#allocation3 + $0x2d1] sm:$0xff] }
 0x674   :  { %15413 = vst [vmem:[#allocation48_spill] sm:$0xff] %v11495_v56  ;;  %15414 = vst [vmem:[#allocation49_spill] sm:$0xff] %v11499_v63  ;;  %v4824_v56 = vld [vmem:[#allocation3 + $0x279] sm:$0xff]  ;;  %v4890_v63 = vmul.f32 %v11393_v4, %v4821_v28  ;;  %v11526_v31 = vadd.f32 %v11399_v3, %v11228_v2  ;;  %v4896_v45 = vmul.f32 %v11393_v4, %v4827_v16  ;;  %v4834_v41 = vld [vmem:[#allocation3 + $0x2f1] sm:$0xff] }
 0x675   :  { %15415 = vst [vmem:[#allocation50_spill] sm:$0xff] %v11502_v53  ;;  %15416 = vst [vmem:[#allocation51_spill] sm:$0xff] %v11505_v46  ;;  %v4826_v46 = vld [vmem:[#allocation3 + $0x291] sm:$0xff]  ;;  %v4892_v53 = vmul.f32 %v11393_v4, %v4823_v6  ;;  %v4893_v15 = vmul.f32 %v11393_v4, %v4824_v56  ;;  %v4829_v28 = vld [vmem:[#allocation3 + $0x2b9] sm:$0xff]  ;;  %v11533_v6 = vadd.f32 %v11405_v5, %v11231_v19 }
 0x676   :  { %15417 = vst [vmem:[#allocation52_spill] sm:$0xff] %v11508_v58  ;;  %15418 = vst [vmem:[#allocation53_spill] sm:$0xff] %v11512_v13  ;;  %v4828_v58 = vld [vmem:[#allocation3 + $0x2a9] sm:$0xff]  ;;  %v4830_v13 = vld [vmem:[#allocation3 + $0x2c1] sm:$0xff]  ;;  %v4895_v40 = vmul.f32 %v11393_v4, %v4826_v46  ;;  %v4898_v47 = vmul.f32 %v11393_v4, %v4829_v28  ;;  %v4900_v3 = vmul.f32 %v11393_v4, %v4831_v60 }
 0x677   :  { %15419 = vst [vmem:[#allocation54_spill] sm:$0xff] %v11519_v55  ;;  %15420 = vst [vmem:[#allocation55_spill] sm:$0xff] %v11526_v31  ;;  %v4897_v20 = vmul.f32 %v11393_v4, %v4828_v58  ;;  %v4832_v56 = vld [vmem:[#allocation3 + $0x2d9] sm:$0xff]  ;;  %v4833_v55 = vld [vmem:[#allocation3 + $0x2e9] sm:$0xff]  ;;  %v4899_v2 = vmul.f32 %v11393_v4, %v4830_v13  ;;  %v11540_v46 = vadd.f32 %v11408_v8, %v11234_v23 }
 0x678   :  { %15421 = vst [vmem:[#allocation56_spill] sm:$0xff] %v11533_v6  ;;  %v4835_v16 = vld [vmem:[#allocation3 + $0x301] sm:$0xff]  ;;  %v4836_v31 = vld [vmem:[#allocation3 + $0x309] sm:$0xff]  ;;  %v4837_v58 = vld [vmem:[#allocation3 + $0x319] sm:$0xff]  ;;  %v4901_v21 = vmul.f32 %v11393_v4, %v4832_v56  ;;  %v4902_v19 = vmul.f32 %v11393_v4, %v4833_v55  ;;  %v4903_v5 = vmul.f32 %v11393_v4, %v4834_v41  ;;  %v11547_v28 = vadd.f32 %v11411_v39, %v11237_v62 }
 0x679   :  { %v4838_v13 = vld [vmem:[#allocation3 + $0x321] sm:$0xff]  ;;  %v4904_v60 = vmul.f32 %v11393_v4, %v4835_v16  ;;  %v4905_v6 = vmul.f32 %v11393_v4, %v4836_v31  ;;  %v4906_v23 = vmul.f32 %v11393_v4, %v4837_v58  ;;  %v11554_v8 = vadd.f32 %v11417_v54, %v11240_v29 }
 0x67a   :  { %v4907_v56 = vmul.f32 %v11393_v4, %v4838_v13  ;;  %v11559_v55 = vadd.f32 %v11420_v49, %v11243_v27  ;;  %v11563_v62 = vadd.f32 %v11423_v25, %v11246_v17  ;;  %v11567_v39 = vadd.f32 %v11429_v14, %v11249_v50  ;;  %v15430_v4 = vld [vmem:[#allocation18_spill] sm:$0xff]  ;;  %v15432_v54 = vld [vmem:[#allocation21_spill] sm:$0xff]  ;;  %v15433_v49 = vld [vmem:[#allocation44_spill] sm:$0xff] }
 0x67b   :  { %v11571_v31 = vadd.f32 %v11432_v11, %v11252_v52  ;;  %v11575_v29 = vadd.f32 %v11435_v1, %v11255_v12  ;;  %v11579_v27 = vadd.f32 %v11441_v36, %v11258_v61  ;;  %v11583_v17 = vadd.f32 %v11444_v22, %v11261_v38  ;;  %v15435_v25 = vld [vmem:[#allocation20_spill] sm:$0xff]  ;;  %v15436_v14 = vld [vmem:[#allocation46_spill] sm:$0xff]  ;;  %v15438_v11 = vld [vmem:[#allocation23_spill] sm:$0xff] }
 0x67c   :  { %v11587_v50 = vadd.f32 %v11447_v59, %v11264_v37  ;;  %v11591_v52 = vadd.f32 %v11453_v51, %v11267_v26  ;;  %v11595_v12 = vadd.f32 %v11456_v24, %v11270_v48  ;;  %v11599_v61 = vadd.f32 %v11459_v7, %v11273_v44  ;;  %v15439_v1 = vld [vmem:[#allocation47_spill] sm:$0xff]  ;;  %v15442_v22 = vld [vmem:[#allocation48_spill] sm:$0xff]  ;;  %v15444_v59 = vld [vmem:[#allocation25_spill] sm:$0xff] }
 0x67d   :  { %v11603_v38 = vadd.f32 %v11465_v18, %v11276_v32  ;;  %v11607_v37 = vadd.f32 %v11468_v42, %v11279_v30  ;;  %v11611_v26 = vadd.f32 %v11471_v43, %v11282_v0  ;;  %v11615_v48 = vadd.f32 %v11477_v9, %v11285_v34  ;;  %v15441_v36 = vld [vmem:[#allocation31_spill] sm:$0xff]  ;;  %v15445_v51 = vld [vmem:[#allocation50_spill] sm:$0xff]  ;;  %v15447_v7 = vld [vmem:[#allocation4_spill] sm:$0xff] }
 0x67e   :  { %15422 = vst [vmem:[#allocation57_spill] sm:$0xff] %v11587_v50  ;;  %15423 = vst [vmem:[#allocation58_spill] sm:$0xff] %v11591_v52  ;;  %v11619_v44 = vadd.f32 %v11480_v35, %v15430_v4  ;;  %v11623_v32 = vadd.f32 %v15433_v49, %v15432_v54  ;;  %v11627_v30 = vadd.f32 %v15436_v14, %v15435_v25  ;;  %v15448_v18 = vld [vmem:[#allocation51_spill] sm:$0xff]  ;;  %v15450_v43 = vld [vmem:[#allocation6_spill] sm:$0xff] }
 0x67f   :  { %15424 = vst [vmem:[#allocation59_spill] sm:$0xff] %v11595_v12  ;;  %15425 = vst [vmem:[#allocation60_spill] sm:$0xff] %v11599_v61  ;;  %v11631_v0 = vadd.f32 %v15439_v1, %v15438_v11  ;;  %v11635_v34 = vadd.f32 %v15442_v22, %v15441_v36  ;;  %v11639_v24 = vadd.f32 %v15445_v51, %v15444_v59  ;;  %v15451_v9 = vld [vmem:[#allocation52_spill] sm:$0xff]  ;;  %v15453_v16 = vld [vmem:[#allocation5_spill] sm:$0xff] }
 0x680   :  { %15426 = vst [vmem:[#allocation61_spill] sm:$0xff] %v11603_v38  ;;  %15427 = vst [vmem:[#allocation62_spill] sm:$0xff] %v11607_v37  ;;  %v11643_v42 = vadd.f32 %v15448_v18, %v15447_v7  ;;  %v11647_v35 = vadd.f32 %v15451_v9, %v15450_v43  ;;  %v4974_v41 = vld [vmem:[#allocation3 + $0x1a] sm:$0xff]  ;;  %v11650_v58 = vadd.f32 %v4889_v33, %v15453_v16  ;;  %v15459_v25 = vld [vmem:[#allocation9_spill] sm:$0xff] }
 0x681   :  { %15428 = vst [vmem:[#allocation63_spill] sm:$0xff] %v11611_v26  ;;  %15429 = vst [vmem:[#allocation64_spill] sm:$0xff] %v11615_v48  ;;  %v15455_v13 = vld [vmem:[#allocation8_spill] sm:$0xff]  ;;  %v15457_v54 = vld [vmem:[#allocation7_spill] sm:$0xff]  ;;  %v11659_v14 = vadd.f32 %v4892_v53, %v15459_v25 }
 0x682   :  { %15431 = vst [vmem:[#allocation18_spill] sm:$0xff] %v11619_v44  ;;  %15434 = vst [vmem:[#allocation21_spill] sm:$0xff] %v11623_v32  ;;  %v11653_v4 = vadd.f32 %v4890_v63, %v15455_v13  ;;  %v11656_v49 = vadd.f32 %v4891_v10, %v15457_v54  ;;  %v4975_v11 = vld [vmem:[#allocation3 + $0x22] sm:$0xff]  ;;  %v4976_v1 = vld [vmem:[#allocation3 + $0x32] sm:$0xff] }
 0x683   :  { %15437 = vst [vmem:[#allocation44_spill] sm:$0xff] %v11627_v30  ;;  %15440 = vst [vmem:[#allocation20_spill] sm:$0xff] %v11631_v0  ;;  %v4977_v36 = vld [vmem:[#allocation3 + $0x3a] sm:$0xff]  ;;  %v4978_v22 = vld [vmem:[#allocation3 + $0x4a] sm:$0xff] }
 0x684   :  { %15443 = vst [vmem:[#allocation46_spill] sm:$0xff] %v11635_v34  ;;  %15446 = vst [vmem:[#allocation23_spill] sm:$0xff] %v11639_v24  ;;  %v15461_v59 = vld [vmem:[#allocation11_spill] sm:$0xff]  ;;  %v15463_v7 = vld [vmem:[#allocation10_spill] sm:$0xff] }
 0x685   :  { %15449 = vst [vmem:[#allocation47_spill] sm:$0xff] %v11643_v42  ;;  %15452 = vst [vmem:[#allocation31_spill] sm:$0xff] %v11647_v35  ;;  %v11662_v51 = vadd.f32 %v4893_v15, %v15461_v59  ;;  %v11665_v18 = vadd.f32 %v4894_v57, %v15463_v7  ;;  %v15465_v33 = vld [vmem:[#allocation13_spill] sm:$0xff]  ;;  %v15467_v63 = vld [vmem:[#allocation12_spill] sm:$0xff] }
 0x686   :  { %15454 = vst [vmem:[#allocation48_spill] sm:$0xff] %v11650_v58  ;;  %15456 = vst [vmem:[#allocation25_spill] sm:$0xff] %v11653_v4  ;;  %v11668_v43 = vadd.f32 %v4895_v40, %v15465_v33  ;;  %v11671_v9 = vadd.f32 %v4896_v45, %v15467_v63  ;;  %v4979_v10 = vld [vmem:[#allocation3 + $0x52] sm:$0xff]  ;;  %v4980_v16 = vld [vmem:[#allocation3 + $0x62] sm:$0xff] }
 0x687   :  { %15458 = vst [vmem:[#allocation50_spill] sm:$0xff] %v11656_v49  ;;  %15460 = vst [vmem:[#allocation4_spill] sm:$0xff] %v11659_v14  ;;  %v4981_v53 = vld [vmem:[#allocation3 + $0x6a] sm:$0xff]  ;;  %v4982_v13 = vld [vmem:[#allocation3 + $0x7a] sm:$0xff] }
 0x688   :  { %15462 = vst [vmem:[#allocation51_spill] sm:$0xff] %v11662_v51  ;;  %15464 = vst [vmem:[#allocation6_spill] sm:$0xff] %v11665_v18  ;;  %v15469_v54 = vld [vmem:[#allocation15_spill] sm:$0xff]  ;;  %v15471_v14 = vld [vmem:[#allocation29_spill] sm:$0xff] }
 0x689   :  { %15466 = vst [vmem:[#allocation52_spill] sm:$0xff] %v11668_v43  ;;  %15468 = vst [vmem:[#allocation5_spill] sm:$0xff] %v11671_v9  ;;  %v11674_v25 = vadd.f32 %v4897_v20, %v15469_v54  ;;  %v11677_v49 = vadd.f32 %v4898_v47, %v15471_v14  ;;  %v15473_v15 = vld [vmem:[#allocation26_spill] sm:$0xff]  ;;  %v4983_v40 = vld [vmem:[#allocation3 + $0x82] sm:$0xff] }
 0x68a   :  { %v11680_v59 = vadd.f32 %v4899_v2, %v15473_v15  ;;  %v15475_v57 = vld [vmem:[#allocation22_spill] sm:$0xff]  ;;  %v4985_v45 = vld [vmem:[#allocation3 + $0x9a] sm:$0xff]  ;;  %v15483_v47 = vld [vmem:[#allocation33_spill] sm:$0xff] }
 0x68b   :  { %15470 = vst [vmem:[#allocation8_spill] sm:$0xff] %v11674_v25  ;;  %15472 = vst [vmem:[#allocation7_spill] sm:$0xff] %v11677_v49  ;;  %v11683_v7 = vadd.f32 %v4900_v3, %v15475_v57  ;;  %v4984_v33 = vld [vmem:[#allocation3 + $0x92] sm:$0xff]  ;;  %v4986_v63 = vld [vmem:[#allocation3 + $0xaa] sm:$0xff]  ;;  %v11695_v14 = vadd.f32 %v4904_v60, %v15483_v47 }
 0x68c   :  { %15474 = vst [vmem:[#allocation9_spill] sm:$0xff] %v11680_v59  ;;  %v15477_v9 = vld [vmem:[#allocation30_spill] sm:$0xff]  ;;  %v15479_v18 = vld [vmem:[#allocation32_spill] sm:$0xff] }
 0x68d   :  { %15476 = vst [vmem:[#allocation11_spill] sm:$0xff] %v11683_v7  ;;  %v11686_v43 = vadd.f32 %v4901_v21, %v15477_v9  ;;  %v11689_v51 = vadd.f32 %v4902_v19, %v15479_v18  ;;  %v15481_v20 = vld [vmem:[#allocation24_spill] sm:$0xff]  ;;  %15484 = vst [vmem:[#allocation15_spill] sm:$0xff] %v11695_v14  ;;  %v4987_v2 = vld [vmem:[#allocation3 + $0xb2] sm:$0xff] }
 0x68e   :  { %v11692_v54 = vadd.f32 %v4903_v5, %v15481_v20  ;;  %v4988_v15 = vld [vmem:[#allocation3 + $0xc2] sm:$0xff]  ;;  %v4989_v3 = vld [vmem:[#allocation3 + $0xca] sm:$0xff]  ;;  %v4990_v57 = vld [vmem:[#allocation3 + $0xda] sm:$0xff] }
 0x68f   :  { %15478 = vst [vmem:[#allocation10_spill] sm:$0xff] %v11686_v43  ;;  %15480 = vst [vmem:[#allocation13_spill] sm:$0xff] %v11689_v51  ;;  %v15485_v7 = vld [vmem:[#allocation27_spill] sm:$0xff]  ;;  %v15487_v49 = vld [vmem:[#allocation34_spill] sm:$0xff] }
 0x690   :  { %15482 = vst [vmem:[#allocation12_spill] sm:$0xff] %v11692_v54  ;;  %v11698_v59 = vadd.f32 %v4905_v6, %v15485_v7  ;;  %v11701_v25 = vadd.f32 %v4906_v23, %v15487_v49  ;;  %v15489_v21 = vld [vmem:[#allocation28_spill] sm:$0xff]  ;;  %v4992_v18 = vld [vmem:[#allocation3 + $0xf2] sm:$0xff]  ;;  %v4994_v20 = vld [vmem:[#allocation3 + $0x10a] sm:$0xff] }
 0x691   :  { %v11704_v9 = vadd.f32 %v4907_v56, %v15489_v21  ;;  %v4991_v19 = vld [vmem:[#allocation3 + $0xe2] sm:$0xff]  ;;  %v4993_v5 = vld [vmem:[#allocation3 + $0xfa] sm:$0xff]  ;;  %v4995_v6 = vld [vmem:[#allocation3 + $0x112] sm:$0xff] }
 0x692   :  { %15486 = vst [vmem:[#allocation29_spill] sm:$0xff] %v11698_v59  ;;  %15488 = vst [vmem:[#allocation26_spill] sm:$0xff] %v11701_v25  ;;  %v11709_v60 = vld [vmem:[%s15171_s4 + $0x2] ss:$0 sm:$0xff]  ;;  %v4997_v59 = vld [vmem:[#allocation3 + $0x12a] sm:$0xff] }
 0x693   :  { %15490 = vst [vmem:[#allocation22_spill] sm:$0xff] %v11704_v9  ;;  %v11712_v47 = vmul.f32 %v11709_v60, %v4974_v41  ;;  %v4996_v7 = vld [vmem:[#allocation3 + $0x122] sm:$0xff]  ;;  %v4998_v23 = vld [vmem:[#allocation3 + $0x13a] sm:$0xff]  ;;  %v11715_v49 = vmul.f32 %v11709_v60, %v4975_v11  ;;  %v11718_v56 = vmul.f32 %v11709_v60, %v4976_v1  ;;  %v11721_v21 = vmul.f32 %v11709_v60, %v4977_v36  ;;  %v5000_v14 = vld [vmem:[#allocation3 + $0x152] sm:$0xff] }
 0x694   :  { %v11724_v9 = vmul.f32 %v11709_v60, %v4978_v22  ;;  %v4999_v25 = vld [vmem:[#allocation3 + $0x142] sm:$0xff]  ;;  %v5001_v41 = vld [vmem:[#allocation3 + $0x15a] sm:$0xff]  ;;  %v5002_v54 = vld [vmem:[#allocation3 + $0x16a] sm:$0xff]  ;;  %v11727_v51 = vmul.f32 %v11709_v60, %v4979_v10  ;;  %v11730_v43 = vmul.f32 %v11709_v60, %v4980_v16  ;;  %v11733_v11 = vmul.f32 %v11709_v60, %v4981_v53 }
 0x695   :  { %v11736_v1 = vmul.f32 %v11709_v60, %v4982_v13  ;;  %v5003_v36 = vld [vmem:[#allocation3 + $0x172] sm:$0xff]  ;;  %v5006_v4 = vld [vmem:[#allocation3 + $0x1ca] sm:$0xff]  ;;  %v5008_v58 = vld [vmem:[#allocation3 + $0x1e2] sm:$0xff]  ;;  %v11739_v35 = vmul.f32 %v11709_v60, %v4983_v40  ;;  %v11742_v42 = vmul.f32 %v11709_v60, %v4984_v33  ;;  %v11745_v10 = vmul.f32 %v11709_v60, %v4985_v45 }
 0x696   :  { %v5007_v22 = vld [vmem:[#allocation3 + $0x1d2] sm:$0xff]  ;;  %v11748_v16 = vmul.f32 %v11709_v60, %v4986_v63  ;;  %v5009_v53 = vld [vmem:[#allocation3 + $0x1ea] sm:$0xff]  ;;  %v5010_v24 = vld [vmem:[#allocation3 + $0x1fa] sm:$0xff]  ;;  %v11751_v34 = vmul.f32 %v11709_v60, %v4987_v2  ;;  %v11754_v0 = vmul.f32 %v11709_v60, %v4988_v15  ;;  %v11757_v40 = vmul.f32 %v11709_v60, %v4989_v3 }
 0x697   :  { %v5011_v13 = vld [vmem:[#allocation3 + $0x202] sm:$0xff]  ;;  %v11760_v33 = vmul.f32 %v11709_v60, %v4990_v57  ;;  %v5012_v45 = vld [vmem:[#allocation3 + $0x212] sm:$0xff]  ;;  %v5013_v30 = vld [vmem:[#allocation3 + $0x21a] sm:$0xff]  ;;  %v11763_v63 = vmul.f32 %v11709_v60, %v4991_v19  ;;  %v11766_v44 = vmul.f32 %v11709_v60, %v4992_v18  ;;  %v11769_v2 = vmul.f32 %v11709_v60, %v4993_v5 }
 0x698   :  { %v5014_v32 = vld [vmem:[#allocation3 + $0x22a] sm:$0xff]  ;;  %v11772_v15 = vmul.f32 %v11709_v60, %v4994_v20  ;;  %v5015_v3 = vld [vmem:[#allocation3 + $0x232] sm:$0xff]  ;;  %v5016_v48 = vld [vmem:[#allocation3 + $0x242] sm:$0xff]  ;;  %v11775_v57 = vmul.f32 %v11709_v60, %v4995_v6  ;;  %v11778_v37 = vmul.f32 %v11709_v60, %v4996_v7  ;;  %v11781_v19 = vmul.f32 %v11709_v60, %v4997_v59 }
 0x699   :  { %v5017_v26 = vld [vmem:[#allocation3 + $0x24a] sm:$0xff]  ;;  %v11784_v18 = vmul.f32 %v11709_v60, %v4998_v23  ;;  %v5018_v5 = vld [vmem:[#allocation3 + $0x25a] sm:$0xff]  ;;  %v5019_v38 = vld [vmem:[#allocation3 + $0x262] sm:$0xff]  ;;  %v11787_v20 = vmul.f32 %v11709_v60, %v4999_v25  ;;  %v11790_v12 = vmul.f32 %v11709_v60, %v5000_v14  ;;  %v11793_v6 = vmul.f32 %v11709_v60, %v5001_v41 }
 0x69a   :  { %v5020_v61 = vld [vmem:[#allocation3 + $0x272] sm:$0xff]  ;;  %v11796_v7 = vmul.f32 %v11709_v60, %v5002_v54  ;;  %v5021_v59 = vld [vmem:[#allocation3 + $0x27a] sm:$0xff]  ;;  %v5022_v52 = vld [vmem:[#allocation3 + $0x28a] sm:$0xff]  ;;  %v11799_v23 = vmul.f32 %v11709_v60, %v5003_v36  ;;  %v11805_v25 = vmul.f32 %v11709_v60, %v5007_v22  ;;  %v11808_v14 = vmul.f32 %v11709_v60, %v5008_v58 }
 0x69b   :  { %15491 = vst [vmem:[#allocation30_spill] sm:$0xff] %v11784_v18  ;;  %15492 = vst [vmem:[#allocation32_spill] sm:$0xff] %v11790_v12  ;;  %v5023_v50 = vld [vmem:[#allocation3 + $0x292] sm:$0xff]  ;;  %v11802_v18 = vmul.f32 %v11709_v60, %v5006_v4  ;;  %v5024_v41 = vld [vmem:[#allocation3 + $0x2a2] sm:$0xff]  ;;  %v11811_v54 = vmul.f32 %v11709_v60, %v5009_v53  ;;  %v11817_v36 = vmul.f32 %v11709_v60, %v5011_v13 }
 0x69c   :  { %15493 = vst [vmem:[#allocation24_spill] sm:$0xff] %v11793_v6  ;;  %15494 = vst [vmem:[#allocation33_spill] sm:$0xff] %v11796_v7  ;;  %v5025_v6 = vld [vmem:[#allocation3 + $0x2aa] sm:$0xff]  ;;  %v5026_v12 = vld [vmem:[#allocation3 + $0x2ba] sm:$0xff]  ;;  %v11814_v7 = vmul.f32 %v11709_v60, %v5010_v24  ;;  %v11820_v4 = vmul.f32 %v11709_v60, %v5012_v45  ;;  %v11823_v58 = vmul.f32 %v11709_v60, %v5013_v30 }
 0x69d   :  { %15495 = vst [vmem:[#allocation27_spill] sm:$0xff] %v11802_v18  ;;  %15496 = vst [vmem:[#allocation34_spill] sm:$0xff] %v11805_v25  ;;  %v5027_v22 = vld [vmem:[#allocation3 + $0x2c2] sm:$0xff]  ;;  %v5028_v25 = vld [vmem:[#allocation3 + $0x2d2] sm:$0xff]  ;;  %v11829_v53 = vmul.f32 %v11709_v60, %v5015_v3  ;;  %v11832_v24 = vmul.f32 %v11709_v60, %v5016_v48  ;;  %v11835_v45 = vmul.f32 %v11709_v60, %v5017_v26 }
 0x69e   :  { %15497 = vst [vmem:[#allocation28_spill] sm:$0xff] %v11808_v14  ;;  %15498 = vst [vmem:[#allocation65_spill] sm:$0xff] %v11814_v7  ;;  %v5029_v18 = vld [vmem:[#allocation3 + $0x2da] sm:$0xff]  ;;  %v11826_v14 = vmul.f32 %v11709_v60, %v5014_v32  ;;  %v5030_v13 = vld [vmem:[#allocation3 + $0x2ea] sm:$0xff]  ;;  %v11841_v30 = vmul.f32 %v11709_v60, %v5019_v38  ;;  %v11844_v32 = vmul.f32 %v11709_v60, %v5020_v61 }
 0x69f   :  { %15499 = vst [vmem:[#allocation66_spill] sm:$0xff] %v11817_v36  ;;  %15500 = vst [vmem:[#allocation67_spill] sm:$0xff] %v11820_v4  ;;  %v5031_v36 = vld [vmem:[#allocation3 + $0x2f2] sm:$0xff]  ;;  %v5032_v7 = vld [vmem:[#allocation3 + $0x302] sm:$0xff]  ;;  %v11838_v4 = vmul.f32 %v11709_v60, %v5018_v5  ;;  %v11847_v48 = vmul.f32 %v11709_v60, %v5021_v59  ;;  %v11853_v26 = vmul.f32 %v11709_v60, %v5023_v50 }
 0x6a0   :  { %15501 = vst [vmem:[#allocation68_spill] sm:$0xff] %v11826_v14  ;;  %15502 = vst [vmem:[#allocation69_spill] sm:$0xff] %v11829_v53  ;;  %v5033_v3 = vld [vmem:[#allocation3 + $0x30a] sm:$0xff]  ;;  %v5034_v53 = vld [vmem:[#allocation3 + $0x31a] sm:$0xff]  ;;  %v11856_v5 = vmul.f32 %v11709_v60, %v5024_v41  ;;  %v11859_v38 = vmul.f32 %v11709_v60, %v5025_v6  ;;  %v11862_v61 = vmul.f32 %v11709_v60, %v5026_v12 }
 0x6a1   :  { %15503 = vst [vmem:[#allocation70_spill] sm:$0xff] %v11832_v24  ;;  %15504 = vst [vmem:[#allocation71_spill] sm:$0xff] %v11844_v32  ;;  %v5035_v14 = vld [vmem:[#allocation3 + $0x322] sm:$0xff]  ;;  %v11850_v24 = vmul.f32 %v11709_v60, %v5022_v52  ;;  %v11865_v32 = vmul.f32 %v11709_v60, %v5027_v22  ;;  %v11868_v59 = vmul.f32 %v11709_v60, %v5028_v25 }
 0x6a2   :  { %v11871_v52 = vmul.f32 %v11709_v60, %v5029_v18  ;;  %v11874_v50 = vmul.f32 %v11709_v60, %v5030_v13  ;;  %v11877_v41 = vmul.f32 %v11709_v60, %v5031_v36  ;;  %v11880_v6 = vmul.f32 %v11709_v60, %v5032_v7  ;;  %v15508_v18 = vld [vmem:[#allocation35_spill] sm:$0xff]  ;;  %v15509_v13 = vld [vmem:[#allocation36_spill] sm:$0xff] }
 0x6a3   :  { %v11883_v12 = vmul.f32 %v11709_v60, %v5033_v3  ;;  %v11886_v22 = vmul.f32 %v11709_v60, %v5034_v53  ;;  %v11889_v25 = vmul.f32 %v11709_v60, %v5035_v14  ;;  %v11897_v36 = vadd.f32 %v11715_v49, %v15509_v13  ;;  %v15511_v3 = vld [vmem:[#allocation38_spill] sm:$0xff]  ;;  %v15512_v53 = vld [vmem:[#allocation39_spill] sm:$0xff]  ;;  %v15513_v14 = vld [vmem:[#allocation40_spill] sm:$0xff] }
 0x6a4   :  { %15505 = vst [vmem:[#allocation72_spill] sm:$0xff] %v11871_v52  ;;  %15506 = vst [vmem:[#allocation73_spill] sm:$0xff] %v11877_v41  ;;  %v11893_v52 = vadd.f32 %v11712_v47, %v15508_v18  ;;  %v15510_v41 = vld [vmem:[#allocation37_spill] sm:$0xff]  ;;  %v11909_v60 = vadd.f32 %v11724_v9, %v15512_v53  ;;  %v11913_v47 = vadd.f32 %v11727_v51, %v15513_v14  ;;  %v15515_v13 = vld [vmem:[#allocation42_spill] sm:$0xff] }
 0x6a5   :  { %15507 = vst [vmem:[#allocation74_spill] sm:$0xff] %v11883_v12  ;;  %v11901_v7 = vadd.f32 %v11718_v56, %v15510_v41  ;;  %v11905_v12 = vadd.f32 %v11721_v21, %v15511_v3  ;;  %v15514_v18 = vld [vmem:[#allocation41_spill] sm:$0xff]  ;;  %v11921_v56 = vadd.f32 %v11733_v11, %v15515_v13  ;;  %v15516_v41 = vld [vmem:[#allocation43_spill] sm:$0xff] }
 0x6a6   :  { %v11917_v49 = vadd.f32 %v11730_v43, %v15514_v18  ;;  %v11925_v21 = vadd.f32 %v11736_v1, %v15516_v41  ;;  %v15517_v3 = vld [vmem:[#allocation45_spill] sm:$0xff]  ;;  %v15520_v18 = vld [vmem:[#allocation54_spill] sm:$0xff]  ;;  %v15521_v13 = vld [vmem:[#allocation55_spill] sm:$0xff] }
 0x6a7   :  { %v11929_v9 = vadd.f32 %v11739_v35, %v15517_v3  ;;  %v15518_v53 = vld [vmem:[#allocation49_spill] sm:$0xff]  ;;  %v11941_v11 = vadd.f32 %v11748_v16, %v15520_v18  ;;  %v11945_v1 = vadd.f32 %v11751_v34, %v15521_v13  ;;  %v15522_v41 = vld [vmem:[#allocation56_spill] sm:$0xff]  ;;  %v11961_v16 = vadd.f32 %v11763_v63, %v11554_v8  ;;  %v15547_v3 = vld [vmem:[#allocation62_spill] sm:$0xff] }
 0x6a8   :  { %v11933_v51 = vadd.f32 %v11742_v42, %v15518_v53  ;;  %v15519_v14 = vld [vmem:[#allocation53_spill] sm:$0xff]  ;;  %v11949_v35 = vadd.f32 %v11754_v0, %v15522_v41  ;;  %v11953_v42 = vadd.f32 %v11757_v40, %v11540_v46  ;;  %v11965_v34 = vadd.f32 %v11766_v44, %v11559_v55  ;;  %v15532_v44 = vld [vmem:[#allocation30_spill] sm:$0xff]  ;;  %v15537_v63 = vld [vmem:[#allocation32_spill] sm:$0xff] }
 0x6a9   :  { %v11937_v43 = vadd.f32 %v11745_v10, %v15519_v14  ;;  %v11957_v10 = vadd.f32 %v11760_v33, %v11547_v28  ;;  %15525 = vst [vmem:[#allocation37_spill] sm:$0xff] %v11961_v16  ;;  %v11969_v0 = vadd.f32 %v11769_v2, %v11563_v62  ;;  %v11973_v46 = vadd.f32 %v11772_v15, %v11567_v39  ;;  %v15534_v40 = vld [vmem:[#allocation57_spill] sm:$0xff]  ;;  %v15536_v33 = vld [vmem:[#allocation58_spill] sm:$0xff]  ;;  %v15539_v2 = vld [vmem:[#allocation59_spill] sm:$0xff] }
 0x6aa   :  { %15523 = vst [vmem:[#allocation35_spill] sm:$0xff] %v11953_v42  ;;  %15526 = vst [vmem:[#allocation38_spill] sm:$0xff] %v11965_v34  ;;  %v11977_v28 = vadd.f32 %v11775_v57, %v11571_v31  ;;  %v11981_v8 = vadd.f32 %v11778_v37, %v11575_v29  ;;  %v11985_v55 = vadd.f32 %v11781_v19, %v11579_v27  ;;  %v15540_v15 = vld [vmem:[#allocation24_spill] sm:$0xff]  ;;  %v15543_v57 = vld [vmem:[#allocation33_spill] sm:$0xff] }
 0x6ab   :  { %15524 = vst [vmem:[#allocation36_spill] sm:$0xff] %v11957_v10  ;;  %15527 = vst [vmem:[#allocation39_spill] sm:$0xff] %v11969_v0  ;;  %v11989_v62 = vadd.f32 %v15532_v44, %v11583_v17  ;;  %v11993_v39 = vadd.f32 %v11787_v20, %v15534_v40  ;;  %v11997_v31 = vadd.f32 %v15537_v63, %v15536_v33  ;;  %v15542_v37 = vld [vmem:[#allocation60_spill] sm:$0xff]  ;;  %v15545_v19 = vld [vmem:[#allocation61_spill] sm:$0xff] }
 0x6ac   :  { %15528 = vst [vmem:[#allocation40_spill] sm:$0xff] %v11973_v46  ;;  %15529 = vst [vmem:[#allocation41_spill] sm:$0xff] %v11977_v28  ;;  %v12001_v29 = vadd.f32 %v15540_v15, %v15539_v2  ;;  %v12005_v27 = vadd.f32 %v15543_v57, %v15542_v37  ;;  %v12009_v17 = vadd.f32 %v11799_v23, %v15545_v19  ;;  %v15548_v53 = vld [vmem:[#allocation27_spill] sm:$0xff]  ;;  %v15551_v18 = vld [vmem:[#allocation34_spill] sm:$0xff] }
 0x6ad   :  { %15530 = vst [vmem:[#allocation42_spill] sm:$0xff] %v11981_v8  ;;  %15531 = vst [vmem:[#allocation43_spill] sm:$0xff] %v11985_v55  ;;  %v12013_v20 = vadd.f32 %v15548_v53, %v15547_v3  ;;  %v15550_v14 = vld [vmem:[#allocation63_spill] sm:$0xff]  ;;  %v15553_v41 = vld [vmem:[#allocation64_spill] sm:$0xff] }
 0x6ae   :  { %15533 = vst [vmem:[#allocation45_spill] sm:$0xff] %v11989_v62  ;;  %15535 = vst [vmem:[#allocation49_spill] sm:$0xff] %v11993_v39  ;;  %v12017_v13 = vadd.f32 %v15551_v18, %v15550_v14  ;;  %v15554_v44 = vld [vmem:[#allocation28_spill] sm:$0xff]  ;;  %v15556_v33 = vld [vmem:[#allocation18_spill] sm:$0xff] }
 0x6af   :  { %15538 = vst [vmem:[#allocation53_spill] sm:$0xff] %v11997_v31  ;;  %15541 = vst [vmem:[#allocation54_spill] sm:$0xff] %v12001_v29  ;;  %v12021_v40 = vadd.f32 %v15554_v44, %v15553_v41  ;;  %v12025_v63 = vadd.f32 %v11811_v54, %v15556_v33  ;;  %v15558_v2 = vld [vmem:[#allocation21_spill] sm:$0xff]  ;;  %v15561_v37 = vld [vmem:[#allocation44_spill] sm:$0xff] }
 0x6b0   :  { %15544 = vst [vmem:[#allocation55_spill] sm:$0xff] %v12005_v27  ;;  %15546 = vst [vmem:[#allocation56_spill] sm:$0xff] %v12009_v17  ;;  %v15559_v15 = vld [vmem:[#allocation65_spill] sm:$0xff]  ;;  %v15562_v57 = vld [vmem:[#allocation66_spill] sm:$0xff] }
 0x6b1   :  { %15549 = vst [vmem:[#allocation30_spill] sm:$0xff] %v12013_v20  ;;  %15552 = vst [vmem:[#allocation57_spill] sm:$0xff] %v12017_v13  ;;  %v12029_v23 = vadd.f32 %v15559_v15, %v15558_v2  ;;  %v12033_v19 = vadd.f32 %v15562_v57, %v15561_v37  ;;  %v15564_v3 = vld [vmem:[#allocation20_spill] sm:$0xff]  ;;  %v15565_v53 = vld [vmem:[#allocation67_spill] sm:$0xff] }
 0x6b2   :  { %15555 = vst [vmem:[#allocation58_spill] sm:$0xff] %v12021_v40  ;;  %15557 = vst [vmem:[#allocation32_spill] sm:$0xff] %v12025_v63  ;;  %v12037_v14 = vadd.f32 %v15565_v53, %v15564_v3  ;;  %v15567_v18 = vld [vmem:[#allocation46_spill] sm:$0xff]  ;;  %v15569_v44 = vld [vmem:[#allocation23_spill] sm:$0xff] }
 0x6b3   :  { %15560 = vst [vmem:[#allocation59_spill] sm:$0xff] %v12029_v23  ;;  %15563 = vst [vmem:[#allocation24_spill] sm:$0xff] %v12033_v19  ;;  %v12041_v41 = vadd.f32 %v11823_v58, %v15567_v18  ;;  %v15570_v40 = vld [vmem:[#allocation68_spill] sm:$0xff]  ;;  %v15572_v33 = vld [vmem:[#allocation47_spill] sm:$0xff] }
 0x6b4   :  { %15566 = vst [vmem:[#allocation60_spill] sm:$0xff] %v12037_v14  ;;  %v12045_v54 = vadd.f32 %v15570_v40, %v15569_v44  ;;  %v15573_v63 = vld [vmem:[#allocation69_spill] sm:$0xff]  ;;  %v15575_v15 = vld [vmem:[#allocation31_spill] sm:$0xff]  ;;  %v15576_v23 = vld [vmem:[#allocation70_spill] sm:$0xff] }
 0x6b5   :  { %15568 = vst [vmem:[#allocation33_spill] sm:$0xff] %v12041_v41  ;;  %v12049_v2 = vadd.f32 %v15573_v63, %v15572_v33  ;;  %v12053_v37 = vadd.f32 %v15576_v23, %v15575_v15  ;;  %v5169_v57 = vld [vmem:[#allocation3 + $0x18] sm:$0xff]  ;;  %v12058_v3 = vld [vmem:[%s15171_s4 + $0x3] ss:$0 sm:$0xff]  ;;  %v15580_v40 = vld [vmem:[#allocation25_spill] sm:$0xff] }
 0x6b6   :  { %15571 = vst [vmem:[#allocation61_spill] sm:$0xff] %v12045_v54  ;;  %v15578_v58 = vld [vmem:[#allocation48_spill] sm:$0xff]  ;;  %v12066_v18 = vadd.f32 %v11838_v4, %v15580_v40  ;;  %v15582_v63 = vld [vmem:[#allocation50_spill] sm:$0xff]  ;;  %v15585_v33 = vld [vmem:[#allocation71_spill] sm:$0xff] }
 0x6b7   :  { %15574 = vst [vmem:[#allocation62_spill] sm:$0xff] %v12049_v2  ;;  %15577 = vst [vmem:[#allocation27_spill] sm:$0xff] %v12053_v37  ;;  %v12062_v53 = vadd.f32 %v11835_v45, %v15578_v58  ;;  %v12070_v44 = vadd.f32 %v11841_v30, %v15582_v63  ;;  %v15584_v23 = vld [vmem:[#allocation4_spill] sm:$0xff]  ;;  %v5171_v2 = vld [vmem:[#allocation3 + $0x30] sm:$0xff] }
 0x6b8   :  { %15581 = vst [vmem:[#allocation34_spill] sm:$0xff] %v12066_v18  ;;  %v12074_v15 = vadd.f32 %v15585_v33, %v15584_v23  ;;  %v5170_v37 = vld [vmem:[#allocation3 + $0x20] sm:$0xff]  ;;  %v5172_v54 = vld [vmem:[#allocation3 + $0x38] sm:$0xff]  ;;  %v5173_v41 = vld [vmem:[#allocation3 + $0x48] sm:$0xff] }
 0x6b9   :  { %15579 = vst [vmem:[#allocation63_spill] sm:$0xff] %v12062_v53  ;;  %15583 = vst [vmem:[#allocation64_spill] sm:$0xff] %v12070_v44  ;;  %v15587_v14 = vld [vmem:[#allocation51_spill] sm:$0xff]  ;;  %v15589_v58 = vld [vmem:[#allocation6_spill] sm:$0xff] }
 0x6ba   :  { %15586 = vst [vmem:[#allocation28_spill] sm:$0xff] %v12074_v15  ;;  %v12078_v45 = vadd.f32 %v11847_v48, %v15587_v14  ;;  %v12082_v4 = vadd.f32 %v11850_v24, %v15589_v58  ;;  %v15591_v40 = vld [vmem:[#allocation52_spill] sm:$0xff]  ;;  %v15593_v63 = vld [vmem:[#allocation5_spill] sm:$0xff]  ;;  %v5174_v33 = vld [vmem:[#allocation3 + $0x50] sm:$0xff] }
 0x6bb   :  { %v12086_v30 = vadd.f32 %v11853_v26, %v15591_v40  ;;  %v12090_v23 = vadd.f32 %v11856_v5, %v15593_v63  ;;  %v5175_v15 = vld [vmem:[#allocation3 + $0x60] sm:$0xff]  ;;  %v5176_v44 = vld [vmem:[#allocation3 + $0x68] sm:$0xff]  ;;  %v5177_v18 = vld [vmem:[#allocation3 + $0x78] sm:$0xff] }
 0x6bc   :  { %15588 = vst [vmem:[#allocation18_spill] sm:$0xff] %v12078_v45  ;;  %15590 = vst [vmem:[#allocation21_spill] sm:$0xff] %v12082_v4  ;;  %v15595_v53 = vld [vmem:[#allocation8_spill] sm:$0xff]  ;;  %v15597_v14 = vld [vmem:[#allocation7_spill] sm:$0xff]  ;;  %v12155_v27 = vmul.f32 %v12058_v3, %v5175_v15 }
 0x6bd   :  { %15592 = vst [vmem:[#allocation65_spill] sm:$0xff] %v12086_v30  ;;  %15594 = vst [vmem:[#allocation44_spill] sm:$0xff] %v12090_v23  ;;  %v12094_v48 = vadd.f32 %v11859_v38, %v15595_v53  ;;  %v12098_v24 = vadd.f32 %v11862_v61, %v15597_v14  ;;  %v15599_v58 = vld [vmem:[#allocation9_spill] sm:$0xff]  ;;  %v15601_v40 = vld [vmem:[#allocation11_spill] sm:$0xff] }
 0x6be   :  { %v12102_v26 = vadd.f32 %v11865_v32, %v15599_v58  ;;  %v12106_v5 = vadd.f32 %v11868_v59, %v15601_v40  ;;  %v5178_v63 = vld [vmem:[#allocation3 + $0x80] sm:$0xff]  ;;  %v5179_v23 = vld [vmem:[#allocation3 + $0x90] sm:$0xff]  ;;  %v5180_v30 = vld [vmem:[#allocation3 + $0x98] sm:$0xff] }
 0x6bf   :  { %15596 = vst [vmem:[#allocation66_spill] sm:$0xff] %v12094_v48  ;;  %15598 = vst [vmem:[#allocation20_spill] sm:$0xff] %v12098_v24  ;;  %v5181_v4 = vld [vmem:[#allocation3 + $0xa8] sm:$0xff]  ;;  %v15603_v45 = vld [vmem:[#allocation10_spill] sm:$0xff]  ;;  %v12164_v39 = vmul.f32 %v12058_v3, %v5178_v63  ;;  %v12167_v62 = vmul.f32 %v12058_v3, %v5179_v23 }
 0x6c0   :  { %15600 = vst [vmem:[#allocation67_spill] sm:$0xff] %v12102_v26  ;;  %15602 = vst [vmem:[#allocation46_spill] sm:$0xff] %v12106_v5  ;;  %v15604_v19 = vld [vmem:[#allocation72_spill] sm:$0xff]  ;;  %v15606_v53 = vld [vmem:[#allocation13_spill] sm:$0xff]  ;;  %v12173_v15 = vmul.f32 %v12058_v3, %v5181_v4 }
 0x6c1   :  { %v12110_v38 = vadd.f32 %v15604_v19, %v15603_v45  ;;  %v12114_v61 = vadd.f32 %v11874_v50, %v15606_v53  ;;  %v15608_v14 = vld [vmem:[#allocation12_spill] sm:$0xff]  ;;  %v15609_v24 = vld [vmem:[#allocation73_spill] sm:$0xff]  ;;  %v15611_v58 = vld [vmem:[#allocation15_spill] sm:$0xff] }
 0x6c2   :  { %v12118_v32 = vadd.f32 %v15609_v24, %v15608_v14  ;;  %v12122_v59 = vadd.f32 %v11880_v6, %v15611_v58  ;;  %v5182_v40 = vld [vmem:[#allocation3 + $0xb0] sm:$0xff]  ;;  %v5183_v5 = vld [vmem:[#allocation3 + $0xc0] sm:$0xff]  ;;  %v5184_v26 = vld [vmem:[#allocation3 + $0xc8] sm:$0xff] }
 0x6c3   :  { %15605 = vst [vmem:[#allocation23_spill] sm:$0xff] %v12110_v38  ;;  %15607 = vst [vmem:[#allocation68_spill] sm:$0xff] %v12114_v61  ;;  %v5185_v48 = vld [vmem:[#allocation3 + $0xd8] sm:$0xff]  ;;  %v15613_v13 = vld [vmem:[#allocation29_spill] sm:$0xff]  ;;  %v12176_v28 = vmul.f32 %v12058_v3, %v5182_v40  ;;  %v12179_v46 = vmul.f32 %v12058_v3, %v5183_v5  ;;  %v12182_v63 = vmul.f32 %v12058_v3, %v5184_v26 }
 0x6c4   :  { %15610 = vst [vmem:[#allocation47_spill] sm:$0xff] %v12118_v32  ;;  %15612 = vst [vmem:[#allocation69_spill] sm:$0xff] %v12122_v59  ;;  %v15614_v20 = vld [vmem:[#allocation74_spill] sm:$0xff]  ;;  %v5186_v14 = vld [vmem:[#allocation3 + $0xe0] sm:$0xff]  ;;  %v12137_v59 = vmul.f32 %v12058_v3, %v5169_v57  ;;  %v12185_v23 = vmul.f32 %v12058_v3, %v5185_v48 }
 0x6c5   :  { %v12126_v19 = vadd.f32 %v15614_v20, %v15613_v13  ;;  %v15616_v45 = vld [vmem:[#allocation26_spill] sm:$0xff]  ;;  %v5188_v6 = vld [vmem:[#allocation3 + $0xf8] sm:$0xff]  ;;  %v5189_v58 = vld [vmem:[#allocation3 + $0x108] sm:$0xff]  ;;  %v12140_v13 = vmul.f32 %v12058_v3, %v5170_v37  ;;  %v12158_v37 = vmul.f32 %v12058_v3, %v5176_v44  ;;  %v12188_v34 = vmul.f32 %v12058_v3, %v5186_v14 }
 0x6c6   :  { %v12130_v50 = vadd.f32 %v11886_v22, %v15616_v45  ;;  %v15618_v53 = vld [vmem:[#allocation22_spill] sm:$0xff]  ;;  %v5191_v38 = vld [vmem:[#allocation3 + $0x120] sm:$0xff]  ;;  %v5192_v17 = vld [vmem:[#allocation3 + $0x128] sm:$0xff]  ;;  %v12143_v22 = vmul.f32 %v12058_v3, %v5171_v2  ;;  %v12149_v45 = vmul.f32 %v12058_v3, %v5173_v41  ;;  %v12161_v2 = vmul.f32 %v12058_v3, %v5177_v18  ;;  %15620 = vst [vmem:[#allocation25_spill] sm:$0xff] %v12185_v23 }
 0x6c7   :  { %15615 = vst [vmem:[#allocation31_spill] sm:$0xff] %v12126_v19  ;;  %v12134_v24 = vadd.f32 %v11889_v25, %v15618_v53  ;;  %v5187_v32 = vld [vmem:[#allocation3 + $0xf0] sm:$0xff]  ;;  %v5193_v20 = vld [vmem:[#allocation3 + $0x138] sm:$0xff]  ;;  %v12146_v25 = vmul.f32 %v12058_v3, %v5172_v54  ;;  %v5194_v53 = vld [vmem:[#allocation3 + $0x140] sm:$0xff]  ;;  %v12152_v19 = vmul.f32 %v12058_v3, %v5174_v33  ;;  %v12170_v33 = vmul.f32 %v12058_v3, %v5180_v30 }
 0x6c8   :  { %15617 = vst [vmem:[#allocation70_spill] sm:$0xff] %v12130_v50  ;;  %v5190_v61 = vld [vmem:[#allocation3 + $0x110] sm:$0xff]  ;;  %v5196_v57 = vld [vmem:[#allocation3 + $0x158] sm:$0xff]  ;;  %v5197_v50 = vld [vmem:[#allocation3 + $0x168] sm:$0xff]  ;;  %v12191_v16 = vmul.f32 %v12058_v3, %v5187_v32  ;;  %v12194_v40 = vmul.f32 %v12058_v3, %v5188_v6  ;;  %v12197_v5 = vmul.f32 %v12058_v3, %v5189_v58  ;;  %v12203_v23 = vmul.f32 %v12058_v3, %v5191_v38 }
 0x6c9   :  { %15619 = vst [vmem:[#allocation48_spill] sm:$0xff] %v12134_v24  ;;  %v5195_v24 = vld [vmem:[#allocation3 + $0x150] sm:$0xff]  ;;  %v5199_v29 = vld [vmem:[#allocation3 + $0x180] sm:$0xff]  ;;  %v5200_v41 = vld [vmem:[#allocation3 + $0x188] sm:$0xff]  ;;  %v12200_v48 = vmul.f32 %v12058_v3, %v5190_v61  ;;  %v12206_v14 = vmul.f32 %v12058_v3, %v5192_v17  ;;  %v12209_v32 = vmul.f32 %v12058_v3, %v5193_v20  ;;  %v12212_v58 = vmul.f32 %v12058_v3, %v5194_v53 }
 0x6ca   :  { %v5198_v54 = vld [vmem:[#allocation3 + $0x170] sm:$0xff]  ;;  %v5201_v31 = vld [vmem:[#allocation3 + $0x1c8] sm:$0xff]  ;;  %v5203_v55 = vld [vmem:[#allocation3 + $0x1e0] sm:$0xff]  ;;  %15621 = vst [vmem:[#allocation50_spill] sm:$0xff] %v12191_v16  ;;  %v12218_v61 = vmul.f32 %v12058_v3, %v5196_v57  ;;  %v12221_v38 = vmul.f32 %v12058_v3, %v5197_v50  ;;  %v12230_v53 = vmul.f32 %v12058_v3, %v5200_v41 }
 0x6cb   :  { %v5202_v44 = vld [vmem:[#allocation3 + $0x1d0] sm:$0xff]  ;;  %v5204_v18 = vld [vmem:[#allocation3 + $0x1e8] sm:$0xff]  ;;  %v5205_v8 = vld [vmem:[#allocation3 + $0x1f8] sm:$0xff]  ;;  %15622 = vst [vmem:[#allocation4_spill] sm:$0xff] %v12194_v40  ;;  %v12224_v20 = vmul.f32 %v12058_v3, %v5198_v54 }
 0x6cc   :  { %v5206_v30 = vld [vmem:[#allocation3 + $0x200] sm:$0xff]  ;;  %v5207_v0 = vld [vmem:[#allocation3 + $0x210] sm:$0xff]  ;;  %v5208_v4 = vld [vmem:[#allocation3 + $0x218] sm:$0xff]  ;;  %15623 = vst [vmem:[#allocation71_spill] sm:$0xff] %v12197_v5  ;;  %v12215_v5 = vmul.f32 %v12058_v3, %v5195_v24  ;;  %v12233_v24 = vmul.f32 %v12058_v3, %v5201_v31  ;;  %v12236_v50 = vmul.f32 %v12058_v3, %v5202_v44  ;;  %v12242_v54 = vmul.f32 %v12058_v3, %v5204_v18 }
 0x6cd   :  { %v5209_v26 = vld [vmem:[#allocation3 + $0x228] sm:$0xff]  ;;  %v5210_v10 = vld [vmem:[#allocation3 + $0x230] sm:$0xff]  ;;  %v5211_v42 = vld [vmem:[#allocation3 + $0x240] sm:$0xff]  ;;  %15624 = vst [vmem:[#allocation51_spill] sm:$0xff] %v12203_v23  ;;  %v12248_v31 = vmul.f32 %v12058_v3, %v5206_v30  ;;  %v12254_v44 = vmul.f32 %v12058_v3, %v5208_v4 }
 0x6ce   :  { %15625 = vst [vmem:[#allocation6_spill] sm:$0xff] %v12206_v14  ;;  %15626 = vst [vmem:[#allocation52_spill] sm:$0xff] %v12209_v32  ;;  %v5212_v6 = vld [vmem:[#allocation3 + $0x248] sm:$0xff]  ;;  %v5213_v40 = vld [vmem:[#allocation3 + $0x258] sm:$0xff]  ;;  %v12227_v32 = vmul.f32 %v12058_v3, %v5199_v29  ;;  %v12245_v29 = vmul.f32 %v12058_v3, %v5205_v8  ;;  %v12260_v8 = vmul.f32 %v12058_v3, %v5210_v10 }
 0x6cf   :  { %v5214_v16 = vld [vmem:[#allocation3 + $0x260] sm:$0xff]  ;;  %15627 = vst [vmem:[#allocation5_spill] sm:$0xff] %v12215_v5  ;;  %15628 = vst [vmem:[#allocation8_spill] sm:$0xff] %v12218_v61  ;;  %v5215_v17 = vld [vmem:[#allocation3 + $0x270] sm:$0xff]  ;;  %v12266_v30 = vmul.f32 %v12058_v3, %v5212_v6 }
 0x6d0   :  { %15629 = vst [vmem:[#allocation7_spill] sm:$0xff] %v12221_v38  ;;  %v5216_v14 = vld [vmem:[#allocation3 + $0x278] sm:$0xff]  ;;  %v5217_v23 = vld [vmem:[#allocation3 + $0x288] sm:$0xff]  ;;  %15630 = vst [vmem:[#allocation9_spill] sm:$0xff] %v12227_v32  ;;  %v12239_v38 = vmul.f32 %v12058_v3, %v5203_v55  ;;  %v12257_v55 = vmul.f32 %v12058_v3, %v5209_v26  ;;  %v12272_v26 = vmul.f32 %v12058_v3, %v5214_v16 }
 0x6d1   :  { %15631 = vst [vmem:[#allocation11_spill] sm:$0xff] %v12230_v53  ;;  %15632 = vst [vmem:[#allocation10_spill] sm:$0xff] %v12233_v24  ;;  %v5218_v57 = vld [vmem:[#allocation3 + $0x290] sm:$0xff]  ;;  %v5219_v61 = vld [vmem:[#allocation3 + $0x2a0] sm:$0xff]  ;;  %v12251_v24 = vmul.f32 %v12058_v3, %v5207_v0  ;;  %v12269_v0 = vmul.f32 %v12058_v3, %v5213_v40  ;;  %v12278_v10 = vmul.f32 %v12058_v3, %v5216_v14 }
 0x6d2   :  { %v5220_v5 = vld [vmem:[#allocation3 + $0x2a8] sm:$0xff]  ;;  %15633 = vst [vmem:[#allocation72_spill] sm:$0xff] %v12239_v38  ;;  %15634 = vst [vmem:[#allocation13_spill] sm:$0xff] %v12242_v54  ;;  %v5221_v41 = vld [vmem:[#allocation3 + $0x2b8] sm:$0xff]  ;;  %v12284_v40 = vmul.f32 %v12058_v3, %v5218_v57 }
 0x6d3   :  { %15635 = vst [vmem:[#allocation12_spill] sm:$0xff] %v12245_v29  ;;  %v5222_v53 = vld [vmem:[#allocation3 + $0x2c0] sm:$0xff]  ;;  %v5223_v32 = vld [vmem:[#allocation3 + $0x2d0] sm:$0xff]  ;;  %15636 = vst [vmem:[#allocation73_spill] sm:$0xff] %v12251_v24  ;;  %v12263_v29 = vmul.f32 %v12058_v3, %v5211_v42  ;;  %v12281_v42 = vmul.f32 %v12058_v3, %v5217_v23  ;;  %v12290_v16 = vmul.f32 %v12058_v3, %v5220_v5 }
 0x6d4   :  { %15637 = vst [vmem:[#allocation15_spill] sm:$0xff] %v12254_v44  ;;  %15638 = vst [vmem:[#allocation29_spill] sm:$0xff] %v12257_v55  ;;  %v5224_v18 = vld [vmem:[#allocation3 + $0x2d8] sm:$0xff]  ;;  %v5225_v54 = vld [vmem:[#allocation3 + $0x2e8] sm:$0xff]  ;;  %v12275_v55 = vmul.f32 %v12058_v3, %v5215_v17  ;;  %v12293_v17 = vmul.f32 %v12058_v3, %v5221_v41  ;;  %v12296_v14 = vmul.f32 %v12058_v3, %v5222_v53 }
 0x6d5   :  { %v5226_v38 = vld [vmem:[#allocation3 + $0x2f0] sm:$0xff]  ;;  %15639 = vst [vmem:[#allocation74_spill] sm:$0xff] %v12263_v29  ;;  %15640 = vst [vmem:[#allocation26_spill] sm:$0xff] %v12266_v30  ;;  %v5227_v4 = vld [vmem:[#allocation3 + $0x300] sm:$0xff]  ;;  %v12299_v23 = vmul.f32 %v12058_v3, %v5223_v32  ;;  %v12305_v57 = vmul.f32 %v12058_v3, %v5225_v54 }
 0x6d6   :  { %15641 = vst [vmem:[#allocation22_spill] sm:$0xff] %v12269_v0  ;;  %v5228_v44 = vld [vmem:[#allocation3 + $0x308] sm:$0xff]  ;;  %v5229_v24 = vld [vmem:[#allocation3 + $0x318] sm:$0xff]  ;;  %15642 = vst [vmem:[#allocation75_spill] sm:$0xff] %v12281_v42  ;;  %v12287_v0 = vmul.f32 %v12058_v3, %v5219_v61  ;;  %v12302_v42 = vmul.f32 %v12058_v3, %v5224_v18  ;;  %v12308_v61 = vmul.f32 %v12058_v3, %v5226_v38 }
 0x6d7   :  { %v5230_v6 = vld [vmem:[#allocation3 + $0x320] sm:$0xff]  ;;  %v5231_v30 = vld [vmem:[#allocation3 + $0x330] sm:$0xff]  ;;  %v5232_v29 = vld [vmem:[#allocation3 + $0x338] sm:$0xff]  ;;  %v12311_v5 = vmul.f32 %v12058_v3, %v5227_v4  ;;  %v12314_v41 = vmul.f32 %v12058_v3, %v5228_v44  ;;  %v12317_v53 = vmul.f32 %v12058_v3, %v5229_v24  ;;  %v12338_v24 = vadd.f32 %v12143_v22, %v11893_v52 }
 0x6d8   :  { %15643 = vst [vmem:[#allocation76_spill] sm:$0xff] %v12308_v61  ;;  %v12320_v32 = vmul.f32 %v12058_v3, %v5230_v6  ;;  %v12323_v18 = vmul.f32 %v12058_v3, %v5231_v30  ;;  %v12326_v54 = vmul.f32 %v12058_v3, %v5232_v29  ;;  %v15644_v38 = vld [vmem:[#allocation14_spill] sm:$0xff]  ;;  %v15645_v4 = vld [vmem:[#allocation17_spill] sm:$0xff]  ;;  %v12342_v6 = vadd.f32 %v12146_v25, %v11897_v36  ;;  %v15654_v22 = vld [vmem:[#allocation4_spill] sm:$0xff] }
 0x6d9   :  { %v12330_v61 = vadd.f32 %v12137_v59, %v15644_v38  ;;  %v12334_v44 = vadd.f32 %v12140_v13, %v15645_v4  ;;  %v12346_v3 = vadd.f32 %v12149_v45, %v11901_v7  ;;  %v12350_v59 = vadd.f32 %v12152_v19, %v11905_v12  ;;  %v15651_v19 = vld [vmem:[#allocation50_spill] sm:$0xff]  ;;  %v15657_v25 = vld [vmem:[#allocation71_spill] sm:$0xff]  ;;  %v15668_v30 = vld [vmem:[#allocation52_spill] sm:$0xff] }
 0x6da   :  { %v12354_v13 = vadd.f32 %v12155_v27, %v11909_v60  ;;  %v12358_v52 = vadd.f32 %v12158_v37, %v11913_v47  ;;  %v12362_v36 = vadd.f32 %v12161_v2, %v11917_v49  ;;  %v12366_v7 = vadd.f32 %v12164_v39, %v11921_v56  ;;  %v15648_v39 = vld [vmem:[#allocation35_spill] sm:$0xff]  ;;  %v15650_v27 = vld [vmem:[#allocation36_spill] sm:$0xff]  ;;  %v15667_v29 = vld [vmem:[#allocation42_spill] sm:$0xff] }
 0x6db   :  { %v12370_v12 = vadd.f32 %v12167_v62, %v11925_v21  ;;  %v12374_v60 = vadd.f32 %v12170_v33, %v11929_v9  ;;  %v12378_v47 = vadd.f32 %v12173_v15, %v11933_v51  ;;  %v12382_v49 = vadd.f32 %v12176_v28, %v11937_v43  ;;  %v15646_v62 = vld [vmem:[#allocation25_spill] sm:$0xff]  ;;  %v15659_v45 = vld [vmem:[#allocation39_spill] sm:$0xff]  ;;  %v15661_v37 = vld [vmem:[#allocation40_spill] sm:$0xff] }
 0x6dc   :  { %v12386_v56 = vadd.f32 %v12179_v46, %v11941_v11  ;;  %v12390_v21 = vadd.f32 %v12182_v63, %v11945_v1  ;;  %v12394_v9 = vadd.f32 %v15646_v62, %v11949_v35  ;;  %v12398_v51 = vadd.f32 %v12188_v34, %v15648_v39  ;;  %v15653_v28 = vld [vmem:[#allocation37_spill] sm:$0xff]  ;;  %v15656_v46 = vld [vmem:[#allocation38_spill] sm:$0xff]  ;;  %v15662_v2 = vld [vmem:[#allocation51_spill] sm:$0xff] }
 0x6dd   :  { %v12402_v43 = vadd.f32 %v15651_v19, %v15650_v27  ;;  %v12406_v11 = vadd.f32 %v15654_v22, %v15653_v28  ;;  %v12410_v1 = vadd.f32 %v15657_v25, %v15656_v46  ;;  %v12414_v35 = vadd.f32 %v12200_v48, %v15659_v45  ;;  %v15664_v33 = vld [vmem:[#allocation41_spill] sm:$0xff]  ;;  %v15665_v15 = vld [vmem:[#allocation6_spill] sm:$0xff]  ;;  %v15670_v4 = vld [vmem:[#allocation43_spill] sm:$0xff] }
 0x6de   :  { %15647 = vst [vmem:[#allocation14_spill] sm:$0xff] %v12394_v9  ;;  %15649 = vst [vmem:[#allocation17_spill] sm:$0xff] %v12398_v51  ;;  %v12418_v34 = vadd.f32 %v15662_v2, %v15661_v37  ;;  %v12422_v63 = vadd.f32 %v15665_v15, %v15664_v33  ;;  %v12426_v38 = vadd.f32 %v15668_v30, %v15667_v29  ;;  %v15672_v39 = vld [vmem:[#allocation45_spill] sm:$0xff]  ;;  %v15676_v28 = vld [vmem:[#allocation8_spill] sm:$0xff] }
 0x6df   :  { %15652 = vst [vmem:[#allocation25_spill] sm:$0xff] %v12402_v43  ;;  %15655 = vst [vmem:[#allocation35_spill] sm:$0xff] %v12406_v11  ;;  %v12430_v62 = vadd.f32 %v12212_v58, %v15670_v4  ;;  %v15673_v27 = vld [vmem:[#allocation5_spill] sm:$0xff]  ;;  %v15679_v25 = vld [vmem:[#allocation7_spill] sm:$0xff] }
 0x6e0   :  { %15658 = vst [vmem:[#allocation36_spill] sm:$0xff] %v12410_v1  ;;  %15660 = vst [vmem:[#allocation50_spill] sm:$0xff] %v12414_v35  ;;  %v12434_v48 = vadd.f32 %v15673_v27, %v15672_v39  ;;  %v15675_v19 = vld [vmem:[#allocation49_spill] sm:$0xff]  ;;  %v15681_v37 = vld [vmem:[#allocation54_spill] sm:$0xff] }
 0x6e1   :  { %15663 = vst [vmem:[#allocation37_spill] sm:$0xff] %v12418_v34  ;;  %15666 = vst [vmem:[#allocation4_spill] sm:$0xff] %v12422_v63  ;;  %v12438_v22 = vadd.f32 %v15676_v28, %v15675_v19  ;;  %v15678_v46 = vld [vmem:[#allocation53_spill] sm:$0xff]  ;;  %v12446_v2 = vadd.f32 %v12224_v20, %v15681_v37  ;;  %v15683_v33 = vld [vmem:[#allocation55_spill] sm:$0xff] }
 0x6e2   :  { %15669 = vst [vmem:[#allocation38_spill] sm:$0xff] %v12426_v38  ;;  %15671 = vst [vmem:[#allocation71_spill] sm:$0xff] %v12430_v62  ;;  %v12442_v45 = vadd.f32 %v15679_v25, %v15678_v46  ;;  %v15684_v15 = vld [vmem:[#allocation9_spill] sm:$0xff]  ;;  %v15686_v29 = vld [vmem:[#allocation56_spill] sm:$0xff] }
 0x6e3   :  { %15674 = vst [vmem:[#allocation39_spill] sm:$0xff] %v12434_v48  ;;  %15677 = vst [vmem:[#allocation40_spill] sm:$0xff] %v12438_v22  ;;  %v12450_v58 = vadd.f32 %v15684_v15, %v15683_v33  ;;  %v15687_v30 = vld [vmem:[#allocation11_spill] sm:$0xff]  ;;  %v15689_v39 = vld [vmem:[#allocation16_spill] sm:$0xff] }
 0x6e4   :  { %15680 = vst [vmem:[#allocation51_spill] sm:$0xff] %v12442_v45  ;;  %15682 = vst [vmem:[#allocation41_spill] sm:$0xff] %v12446_v2  ;;  %v12454_v4 = vadd.f32 %v15687_v30, %v15686_v29  ;;  %v15690_v27 = vld [vmem:[#allocation10_spill] sm:$0xff]  ;;  %v15692_v28 = vld [vmem:[#allocation19_spill] sm:$0xff] }
 0x6e5   :  { %15685 = vst [vmem:[#allocation6_spill] sm:$0xff] %v12450_v58  ;;  %v12458_v19 = vadd.f32 %v15690_v27, %v15689_v39  ;;  %v12462_v46 = vadd.f32 %v12236_v50, %v15692_v28  ;;  %v15694_v25 = vld [vmem:[#allocation30_spill] sm:$0xff]  ;;  %v15695_v45 = vld [vmem:[#allocation72_spill] sm:$0xff]  ;;  %v15697_v37 = vld [vmem:[#allocation57_spill] sm:$0xff] }
 0x6e6   :  { %15688 = vst [vmem:[#allocation42_spill] sm:$0xff] %v12454_v4  ;;  %v12466_v20 = vadd.f32 %v15695_v45, %v15694_v25  ;;  %v15698_v2 = vld [vmem:[#allocation13_spill] sm:$0xff]  ;;  %v15700_v15 = vld [vmem:[#allocation58_spill] sm:$0xff]  ;;  %v15701_v58 = vld [vmem:[#allocation12_spill] sm:$0xff] }
 0x6e7   :  { %15691 = vst [vmem:[#allocation52_spill] sm:$0xff] %v12458_v19  ;;  %15693 = vst [vmem:[#allocation43_spill] sm:$0xff] %v12462_v46  ;;  %v12470_v33 = vadd.f32 %v15698_v2, %v15697_v37  ;;  %v12474_v29 = vadd.f32 %v15701_v58, %v15700_v15  ;;  %v15703_v30 = vld [vmem:[#allocation32_spill] sm:$0xff]  ;;  %v15705_v27 = vld [vmem:[#allocation59_spill] sm:$0xff] }
 0x6e8   :  { %15696 = vst [vmem:[#allocation45_spill] sm:$0xff] %v12466_v20  ;;  %v12478_v39 = vadd.f32 %v12248_v31, %v15703_v30  ;;  %v15706_v19 = vld [vmem:[#allocation73_spill] sm:$0xff]  ;;  %v15708_v28 = vld [vmem:[#allocation24_spill] sm:$0xff]  ;;  %v15709_v46 = vld [vmem:[#allocation15_spill] sm:$0xff] }
 0x6e9   :  { %15699 = vst [vmem:[#allocation5_spill] sm:$0xff] %v12470_v33  ;;  %15702 = vst [vmem:[#allocation49_spill] sm:$0xff] %v12474_v29  ;;  %v12482_v50 = vadd.f32 %v15706_v19, %v15705_v27  ;;  %v12486_v45 = vadd.f32 %v15709_v46, %v15708_v28  ;;  %v15711_v25 = vld [vmem:[#allocation60_spill] sm:$0xff]  ;;  %v15712_v20 = vld [vmem:[#allocation29_spill] sm:$0xff] }
 0x6ea   :  { %15704 = vst [vmem:[#allocation8_spill] sm:$0xff] %v12478_v39  ;;  %v12490_v2 = vadd.f32 %v15712_v20, %v15711_v25  ;;  %v15714_v37 = vld [vmem:[#allocation33_spill] sm:$0xff]  ;;  %v15717_v29 = vld [vmem:[#allocation74_spill] sm:$0xff]  ;;  %v15722_v27 = vld [vmem:[#allocation27_spill] sm:$0xff] }
 0x6eb   :  { %15707 = vst [vmem:[#allocation53_spill] sm:$0xff] %v12482_v50  ;;  %15710 = vst [vmem:[#allocation7_spill] sm:$0xff] %v12486_v45  ;;  %v12494_v58 = vadd.f32 %v12260_v8, %v15714_v37  ;;  %v15716_v15 = vld [vmem:[#allocation61_spill] sm:$0xff]  ;;  %v15719_v30 = vld [vmem:[#allocation62_spill] sm:$0xff] }
 0x6ec   :  { %15713 = vst [vmem:[#allocation54_spill] sm:$0xff] %v12490_v2  ;;  %v12498_v31 = vadd.f32 %v15717_v29, %v15716_v15  ;;  %v15720_v39 = vld [vmem:[#allocation26_spill] sm:$0xff]  ;;  %v5366_v28 = vld [vmem:[#allocation3 + $0x19] sm:$0xff]  ;;  %v12511_v20 = vld [vmem:[%s15171_s4 + $0x4] ss:$0 sm:$0xff] }
 0x6ed   :  { %15715 = vst [vmem:[#allocation55_spill] sm:$0xff] %v12494_v58  ;;  %v12502_v19 = vadd.f32 %v15720_v39, %v15719_v30  ;;  %v15723_v50 = vld [vmem:[#allocation22_spill] sm:$0xff]  ;;  %v15725_v8 = vld [vmem:[#allocation63_spill] sm:$0xff]  ;;  %v15729_v39 = vld [vmem:[#allocation64_spill] sm:$0xff] }
 0x6ee   :  { %15718 = vst [vmem:[#allocation9_spill] sm:$0xff] %v12498_v31  ;;  %v12506_v46 = vadd.f32 %v15723_v50, %v15722_v27  ;;  %v12515_v25 = vadd.f32 %v12272_v26, %v15725_v8  ;;  %v15727_v29 = vld [vmem:[#allocation34_spill] sm:$0xff]  ;;  %v12523_v15 = vadd.f32 %v12278_v10, %v15729_v39  ;;  %v15731_v50 = vld [vmem:[#allocation28_spill] sm:$0xff]  ;;  %v15732_v30 = vld [vmem:[#allocation75_spill] sm:$0xff] }
 0x6ef   :  { %15721 = vst [vmem:[#allocation56_spill] sm:$0xff] %v12502_v19  ;;  %v12519_v37 = vadd.f32 %v12275_v55, %v15727_v29  ;;  %v12527_v27 = vadd.f32 %v15732_v30, %v15731_v50  ;;  %v5368_v19 = vld [vmem:[#allocation3 + $0x31] sm:$0xff]  ;;  %v5369_v31 = vld [vmem:[#allocation3 + $0x39] sm:$0xff]  ;;  %v5370_v58 = vld [vmem:[#allocation3 + $0x49] sm:$0xff] }
 0x6f0   :  { %15724 = vst [vmem:[#allocation11_spill] sm:$0xff] %v12506_v46  ;;  %15726 = vst [vmem:[#allocation16_spill] sm:$0xff] %v12515_v25  ;;  %v5367_v46 = vld [vmem:[#allocation3 + $0x21] sm:$0xff]  ;;  %v15734_v2 = vld [vmem:[#allocation18_spill] sm:$0xff] }
 0x6f1   :  { %15728 = vst [vmem:[#allocation10_spill] sm:$0xff] %v12519_v37  ;;  %15730 = vst [vmem:[#allocation19_spill] sm:$0xff] %v12523_v15  ;;  %v12531_v26 = vadd.f32 %v12284_v40, %v15734_v2  ;;  %v15736_v8 = vld [vmem:[#allocation21_spill] sm:$0xff]  ;;  %v15740_v39 = vld [vmem:[#allocation44_spill] sm:$0xff] }
 0x6f2   :  { %15733 = vst [vmem:[#allocation30_spill] sm:$0xff] %v12527_v27  ;;  %v12535_v55 = vadd.f32 %v12287_v0, %v15736_v8  ;;  %v15738_v29 = vld [vmem:[#allocation65_spill] sm:$0xff]  ;;  %v12543_v50 = vadd.f32 %v12293_v17, %v15740_v39  ;;  %v5371_v30 = vld [vmem:[#allocation3 + $0x51] sm:$0xff]  ;;  %v5374_v37 = vld [vmem:[#allocation3 + $0x79] sm:$0xff] }
 0x6f3   :  { %15735 = vst [vmem:[#allocation72_spill] sm:$0xff] %v12531_v26  ;;  %v12539_v10 = vadd.f32 %v12290_v16, %v15738_v29  ;;  %v5372_v27 = vld [vmem:[#allocation3 + $0x61] sm:$0xff]  ;;  %v5373_v15 = vld [vmem:[#allocation3 + $0x69] sm:$0xff]  ;;  %v15746_v8 = vld [vmem:[#allocation67_spill] sm:$0xff] }
 0x6f4   :  { %15737 = vst [vmem:[#allocation57_spill] sm:$0xff] %v12535_v55  ;;  %15741 = vst [vmem:[#allocation58_spill] sm:$0xff] %v12543_v50  ;;  %v15742_v25 = vld [vmem:[#allocation66_spill] sm:$0xff]  ;;  %v15744_v2 = vld [vmem:[#allocation20_spill] sm:$0xff]  ;;  %v12555_v16 = vadd.f32 %v12302_v42, %v15746_v8  ;;  %v12608_v4 = vmul.f32 %v12511_v20, %v5372_v27 }
 0x6f5   :  { %15739 = vst [vmem:[#allocation13_spill] sm:$0xff] %v12539_v10  ;;  %v12547_v40 = vadd.f32 %v12296_v14, %v15742_v25  ;;  %v12551_v0 = vadd.f32 %v12299_v23, %v15744_v2  ;;  %v15748_v29 = vld [vmem:[#allocation46_spill] sm:$0xff]  ;;  %v5375_v39 = vld [vmem:[#allocation3 + $0x81] sm:$0xff]  ;;  %v5377_v10 = vld [vmem:[#allocation3 + $0x99] sm:$0xff] }
 0x6f6   :  { %15747 = vst [vmem:[#allocation59_spill] sm:$0xff] %v12555_v16  ;;  %v12559_v17 = vadd.f32 %v12305_v57, %v15748_v29  ;;  %v5376_v50 = vld [vmem:[#allocation3 + $0x91] sm:$0xff]  ;;  %v5378_v55 = vld [vmem:[#allocation3 + $0xa9] sm:$0xff]  ;;  %v15751_v45 = vld [vmem:[#allocation76_spill] sm:$0xff]  ;;  %v12617_v62 = vmul.f32 %v12511_v20, %v5375_v39 }
 0x6f7   :  { %15743 = vst [vmem:[#allocation12_spill] sm:$0xff] %v12547_v40  ;;  %15745 = vst [vmem:[#allocation32_spill] sm:$0xff] %v12551_v0  ;;  %v15750_v26 = vld [vmem:[#allocation23_spill] sm:$0xff]  ;;  %v15753_v25 = vld [vmem:[#allocation68_spill] sm:$0xff]  ;;  %v12620_v38 = vmul.f32 %v12511_v20, %v5376_v50  ;;  %v12626_v27 = vmul.f32 %v12511_v20, %v5378_v55 }
 0x6f8   :  { %15749 = vst [vmem:[#allocation73_spill] sm:$0xff] %v12559_v17  ;;  %v12563_v14 = vadd.f32 %v15751_v45, %v15750_v26  ;;  %v12567_v23 = vadd.f32 %v12311_v5, %v15753_v25  ;;  %v15755_v2 = vld [vmem:[#allocation47_spill] sm:$0xff]  ;;  %v15757_v8 = vld [vmem:[#allocation69_spill] sm:$0xff]  ;;  %v15761_v26 = vld [vmem:[#allocation70_spill] sm:$0xff] }
 0x6f9   :  { %v12571_v42 = vadd.f32 %v12314_v41, %v15755_v2  ;;  %v12575_v57 = vadd.f32 %v12317_v53, %v15757_v8  ;;  %v5379_v29 = vld [vmem:[#allocation3 + $0xb1] sm:$0xff]  ;;  %v5380_v17 = vld [vmem:[#allocation3 + $0xc1] sm:$0xff]  ;;  %v5381_v16 = vld [vmem:[#allocation3 + $0xc9] sm:$0xff]  ;;  %v12583_v5 = vadd.f32 %v12323_v18, %v15761_v26  ;;  %v12596_v18 = vmul.f32 %v12511_v20, %v5368_v19 }
 0x6fa   :  { %15752 = vst [vmem:[#allocation24_spill] sm:$0xff] %v12563_v14  ;;  %15754 = vst [vmem:[#allocation15_spill] sm:$0xff] %v12567_v23  ;;  %v5382_v0 = vld [vmem:[#allocation3 + $0xd9] sm:$0xff]  ;;  %v5383_v2 = vld [vmem:[#allocation3 + $0xe1] sm:$0xff]  ;;  %v12602_v26 = vmul.f32 %v12511_v20, %v5370_v58  ;;  %v12614_v19 = vmul.f32 %v12511_v20, %v5374_v37  ;;  %v12629_v35 = vmul.f32 %v12511_v20, %v5379_v29 }
 0x6fb   :  { %15756 = vst [vmem:[#allocation60_spill] sm:$0xff] %v12571_v42  ;;  %15758 = vst [vmem:[#allocation29_spill] sm:$0xff] %v12575_v57  ;;  %v15759_v40 = vld [vmem:[#allocation31_spill] sm:$0xff]  ;;  %v15763_v25 = vld [vmem:[#allocation48_spill] sm:$0xff]  ;;  %v12590_v57 = vmul.f32 %v12511_v20, %v5366_v28  ;;  %v12632_v1 = vmul.f32 %v12511_v20, %v5380_v17  ;;  %v12635_v39 = vmul.f32 %v12511_v20, %v5381_v16 }
 0x6fc   :  { %v12579_v45 = vadd.f32 %v12320_v32, %v15759_v40  ;;  %15762 = vst [vmem:[#allocation61_spill] sm:$0xff] %v12583_v5  ;;  %v12587_v41 = vadd.f32 %v12326_v54, %v15763_v25  ;;  %v5384_v42 = vld [vmem:[#allocation3 + $0xf1] sm:$0xff]  ;;  %v5385_v53 = vld [vmem:[#allocation3 + $0xf9] sm:$0xff]  ;;  %v5386_v8 = vld [vmem:[#allocation3 + $0x109] sm:$0xff]  ;;  %v12593_v40 = vmul.f32 %v12511_v20, %v5367_v46  ;;  %v12599_v54 = vmul.f32 %v12511_v20, %v5369_v31 }
 0x6fd   :  { %v5387_v23 = vld [vmem:[#allocation3 + $0x111] sm:$0xff]  ;;  %v5388_v14 = vld [vmem:[#allocation3 + $0x121] sm:$0xff]  ;;  %v5389_v33 = vld [vmem:[#allocation3 + $0x129] sm:$0xff]  ;;  %v12611_v46 = vmul.f32 %v12511_v20, %v5373_v15  ;;  %15765 = vst [vmem:[#allocation62_spill] sm:$0xff] %v12635_v39  ;;  %v12638_v50 = vmul.f32 %v12511_v20, %v5382_v0  ;;  %v12641_v43 = vmul.f32 %v12511_v20, %v5383_v2  ;;  %v12644_v51 = vmul.f32 %v12511_v20, %v5384_v42 }
 0x6fe   :  { %15760 = vst [vmem:[#allocation33_spill] sm:$0xff] %v12579_v45  ;;  %15764 = vst [vmem:[#allocation74_spill] sm:$0xff] %v12587_v41  ;;  %v5390_v32 = vld [vmem:[#allocation3 + $0x139] sm:$0xff]  ;;  %v5391_v25 = vld [vmem:[#allocation3 + $0x141] sm:$0xff]  ;;  %v12605_v45 = vmul.f32 %v12511_v20, %v5371_v30  ;;  %v12623_v30 = vmul.f32 %v12511_v20, %v5377_v10  ;;  %v12647_v29 = vmul.f32 %v12511_v20, %v5385_v53 }
 0x6ff   :  { %v5392_v41 = vld [vmem:[#allocation3 + $0x151] sm:$0xff]  ;;  %v5393_v28 = vld [vmem:[#allocation3 + $0x159] sm:$0xff]  ;;  %v5394_v5 = vld [vmem:[#allocation3 + $0x169] sm:$0xff]  ;;  %15766 = vst [vmem:[#allocation26_spill] sm:$0xff] %v12638_v50  ;;  %v12650_v17 = vmul.f32 %v12511_v20, %v5386_v8  ;;  %v12653_v0 = vmul.f32 %v12511_v20, %v5387_v23  ;;  %v12656_v50 = vmul.f32 %v12511_v20, %v5388_v14  ;;  %v12659_v2 = vmul.f32 %v12511_v20, %v5389_v33 }
 0x700   :  { %v5395_v31 = vld [vmem:[#allocation3 + $0x171] sm:$0xff]  ;;  %v5396_v22 = vld [vmem:[#allocation3 + $0x181] sm:$0xff]  ;;  %v5397_v58 = vld [vmem:[#allocation3 + $0x189] sm:$0xff]  ;;  %15767 = vst [vmem:[#allocation27_spill] sm:$0xff] %v12644_v51  ;;  %v12662_v42 = vmul.f32 %v12511_v20, %v5390_v32  ;;  %v12665_v8 = vmul.f32 %v12511_v20, %v5391_v25  ;;  %v12671_v23 = vmul.f32 %v12511_v20, %v5393_v28  ;;  %v12674_v14 = vmul.f32 %v12511_v20, %v5394_v5 }
 0x701   :  { %v5398_v48 = vld [vmem:[#allocation3 + $0x1c9] sm:$0xff]  ;;  %v5399_v15 = vld [vmem:[#allocation3 + $0x1d1] sm:$0xff]  ;;  %v5400_v63 = vld [vmem:[#allocation3 + $0x1e1] sm:$0xff]  ;;  %15768 = vst [vmem:[#allocation22_spill] sm:$0xff] %v12647_v29  ;;  %v12677_v32 = vmul.f32 %v12511_v20, %v5395_v31  ;;  %v12683_v25 = vmul.f32 %v12511_v20, %v5397_v58 }
 0x702   :  { %v5401_v37 = vld [vmem:[#allocation3 + $0x1e9] sm:$0xff]  ;;  %v5402_v34 = vld [vmem:[#allocation3 + $0x1f9] sm:$0xff]  ;;  %v5403_v10 = vld [vmem:[#allocation3 + $0x201] sm:$0xff]  ;;  %15769 = vst [vmem:[#allocation63_spill] sm:$0xff] %v12650_v17  ;;  %v12668_v17 = vmul.f32 %v12511_v20, %v5392_v41  ;;  %v12686_v41 = vmul.f32 %v12511_v20, %v5398_v48  ;;  %v12689_v5 = vmul.f32 %v12511_v20, %v5399_v15 }
 0x703   :  { %v5404_v11 = vld [vmem:[#allocation3 + $0x211] sm:$0xff]  ;;  %v5405_v55 = vld [vmem:[#allocation3 + $0x219] sm:$0xff]  ;;  %v5406_v16 = vld [vmem:[#allocation3 + $0x229] sm:$0xff]  ;;  %15770 = vst [vmem:[#allocation34_spill] sm:$0xff] %v12656_v50  ;;  %v12695_v31 = vmul.f32 %v12511_v20, %v5401_v37  ;;  %v12701_v48 = vmul.f32 %v12511_v20, %v5403_v10 }
 0x704   :  { %v5407_v9 = vld [vmem:[#allocation3 + $0x231] sm:$0xff]  ;;  %v5408_v39 = vld [vmem:[#allocation3 + $0x241] sm:$0xff]  ;;  %15771 = vst [vmem:[#allocation64_spill] sm:$0xff] %v12659_v2  ;;  %15772 = vst [vmem:[#allocation28_spill] sm:$0xff] %v12662_v42  ;;  %v12680_v42 = vmul.f32 %v12511_v20, %v5396_v22  ;;  %v12698_v22 = vmul.f32 %v12511_v20, %v5402_v34  ;;  %v12707_v15 = vmul.f32 %v12511_v20, %v5405_v55 }
 0x705   :  { %v5409_v53 = vld [vmem:[#allocation3 + $0x249] sm:$0xff]  ;;  %v5410_v29 = vld [vmem:[#allocation3 + $0x259] sm:$0xff]  ;;  %v5411_v51 = vld [vmem:[#allocation3 + $0x261] sm:$0xff]  ;;  %15773 = vst [vmem:[#allocation75_spill] sm:$0xff] %v12668_v17  ;;  %v12713_v34 = vmul.f32 %v12511_v20, %v5407_v9 }
 0x706   :  { %15774 = vst [vmem:[#allocation18_spill] sm:$0xff] %v12671_v23  ;;  %15775 = vst [vmem:[#allocation21_spill] sm:$0xff] %v12674_v14  ;;  %v5412_v33 = vld [vmem:[#allocation3 + $0x271] sm:$0xff]  ;;  %v5413_v2 = vld [vmem:[#allocation3 + $0x279] sm:$0xff]  ;;  %v12692_v14 = vmul.f32 %v12511_v20, %v5400_v63  ;;  %v12710_v63 = vmul.f32 %v12511_v20, %v5406_v16  ;;  %v12719_v10 = vmul.f32 %v12511_v20, %v5409_v53 }
 0x707   :  { %v5414_v50 = vld [vmem:[#allocation3 + $0x289] sm:$0xff]  ;;  %15776 = vst [vmem:[#allocation65_spill] sm:$0xff] %v12680_v42  ;;  %15777 = vst [vmem:[#allocation44_spill] sm:$0xff] %v12683_v25  ;;  %v5415_v28 = vld [vmem:[#allocation3 + $0x291] sm:$0xff]  ;;  %v12725_v16 = vmul.f32 %v12511_v20, %v5411_v51  ;;  %v12731_v9 = vmul.f32 %v12511_v20, %v5413_v2 }
 0x708   :  { %15778 = vst [vmem:[#allocation66_spill] sm:$0xff] %v12686_v41  ;;  %v5416_v23 = vld [vmem:[#allocation3 + $0x2a1] sm:$0xff]  ;;  %v5417_v17 = vld [vmem:[#allocation3 + $0x2a9] sm:$0xff]  ;;  %15779 = vst [vmem:[#allocation20_spill] sm:$0xff] %v12692_v14  ;;  %v12704_v41 = vmul.f32 %v12511_v20, %v5404_v11  ;;  %v12722_v11 = vmul.f32 %v12511_v20, %v5410_v29  ;;  %v12737_v29 = vmul.f32 %v12511_v20, %v5415_v28 }
 0x709   :  { %15780 = vst [vmem:[#allocation67_spill] sm:$0xff] %v12695_v31  ;;  %15781 = vst [vmem:[#allocation46_spill] sm:$0xff] %v12698_v22  ;;  %v5418_v58 = vld [vmem:[#allocation3 + $0x2b9] sm:$0xff]  ;;  %v5419_v25 = vld [vmem:[#allocation3 + $0x2c1] sm:$0xff]  ;;  %v12716_v22 = vmul.f32 %v12511_v20, %v5408_v39  ;;  %v12734_v39 = vmul.f32 %v12511_v20, %v5414_v50  ;;  %v12743_v51 = vmul.f32 %v12511_v20, %v5417_v17 }
 0x70a   :  { %v5420_v42 = vld [vmem:[#allocation3 + $0x2d1] sm:$0xff]  ;;  %15782 = vst [vmem:[#allocation23_spill] sm:$0xff] %v12704_v41  ;;  %15783 = vst [vmem:[#allocation76_spill] sm:$0xff] %v12707_v15  ;;  %v5421_v37 = vld [vmem:[#allocation3 + $0x2d9] sm:$0xff]  ;;  %v12749_v2 = vmul.f32 %v12511_v20, %v5419_v25 }
 0x70b   :  { %15784 = vst [vmem:[#allocation68_spill] sm:$0xff] %v12710_v63  ;;  %v5422_v31 = vld [vmem:[#allocation3 + $0x2e9] sm:$0xff]  ;;  %v5423_v14 = vld [vmem:[#allocation3 + $0x2f1] sm:$0xff]  ;;  %15785 = vst [vmem:[#allocation47_spill] sm:$0xff] %v12716_v22  ;;  %v12728_v63 = vmul.f32 %v12511_v20, %v5412_v33  ;;  %v12746_v33 = vmul.f32 %v12511_v20, %v5418_v58  ;;  %v12752_v50 = vmul.f32 %v12511_v20, %v5420_v42 }
 0x70c   :  { %15786 = vst [vmem:[#allocation69_spill] sm:$0xff] %v12719_v10  ;;  %15787 = vst [vmem:[#allocation31_spill] sm:$0xff] %v12722_v11  ;;  %v5424_v55 = vld [vmem:[#allocation3 + $0x301] sm:$0xff]  ;;  %v5425_v15 = vld [vmem:[#allocation3 + $0x309] sm:$0xff]  ;;  %v12740_v11 = vmul.f32 %v12511_v20, %v5416_v23  ;;  %v12758_v28 = vmul.f32 %v12511_v20, %v5422_v31  ;;  %v12761_v23 = vmul.f32 %v12511_v20, %v5423_v14 }
 0x70d   :  { %v5426_v41 = vld [vmem:[#allocation3 + $0x319] sm:$0xff]  ;;  %15788 = vst [vmem:[#allocation70_spill] sm:$0xff] %v12734_v39  ;;  %v5427_v53 = vld [vmem:[#allocation3 + $0x321] sm:$0xff]  ;;  %v5428_v10 = vld [vmem:[#allocation3 + $0x331] sm:$0xff]  ;;  %v12755_v39 = vmul.f32 %v12511_v20, %v5421_v37  ;;  %v12764_v17 = vmul.f32 %v12511_v20, %v5424_v55  ;;  %v12767_v58 = vmul.f32 %v12511_v20, %v5425_v15  ;;  %v12783_v14 = vadd.f32 %v12590_v57, %v12330_v61 }
 0x70e   :  { %v5429_v22 = vld [vmem:[#allocation3 + $0x339] sm:$0xff]  ;;  %v12770_v25 = vmul.f32 %v12511_v20, %v5426_v41  ;;  %v12773_v42 = vmul.f32 %v12511_v20, %v5427_v53  ;;  %v12776_v37 = vmul.f32 %v12511_v20, %v5428_v10  ;;  %v12787_v15 = vadd.f32 %v12593_v40, %v12334_v44  ;;  %v15793_v57 = vld [vmem:[#allocation17_spill] sm:$0xff]  ;;  %v15812_v53 = vld [vmem:[#allocation38_spill] sm:$0xff] }
 0x70f   :  { %v12779_v31 = vmul.f32 %v12511_v20, %v5429_v22  ;;  %v12791_v41 = vadd.f32 %v12596_v18, %v12338_v24  ;;  %v12795_v55 = vadd.f32 %v12599_v54, %v12342_v6  ;;  %v12799_v20 = vadd.f32 %v12602_v26, %v12346_v3  ;;  %v15796_v40 = vld [vmem:[#allocation27_spill] sm:$0xff]  ;;  %v15799_v18 = vld [vmem:[#allocation22_spill] sm:$0xff]  ;;  %v15810_v22 = vld [vmem:[#allocation64_spill] sm:$0xff] }
 0x710   :  { %v12803_v61 = vadd.f32 %v12605_v45, %v12350_v59  ;;  %v12807_v44 = vadd.f32 %v12608_v4, %v12354_v13  ;;  %v12811_v24 = vadd.f32 %v12611_v46, %v12358_v52  ;;  %v12815_v6 = vadd.f32 %v12614_v19, %v12362_v36  ;;  %v15791_v4 = vld [vmem:[#allocation26_spill] sm:$0xff]  ;;  %v15795_v45 = vld [vmem:[#allocation25_spill] sm:$0xff]  ;;  %v15802_v54 = vld [vmem:[#allocation63_spill] sm:$0xff] }
 0x711   :  { %v12819_v3 = vadd.f32 %v12617_v62, %v12366_v7  ;;  %v12823_v59 = vadd.f32 %v12620_v38, %v12370_v12  ;;  %v12827_v13 = vadd.f32 %v12623_v30, %v12374_v60  ;;  %v12831_v52 = vadd.f32 %v12626_v27, %v12378_v47  ;;  %v15789_v62 = vld [vmem:[#allocation62_spill] sm:$0xff]  ;;  %v15806_v19 = vld [vmem:[#allocation37_spill] sm:$0xff]  ;;  %v15809_v27 = vld [vmem:[#allocation4_spill] sm:$0xff] }
 0x712   :  { %v12835_v36 = vadd.f32 %v12629_v35, %v12382_v49  ;;  %v12839_v7 = vadd.f32 %v12632_v1, %v12386_v56  ;;  %v12843_v12 = vadd.f32 %v15789_v62, %v12390_v21  ;;  %v15790_v38 = vld [vmem:[#allocation14_spill] sm:$0xff]  ;;  %v12851_v47 = vadd.f32 %v12641_v43, %v15793_v57  ;;  %v15798_v35 = vld [vmem:[#allocation35_spill] sm:$0xff]  ;;  %v15801_v1 = vld [vmem:[#allocation36_spill] sm:$0xff] }
 0x713   :  { %v12847_v60 = vadd.f32 %v15791_v4, %v15790_v38  ;;  %v12855_v49 = vadd.f32 %v15796_v40, %v15795_v45  ;;  %v12859_v56 = vadd.f32 %v15799_v18, %v15798_v35  ;;  %v12863_v21 = vadd.f32 %v15802_v54, %v15801_v1  ;;  %v15804_v26 = vld [vmem:[#allocation50_spill] sm:$0xff]  ;;  %v15813_v62 = vld [vmem:[#allocation28_spill] sm:$0xff]  ;;  %v15815_v4 = vld [vmem:[#allocation71_spill] sm:$0xff] }
 0x714   :  { %15794 = vst [vmem:[#allocation62_spill] sm:$0xff] %v12851_v47  ;;  %v12867_v46 = vadd.f32 %v12653_v0, %v15804_v26  ;;  %v15807_v30 = vld [vmem:[#allocation34_spill] sm:$0xff]  ;;  %v12875_v10 = vadd.f32 %v15810_v22, %v15809_v27  ;;  %v12879_v38 = vadd.f32 %v15813_v62, %v15812_v53  ;;  %v12883_v57 = vadd.f32 %v12665_v8, %v15815_v4  ;;  %v15817_v45 = vld [vmem:[#allocation39_spill] sm:$0xff]  ;;  %v15820_v35 = vld [vmem:[#allocation40_spill] sm:$0xff] }
 0x715   :  { %15792 = vst [vmem:[#allocation48_spill] sm:$0xff] %v12847_v60  ;;  %15797 = vst [vmem:[#allocation14_spill] sm:$0xff] %v12855_v49  ;;  %v12871_v43 = vadd.f32 %v15807_v30, %v15806_v19  ;;  %v15818_v40 = vld [vmem:[#allocation75_spill] sm:$0xff]  ;;  %v15821_v18 = vld [vmem:[#allocation18_spill] sm:$0xff] }
 0x716   :  { %15800 = vst [vmem:[#allocation26_spill] sm:$0xff] %v12859_v56  ;;  %15803 = vst [vmem:[#allocation17_spill] sm:$0xff] %v12863_v21  ;;  %v12887_v0 = vadd.f32 %v15818_v40, %v15817_v45  ;;  %v12891_v1 = vadd.f32 %v15821_v18, %v15820_v35  ;;  %v15823_v54 = vld [vmem:[#allocation51_spill] sm:$0xff]  ;;  %v15824_v26 = vld [vmem:[#allocation21_spill] sm:$0xff] }
 0x717   :  { %15805 = vst [vmem:[#allocation25_spill] sm:$0xff] %v12867_v46  ;;  %15808 = vst [vmem:[#allocation27_spill] sm:$0xff] %v12871_v43  ;;  %v12895_v19 = vadd.f32 %v15824_v26, %v15823_v54  ;;  %v15826_v30 = vld [vmem:[#allocation41_spill] sm:$0xff]  ;;  %v15828_v22 = vld [vmem:[#allocation6_spill] sm:$0xff] }
 0x718   :  { %15811 = vst [vmem:[#allocation35_spill] sm:$0xff] %v12875_v10  ;;  %15814 = vst [vmem:[#allocation22_spill] sm:$0xff] %v12879_v38  ;;  %v12899_v27 = vadd.f32 %v12677_v32, %v15826_v30  ;;  %v15829_v53 = vld [vmem:[#allocation65_spill] sm:$0xff]  ;;  %v15831_v62 = vld [vmem:[#allocation42_spill] sm:$0xff] }
 0x719   :  { %15816 = vst [vmem:[#allocation36_spill] sm:$0xff] %v12883_v57  ;;  %15819 = vst [vmem:[#allocation63_spill] sm:$0xff] %v12887_v0  ;;  %v12903_v8 = vadd.f32 %v15829_v53, %v15828_v22  ;;  %v15832_v4 = vld [vmem:[#allocation44_spill] sm:$0xff]  ;;  %v15835_v0 = vld [vmem:[#allocation66_spill] sm:$0xff] }
 0x71a   :  { %15822 = vst [vmem:[#allocation50_spill] sm:$0xff] %v12891_v1  ;;  %15825 = vst [vmem:[#allocation37_spill] sm:$0xff] %v12895_v19  ;;  %v12907_v45 = vadd.f32 %v15832_v4, %v15831_v62  ;;  %v15834_v40 = vld [vmem:[#allocation52_spill] sm:$0xff]  ;;  %v15837_v18 = vld [vmem:[#allocation43_spill] sm:$0xff] }
 0x71b   :  { %15827 = vst [vmem:[#allocation34_spill] sm:$0xff] %v12899_v27  ;;  %15830 = vst [vmem:[#allocation4_spill] sm:$0xff] %v12903_v8  ;;  %v12911_v35 = vadd.f32 %v15835_v0, %v15834_v40  ;;  %v12915_v54 = vadd.f32 %v12689_v5, %v15837_v18  ;;  %v15839_v26 = vld [vmem:[#allocation45_spill] sm:$0xff]  ;;  %v15840_v19 = vld [vmem:[#allocation20_spill] sm:$0xff] }
 0x71c   :  { %15833 = vst [vmem:[#allocation64_spill] sm:$0xff] %v12907_v45  ;;  %v12919_v32 = vadd.f32 %v15840_v19, %v15839_v26  ;;  %v15842_v30 = vld [vmem:[#allocation5_spill] sm:$0xff]  ;;  %v15843_v27 = vld [vmem:[#allocation67_spill] sm:$0xff]  ;;  %v15846_v8 = vld [vmem:[#allocation46_spill] sm:$0xff] }
 0x71d   :  { %15836 = vst [vmem:[#allocation38_spill] sm:$0xff] %v12911_v35  ;;  %15838 = vst [vmem:[#allocation28_spill] sm:$0xff] %v12915_v54  ;;  %v12923_v22 = vadd.f32 %v15843_v27, %v15842_v30  ;;  %v15845_v53 = vld [vmem:[#allocation49_spill] sm:$0xff]  ;;  %v15848_v4 = vld [vmem:[#allocation8_spill] sm:$0xff] }
 0x71e   :  { %15841 = vst [vmem:[#allocation71_spill] sm:$0xff] %v12919_v32  ;;  %v12927_v62 = vadd.f32 %v15846_v8, %v15845_v53  ;;  %v12931_v0 = vadd.f32 %v12701_v48, %v15848_v4  ;;  %v15850_v40 = vld [vmem:[#allocation53_spill] sm:$0xff]  ;;  %v15851_v35 = vld [vmem:[#allocation23_spill] sm:$0xff]  ;;  %v15854_v54 = vld [vmem:[#allocation76_spill] sm:$0xff] }
 0x71f   :  { %15844 = vst [vmem:[#allocation39_spill] sm:$0xff] %v12923_v22  ;;  %v12935_v5 = vadd.f32 %v15851_v35, %v15850_v40  ;;  %v15853_v18 = vld [vmem:[#allocation7_spill] sm:$0xff]  ;;  %v15856_v26 = vld [vmem:[#allocation54_spill] sm:$0xff]  ;;  %v15857_v32 = vld [vmem:[#allocation68_spill] sm:$0xff] }
 0x720   :  { %15847 = vst [vmem:[#allocation75_spill] sm:$0xff] %v12927_v62  ;;  %15849 = vst [vmem:[#allocation40_spill] sm:$0xff] %v12931_v0  ;;  %v12939_v19 = vadd.f32 %v15854_v54, %v15853_v18  ;;  %v12943_v27 = vadd.f32 %v15857_v32, %v15856_v26  ;;  %v15859_v30 = vld [vmem:[#allocation55_spill] sm:$0xff]  ;;  %v15861_v53 = vld [vmem:[#allocation9_spill] sm:$0xff] }
 0x721   :  { %15852 = vst [vmem:[#allocation18_spill] sm:$0xff] %v12935_v5  ;;  %v12947_v8 = vadd.f32 %v12713_v34, %v15859_v30  ;;  %v15862_v62 = vld [vmem:[#allocation47_spill] sm:$0xff]  ;;  %v15864_v4 = vld [vmem:[#allocation56_spill] sm:$0xff]  ;;  %v15865_v0 = vld [vmem:[#allocation69_spill] sm:$0xff] }
 0x722   :  { %15855 = vst [vmem:[#allocation51_spill] sm:$0xff] %v12939_v19  ;;  %15858 = vst [vmem:[#allocation21_spill] sm:$0xff] %v12943_v27  ;;  %v12951_v48 = vadd.f32 %v15862_v62, %v15861_v53  ;;  %v12955_v35 = vadd.f32 %v15865_v0, %v15864_v4  ;;  %v15867_v40 = vld [vmem:[#allocation11_spill] sm:$0xff]  ;;  %v15870_v19 = vld [vmem:[#allocation16_spill] sm:$0xff] }
 0x723   :  { %15860 = vst [vmem:[#allocation41_spill] sm:$0xff] %v12947_v8  ;;  %v15868_v5 = vld [vmem:[#allocation31_spill] sm:$0xff]  ;;  %v12963_v32 = vadd.f32 %v12725_v16, %v15870_v19  ;;  %v15872_v26 = vld [vmem:[#allocation10_spill] sm:$0xff]  ;;  %v15881_v19 = vld [vmem:[#allocation57_spill] sm:$0xff] }
 0x724   :  { %15863 = vst [vmem:[#allocation6_spill] sm:$0xff] %v12951_v48  ;;  %15866 = vst [vmem:[#allocation65_spill] sm:$0xff] %v12955_v35  ;;  %v12959_v54 = vadd.f32 %v15868_v5, %v15867_v40  ;;  %v5563_v18 = vld [vmem:[#allocation3 + $0x1a] sm:$0xff]  ;;  %v12967_v34 = vadd.f32 %v12728_v63, %v15872_v26  ;;  %v15876_v53 = vld [vmem:[#allocation30_spill] sm:$0xff]  ;;  %v12983_v63 = vadd.f32 %v12740_v11, %v15881_v19 }
 0x725   :  { %15871 = vst [vmem:[#allocation44_spill] sm:$0xff] %v12963_v32  ;;  %v15874_v30 = vld [vmem:[#allocation19_spill] sm:$0xff]  ;;  %v15877_v0 = vld [vmem:[#allocation70_spill] sm:$0xff]  ;;  %v5564_v35 = vld [vmem:[#allocation3 + $0x22] sm:$0xff] }
 0x726   :  { %15869 = vst [vmem:[#allocation42_spill] sm:$0xff] %v12959_v54  ;;  %15873 = vst [vmem:[#allocation52_spill] sm:$0xff] %v12967_v34  ;;  %v12971_v62 = vadd.f32 %v12731_v9, %v15874_v30  ;;  %v12975_v4 = vadd.f32 %v15877_v0, %v15876_v53  ;;  %v5565_v5 = vld [vmem:[#allocation3 + $0x32] sm:$0xff]  ;;  %v5566_v40 = vld [vmem:[#allocation3 + $0x3a] sm:$0xff] }
 0x727   :  { %v5567_v54 = vld [vmem:[#allocation3 + $0x4a] sm:$0xff]  ;;  %v15879_v48 = vld [vmem:[#allocation72_spill] sm:$0xff]  ;;  %15882 = vst [vmem:[#allocation20_spill] sm:$0xff] %v12983_v63  ;;  %v5568_v0 = vld [vmem:[#allocation3 + $0x52] sm:$0xff] }
 0x728   :  { %15875 = vst [vmem:[#allocation66_spill] sm:$0xff] %v12971_v62  ;;  %15878 = vst [vmem:[#allocation43_spill] sm:$0xff] %v12975_v4  ;;  %v12979_v16 = vadd.f32 %v12737_v29, %v15879_v48  ;;  %v15883_v26 = vld [vmem:[#allocation13_spill] sm:$0xff]  ;;  %v15885_v30 = vld [vmem:[#allocation58_spill] sm:$0xff] }
 0x729   :  { %v12987_v9 = vadd.f32 %v12743_v51, %v15883_v26  ;;  %v12991_v53 = vadd.f32 %v12746_v33, %v15885_v30  ;;  %v5569_v4 = vld [vmem:[#allocation3 + $0x62] sm:$0xff]  ;;  %v5570_v62 = vld [vmem:[#allocation3 + $0x6a] sm:$0xff]  ;;  %v5571_v34 = vld [vmem:[#allocation3 + $0x7a] sm:$0xff] }
 0x72a   :  { %15880 = vst [vmem:[#allocation45_spill] sm:$0xff] %v12979_v16  ;;  %v12996_v29 = vld [vmem:[%s15171_s4 + $0x5] ss:$0 sm:$0xff]  ;;  %v15891_v26 = vld [vmem:[#allocation59_spill] sm:$0xff]  ;;  %v15893_v30 = vld [vmem:[#allocation73_spill] sm:$0xff] }
 0x72b   :  { %15884 = vst [vmem:[#allocation5_spill] sm:$0xff] %v12987_v9  ;;  %15886 = vst [vmem:[#allocation67_spill] sm:$0xff] %v12991_v53  ;;  %v15887_v48 = vld [vmem:[#allocation12_spill] sm:$0xff]  ;;  %v13008_v33 = vadd.f32 %v12755_v39, %v15891_v26  ;;  %v13012_v53 = vadd.f32 %v12758_v28, %v15893_v30  ;;  %v5573_v63 = vld [vmem:[#allocation3 + $0x92] sm:$0xff]  ;;  %v13061_v22 = vmul.f32 %v12996_v29, %v5569_v4 }
 0x72c   :  { %v13000_v11 = vadd.f32 %v12749_v2, %v15887_v48  ;;  %v15889_v19 = vld [vmem:[#allocation32_spill] sm:$0xff]  ;;  %v5575_v32 = vld [vmem:[#allocation3 + $0xaa] sm:$0xff]  ;;  %v15897_v48 = vld [vmem:[#allocation15_spill] sm:$0xff]  ;;  %v13073_v38 = vmul.f32 %v12996_v29, %v5573_v63 }
 0x72d   :  { %v13004_v51 = vadd.f32 %v12752_v50, %v15889_v19  ;;  %15892 = vst [vmem:[#allocation8_spill] sm:$0xff] %v13008_v33  ;;  %15894 = vst [vmem:[#allocation53_spill] sm:$0xff] %v13012_v53  ;;  %v5572_v9 = vld [vmem:[#allocation3 + $0x82] sm:$0xff]  ;;  %v5574_v16 = vld [vmem:[#allocation3 + $0x9a] sm:$0xff]  ;;  %v13020_v50 = vadd.f32 %v12764_v17, %v15897_v48  ;;  %v13079_v4 = vmul.f32 %v12996_v29, %v5575_v32 }
 0x72e   :  { %15888 = vst [vmem:[#allocation49_spill] sm:$0xff] %v13000_v11  ;;  %v15895_v8 = vld [vmem:[#allocation24_spill] sm:$0xff]  ;;  %v15901_v26 = vld [vmem:[#allocation29_spill] sm:$0xff]  ;;  %v5576_v30 = vld [vmem:[#allocation3 + $0xb2] sm:$0xff]  ;;  %v13070_v57 = vmul.f32 %v12996_v29, %v5572_v9 }
 0x72f   :  { %15890 = vst [vmem:[#allocation46_spill] sm:$0xff] %v13004_v51  ;;  %v13016_v2 = vadd.f32 %v12761_v23, %v15895_v8  ;;  %15898 = vst [vmem:[#allocation7_spill] sm:$0xff] %v13020_v50  ;;  %v15899_v19 = vld [vmem:[#allocation60_spill] sm:$0xff]  ;;  %v13028_v28 = vadd.f32 %v12770_v25, %v15901_v26  ;;  %v5578_v33 = vld [vmem:[#allocation3 + $0xca] sm:$0xff]  ;;  %v13082_v46 = vmul.f32 %v12996_v29, %v5576_v30 }
 0x730   :  { %v13024_v39 = vadd.f32 %v12767_v58, %v15899_v19  ;;  %v5577_v53 = vld [vmem:[#allocation3 + $0xc2] sm:$0xff]  ;;  %v5579_v51 = vld [vmem:[#allocation3 + $0xda] sm:$0xff]  ;;  %v15907_v48 = vld [vmem:[#allocation74_spill] sm:$0xff]  ;;  %v13088_v9 = vmul.f32 %v12996_v29, %v5578_v33 }
 0x731   :  { %15896 = vst [vmem:[#allocation23_spill] sm:$0xff] %v13016_v2  ;;  %15902 = vst [vmem:[#allocation54_spill] sm:$0xff] %v13028_v28  ;;  %v15903_v11 = vld [vmem:[#allocation33_spill] sm:$0xff]  ;;  %v13040_v58 = vadd.f32 %v12779_v31, %v15907_v48  ;;  %v5582_v25 = vld [vmem:[#allocation3 + $0xfa] sm:$0xff]  ;;  %v13043_v28 = vmul.f32 %v12996_v29, %v5563_v18  ;;  %v13052_v31 = vmul.f32 %v12996_v29, %v5566_v40 }
 0x732   :  { %15900 = vst [vmem:[#allocation76_spill] sm:$0xff] %v13024_v39  ;;  %v13032_v23 = vadd.f32 %v12773_v42, %v15903_v11  ;;  %v15905_v8 = vld [vmem:[#allocation61_spill] sm:$0xff]  ;;  %v5581_v39 = vld [vmem:[#allocation3 + $0xf2] sm:$0xff]  ;;  %v5587_v42 = vld [vmem:[#allocation3 + $0x13a] sm:$0xff]  ;;  %v13046_v11 = vmul.f32 %v12996_v29, %v5564_v35  ;;  %v13064_v35 = vmul.f32 %v12996_v29, %v5570_v62  ;;  %v13085_v21 = vmul.f32 %v12996_v29, %v5577_v53 }
 0x733   :  { %v13036_v17 = vadd.f32 %v12776_v37, %v15905_v8  ;;  %15908 = vst [vmem:[#allocation9_spill] sm:$0xff] %v13040_v58  ;;  %v5580_v19 = vld [vmem:[#allocation3 + $0xe2] sm:$0xff]  ;;  %v5583_v26 = vld [vmem:[#allocation3 + $0x10a] sm:$0xff]  ;;  %v5584_v50 = vld [vmem:[#allocation3 + $0x112] sm:$0xff]  ;;  %v13049_v37 = vmul.f32 %v12996_v29, %v5565_v5  ;;  %v13055_v8 = vmul.f32 %v12996_v29, %v5567_v54  ;;  %v13067_v5 = vmul.f32 %v12996_v29, %v5571_v34 }
 0x734   :  { %15904 = vst [vmem:[#allocation68_spill] sm:$0xff] %v13032_v23  ;;  %v5585_v2 = vld [vmem:[#allocation3 + $0x122] sm:$0xff]  ;;  %v5586_v27 = vld [vmem:[#allocation3 + $0x12a] sm:$0xff]  ;;  %v5589_v58 = vld [vmem:[#allocation3 + $0x152] sm:$0xff]  ;;  %v13058_v23 = vmul.f32 %v12996_v29, %v5568_v0  ;;  %v13076_v0 = vmul.f32 %v12996_v29, %v5574_v16  ;;  %v13091_v63 = vmul.f32 %v12996_v29, %v5579_v51  ;;  %v13094_v49 = vmul.f32 %v12996_v29, %v5580_v19 }
 0x735   :  { %15906 = vst [vmem:[#allocation55_spill] sm:$0xff] %v13036_v17  ;;  %v5588_v48 = vld [vmem:[#allocation3 + $0x142] sm:$0xff]  ;;  %v5590_v18 = vld [vmem:[#allocation3 + $0x15a] sm:$0xff]  ;;  %v5591_v17 = vld [vmem:[#allocation3 + $0x16a] sm:$0xff]  ;;  %v13097_v47 = vmul.f32 %v12996_v29, %v5581_v39  ;;  %v13100_v30 = vmul.f32 %v12996_v29, %v5582_v25  ;;  %v13103_v53 = vmul.f32 %v12996_v29, %v5583_v26  ;;  %v13106_v51 = vmul.f32 %v12996_v29, %v5584_v50 }
 0x736   :  { %v5592_v40 = vld [vmem:[#allocation3 + $0x172] sm:$0xff]  ;;  %v5593_v45 = vld [vmem:[#allocation3 + $0x182] sm:$0xff]  ;;  %v5594_v54 = vld [vmem:[#allocation3 + $0x18a] sm:$0xff]  ;;  %15909 = vst [vmem:[#allocation47_spill] sm:$0xff] %v13088_v9  ;;  %v13112_v19 = vmul.f32 %v12996_v29, %v5586_v27  ;;  %v13115_v39 = vmul.f32 %v12996_v29, %v5587_v42  ;;  %v13118_v26 = vmul.f32 %v12996_v29, %v5588_v48  ;;  %v13124_v50 = vmul.f32 %v12996_v29, %v5590_v18 }
 0x737   :  { %v5595_v1 = vld [vmem:[#allocation3 + $0x1ca] sm:$0xff]  ;;  %v5596_v62 = vld [vmem:[#allocation3 + $0x1d2] sm:$0xff]  ;;  %v5597_v10 = vld [vmem:[#allocation3 + $0x1e2] sm:$0xff]  ;;  %15910 = vst [vmem:[#allocation56_spill] sm:$0xff] %v13091_v63  ;;  %v13109_v63 = vmul.f32 %v12996_v29, %v5585_v2  ;;  %v13127_v2 = vmul.f32 %v12996_v29, %v5591_v17  ;;  %v13130_v42 = vmul.f32 %v12996_v29, %v5592_v40  ;;  %v13136_v48 = vmul.f32 %v12996_v29, %v5594_v54 }
 0x738   :  { %v5598_v34 = vld [vmem:[#allocation3 + $0x1ea] sm:$0xff]  ;;  %v5599_v43 = vld [vmem:[#allocation3 + $0x1fa] sm:$0xff]  ;;  %v5600_v16 = vld [vmem:[#allocation3 + $0x202] sm:$0xff]  ;;  %15911 = vst [vmem:[#allocation69_spill] sm:$0xff] %v13097_v47  ;;  %v13142_v17 = vmul.f32 %v12996_v29, %v5596_v62 }
 0x739   :  { %v5601_v56 = vld [vmem:[#allocation3 + $0x212] sm:$0xff]  ;;  %v5602_v32 = vld [vmem:[#allocation3 + $0x21a] sm:$0xff]  ;;  %15912 = vst [vmem:[#allocation11_spill] sm:$0xff] %v13100_v30  ;;  %15913 = vst [vmem:[#allocation31_spill] sm:$0xff] %v13103_v53  ;;  %v13121_v53 = vmul.f32 %v12996_v29, %v5589_v58  ;;  %v13139_v58 = vmul.f32 %v12996_v29, %v5595_v1  ;;  %v13148_v40 = vmul.f32 %v12996_v29, %v5598_v34 }
 0x73a   :  { %v5603_v33 = vld [vmem:[#allocation3 + $0x22a] sm:$0xff]  ;;  %v5604_v60 = vld [vmem:[#allocation3 + $0x232] sm:$0xff]  ;;  %v5605_v9 = vld [vmem:[#allocation3 + $0x242] sm:$0xff]  ;;  %15914 = vst [vmem:[#allocation16_spill] sm:$0xff] %v13109_v63  ;;  %v13154_v1 = vmul.f32 %v12996_v29, %v5600_v16  ;;  %v13160_v62 = vmul.f32 %v12996_v29, %v5602_v32 }
 0x73b   :  { %15915 = vst [vmem:[#allocation10_spill] sm:$0xff] %v13112_v19  ;;  %15916 = vst [vmem:[#allocation19_spill] sm:$0xff] %v13115_v39  ;;  %v5606_v25 = vld [vmem:[#allocation3 + $0x24a] sm:$0xff]  ;;  %v5607_v30 = vld [vmem:[#allocation3 + $0x25a] sm:$0xff]  ;;  %v13133_v39 = vmul.f32 %v12996_v29, %v5593_v45  ;;  %v13151_v45 = vmul.f32 %v12996_v29, %v5599_v43  ;;  %v13166_v43 = vmul.f32 %v12996_v29, %v5604_v60 }
 0x73c   :  { %v5608_v47 = vld [vmem:[#allocation3 + $0x262] sm:$0xff]  ;;  %15917 = vst [vmem:[#allocation30_spill] sm:$0xff] %v13121_v53  ;;  %15918 = vst [vmem:[#allocation70_spill] sm:$0xff] %v13124_v50  ;;  %v5609_v27 = vld [vmem:[#allocation3 + $0x272] sm:$0xff]  ;;  %v13172_v16 = vmul.f32 %v12996_v29, %v5606_v25 }
 0x73d   :  { %15919 = vst [vmem:[#allocation72_spill] sm:$0xff] %v13127_v2  ;;  %v5610_v19 = vld [vmem:[#allocation3 + $0x27a] sm:$0xff]  ;;  %v5611_v63 = vld [vmem:[#allocation3 + $0x28a] sm:$0xff]  ;;  %15920 = vst [vmem:[#allocation57_spill] sm:$0xff] %v13133_v39  ;;  %v13145_v2 = vmul.f32 %v12996_v29, %v5597_v10  ;;  %v13163_v10 = vmul.f32 %v12996_v29, %v5603_v33  ;;  %v13178_v33 = vmul.f32 %v12996_v29, %v5608_v47 }
 0x73e   :  { %15921 = vst [vmem:[#allocation13_spill] sm:$0xff] %v13136_v48  ;;  %15922 = vst [vmem:[#allocation58_spill] sm:$0xff] %v13139_v58  ;;  %v5612_v18 = vld [vmem:[#allocation3 + $0x292] sm:$0xff]  ;;  %v5613_v50 = vld [vmem:[#allocation3 + $0x2a2] sm:$0xff]  ;;  %v13157_v58 = vmul.f32 %v12996_v29, %v5601_v56  ;;  %v13175_v56 = vmul.f32 %v12996_v29, %v5607_v30  ;;  %v13184_v60 = vmul.f32 %v12996_v29, %v5610_v19 }
 0x73f   :  { %v5614_v53 = vld [vmem:[#allocation3 + $0x2aa] sm:$0xff]  ;;  %15923 = vst [vmem:[#allocation12_spill] sm:$0xff] %v13145_v2  ;;  %15924 = vst [vmem:[#allocation32_spill] sm:$0xff] %v13148_v40  ;;  %v5615_v54 = vld [vmem:[#allocation3 + $0x2ba] sm:$0xff]  ;;  %v13190_v30 = vmul.f32 %v12996_v29, %v5612_v18 }
 0x740   :  { %15925 = vst [vmem:[#allocation59_spill] sm:$0xff] %v13151_v45  ;;  %v5616_v48 = vld [vmem:[#allocation3 + $0x2c2] sm:$0xff]  ;;  %v5617_v39 = vld [vmem:[#allocation3 + $0x2d2] sm:$0xff]  ;;  %15926 = vst [vmem:[#allocation73_spill] sm:$0xff] %v13157_v58  ;;  %v13169_v45 = vmul.f32 %v12996_v29, %v5605_v9  ;;  %v13187_v9 = vmul.f32 %v12996_v29, %v5611_v63  ;;  %v13196_v47 = vmul.f32 %v12996_v29, %v5614_v53 }
 0x741   :  { %15927 = vst [vmem:[#allocation24_spill] sm:$0xff] %v13160_v62  ;;  %15928 = vst [vmem:[#allocation15_spill] sm:$0xff] %v13163_v10  ;;  %v5618_v34 = vld [vmem:[#allocation3 + $0x2da] sm:$0xff]  ;;  %v5619_v40 = vld [vmem:[#allocation3 + $0x2ea] sm:$0xff]  ;;  %v13181_v10 = vmul.f32 %v12996_v29, %v5609_v27  ;;  %v13199_v27 = vmul.f32 %v12996_v29, %v5615_v54  ;;  %v13202_v19 = vmul.f32 %v12996_v29, %v5616_v48 }
 0x742   :  { %v5620_v2 = vld [vmem:[#allocation3 + $0x2f2] sm:$0xff]  ;;  %15929 = vst [vmem:[#allocation60_spill] sm:$0xff] %v13169_v45  ;;  %15930 = vst [vmem:[#allocation29_spill] sm:$0xff] %v13172_v16  ;;  %v5621_v32 = vld [vmem:[#allocation3 + $0x302] sm:$0xff]  ;;  %v13205_v63 = vmul.f32 %v12996_v29, %v5617_v39  ;;  %v13211_v18 = vmul.f32 %v12996_v29, %v5619_v40 }
 0x743   :  { %15931 = vst [vmem:[#allocation33_spill] sm:$0xff] %v13175_v56  ;;  %v5622_v62 = vld [vmem:[#allocation3 + $0x30a] sm:$0xff]  ;;  %v5623_v58 = vld [vmem:[#allocation3 + $0x31a] sm:$0xff]  ;;  %15932 = vst [vmem:[#allocation61_spill] sm:$0xff] %v13187_v9  ;;  %v13193_v56 = vmul.f32 %v12996_v29, %v5613_v50  ;;  %v13208_v9 = vmul.f32 %v12996_v29, %v5618_v34  ;;  %v13214_v50 = vmul.f32 %v12996_v29, %v5620_v2 }
 0x744   :  { %v5624_v25 = vld [vmem:[#allocation3 + $0x322] sm:$0xff]  ;;  %v5625_v16 = vld [vmem:[#allocation3 + $0x332] sm:$0xff]  ;;  %v5626_v45 = vld [vmem:[#allocation3 + $0x33a] sm:$0xff]  ;;  %v13217_v53 = vmul.f32 %v12996_v29, %v5621_v32  ;;  %v13220_v54 = vmul.f32 %v12996_v29, %v5622_v62  ;;  %v13223_v48 = vmul.f32 %v12996_v29, %v5623_v58  ;;  %v13236_v2 = vadd.f32 %v13043_v28, %v12783_v14 }
 0x745   :  { %v13226_v39 = vmul.f32 %v12996_v29, %v5624_v25  ;;  %v13229_v34 = vmul.f32 %v12996_v29, %v5625_v16  ;;  %v13232_v40 = vmul.f32 %v12996_v29, %v5626_v45  ;;  %v13240_v62 = vadd.f32 %v13046_v11, %v12787_v15  ;;  %v15937_v28 = vld [vmem:[#allocation62_spill] sm:$0xff]  ;;  %v15940_v11 = vld [vmem:[#allocation69_spill] sm:$0xff] }
 0x746   :  { %v13244_v58 = vadd.f32 %v13049_v37, %v12791_v41  ;;  %v13248_v32 = vadd.f32 %v13052_v31, %v12795_v55  ;;  %v13252_v29 = vadd.f32 %v13055_v8, %v12799_v20  ;;  %v13256_v14 = vadd.f32 %v13058_v23, %v12803_v61  ;;  %v15939_v23 = vld [vmem:[#allocation14_spill] sm:$0xff]  ;;  %v15943_v37 = vld [vmem:[#allocation11_spill] sm:$0xff]  ;;  %v15948_v8 = vld [vmem:[#allocation25_spill] sm:$0xff] }
 0x747   :  { %v13260_v15 = vadd.f32 %v13061_v22, %v12807_v44  ;;  %v13264_v41 = vadd.f32 %v13064_v35, %v12811_v24  ;;  %v13268_v55 = vadd.f32 %v13067_v5, %v12815_v6  ;;  %v13272_v20 = vadd.f32 %v13070_v57, %v12819_v3  ;;  %v15933_v57 = vld [vmem:[#allocation47_spill] sm:$0xff]  ;;  %v15935_v22 = vld [vmem:[#allocation56_spill] sm:$0xff]  ;;  %v15954_v45 = vld [vmem:[#allocation10_spill] sm:$0xff] }
 0x748   :  { %v13276_v61 = vadd.f32 %v13073_v38, %v12823_v59  ;;  %v13280_v44 = vadd.f32 %v13076_v0, %v12827_v13  ;;  %v13284_v24 = vadd.f32 %v13079_v4, %v12831_v52  ;;  %v13288_v6 = vadd.f32 %v13082_v46, %v12835_v36  ;;  %v15934_v38 = vld [vmem:[#allocation48_spill] sm:$0xff]  ;;  %v15942_v46 = vld [vmem:[#allocation26_spill] sm:$0xff]  ;;  %v15946_v31 = vld [vmem:[#allocation31_spill] sm:$0xff] }
 0x749   :  { %v13292_v3 = vadd.f32 %v13085_v21, %v12839_v7  ;;  %v13296_v59 = vadd.f32 %v15933_v57, %v12843_v12  ;;  %v13300_v13 = vadd.f32 %v15935_v22, %v15934_v38  ;;  %v13304_v52 = vadd.f32 %v13094_v49, %v15937_v28  ;;  %v15945_v21 = vld [vmem:[#allocation17_spill] sm:$0xff]  ;;  %v15950_v5 = vld [vmem:[#allocation27_spill] sm:$0xff]  ;;  %v15951_v0 = vld [vmem:[#allocation16_spill] sm:$0xff] }
 0x74a   :  { %v13308_v36 = vadd.f32 %v15940_v11, %v15939_v23  ;;  %v13312_v7 = vadd.f32 %v15943_v37, %v15942_v46  ;;  %v13316_v12 = vadd.f32 %v15946_v31, %v15945_v21  ;;  %v13320_v35 = vadd.f32 %v13106_v51, %v15948_v8  ;;  %v15953_v4 = vld [vmem:[#allocation35_spill] sm:$0xff]  ;;  %v15956_v25 = vld [vmem:[#allocation22_spill] sm:$0xff]  ;;  %v15959_v22 = vld [vmem:[#allocation36_spill] sm:$0xff] }
 0x74b   :  { %15936 = vst [vmem:[#allocation74_spill] sm:$0xff] %v13300_v13  ;;  %15938 = vst [vmem:[#allocation47_spill] sm:$0xff] %v13304_v52  ;;  %v13324_v49 = vadd.f32 %v15951_v0, %v15950_v5  ;;  %v13328_v16 = vadd.f32 %v15954_v45, %v15953_v4  ;;  %v15957_v57 = vld [vmem:[#allocation19_spill] sm:$0xff]  ;;  %v13336_v28 = vadd.f32 %v13118_v26, %v15959_v22  ;;  %v15962_v11 = vld [vmem:[#allocation30_spill] sm:$0xff] }
 0x74c   :  { %15941 = vst [vmem:[#allocation48_spill] sm:$0xff] %v13308_v36  ;;  %15944 = vst [vmem:[#allocation56_spill] sm:$0xff] %v13312_v7  ;;  %v13332_v38 = vadd.f32 %v15957_v57, %v15956_v25  ;;  %v15961_v23 = vld [vmem:[#allocation63_spill] sm:$0xff]  ;;  %v15964_v46 = vld [vmem:[#allocation50_spill] sm:$0xff] }
 0x74d   :  { %15947 = vst [vmem:[#allocation62_spill] sm:$0xff] %v13316_v12  ;;  %15949 = vst [vmem:[#allocation14_spill] sm:$0xff] %v13320_v35  ;;  %v13340_v51 = vadd.f32 %v15962_v11, %v15961_v23  ;;  %v15965_v37 = vld [vmem:[#allocation70_spill] sm:$0xff]  ;;  %v15967_v31 = vld [vmem:[#allocation37_spill] sm:$0xff] }
 0x74e   :  { %15952 = vst [vmem:[#allocation69_spill] sm:$0xff] %v13324_v49  ;;  %15955 = vst [vmem:[#allocation26_spill] sm:$0xff] %v13328_v16  ;;  %v13344_v21 = vadd.f32 %v15965_v37, %v15964_v46  ;;  %v15968_v8 = vld [vmem:[#allocation72_spill] sm:$0xff]  ;;  %v15970_v0 = vld [vmem:[#allocation34_spill] sm:$0xff] }
 0x74f   :  { %15958 = vst [vmem:[#allocation11_spill] sm:$0xff] %v13332_v38  ;;  %15960 = vst [vmem:[#allocation17_spill] sm:$0xff] %v13336_v28  ;;  %v13348_v5 = vadd.f32 %v15968_v8, %v15967_v31  ;;  %v13352_v4 = vadd.f32 %v13130_v42, %v15970_v0  ;;  %v15972_v45 = vld [vmem:[#allocation4_spill] sm:$0xff]  ;;  %v15973_v25 = vld [vmem:[#allocation57_spill] sm:$0xff] }
 0x750   :  { %15963 = vst [vmem:[#allocation31_spill] sm:$0xff] %v13340_v51  ;;  %15966 = vst [vmem:[#allocation25_spill] sm:$0xff] %v13344_v21  ;;  %v13356_v26 = vadd.f32 %v15973_v25, %v15972_v45  ;;  %v15975_v57 = vld [vmem:[#allocation64_spill] sm:$0xff]  ;;  %v15976_v22 = vld [vmem:[#allocation13_spill] sm:$0xff] }
 0x751   :  { %15969 = vst [vmem:[#allocation27_spill] sm:$0xff] %v13348_v5  ;;  %15971 = vst [vmem:[#allocation16_spill] sm:$0xff] %v13352_v4  ;;  %v13360_v23 = vadd.f32 %v15976_v22, %v15975_v57  ;;  %v15978_v11 = vld [vmem:[#allocation38_spill] sm:$0xff]  ;;  %v15981_v37 = vld [vmem:[#allocation28_spill] sm:$0xff] }
 0x752   :  { %15974 = vst [vmem:[#allocation35_spill] sm:$0xff] %v13356_v26  ;;  %v15979_v51 = vld [vmem:[#allocation58_spill] sm:$0xff]  ;;  %v13368_v31 = vadd.f32 %v13142_v17, %v15981_v37  ;;  %v15983_v8 = vld [vmem:[#allocation71_spill] sm:$0xff]  ;;  %v15984_v5 = vld [vmem:[#allocation12_spill] sm:$0xff] }
 0x753   :  { %15977 = vst [vmem:[#allocation10_spill] sm:$0xff] %v13360_v23  ;;  %v13364_v46 = vadd.f32 %v15979_v51, %v15978_v11  ;;  %v13372_v42 = vadd.f32 %v15984_v5, %v15983_v8  ;;  %v15986_v0 = vld [vmem:[#allocation39_spill] sm:$0xff]  ;;  %v15987_v4 = vld [vmem:[#allocation32_spill] sm:$0xff]  ;;  %v15994_v11 = vld [vmem:[#allocation18_spill] sm:$0xff] }
 0x754   :  { %15982 = vst [vmem:[#allocation19_spill] sm:$0xff] %v13368_v31  ;;  %v13376_v45 = vadd.f32 %v15987_v4, %v15986_v0  ;;  %v15989_v25 = vld [vmem:[#allocation75_spill] sm:$0xff]  ;;  %v15992_v22 = vld [vmem:[#allocation40_spill] sm:$0xff]  ;;  %v16000_v8 = vld [vmem:[#allocation21_spill] sm:$0xff] }
 0x755   :  { %15980 = vst [vmem:[#allocation22_spill] sm:$0xff] %v13364_v46  ;;  %15985 = vst [vmem:[#allocation36_spill] sm:$0xff] %v13372_v42  ;;  %v15990_v26 = vld [vmem:[#allocation59_spill] sm:$0xff]  ;;  %v13384_v51 = vadd.f32 %v13154_v1, %v15992_v22  ;;  %v15995_v46 = vld [vmem:[#allocation73_spill] sm:$0xff] }
 0x756   :  { %15988 = vst [vmem:[#allocation63_spill] sm:$0xff] %v13376_v45  ;;  %v13380_v57 = vadd.f32 %v15990_v26, %v15989_v25  ;;  %v13388_v17 = vadd.f32 %v15995_v46, %v15994_v11  ;;  %v15997_v37 = vld [vmem:[#allocation51_spill] sm:$0xff]  ;;  %v15998_v31 = vld [vmem:[#allocation24_spill] sm:$0xff]  ;;  %v16003_v0 = vld [vmem:[#allocation41_spill] sm:$0xff] }
 0x757   :  { %15993 = vst [vmem:[#allocation50_spill] sm:$0xff] %v13384_v51  ;;  %v13392_v5 = vadd.f32 %v15998_v31, %v15997_v37  ;;  %v16001_v42 = vld [vmem:[#allocation15_spill] sm:$0xff]  ;;  %v13400_v26 = vadd.f32 %v13166_v43, %v16003_v0  ;;  %v16005_v25 = vld [vmem:[#allocation6_spill] sm:$0xff]  ;;  %v16008_v22 = vld [vmem:[#allocation65_spill] sm:$0xff] }
 0x758   :  { %15991 = vst [vmem:[#allocation30_spill] sm:$0xff] %v13380_v57  ;;  %15996 = vst [vmem:[#allocation70_spill] sm:$0xff] %v13388_v17  ;;  %v13396_v4 = vadd.f32 %v16001_v42, %v16000_v8  ;;  %v16006_v57 = vld [vmem:[#allocation60_spill] sm:$0xff]  ;;  %v16009_v51 = vld [vmem:[#allocation29_spill] sm:$0xff] }
 0x759   :  { %15999 = vst [vmem:[#allocation37_spill] sm:$0xff] %v13392_v5  ;;  %16004 = vst [vmem:[#allocation34_spill] sm:$0xff] %v13400_v26  ;;  %v13404_v1 = vadd.f32 %v16006_v57, %v16005_v25  ;;  %v13408_v46 = vadd.f32 %v16009_v51, %v16008_v22  ;;  %v16011_v11 = vld [vmem:[#allocation42_spill] sm:$0xff]  ;;  %v16012_v17 = vld [vmem:[#allocation33_spill] sm:$0xff] }
 0x75a   :  { %16002 = vst [vmem:[#allocation72_spill] sm:$0xff] %v13396_v4  ;;  %v13412_v31 = vadd.f32 %v16012_v17, %v16011_v11  ;;  %v5761_v37 = vld [vmem:[#allocation3 + $0x30] sm:$0xff]  ;;  %v16014_v5 = vld [vmem:[#allocation44_spill] sm:$0xff]  ;;  %v16020_v25 = vld [vmem:[#allocation43_spill] sm:$0xff] }
 0x75b   :  { %16007 = vst [vmem:[#allocation4_spill] sm:$0xff] %v13404_v1  ;;  %16010 = vst [vmem:[#allocation57_spill] sm:$0xff] %v13408_v46  ;;  %v13416_v42 = vadd.f32 %v13178_v33, %v16014_v5  ;;  %v16016_v8 = vld [vmem:[#allocation52_spill] sm:$0xff]  ;;  %v16018_v0 = vld [vmem:[#allocation66_spill] sm:$0xff] }
 0x75c   :  { %16013 = vst [vmem:[#allocation64_spill] sm:$0xff] %v13412_v31  ;;  %v13420_v43 = vadd.f32 %v13181_v10, %v16016_v8  ;;  %v13424_v57 = vadd.f32 %v13184_v60, %v16018_v0  ;;  %v16021_v51 = vld [vmem:[#allocation61_spill] sm:$0xff]  ;;  %v5762_v46 = vld [vmem:[#allocation3 + $0x38] sm:$0xff]  ;;  %v5764_v11 = vld [vmem:[#allocation3 + $0x50] sm:$0xff] }
 0x75d   :  { %16015 = vst [vmem:[#allocation13_spill] sm:$0xff] %v13416_v42  ;;  %v13428_v22 = vadd.f32 %v16021_v51, %v16020_v25  ;;  %v5763_v17 = vld [vmem:[#allocation3 + $0x48] sm:$0xff]  ;;  %v5765_v31 = vld [vmem:[#allocation3 + $0x60] sm:$0xff]  ;;  %v16029_v0 = vld [vmem:[#allocation67_spill] sm:$0xff] }
 0x75e   :  { %16017 = vst [vmem:[#allocation38_spill] sm:$0xff] %v13420_v43  ;;  %16019 = vst [vmem:[#allocation58_spill] sm:$0xff] %v13424_v57  ;;  %v16023_v1 = vld [vmem:[#allocation45_spill] sm:$0xff]  ;;  %v16025_v5 = vld [vmem:[#allocation20_spill] sm:$0xff]  ;;  %v13444_v25 = vadd.f32 %v13199_v27, %v16029_v0 }
 0x75f   :  { %16022 = vst [vmem:[#allocation28_spill] sm:$0xff] %v13428_v22  ;;  %v13432_v33 = vadd.f32 %v13190_v30, %v16023_v1  ;;  %v13436_v10 = vadd.f32 %v13193_v56, %v16025_v5  ;;  %v16027_v8 = vld [vmem:[#allocation5_spill] sm:$0xff]  ;;  %v5767_v22 = vld [vmem:[#allocation3 + $0x78] sm:$0xff]  ;;  %v5768_v57 = vld [vmem:[#allocation3 + $0x80] sm:$0xff] }
 0x760   :  { %v13440_v60 = vadd.f32 %v13196_v47, %v16027_v8  ;;  %16030 = vst [vmem:[#allocation32_spill] sm:$0xff] %v13444_v25  ;;  %v5766_v51 = vld [vmem:[#allocation3 + $0x68] sm:$0xff]  ;;  %v5769_v43 = vld [vmem:[#allocation3 + $0x90] sm:$0xff]  ;;  %v13449_v30 = vld [vmem:[%s15171_s4 + $0x6] ss:$0 sm:$0xff] }
 0x761   :  { %16024 = vst [vmem:[#allocation71_spill] sm:$0xff] %v13432_v33  ;;  %16026 = vst [vmem:[#allocation12_spill] sm:$0xff] %v13436_v10  ;;  %v16031_v1 = vld [vmem:[#allocation49_spill] sm:$0xff]  ;;  %v16033_v5 = vld [vmem:[#allocation46_spill] sm:$0xff]  ;;  %v13514_v45 = vmul.f32 %v13449_v30, %v5767_v22 }
 0x762   :  { %16028 = vst [vmem:[#allocation39_spill] sm:$0xff] %v13440_v60  ;;  %v13453_v56 = vadd.f32 %v13202_v19, %v16031_v1  ;;  %v13457_v47 = vadd.f32 %v13205_v63, %v16033_v5  ;;  %v16035_v8 = vld [vmem:[#allocation8_spill] sm:$0xff]  ;;  %v16037_v0 = vld [vmem:[#allocation53_spill] sm:$0xff]  ;;  %v5770_v60 = vld [vmem:[#allocation3 + $0x98] sm:$0xff] }
 0x763   :  { %v13461_v27 = vadd.f32 %v13208_v9, %v16035_v8  ;;  %v13465_v25 = vadd.f32 %v13211_v18, %v16037_v0  ;;  %v5771_v10 = vld [vmem:[#allocation3 + $0xa8] sm:$0xff]  ;;  %v5772_v33 = vld [vmem:[#allocation3 + $0xb0] sm:$0xff]  ;;  %v5773_v42 = vld [vmem:[#allocation3 + $0xc0] sm:$0xff]  ;;  %v13523_v28 = vmul.f32 %v13449_v30, %v5770_v60 }
 0x764   :  { %16032 = vst [vmem:[#allocation75_spill] sm:$0xff] %v13453_v56  ;;  %16034 = vst [vmem:[#allocation59_spill] sm:$0xff] %v13457_v47  ;;  %v16039_v26 = vld [vmem:[#allocation23_spill] sm:$0xff]  ;;  %v16043_v5 = vld [vmem:[#allocation76_spill] sm:$0xff]  ;;  %v13526_v38 = vmul.f32 %v13449_v30, %v5771_v10  ;;  %v13532_v22 = vmul.f32 %v13449_v30, %v5773_v42 }
 0x765   :  { %16036 = vst [vmem:[#allocation40_spill] sm:$0xff] %v13461_v27  ;;  %16038 = vst [vmem:[#allocation18_spill] sm:$0xff] %v13465_v25  ;;  %v13469_v19 = vadd.f32 %v13214_v50, %v16039_v26  ;;  %v16041_v1 = vld [vmem:[#allocation7_spill] sm:$0xff]  ;;  %v13477_v9 = vadd.f32 %v13220_v54, %v16043_v5  ;;  %v16045_v8 = vld [vmem:[#allocation54_spill] sm:$0xff] }
 0x766   :  { %v13473_v63 = vadd.f32 %v13217_v53, %v16041_v1  ;;  %v13481_v18 = vadd.f32 %v13223_v48, %v16045_v8  ;;  %v5774_v0 = vld [vmem:[#allocation3 + $0xc8] sm:$0xff]  ;;  %v5775_v25 = vld [vmem:[#allocation3 + $0xd8] sm:$0xff]  ;;  %v5776_v27 = vld [vmem:[#allocation3 + $0xe0] sm:$0xff] }
 0x767   :  { %16040 = vst [vmem:[#allocation73_spill] sm:$0xff] %v13469_v19  ;;  %16044 = vst [vmem:[#allocation24_spill] sm:$0xff] %v13477_v9  ;;  %v5777_v47 = vld [vmem:[#allocation3 + $0xf0] sm:$0xff]  ;;  %v16047_v56 = vld [vmem:[#allocation68_spill] sm:$0xff]  ;;  %v13535_v35 = vmul.f32 %v13449_v30, %v5774_v0  ;;  %v13538_v12 = vmul.f32 %v13449_v30, %v5775_v25  ;;  %v13541_v60 = vmul.f32 %v13449_v30, %v5776_v27 }
 0x768   :  { %16042 = vst [vmem:[#allocation51_spill] sm:$0xff] %v13473_v63  ;;  %16046 = vst [vmem:[#allocation21_spill] sm:$0xff] %v13481_v18  ;;  %v13485_v50 = vadd.f32 %v13226_v39, %v16047_v56  ;;  %v16049_v26 = vld [vmem:[#allocation55_spill] sm:$0xff]  ;;  %v16051_v1 = vld [vmem:[#allocation9_spill] sm:$0xff]  ;;  %v13496_v18 = vmul.f32 %v13449_v30, %v5761_v37  ;;  %v13499_v56 = vmul.f32 %v13449_v30, %v5762_v46 }
 0x769   :  { %v13489_v53 = vadd.f32 %v13229_v34, %v16049_v26  ;;  %v13493_v54 = vadd.f32 %v13232_v40, %v16051_v1  ;;  %v5778_v5 = vld [vmem:[#allocation3 + $0xf8] sm:$0xff]  ;;  %v5779_v9 = vld [vmem:[#allocation3 + $0x108] sm:$0xff]  ;;  %v5780_v48 = vld [vmem:[#allocation3 + $0x110] sm:$0xff]  ;;  %v13502_v34 = vmul.f32 %v13449_v30, %v5763_v17  ;;  %v13505_v40 = vmul.f32 %v13449_v30, %v5764_v11  ;;  %16053 = vst [vmem:[#allocation60_spill] sm:$0xff] %v13541_v60 }
 0x76a   :  { %16048 = vst [vmem:[#allocation15_spill] sm:$0xff] %v13485_v50  ;;  %v5781_v8 = vld [vmem:[#allocation3 + $0x120] sm:$0xff]  ;;  %v5782_v63 = vld [vmem:[#allocation3 + $0x128] sm:$0xff]  ;;  %v5783_v19 = vld [vmem:[#allocation3 + $0x138] sm:$0xff]  ;;  %v13508_v26 = vmul.f32 %v13449_v30, %v5765_v31  ;;  %v13511_v50 = vmul.f32 %v13449_v30, %v5766_v51  ;;  %v13517_v46 = vmul.f32 %v13449_v30, %v5768_v57  ;;  %v13520_v17 = vmul.f32 %v13449_v30, %v5769_v43 }
 0x76b   :  { %16050 = vst [vmem:[#allocation41_spill] sm:$0xff] %v13489_v53  ;;  %16052 = vst [vmem:[#allocation6_spill] sm:$0xff] %v13493_v54  ;;  %v5784_v4 = vld [vmem:[#allocation3 + $0x140] sm:$0xff]  ;;  %v5785_v39 = vld [vmem:[#allocation3 + $0x150] sm:$0xff]  ;;  %v13529_v51 = vmul.f32 %v13449_v30, %v5772_v33  ;;  %v13544_v10 = vmul.f32 %v13449_v30, %v5777_v47  ;;  %v13547_v36 = vmul.f32 %v13449_v30, %v5778_v5 }
 0x76c   :  { %v5786_v1 = vld [vmem:[#allocation3 + $0x158] sm:$0xff]  ;;  %v5787_v54 = vld [vmem:[#allocation3 + $0x168] sm:$0xff]  ;;  %v5788_v37 = vld [vmem:[#allocation3 + $0x170] sm:$0xff]  ;;  %v13550_v52 = vmul.f32 %v13449_v30, %v5779_v9  ;;  %v13553_v0 = vmul.f32 %v13449_v30, %v5780_v48  ;;  %v13556_v25 = vmul.f32 %v13449_v30, %v5781_v8  ;;  %v13559_v47 = vmul.f32 %v13449_v30, %v5782_v63 }
 0x76d   :  { %v5789_v53 = vld [vmem:[#allocation3 + $0x180] sm:$0xff]  ;;  %v5790_v11 = vld [vmem:[#allocation3 + $0x188] sm:$0xff]  ;;  %v5791_v23 = vld [vmem:[#allocation3 + $0x198] sm:$0xff]  ;;  %16054 = vst [vmem:[#allocation65_spill] sm:$0xff] %v13544_v10  ;;  %v13562_v10 = vmul.f32 %v13449_v30, %v5783_v19  ;;  %v13565_v5 = vmul.f32 %v13449_v30, %v5784_v4  ;;  %v13568_v9 = vmul.f32 %v13449_v30, %v5785_v39  ;;  %v13571_v8 = vmul.f32 %v13449_v30, %v5786_v1 }
 0x76e   :  { %v5792_v31 = vld [vmem:[#allocation3 + $0x1a0] sm:$0xff]  ;;  %v5794_v57 = vld [vmem:[#allocation3 + $0x1e8] sm:$0xff]  ;;  %v5795_v16 = vld [vmem:[#allocation3 + $0x1f8] sm:$0xff]  ;;  %16055 = vst [vmem:[#allocation29_spill] sm:$0xff] %v13550_v52  ;;  %v13577_v63 = vmul.f32 %v13449_v30, %v5788_v37  ;;  %v13580_v19 = vmul.f32 %v13449_v30, %v5789_v53  ;;  %v13583_v39 = vmul.f32 %v13449_v30, %v5790_v11 }
 0x76f   :  { %v5793_v21 = vld [vmem:[#allocation3 + $0x1e0] sm:$0xff]  ;;  %v5797_v49 = vld [vmem:[#allocation3 + $0x210] sm:$0xff]  ;;  %v5798_v33 = vld [vmem:[#allocation3 + $0x218] sm:$0xff]  ;;  %16056 = vst [vmem:[#allocation42_spill] sm:$0xff] %v13553_v0  ;;  %v13589_v1 = vmul.f32 %v13449_v30, %v5792_v31  ;;  %v13595_v53 = vmul.f32 %v13449_v30, %v5794_v57 }
 0x770   :  { %v5796_v43 = vld [vmem:[#allocation3 + $0x200] sm:$0xff]  ;;  %v5799_v7 = vld [vmem:[#allocation3 + $0x228] sm:$0xff]  ;;  %v5800_v42 = vld [vmem:[#allocation3 + $0x230] sm:$0xff]  ;;  %16057 = vst [vmem:[#allocation33_spill] sm:$0xff] %v13556_v25  ;;  %v13574_v25 = vmul.f32 %v13449_v30, %v5787_v54  ;;  %v13592_v54 = vmul.f32 %v13449_v30, %v5793_v21  ;;  %v13607_v21 = vmul.f32 %v13449_v30, %v5798_v33 }
 0x771   :  { %v5801_v27 = vld [vmem:[#allocation3 + $0x240] sm:$0xff]  ;;  %v5802_v13 = vld [vmem:[#allocation3 + $0x248] sm:$0xff]  ;;  %v5803_v60 = vld [vmem:[#allocation3 + $0x258] sm:$0xff]  ;;  %16058 = vst [vmem:[#allocation44_spill] sm:$0xff] %v13562_v10  ;;  %v13601_v11 = vmul.f32 %v13449_v30, %v5796_v43  ;;  %v13613_v57 = vmul.f32 %v13449_v30, %v5800_v42 }
 0x772   :  { %16059 = vst [vmem:[#allocation52_spill] sm:$0xff] %v13565_v5  ;;  %16060 = vst [vmem:[#allocation66_spill] sm:$0xff] %v13568_v9  ;;  %v5804_v48 = vld [vmem:[#allocation3 + $0x260] sm:$0xff]  ;;  %v5805_v0 = vld [vmem:[#allocation3 + $0x270] sm:$0xff]  ;;  %v13586_v9 = vmul.f32 %v13449_v30, %v5791_v23  ;;  %v13604_v23 = vmul.f32 %v13449_v30, %v5797_v49  ;;  %v13619_v49 = vmul.f32 %v13449_v30, %v5802_v13 }
 0x773   :  { %v5806_v52 = vld [vmem:[#allocation3 + $0x278] sm:$0xff]  ;;  %16061 = vst [vmem:[#allocation43_spill] sm:$0xff] %v13574_v25  ;;  %16062 = vst [vmem:[#allocation61_spill] sm:$0xff] %v13577_v63  ;;  %v5807_v4 = vld [vmem:[#allocation3 + $0x288] sm:$0xff]  ;;  %v13625_v33 = vmul.f32 %v13449_v30, %v5804_v48 }
 0x774   :  { %16063 = vst [vmem:[#allocation45_spill] sm:$0xff] %v13580_v19  ;;  %v5808_v5 = vld [vmem:[#allocation3 + $0x290] sm:$0xff]  ;;  %v5809_v10 = vld [vmem:[#allocation3 + $0x2a0] sm:$0xff]  ;;  %16064 = vst [vmem:[#allocation20_spill] sm:$0xff] %v13586_v9  ;;  %v13598_v19 = vmul.f32 %v13449_v30, %v5795_v16  ;;  %v13616_v16 = vmul.f32 %v13449_v30, %v5801_v27  ;;  %v13631_v27 = vmul.f32 %v13449_v30, %v5806_v52 }
 0x775   :  { %16065 = vst [vmem:[#allocation5_spill] sm:$0xff] %v13589_v1  ;;  %16066 = vst [vmem:[#allocation67_spill] sm:$0xff] %v13592_v54  ;;  %v5810_v37 = vld [vmem:[#allocation3 + $0x2a8] sm:$0xff]  ;;  %v5811_v63 = vld [vmem:[#allocation3 + $0x2b8] sm:$0xff]  ;;  %v13610_v54 = vmul.f32 %v13449_v30, %v5799_v7  ;;  %v13628_v7 = vmul.f32 %v13449_v30, %v5805_v0  ;;  %v13637_v13 = vmul.f32 %v13449_v30, %v5808_v5 }
 0x776   :  { %v5812_v25 = vld [vmem:[#allocation3 + $0x2c0] sm:$0xff]  ;;  %16067 = vst [vmem:[#allocation49_spill] sm:$0xff] %v13598_v19  ;;  %16068 = vst [vmem:[#allocation46_spill] sm:$0xff] %v13601_v11  ;;  %v5813_v31 = vld [vmem:[#allocation3 + $0x2d0] sm:$0xff]  ;;  %v13643_v0 = vmul.f32 %v13449_v30, %v5810_v37 }
 0x777   :  { %16069 = vst [vmem:[#allocation8_spill] sm:$0xff] %v13604_v23  ;;  %v5814_v1 = vld [vmem:[#allocation3 + $0x2d8] sm:$0xff]  ;;  %v5815_v9 = vld [vmem:[#allocation3 + $0x2e8] sm:$0xff]  ;;  %16070 = vst [vmem:[#allocation53_spill] sm:$0xff] %v13610_v54  ;;  %v13622_v23 = vmul.f32 %v13449_v30, %v5803_v60  ;;  %v13640_v60 = vmul.f32 %v13449_v30, %v5809_v10  ;;  %v13649_v52 = vmul.f32 %v13449_v30, %v5812_v25 }
 0x778   :  { %16071 = vst [vmem:[#allocation23_spill] sm:$0xff] %v13613_v57  ;;  %16072 = vst [vmem:[#allocation7_spill] sm:$0xff] %v13616_v16  ;;  %v5816_v43 = vld [vmem:[#allocation3 + $0x2f0] sm:$0xff]  ;;  %v5817_v11 = vld [vmem:[#allocation3 + $0x300] sm:$0xff]  ;;  %v13634_v16 = vmul.f32 %v13449_v30, %v5807_v4  ;;  %v13652_v4 = vmul.f32 %v13449_v30, %v5813_v31  ;;  %v13655_v5 = vmul.f32 %v13449_v30, %v5814_v1 }
 0x779   :  { %v5818_v19 = vld [vmem:[#allocation3 + $0x308] sm:$0xff]  ;;  %16073 = vst [vmem:[#allocation76_spill] sm:$0xff] %v13622_v23  ;;  %16074 = vst [vmem:[#allocation54_spill] sm:$0xff] %v13625_v33  ;;  %v5819_v42 = vld [vmem:[#allocation3 + $0x318] sm:$0xff]  ;;  %v13658_v10 = vmul.f32 %v13449_v30, %v5815_v9  ;;  %v13664_v37 = vmul.f32 %v13449_v30, %v5817_v11 }
 0x77a   :  { %16075 = vst [vmem:[#allocation68_spill] sm:$0xff] %v13628_v7  ;;  %v5820_v57 = vld [vmem:[#allocation3 + $0x320] sm:$0xff]  ;;  %v5821_v54 = vld [vmem:[#allocation3 + $0x330] sm:$0xff]  ;;  %16076 = vst [vmem:[#allocation55_spill] sm:$0xff] %v13640_v60  ;;  %v13646_v7 = vmul.f32 %v13449_v30, %v5811_v63  ;;  %v13661_v60 = vmul.f32 %v13449_v30, %v5816_v43  ;;  %v13667_v63 = vmul.f32 %v13449_v30, %v5818_v19 }
 0x77b   :  { %v5822_v48 = vld [vmem:[#allocation3 + $0x338] sm:$0xff]  ;;  %v5823_v33 = vld [vmem:[#allocation3 + $0x348] sm:$0xff]  ;;  %v5824_v23 = vld [vmem:[#allocation3 + $0x350] sm:$0xff]  ;;  %v13670_v25 = vmul.f32 %v13449_v30, %v5819_v42  ;;  %v13673_v31 = vmul.f32 %v13449_v30, %v5820_v57  ;;  %v13676_v1 = vmul.f32 %v13449_v30, %v5821_v54  ;;  %v13689_v19 = vadd.f32 %v13496_v18, %v13236_v2 }
 0x77c   :  { %v13679_v9 = vmul.f32 %v13449_v30, %v5822_v48  ;;  %v13682_v43 = vmul.f32 %v13449_v30, %v5823_v33  ;;  %v13685_v11 = vmul.f32 %v13449_v30, %v5824_v23  ;;  %v13693_v57 = vadd.f32 %v13499_v56, %v13240_v62  ;;  %v16081_v18 = vld [vmem:[#allocation47_spill] sm:$0xff]  ;;  %v16084_v56 = vld [vmem:[#allocation29_spill] sm:$0xff]  ;;  %v16098_v23 = vld [vmem:[#allocation52_spill] sm:$0xff] }
 0x77d   :  { %v13697_v54 = vadd.f32 %v13502_v34, %v13244_v58  ;;  %v13701_v42 = vadd.f32 %v13505_v40, %v13248_v32  ;;  %v13705_v30 = vadd.f32 %v13508_v26, %v13252_v29  ;;  %v13709_v2 = vadd.f32 %v13511_v50, %v13256_v14  ;;  %v16083_v50 = vld [vmem:[#allocation48_spill] sm:$0xff]  ;;  %v16087_v34 = vld [vmem:[#allocation42_spill] sm:$0xff]  ;;  %v16090_v40 = vld [vmem:[#allocation33_spill] sm:$0xff] }
 0x77e   :  { %v13713_v62 = vadd.f32 %v13514_v45, %v13260_v15  ;;  %v13717_v58 = vadd.f32 %v13517_v46, %v13264_v41  ;;  %v13721_v32 = vadd.f32 %v13520_v17, %v13268_v55  ;;  %v13725_v29 = vadd.f32 %v13523_v28, %v13272_v20  ;;  %v16077_v28 = vld [vmem:[#allocation60_spill] sm:$0xff]  ;;  %v16079_v45 = vld [vmem:[#allocation65_spill] sm:$0xff]  ;;  %v16092_v26 = vld [vmem:[#allocation14_spill] sm:$0xff] }
 0x77f   :  { %v13729_v14 = vadd.f32 %v13526_v38, %v13276_v61  ;;  %v13733_v15 = vadd.f32 %v13529_v51, %v13280_v44  ;;  %v13737_v41 = vadd.f32 %v13532_v22, %v13284_v24  ;;  %v13741_v55 = vadd.f32 %v13535_v35, %v13288_v6  ;;  %v16078_v38 = vld [vmem:[#allocation74_spill] sm:$0xff]  ;;  %v16086_v35 = vld [vmem:[#allocation56_spill] sm:$0xff]  ;;  %v16094_v17 = vld [vmem:[#allocation69_spill] sm:$0xff] }
 0x780   :  { %v13745_v20 = vadd.f32 %v13538_v12, %v13292_v3  ;;  %v13749_v61 = vadd.f32 %v16077_v28, %v13296_v59  ;;  %v13753_v44 = vadd.f32 %v16079_v45, %v16078_v38  ;;  %v13757_v24 = vadd.f32 %v13547_v36, %v16081_v18  ;;  %v16089_v12 = vld [vmem:[#allocation62_spill] sm:$0xff]  ;;  %v16095_v51 = vld [vmem:[#allocation44_spill] sm:$0xff]  ;;  %v16100_v48 = vld [vmem:[#allocation11_spill] sm:$0xff] }
 0x781   :  { %v13761_v6 = vadd.f32 %v16084_v56, %v16083_v50  ;;  %v13765_v3 = vadd.f32 %v16087_v34, %v16086_v35  ;;  %v13769_v59 = vadd.f32 %v16090_v40, %v16089_v12  ;;  %v13773_v46 = vadd.f32 %v13559_v47, %v16092_v26  ;;  %v16097_v22 = vld [vmem:[#allocation26_spill] sm:$0xff]  ;;  %v16103_v45 = vld [vmem:[#allocation17_spill] sm:$0xff]  ;;  %v16105_v50 = vld [vmem:[#allocation31_spill] sm:$0xff] }
 0x782   :  { %16080 = vst [vmem:[#allocation9_spill] sm:$0xff] %v13753_v44  ;;  %16082 = vst [vmem:[#allocation60_spill] sm:$0xff] %v13757_v24  ;;  %v13777_v36 = vadd.f32 %v16095_v51, %v16094_v17  ;;  %v13781_v33 = vadd.f32 %v16098_v23, %v16097_v22  ;;  %v16101_v28 = vld [vmem:[#allocation66_spill] sm:$0xff]  ;;  %v13789_v18 = vadd.f32 %v13571_v8, %v16103_v45  ;;  %v16106_v56 = vld [vmem:[#allocation43_spill] sm:$0xff] }
 0x783   :  { %16085 = vst [vmem:[#allocation74_spill] sm:$0xff] %v13761_v6  ;;  %16088 = vst [vmem:[#allocation65_spill] sm:$0xff] %v13765_v3  ;;  %v13785_v38 = vadd.f32 %v16101_v28, %v16100_v48  ;;  %v13793_v47 = vadd.f32 %v16106_v56, %v16105_v50  ;;  %v16108_v35 = vld [vmem:[#allocation25_spill] sm:$0xff]  ;;  %v16111_v40 = vld [vmem:[#allocation27_spill] sm:$0xff] }
 0x784   :  { %16091 = vst [vmem:[#allocation47_spill] sm:$0xff] %v13769_v59  ;;  %16093 = vst [vmem:[#allocation48_spill] sm:$0xff] %v13773_v46  ;;  %v16109_v34 = vld [vmem:[#allocation61_spill] sm:$0xff]  ;;  %v16114_v51 = vld [vmem:[#allocation16_spill] sm:$0xff] }
 0x785   :  { %16096 = vst [vmem:[#allocation29_spill] sm:$0xff] %v13777_v36  ;;  %16099 = vst [vmem:[#allocation56_spill] sm:$0xff] %v13781_v33  ;;  %v13797_v12 = vadd.f32 %v16109_v34, %v16108_v35  ;;  %v16112_v26 = vld [vmem:[#allocation45_spill] sm:$0xff]  ;;  %v13805_v22 = vadd.f32 %v13583_v39, %v16114_v51  ;;  %v16116_v23 = vld [vmem:[#allocation35_spill] sm:$0xff] }
 0x786   :  { %16102 = vst [vmem:[#allocation42_spill] sm:$0xff] %v13785_v38  ;;  %16104 = vst [vmem:[#allocation62_spill] sm:$0xff] %v13789_v18  ;;  %v13801_v17 = vadd.f32 %v16112_v26, %v16111_v40  ;;  %v16117_v48 = vld [vmem:[#allocation20_spill] sm:$0xff]  ;;  %v16119_v28 = vld [vmem:[#allocation10_spill] sm:$0xff] }
 0x787   :  { %16107 = vst [vmem:[#allocation33_spill] sm:$0xff] %v13793_v47  ;;  %16110 = vst [vmem:[#allocation14_spill] sm:$0xff] %v13797_v12  ;;  %v13809_v8 = vadd.f32 %v16117_v48, %v16116_v23  ;;  %v16120_v45 = vld [vmem:[#allocation5_spill] sm:$0xff]  ;;  %v16122_v56 = vld [vmem:[#allocation22_spill] sm:$0xff] }
 0x788   :  { %16113 = vst [vmem:[#allocation69_spill] sm:$0xff] %v13801_v17  ;;  %16115 = vst [vmem:[#allocation44_spill] sm:$0xff] %v13805_v22  ;;  %v13813_v50 = vadd.f32 %v16120_v45, %v16119_v28  ;;  %v16123_v47 = vld [vmem:[#allocation67_spill] sm:$0xff]  ;;  %v16127_v26 = vld [vmem:[#allocation36_spill] sm:$0xff] }
 0x789   :  { %16118 = vst [vmem:[#allocation26_spill] sm:$0xff] %v13809_v8  ;;  %v13817_v35 = vadd.f32 %v16123_v47, %v16122_v56  ;;  %v16125_v34 = vld [vmem:[#allocation19_spill] sm:$0xff]  ;;  %v16128_v17 = vld [vmem:[#allocation49_spill] sm:$0xff]  ;;  %v16131_v22 = vld [vmem:[#allocation46_spill] sm:$0xff] }
 0x78a   :  { %16121 = vst [vmem:[#allocation52_spill] sm:$0xff] %v13813_v50  ;;  %v13821_v40 = vadd.f32 %v13595_v53, %v16125_v34  ;;  %v13825_v39 = vadd.f32 %v16128_v17, %v16127_v26  ;;  %v16130_v51 = vld [vmem:[#allocation63_spill] sm:$0xff]  ;;  %v16133_v48 = vld [vmem:[#allocation30_spill] sm:$0xff]  ;;  %v16134_v8 = vld [vmem:[#allocation8_spill] sm:$0xff] }
 0x78b   :  { %16124 = vst [vmem:[#allocation11_spill] sm:$0xff] %v13817_v35  ;;  %v13829_v23 = vadd.f32 %v16131_v22, %v16130_v51  ;;  %v13833_v28 = vadd.f32 %v16134_v8, %v16133_v48  ;;  %v16136_v45 = vld [vmem:[#allocation50_spill] sm:$0xff]  ;;  %v16139_v35 = vld [vmem:[#allocation53_spill] sm:$0xff]  ;;  %v16144_v26 = vld [vmem:[#allocation72_spill] sm:$0xff] }
 0x78c   :  { %16126 = vst [vmem:[#allocation66_spill] sm:$0xff] %v13821_v40  ;;  %16129 = vst [vmem:[#allocation17_spill] sm:$0xff] %v13825_v39  ;;  %v13837_v47 = vadd.f32 %v13607_v21, %v16136_v45  ;;  %v16138_v56 = vld [vmem:[#allocation70_spill] sm:$0xff]  ;;  %v16141_v34 = vld [vmem:[#allocation37_spill] sm:$0xff] }
 0x78d   :  { %16132 = vst [vmem:[#allocation31_spill] sm:$0xff] %v13829_v23  ;;  %16135 = vst [vmem:[#allocation43_spill] sm:$0xff] %v13833_v28  ;;  %v13841_v53 = vadd.f32 %v16139_v35, %v16138_v56  ;;  %v16142_v40 = vld [vmem:[#allocation23_spill] sm:$0xff]  ;;  %v16147_v51 = vld [vmem:[#allocation34_spill] sm:$0xff] }
 0x78e   :  { %16137 = vst [vmem:[#allocation25_spill] sm:$0xff] %v13837_v47  ;;  %v13845_v17 = vadd.f32 %v16142_v40, %v16141_v34  ;;  %v16145_v39 = vld [vmem:[#allocation7_spill] sm:$0xff]  ;;  %v13853_v8 = vadd.f32 %v13619_v49, %v16147_v51  ;;  %v16149_v48 = vld [vmem:[#allocation4_spill] sm:$0xff]  ;;  %v16152_v45 = vld [vmem:[#allocation57_spill] sm:$0xff] }
 0x78f   :  { %16140 = vst [vmem:[#allocation61_spill] sm:$0xff] %v13841_v53  ;;  %v13849_v22 = vadd.f32 %v16145_v39, %v16144_v26  ;;  %v16150_v28 = vld [vmem:[#allocation76_spill] sm:$0xff]  ;;  %v16153_v47 = vld [vmem:[#allocation54_spill] sm:$0xff] }
 0x790   :  { %16143 = vst [vmem:[#allocation27_spill] sm:$0xff] %v13845_v17  ;;  %16148 = vst [vmem:[#allocation16_spill] sm:$0xff] %v13853_v8  ;;  %v13857_v21 = vadd.f32 %v16150_v28, %v16149_v48  ;;  %v13861_v35 = vadd.f32 %v16153_v47, %v16152_v45  ;;  %v16155_v56 = vld [vmem:[#allocation64_spill] sm:$0xff]  ;;  %v5958_v34 = vld [vmem:[#allocation3 + $0x31] sm:$0xff] }
 0x791   :  { %16146 = vst [vmem:[#allocation45_spill] sm:$0xff] %v13849_v22  ;;  %v16156_v53 = vld [vmem:[#allocation68_spill] sm:$0xff]  ;;  %v16158_v17 = vld [vmem:[#allocation13_spill] sm:$0xff]  ;;  %v16160_v26 = vld [vmem:[#allocation38_spill] sm:$0xff] }
 0x792   :  { %16151 = vst [vmem:[#allocation35_spill] sm:$0xff] %v13857_v21  ;;  %16154 = vst [vmem:[#allocation20_spill] sm:$0xff] %v13861_v35  ;;  %v13865_v40 = vadd.f32 %v16156_v53, %v16155_v56  ;;  %v13869_v39 = vadd.f32 %v13631_v27, %v16158_v17  ;;  %v13873_v49 = vadd.f32 %v13634_v16, %v16160_v26  ;;  %v16162_v51 = vld [vmem:[#allocation58_spill] sm:$0xff]  ;;  %v16164_v48 = vld [vmem:[#allocation28_spill] sm:$0xff] }
 0x793   :  { %v13877_v28 = vadd.f32 %v13637_v13, %v16162_v51  ;;  %v16165_v47 = vld [vmem:[#allocation55_spill] sm:$0xff]  ;;  %v5960_v53 = vld [vmem:[#allocation3 + $0x49] sm:$0xff]  ;;  %v16169_v17 = vld [vmem:[#allocation12_spill] sm:$0xff] }
 0x794   :  { %16157 = vst [vmem:[#allocation10_spill] sm:$0xff] %v13865_v40  ;;  %16159 = vst [vmem:[#allocation5_spill] sm:$0xff] %v13869_v39  ;;  %v13881_v45 = vadd.f32 %v16165_v47, %v16164_v48  ;;  %v5959_v35 = vld [vmem:[#allocation3 + $0x39] sm:$0xff]  ;;  %v5961_v56 = vld [vmem:[#allocation3 + $0x51] sm:$0xff]  ;;  %v13889_v16 = vadd.f32 %v13646_v7, %v16169_v17 }
 0x795   :  { %16161 = vst [vmem:[#allocation22_spill] sm:$0xff] %v13873_v49  ;;  %16163 = vst [vmem:[#allocation67_spill] sm:$0xff] %v13877_v28  ;;  %v5962_v40 = vld [vmem:[#allocation3 + $0x61] sm:$0xff]  ;;  %v16167_v21 = vld [vmem:[#allocation71_spill] sm:$0xff] }
 0x796   :  { %16166 = vst [vmem:[#allocation19_spill] sm:$0xff] %v13881_v45  ;;  %v13885_v27 = vadd.f32 %v13643_v0, %v16167_v21  ;;  %16170 = vst [vmem:[#allocation49_spill] sm:$0xff] %v13889_v16  ;;  %v16171_v26 = vld [vmem:[#allocation39_spill] sm:$0xff]  ;;  %v16173_v51 = vld [vmem:[#allocation32_spill] sm:$0xff] }
 0x797   :  { %v13893_v13 = vadd.f32 %v13649_v52, %v16171_v26  ;;  %v13897_v48 = vadd.f32 %v13652_v4, %v16173_v51  ;;  %v5963_v47 = vld [vmem:[#allocation3 + $0x69] sm:$0xff]  ;;  %v5964_v45 = vld [vmem:[#allocation3 + $0x79] sm:$0xff]  ;;  %v5965_v28 = vld [vmem:[#allocation3 + $0x81] sm:$0xff] }
 0x798   :  { %16168 = vst [vmem:[#allocation36_spill] sm:$0xff] %v13885_v27  ;;  %v5966_v49 = vld [vmem:[#allocation3 + $0x91] sm:$0xff]  ;;  %v13902_v0 = vld [vmem:[%s15171_s4 + $0x7] ss:$0 sm:$0xff]  ;;  %v5968_v16 = vld [vmem:[#allocation3 + $0xa9] sm:$0xff] }
 0x799   :  { %16172 = vst [vmem:[#allocation63_spill] sm:$0xff] %v13893_v13  ;;  %16174 = vst [vmem:[#allocation46_spill] sm:$0xff] %v13897_v48  ;;  %v16175_v21 = vld [vmem:[#allocation75_spill] sm:$0xff]  ;;  %v16179_v26 = vld [vmem:[#allocation40_spill] sm:$0xff]  ;;  %v13967_v23 = vmul.f32 %v13902_v0, %v5964_v45  ;;  %v13979_v38 = vmul.f32 %v13902_v0, %v5968_v16 }
 0x79a   :  { %v13906_v7 = vadd.f32 %v13655_v5, %v16175_v21  ;;  %v16177_v17 = vld [vmem:[#allocation59_spill] sm:$0xff]  ;;  %v13914_v4 = vadd.f32 %v13661_v60, %v16179_v26  ;;  %v16181_v51 = vld [vmem:[#allocation18_spill] sm:$0xff]  ;;  %v5970_v39 = vld [vmem:[#allocation3 + $0xc1] sm:$0xff] }
 0x79b   :  { %v13910_v52 = vadd.f32 %v13658_v10, %v16177_v17  ;;  %v13918_v48 = vadd.f32 %v13664_v37, %v16181_v51  ;;  %v5967_v13 = vld [vmem:[#allocation3 + $0x99] sm:$0xff]  ;;  %v5969_v27 = vld [vmem:[#allocation3 + $0xb1] sm:$0xff]  ;;  %v16183_v8 = vld [vmem:[#allocation73_spill] sm:$0xff]  ;;  %v13985_v45 = vmul.f32 %v13902_v0, %v5970_v39 }
 0x79c   :  { %16176 = vst [vmem:[#allocation30_spill] sm:$0xff] %v13906_v7  ;;  %16180 = vst [vmem:[#allocation50_spill] sm:$0xff] %v13914_v4  ;;  %v13922_v5 = vadd.f32 %v13667_v63, %v16183_v8  ;;  %v16185_v21 = vld [vmem:[#allocation51_spill] sm:$0xff]  ;;  %v16187_v17 = vld [vmem:[#allocation24_spill] sm:$0xff]  ;;  %v13976_v18 = vmul.f32 %v13902_v0, %v5967_v13 }
 0x79d   :  { %16178 = vst [vmem:[#allocation8_spill] sm:$0xff] %v13910_v52  ;;  %16182 = vst [vmem:[#allocation70_spill] sm:$0xff] %v13918_v48  ;;  %v13926_v10 = vadd.f32 %v13670_v25, %v16185_v21  ;;  %v13930_v60 = vadd.f32 %v13673_v31, %v16187_v17  ;;  %v16189_v26 = vld [vmem:[#allocation21_spill] sm:$0xff]  ;;  %v5972_v48 = vld [vmem:[#allocation3 + $0xd9] sm:$0xff] }
 0x79e   :  { %16184 = vst [vmem:[#allocation53_spill] sm:$0xff] %v13922_v5  ;;  %v13934_v37 = vadd.f32 %v13676_v1, %v16189_v26  ;;  %v5971_v51 = vld [vmem:[#allocation3 + $0xc9] sm:$0xff]  ;;  %v5973_v4 = vld [vmem:[#allocation3 + $0xe1] sm:$0xff]  ;;  %v5974_v52 = vld [vmem:[#allocation3 + $0xf1] sm:$0xff]  ;;  %v13991_v59 = vmul.f32 %v13902_v0, %v5972_v48 }
 0x79f   :  { %16186 = vst [vmem:[#allocation37_spill] sm:$0xff] %v13926_v10  ;;  %16188 = vst [vmem:[#allocation23_spill] sm:$0xff] %v13930_v60  ;;  %v16191_v7 = vld [vmem:[#allocation15_spill] sm:$0xff]  ;;  %v16193_v8 = vld [vmem:[#allocation41_spill] sm:$0xff]  ;;  %v13988_v46 = vmul.f32 %v13902_v0, %v5971_v51  ;;  %v13994_v13 = vmul.f32 %v13902_v0, %v5973_v4  ;;  %v13997_v16 = vmul.f32 %v13902_v0, %v5974_v52 }
 0x7a0   :  { %16190 = vst [vmem:[#allocation72_spill] sm:$0xff] %v13934_v37  ;;  %v13938_v63 = vadd.f32 %v13679_v9, %v16191_v7  ;;  %v13942_v25 = vadd.f32 %v13682_v43, %v16193_v8  ;;  %v16195_v21 = vld [vmem:[#allocation6_spill] sm:$0xff]  ;;  %v5975_v17 = vld [vmem:[#allocation3 + $0xf9] sm:$0xff]  ;;  %v5978_v26 = vld [vmem:[#allocation3 + $0x121] sm:$0xff]  ;;  %v13949_v37 = vmul.f32 %v13902_v0, %v5958_v34  ;;  %v13952_v7 = vmul.f32 %v13902_v0, %v5959_v35 }
 0x7a1   :  { %v13946_v31 = vadd.f32 %v13685_v11, %v16195_v21  ;;  %v5976_v60 = vld [vmem:[#allocation3 + $0x109] sm:$0xff]  ;;  %v5977_v1 = vld [vmem:[#allocation3 + $0x111] sm:$0xff]  ;;  %v5980_v5 = vld [vmem:[#allocation3 + $0x139] sm:$0xff]  ;;  %v13955_v43 = vmul.f32 %v13902_v0, %v5960_v53  ;;  %v13958_v11 = vmul.f32 %v13902_v0, %v5961_v56  ;;  %v13961_v8 = vmul.f32 %v13902_v0, %v5962_v40  ;;  %16197 = vst [vmem:[#allocation76_spill] sm:$0xff] %v13994_v13 }
 0x7a2   :  { %16192 = vst [vmem:[#allocation7_spill] sm:$0xff] %v13938_v63  ;;  %16194 = vst [vmem:[#allocation34_spill] sm:$0xff] %v13942_v25  ;;  %v5979_v10 = vld [vmem:[#allocation3 + $0x129] sm:$0xff]  ;;  %v5981_v22 = vld [vmem:[#allocation3 + $0x141] sm:$0xff]  ;;  %v13964_v63 = vmul.f32 %v13902_v0, %v5963_v47  ;;  %v13970_v35 = vmul.f32 %v13902_v0, %v5965_v28  ;;  %v13973_v53 = vmul.f32 %v13902_v0, %v5966_v49 }
 0x7a3   :  { %16196 = vst [vmem:[#allocation4_spill] sm:$0xff] %v13946_v31  ;;  %v5982_v9 = vld [vmem:[#allocation3 + $0x151] sm:$0xff]  ;;  %v5983_v21 = vld [vmem:[#allocation3 + $0x159] sm:$0xff]  ;;  %v5984_v31 = vld [vmem:[#allocation3 + $0x169] sm:$0xff]  ;;  %v13982_v47 = vmul.f32 %v13902_v0, %v5969_v27  ;;  %v14000_v6 = vmul.f32 %v13902_v0, %v5975_v17  ;;  %v14003_v24 = vmul.f32 %v13902_v0, %v5976_v60  ;;  %v14006_v51 = vmul.f32 %v13902_v0, %v5977_v1 }
 0x7a4   :  { %v5985_v34 = vld [vmem:[#allocation3 + $0x171] sm:$0xff]  ;;  %v5986_v25 = vld [vmem:[#allocation3 + $0x181] sm:$0xff]  ;;  %v5987_v56 = vld [vmem:[#allocation3 + $0x189] sm:$0xff]  ;;  %16198 = vst [vmem:[#allocation57_spill] sm:$0xff] %v13997_v16  ;;  %v14009_v48 = vmul.f32 %v13902_v0, %v5978_v26  ;;  %v14012_v52 = vmul.f32 %v13902_v0, %v5979_v10  ;;  %v14015_v16 = vmul.f32 %v13902_v0, %v5980_v5  ;;  %v14018_v17 = vmul.f32 %v13902_v0, %v5981_v22 }
 0x7a5   :  { %v5988_v50 = vld [vmem:[#allocation3 + $0x199] sm:$0xff]  ;;  %v5989_v40 = vld [vmem:[#allocation3 + $0x1a1] sm:$0xff]  ;;  %v5991_v28 = vld [vmem:[#allocation3 + $0x1e9] sm:$0xff]  ;;  %16199 = vst [vmem:[#allocation54_spill] sm:$0xff] %v14003_v24  ;;  %v14021_v60 = vmul.f32 %v13902_v0, %v5982_v9  ;;  %v14024_v26 = vmul.f32 %v13902_v0, %v5983_v21  ;;  %v14030_v10 = vmul.f32 %v13902_v0, %v5985_v34  ;;  %v14033_v5 = vmul.f32 %v13902_v0, %v5986_v25 }
 0x7a6   :  { %v5990_v12 = vld [vmem:[#allocation3 + $0x1e1] sm:$0xff]  ;;  %v5992_v33 = vld [vmem:[#allocation3 + $0x1f9] sm:$0xff]  ;;  %v5994_v36 = vld [vmem:[#allocation3 + $0x211] sm:$0xff]  ;;  %16200 = vst [vmem:[#allocation64_spill] sm:$0xff] %v14006_v51  ;;  %v14036_v9 = vmul.f32 %v13902_v0, %v5987_v56  ;;  %v14042_v21 = vmul.f32 %v13902_v0, %v5989_v40  ;;  %v14048_v25 = vmul.f32 %v13902_v0, %v5991_v28 }
 0x7a7   :  { %v5993_v49 = vld [vmem:[#allocation3 + $0x201] sm:$0xff]  ;;  %v5995_v27 = vld [vmem:[#allocation3 + $0x219] sm:$0xff]  ;;  %v5996_v3 = vld [vmem:[#allocation3 + $0x229] sm:$0xff]  ;;  %16201 = vst [vmem:[#allocation68_spill] sm:$0xff] %v14009_v48  ;;  %v14027_v48 = vmul.f32 %v13902_v0, %v5984_v31  ;;  %v14045_v31 = vmul.f32 %v13902_v0, %v5990_v12 }
 0x7a8   :  { %v5997_v39 = vld [vmem:[#allocation3 + $0x231] sm:$0xff]  ;;  %v5998_v4 = vld [vmem:[#allocation3 + $0x241] sm:$0xff]  ;;  %v5999_v44 = vld [vmem:[#allocation3 + $0x249] sm:$0xff]  ;;  %16202 = vst [vmem:[#allocation13_spill] sm:$0xff] %v14015_v16  ;;  %v14054_v56 = vmul.f32 %v13902_v0, %v5993_v49  ;;  %v14060_v12 = vmul.f32 %v13902_v0, %v5995_v27 }
 0x7a9   :  { %v6000_v13 = vld [vmem:[#allocation3 + $0x259] sm:$0xff]  ;;  %16203 = vst [vmem:[#allocation38_spill] sm:$0xff] %v14018_v17  ;;  %16204 = vst [vmem:[#allocation58_spill] sm:$0xff] %v14021_v60  ;;  %v6001_v1 = vld [vmem:[#allocation3 + $0x261] sm:$0xff]  ;;  %v14039_v60 = vmul.f32 %v13902_v0, %v5988_v50  ;;  %v14057_v50 = vmul.f32 %v13902_v0, %v5994_v36  ;;  %v14066_v28 = vmul.f32 %v13902_v0, %v5997_v39 }
 0x7aa   :  { %v6002_v51 = vld [vmem:[#allocation3 + $0x271] sm:$0xff]  ;;  %v6003_v24 = vld [vmem:[#allocation3 + $0x279] sm:$0xff]  ;;  %16205 = vst [vmem:[#allocation28_spill] sm:$0xff] %v14027_v48  ;;  %16206 = vst [vmem:[#allocation55_spill] sm:$0xff] %v14030_v10  ;;  %v14072_v36 = vmul.f32 %v13902_v0, %v5999_v44  ;;  %v14078_v27 = vmul.f32 %v13902_v0, %v6001_v1 }
 0x7ab   :  { %16207 = vst [vmem:[#allocation71_spill] sm:$0xff] %v14033_v5  ;;  %v6004_v22 = vld [vmem:[#allocation3 + $0x289] sm:$0xff]  ;;  %v6005_v17 = vld [vmem:[#allocation3 + $0x291] sm:$0xff]  ;;  %v6006_v16 = vld [vmem:[#allocation3 + $0x2a1] sm:$0xff]  ;;  %v14051_v5 = vmul.f32 %v13902_v0, %v5992_v33  ;;  %v14069_v33 = vmul.f32 %v13902_v0, %v5998_v4  ;;  %v14084_v4 = vmul.f32 %v13902_v0, %v6003_v24 }
 0x7ac   :  { %16208 = vst [vmem:[#allocation12_spill] sm:$0xff] %v14039_v60  ;;  %16209 = vst [vmem:[#allocation39_spill] sm:$0xff] %v14042_v21  ;;  %v6007_v34 = vld [vmem:[#allocation3 + $0x2a9] sm:$0xff]  ;;  %v6008_v10 = vld [vmem:[#allocation3 + $0x2b9] sm:$0xff]  ;;  %v14090_v44 = vmul.f32 %v13902_v0, %v6005_v17 }
 0x7ad   :  { %16210 = vst [vmem:[#allocation32_spill] sm:$0xff] %v14045_v31  ;;  %v6009_v48 = vld [vmem:[#allocation3 + $0x2c1] sm:$0xff]  ;;  %16211 = vst [vmem:[#allocation75_spill] sm:$0xff] %v14051_v5  ;;  %v6010_v40 = vld [vmem:[#allocation3 + $0x2d1] sm:$0xff]  ;;  %v14063_v31 = vmul.f32 %v13902_v0, %v5996_v3  ;;  %v14081_v3 = vmul.f32 %v13902_v0, %v6002_v51  ;;  %v14096_v51 = vmul.f32 %v13902_v0, %v6007_v34 }
 0x7ae   :  { %16212 = vst [vmem:[#allocation59_spill] sm:$0xff] %v14054_v56  ;;  %16213 = vst [vmem:[#allocation40_spill] sm:$0xff] %v14057_v50  ;;  %v6011_v21 = vld [vmem:[#allocation3 + $0x2d9] sm:$0xff]  ;;  %v6012_v60 = vld [vmem:[#allocation3 + $0x2e9] sm:$0xff]  ;;  %v14075_v50 = vmul.f32 %v13902_v0, %v6000_v13  ;;  %v14093_v13 = vmul.f32 %v13902_v0, %v6006_v16  ;;  %v14102_v24 = vmul.f32 %v13902_v0, %v6009_v48 }
 0x7af   :  { %16214 = vst [vmem:[#allocation18_spill] sm:$0xff] %v14063_v31  ;;  %16215 = vst [vmem:[#allocation73_spill] sm:$0xff] %v14066_v28  ;;  %v6013_v49 = vld [vmem:[#allocation3 + $0x2f1] sm:$0xff]  ;;  %v6014_v56 = vld [vmem:[#allocation3 + $0x301] sm:$0xff]  ;;  %v14108_v17 = vmul.f32 %v13902_v0, %v6011_v21  ;;  %v14111_v16 = vmul.f32 %v13902_v0, %v6012_v60 }
 0x7b0   :  { %16216 = vst [vmem:[#allocation51_spill] sm:$0xff] %v14069_v33  ;;  %v6015_v5 = vld [vmem:[#allocation3 + $0x309] sm:$0xff]  ;;  %16217 = vst [vmem:[#allocation24_spill] sm:$0xff] %v14075_v50  ;;  %v6016_v39 = vld [vmem:[#allocation3 + $0x319] sm:$0xff]  ;;  %v14087_v33 = vmul.f32 %v13902_v0, %v6004_v22  ;;  %v14105_v22 = vmul.f32 %v13902_v0, %v6010_v40  ;;  %v14117_v34 = vmul.f32 %v13902_v0, %v6014_v56 }
 0x7b1   :  { %16218 = vst [vmem:[#allocation21_spill] sm:$0xff] %v14078_v27  ;;  %16219 = vst [vmem:[#allocation15_spill] sm:$0xff] %v14081_v3  ;;  %v6017_v28 = vld [vmem:[#allocation3 + $0x321] sm:$0xff]  ;;  %v6018_v31 = vld [vmem:[#allocation3 + $0x331] sm:$0xff]  ;;  %v14099_v3 = vmul.f32 %v13902_v0, %v6008_v10  ;;  %v14120_v10 = vmul.f32 %v13902_v0, %v6015_v5  ;;  %v14123_v48 = vmul.f32 %v13902_v0, %v6016_v39 }
 0x7b2   :  { %16220 = vst [vmem:[#allocation41_spill] sm:$0xff] %v14093_v13  ;;  %v6019_v1 = vld [vmem:[#allocation3 + $0x339] sm:$0xff]  ;;  %v6020_v27 = vld [vmem:[#allocation3 + $0x349] sm:$0xff]  ;;  %v6021_v50 = vld [vmem:[#allocation3 + $0x351] sm:$0xff]  ;;  %v14114_v13 = vmul.f32 %v13902_v0, %v6013_v49  ;;  %v14126_v40 = vmul.f32 %v13902_v0, %v6017_v28  ;;  %v14129_v21 = vmul.f32 %v13902_v0, %v6018_v31  ;;  %v14142_v5 = vadd.f32 %v13949_v37, %v13689_v19 }
 0x7b3   :  { %v14132_v60 = vmul.f32 %v13902_v0, %v6019_v1  ;;  %v14135_v49 = vmul.f32 %v13902_v0, %v6020_v27  ;;  %v14138_v56 = vmul.f32 %v13902_v0, %v6021_v50  ;;  %v14146_v28 = vadd.f32 %v13952_v7, %v13693_v57  ;;  %v16225_v37 = vld [vmem:[#allocation60_spill] sm:$0xff]  ;;  %v16228_v7 = vld [vmem:[#allocation54_spill] sm:$0xff] }
 0x7b4   :  { %v14150_v31 = vadd.f32 %v13955_v43, %v13697_v54  ;;  %v14154_v39 = vadd.f32 %v13958_v11, %v13701_v42  ;;  %v14158_v0 = vadd.f32 %v13961_v8, %v13705_v30  ;;  %v14162_v19 = vadd.f32 %v13964_v63, %v13709_v2  ;;  %v16227_v63 = vld [vmem:[#allocation74_spill] sm:$0xff]  ;;  %v16231_v43 = vld [vmem:[#allocation64_spill] sm:$0xff] }
 0x7b5   :  { %v14166_v57 = vadd.f32 %v13967_v23, %v13713_v62  ;;  %v14170_v54 = vadd.f32 %v13970_v35, %v13717_v58  ;;  %v14174_v42 = vadd.f32 %v13973_v53, %v13721_v32  ;;  %v14178_v30 = vadd.f32 %v13976_v18, %v13725_v29  ;;  %v16221_v18 = vld [vmem:[#allocation76_spill] sm:$0xff]  ;;  %v16223_v23 = vld [vmem:[#allocation57_spill] sm:$0xff]  ;;  %v16242_v50 = vld [vmem:[#allocation38_spill] sm:$0xff] }
 0x7b6   :  { %v14182_v2 = vadd.f32 %v13979_v38, %v13729_v14  ;;  %v14186_v62 = vadd.f32 %v13982_v47, %v13733_v15  ;;  %v14190_v58 = vadd.f32 %v13985_v45, %v13737_v41  ;;  %v14194_v32 = vadd.f32 %v13988_v46, %v13741_v55  ;;  %v16222_v38 = vld [vmem:[#allocation9_spill] sm:$0xff]  ;;  %v16234_v11 = vld [vmem:[#allocation68_spill] sm:$0xff]  ;;  %v16244_v1 = vld [vmem:[#allocation42_spill] sm:$0xff] }
 0x7b7   :  { %v14198_v29 = vadd.f32 %v13991_v59, %v13745_v20  ;;  %v14202_v14 = vadd.f32 %v16221_v18, %v13749_v61  ;;  %v14206_v15 = vadd.f32 %v16223_v23, %v16222_v38  ;;  %v14210_v41 = vadd.f32 %v14000_v6, %v16225_v37  ;;  %v16230_v46 = vld [vmem:[#allocation65_spill] sm:$0xff]  ;;  %v16233_v59 = vld [vmem:[#allocation47_spill] sm:$0xff]  ;;  %v16236_v8 = vld [vmem:[#allocation48_spill] sm:$0xff] }
 0x7b8   :  { %v14214_v55 = vadd.f32 %v16228_v7, %v16227_v63  ;;  %v14218_v20 = vadd.f32 %v16231_v43, %v16230_v46  ;;  %v14222_v61 = vadd.f32 %v16234_v11, %v16233_v59  ;;  %v14226_v35 = vadd.f32 %v14012_v52, %v16236_v8  ;;  %v16238_v53 = vld [vmem:[#allocation29_spill] sm:$0xff]  ;;  %v16241_v45 = vld [vmem:[#allocation56_spill] sm:$0xff]  ;;  %v16245_v18 = vld [vmem:[#allocation58_spill] sm:$0xff] }
 0x7b9   :  { %16224 = vst [vmem:[#allocation6_spill] sm:$0xff] %v14206_v15  ;;  %16226 = vst [vmem:[#allocation76_spill] sm:$0xff] %v14210_v41  ;;  %v16239_v47 = vld [vmem:[#allocation13_spill] sm:$0xff]  ;;  %v14234_v27 = vadd.f32 %v16242_v50, %v16241_v45  ;;  %v14238_v38 = vadd.f32 %v16245_v18, %v16244_v1  ;;  %v16247_v23 = vld [vmem:[#allocation62_spill] sm:$0xff] }
 0x7ba   :  { %16229 = vst [vmem:[#allocation9_spill] sm:$0xff] %v14214_v55  ;;  %16232 = vst [vmem:[#allocation57_spill] sm:$0xff] %v14218_v20  ;;  %v14230_v6 = vadd.f32 %v16239_v47, %v16238_v53  ;;  %v14242_v37 = vadd.f32 %v14024_v26, %v16247_v23  ;;  %v16249_v63 = vld [vmem:[#allocation33_spill] sm:$0xff]  ;;  %v16250_v7 = vld [vmem:[#allocation28_spill] sm:$0xff] }
 0x7bb   :  { %16235 = vst [vmem:[#allocation60_spill] sm:$0xff] %v14222_v61  ;;  %16237 = vst [vmem:[#allocation74_spill] sm:$0xff] %v14226_v35  ;;  %v14246_v52 = vadd.f32 %v16250_v7, %v16249_v63  ;;  %v16252_v46 = vld [vmem:[#allocation14_spill] sm:$0xff]  ;;  %v16253_v43 = vld [vmem:[#allocation55_spill] sm:$0xff] }
 0x7bc   :  { %16240 = vst [vmem:[#allocation54_spill] sm:$0xff] %v14230_v6  ;;  %16243 = vst [vmem:[#allocation65_spill] sm:$0xff] %v14234_v27  ;;  %v14250_v59 = vadd.f32 %v16253_v43, %v16252_v46  ;;  %v16255_v11 = vld [vmem:[#allocation69_spill] sm:$0xff]  ;;  %v16256_v8 = vld [vmem:[#allocation71_spill] sm:$0xff] }
 0x7bd   :  { %16246 = vst [vmem:[#allocation64_spill] sm:$0xff] %v14238_v38  ;;  %16248 = vst [vmem:[#allocation47_spill] sm:$0xff] %v14242_v37  ;;  %v14254_v53 = vadd.f32 %v16256_v8, %v16255_v11  ;;  %v16258_v47 = vld [vmem:[#allocation44_spill] sm:$0xff]  ;;  %v16260_v50 = vld [vmem:[#allocation26_spill] sm:$0xff] }
 0x7be   :  { %16251 = vst [vmem:[#allocation68_spill] sm:$0xff] %v14246_v52  ;;  %16254 = vst [vmem:[#allocation48_spill] sm:$0xff] %v14250_v59  ;;  %v14258_v45 = vadd.f32 %v14036_v9, %v16258_v47  ;;  %v16261_v1 = vld [vmem:[#allocation12_spill] sm:$0xff]  ;;  %v16264_v23 = vld [vmem:[#allocation39_spill] sm:$0xff] }
 0x7bf   :  { %16257 = vst [vmem:[#allocation29_spill] sm:$0xff] %v14254_v53  ;;  %v14262_v26 = vadd.f32 %v16261_v1, %v16260_v50  ;;  %v16263_v18 = vld [vmem:[#allocation52_spill] sm:$0xff]  ;;  %v16266_v7 = vld [vmem:[#allocation11_spill] sm:$0xff]  ;;  %v16269_v43 = vld [vmem:[#allocation66_spill] sm:$0xff] }
 0x7c0   :  { %16259 = vst [vmem:[#allocation13_spill] sm:$0xff] %v14258_v45  ;;  %v14266_v63 = vadd.f32 %v16264_v23, %v16263_v18  ;;  %v16267_v52 = vld [vmem:[#allocation32_spill] sm:$0xff]  ;;  %v14274_v11 = vadd.f32 %v14048_v25, %v16269_v43  ;;  %v16271_v8 = vld [vmem:[#allocation17_spill] sm:$0xff]  ;;  %v16272_v53 = vld [vmem:[#allocation75_spill] sm:$0xff] }
 0x7c1   :  { %16262 = vst [vmem:[#allocation56_spill] sm:$0xff] %v14262_v26  ;;  %v14270_v46 = vadd.f32 %v16267_v52, %v16266_v7  ;;  %v14278_v9 = vadd.f32 %v16272_v53, %v16271_v8  ;;  %v16274_v47 = vld [vmem:[#allocation31_spill] sm:$0xff]  ;;  %v16278_v26 = vld [vmem:[#allocation40_spill] sm:$0xff]  ;;  %v16280_v23 = vld [vmem:[#allocation25_spill] sm:$0xff] }
 0x7c2   :  { %16265 = vst [vmem:[#allocation38_spill] sm:$0xff] %v14266_v63  ;;  %16270 = vst [vmem:[#allocation58_spill] sm:$0xff] %v14274_v11  ;;  %v16275_v45 = vld [vmem:[#allocation59_spill] sm:$0xff]  ;;  %v14290_v52 = vadd.f32 %v14060_v12, %v16280_v23  ;;  %v16282_v7 = vld [vmem:[#allocation61_spill] sm:$0xff] }
 0x7c3   :  { %16268 = vst [vmem:[#allocation42_spill] sm:$0xff] %v14270_v46  ;;  %16273 = vst [vmem:[#allocation62_spill] sm:$0xff] %v14278_v9  ;;  %v14282_v50 = vadd.f32 %v16275_v45, %v16274_v47  ;;  %v16277_v1 = vld [vmem:[#allocation43_spill] sm:$0xff]  ;;  %v16283_v46 = vld [vmem:[#allocation18_spill] sm:$0xff] }
 0x7c4   :  { %v14286_v18 = vadd.f32 %v16278_v26, %v16277_v1  ;;  %16281 = vst [vmem:[#allocation14_spill] sm:$0xff] %v14290_v52  ;;  %v14294_v25 = vadd.f32 %v16283_v46, %v16282_v7  ;;  %v16285_v43 = vld [vmem:[#allocation27_spill] sm:$0xff]  ;;  %v16286_v11 = vld [vmem:[#allocation73_spill] sm:$0xff]  ;;  %v16291_v47 = vld [vmem:[#allocation16_spill] sm:$0xff] }
 0x7c5   :  { %16276 = vst [vmem:[#allocation33_spill] sm:$0xff] %v14282_v50  ;;  %v14298_v53 = vadd.f32 %v16286_v11, %v16285_v43  ;;  %v16288_v8 = vld [vmem:[#allocation45_spill] sm:$0xff]  ;;  %v16289_v9 = vld [vmem:[#allocation51_spill] sm:$0xff]  ;;  %v14306_v26 = vadd.f32 %v14072_v36, %v16291_v47  ;;  %v16296_v23 = vld [vmem:[#allocation20_spill] sm:$0xff] }
 0x7c6   :  { %16279 = vst [vmem:[#allocation28_spill] sm:$0xff] %v14286_v18  ;;  %16284 = vst [vmem:[#allocation55_spill] sm:$0xff] %v14294_v25  ;;  %v14302_v45 = vadd.f32 %v16289_v9, %v16288_v8  ;;  %v16293_v1 = vld [vmem:[#allocation35_spill] sm:$0xff]  ;;  %v16294_v18 = vld [vmem:[#allocation24_spill] sm:$0xff] }
 0x7c7   :  { %16287 = vst [vmem:[#allocation69_spill] sm:$0xff] %v14298_v53  ;;  %16292 = vst [vmem:[#allocation44_spill] sm:$0xff] %v14306_v26  ;;  %v14310_v12 = vadd.f32 %v16294_v18, %v16293_v1  ;;  %v16297_v52 = vld [vmem:[#allocation21_spill] sm:$0xff]  ;;  %v16299_v7 = vld [vmem:[#allocation10_spill] sm:$0xff] }
 0x7c8   :  { %16290 = vst [vmem:[#allocation71_spill] sm:$0xff] %v14302_v45  ;;  %v14314_v46 = vadd.f32 %v16297_v52, %v16296_v23  ;;  %v16300_v25 = vld [vmem:[#allocation15_spill] sm:$0xff]  ;;  %v16302_v53 = vld [vmem:[#allocation5_spill] sm:$0xff]  ;;  %v16304_v8 = vld [vmem:[#allocation22_spill] sm:$0xff] }
 0x7c9   :  { %16295 = vst [vmem:[#allocation26_spill] sm:$0xff] %v14310_v12  ;;  %v14318_v11 = vadd.f32 %v16300_v25, %v16299_v7  ;;  %v6155_v43 = vld [vmem:[#allocation3 + $0x32] sm:$0xff]  ;;  %v14322_v9 = vadd.f32 %v14084_v4, %v16302_v53  ;;  %v14326_v36 = vadd.f32 %v14087_v33, %v16304_v8  ;;  %v16309_v52 = vld [vmem:[#allocation41_spill] sm:$0xff]  ;;  %v16311_v12 = vld [vmem:[#allocation36_spill] sm:$0xff] }
 0x7ca   :  { %16298 = vst [vmem:[#allocation12_spill] sm:$0xff] %v14314_v46  ;;  %v16306_v47 = vld [vmem:[#allocation67_spill] sm:$0xff]  ;;  %v6157_v25 = vld [vmem:[#allocation3 + $0x4a] sm:$0xff]  ;;  %v14338_v4 = vadd.f32 %v14096_v51, %v16311_v12  ;;  %v14355_v51 = vld [vmem:[%s15171_s4 + $0x8] ss:$0 sm:$0xff] }
 0x7cb   :  { %16301 = vst [vmem:[#allocation52_spill] sm:$0xff] %v14318_v11  ;;  %16303 = vst [vmem:[#allocation39_spill] sm:$0xff] %v14322_v9  ;;  %v14330_v18 = vadd.f32 %v14090_v44, %v16306_v47  ;;  %v16308_v1 = vld [vmem:[#allocation19_spill] sm:$0xff]  ;;  %v6159_v11 = vld [vmem:[#allocation3 + $0x62] sm:$0xff] }
 0x7cc   :  { %16305 = vst [vmem:[#allocation11_spill] sm:$0xff] %v14326_v36  ;;  %v14334_v23 = vadd.f32 %v16309_v52, %v16308_v1  ;;  %v6156_v46 = vld [vmem:[#allocation3 + $0x3a] sm:$0xff]  ;;  %v6158_v7 = vld [vmem:[#allocation3 + $0x52] sm:$0xff]  ;;  %16312 = vst [vmem:[#allocation17_spill] sm:$0xff] %v14338_v4 }
 0x7cd   :  { %16307 = vst [vmem:[#allocation32_spill] sm:$0xff] %v14330_v18  ;;  %v16313_v53 = vld [vmem:[#allocation49_spill] sm:$0xff]  ;;  %v16315_v8 = vld [vmem:[#allocation63_spill] sm:$0xff]  ;;  %v16317_v47 = vld [vmem:[#allocation46_spill] sm:$0xff] }
 0x7ce   :  { %16310 = vst [vmem:[#allocation66_spill] sm:$0xff] %v14334_v23  ;;  %v14342_v33 = vadd.f32 %v14099_v3, %v16313_v53  ;;  %v14346_v44 = vadd.f32 %v14102_v24, %v16315_v8  ;;  %v14350_v1 = vadd.f32 %v14105_v22, %v16317_v47  ;;  %v6160_v52 = vld [vmem:[#allocation3 + $0x6a] sm:$0xff]  ;;  %v6161_v23 = vld [vmem:[#allocation3 + $0x7a] sm:$0xff]  ;;  %v6162_v18 = vld [vmem:[#allocation3 + $0x82] sm:$0xff] }
 0x7cf   :  { %v6163_v36 = vld [vmem:[#allocation3 + $0x92] sm:$0xff]  ;;  %v16321_v53 = vld [vmem:[#allocation8_spill] sm:$0xff]  ;;  %v16327_v26 = vld [vmem:[#allocation53_spill] sm:$0xff]  ;;  %v14420_v50 = vmul.f32 %v14355_v51, %v6161_v23 }
 0x7d0   :  { %16314 = vst [vmem:[#allocation75_spill] sm:$0xff] %v14342_v33  ;;  %16316 = vst [vmem:[#allocation31_spill] sm:$0xff] %v14346_v44  ;;  %v16319_v12 = vld [vmem:[#allocation30_spill] sm:$0xff]  ;;  %v14363_v24 = vadd.f32 %v14111_v16, %v16321_v53  ;;  %v6164_v44 = vld [vmem:[#allocation3 + $0x9a] sm:$0xff] }
 0x7d1   :  { %16318 = vst [vmem:[#allocation59_spill] sm:$0xff] %v14350_v1  ;;  %v14359_v3 = vadd.f32 %v14108_v17, %v16319_v12  ;;  %v16323_v8 = vld [vmem:[#allocation50_spill] sm:$0xff]  ;;  %v6167_v9 = vld [vmem:[#allocation3 + $0xc2] sm:$0xff]  ;;  %v14375_v17 = vadd.f32 %v14120_v10, %v16327_v26  ;;  %v16331_v53 = vld [vmem:[#allocation23_spill] sm:$0xff]  ;;  %v14429_v37 = vmul.f32 %v14355_v51, %v6164_v44 }
 0x7d2   :  { %16322 = vst [vmem:[#allocation40_spill] sm:$0xff] %v14363_v24  ;;  %v14367_v22 = vadd.f32 %v14114_v13, %v16323_v8  ;;  %v16325_v47 = vld [vmem:[#allocation70_spill] sm:$0xff]  ;;  %v16329_v12 = vld [vmem:[#allocation37_spill] sm:$0xff]  ;;  %v14383_v13 = vadd.f32 %v14126_v40, %v16331_v53  ;;  %v16333_v8 = vld [vmem:[#allocation72_spill] sm:$0xff]  ;;  %v14438_v23 = vmul.f32 %v14355_v51, %v6167_v9 }
 0x7d3   :  { %16320 = vst [vmem:[#allocation43_spill] sm:$0xff] %v14359_v3  ;;  %v14371_v1 = vadd.f32 %v14117_v34, %v16325_v47  ;;  %v6165_v33 = vld [vmem:[#allocation3 + $0xaa] sm:$0xff]  ;;  %v6166_v4 = vld [vmem:[#allocation3 + $0xb2] sm:$0xff]  ;;  %16328 = vst [vmem:[#allocation18_spill] sm:$0xff] %v14375_v17  ;;  %v14379_v16 = vadd.f32 %v14123_v48, %v16329_v12  ;;  %v14387_v34 = vadd.f32 %v14129_v21, %v16333_v8 }
 0x7d4   :  { %16324 = vst [vmem:[#allocation25_spill] sm:$0xff] %v14367_v22  ;;  %16332 = vst [vmem:[#allocation73_spill] sm:$0xff] %v14383_v13  ;;  %v6168_v47 = vld [vmem:[#allocation3 + $0xca] sm:$0xff]  ;;  %v6170_v22 = vld [vmem:[#allocation3 + $0xe2] sm:$0xff]  ;;  %v14432_v38 = vmul.f32 %v14355_v51, %v6165_v33 }
 0x7d5   :  { %16326 = vst [vmem:[#allocation61_spill] sm:$0xff] %v14371_v1  ;;  %16330 = vst [vmem:[#allocation27_spill] sm:$0xff] %v14379_v16  ;;  %v6169_v1 = vld [vmem:[#allocation3 + $0xda] sm:$0xff]  ;;  %v6171_v24 = vld [vmem:[#allocation3 + $0xf2] sm:$0xff]  ;;  %v14441_v35 = vmul.f32 %v14355_v51, %v6168_v47  ;;  %v14447_v44 = vmul.f32 %v14355_v51, %v6170_v22 }
 0x7d6   :  { %16334 = vst [vmem:[#allocation45_spill] sm:$0xff] %v14387_v34  ;;  %v16335_v3 = vld [vmem:[#allocation7_spill] sm:$0xff]  ;;  %v16337_v26 = vld [vmem:[#allocation34_spill] sm:$0xff]  ;;  %v16339_v12 = vld [vmem:[#allocation4_spill] sm:$0xff]  ;;  %v14402_v34 = vmul.f32 %v14355_v51, %v6155_v43  ;;  %v14444_v61 = vmul.f32 %v14355_v51, %v6169_v1  ;;  %v14450_v33 = vmul.f32 %v14355_v51, %v6171_v24 }
 0x7d7   :  { %v14391_v10 = vadd.f32 %v14132_v60, %v16335_v3  ;;  %v14395_v48 = vadd.f32 %v14135_v49, %v16337_v26  ;;  %v14399_v40 = vadd.f32 %v14138_v56, %v16339_v12  ;;  %v6172_v53 = vld [vmem:[#allocation3 + $0xfa] sm:$0xff]  ;;  %v6173_v13 = vld [vmem:[#allocation3 + $0x10a] sm:$0xff]  ;;  %v6174_v21 = vld [vmem:[#allocation3 + $0x112] sm:$0xff]  ;;  %v14405_v3 = vmul.f32 %v14355_v51, %v6156_v46  ;;  %16341 = vst [vmem:[#allocation24_spill] sm:$0xff] %v14447_v44 }
 0x7d8   :  { %v6175_v8 = vld [vmem:[#allocation3 + $0x122] sm:$0xff]  ;;  %v6176_v16 = vld [vmem:[#allocation3 + $0x12a] sm:$0xff]  ;;  %v6177_v17 = vld [vmem:[#allocation3 + $0x13a] sm:$0xff]  ;;  %v14408_v49 = vmul.f32 %v14355_v51, %v6157_v25  ;;  %v14411_v56 = vmul.f32 %v14355_v51, %v6158_v7  ;;  %v14414_v26 = vmul.f32 %v14355_v51, %v6159_v11  ;;  %v14423_v46 = vmul.f32 %v14355_v51, %v6162_v18  ;;  %16342 = vst [vmem:[#allocation20_spill] sm:$0xff] %v14450_v33 }
 0x7d9   :  { %16336 = vst [vmem:[#allocation51_spill] sm:$0xff] %v14391_v10  ;;  %16338 = vst [vmem:[#allocation16_spill] sm:$0xff] %v14395_v48  ;;  %v6178_v45 = vld [vmem:[#allocation3 + $0x142] sm:$0xff]  ;;  %v6179_v60 = vld [vmem:[#allocation3 + $0x152] sm:$0xff]  ;;  %v14417_v10 = vmul.f32 %v14355_v51, %v6160_v52  ;;  %v14426_v25 = vmul.f32 %v14355_v51, %v6163_v36  ;;  %v14435_v52 = vmul.f32 %v14355_v51, %v6166_v4 }
 0x7da   :  { %16340 = vst [vmem:[#allocation35_spill] sm:$0xff] %v14399_v40  ;;  %v6180_v12 = vld [vmem:[#allocation3 + $0x15a] sm:$0xff]  ;;  %v6181_v40 = vld [vmem:[#allocation3 + $0x16a] sm:$0xff]  ;;  %v6182_v43 = vld [vmem:[#allocation3 + $0x172] sm:$0xff]  ;;  %v14453_v55 = vmul.f32 %v14355_v51, %v6172_v53  ;;  %v14456_v41 = vmul.f32 %v14355_v51, %v6173_v13  ;;  %v14459_v47 = vmul.f32 %v14355_v51, %v6174_v21  ;;  %v14462_v1 = vmul.f32 %v14355_v51, %v6175_v8 }
 0x7db   :  { %v6183_v48 = vld [vmem:[#allocation3 + $0x182] sm:$0xff]  ;;  %v6184_v7 = vld [vmem:[#allocation3 + $0x18a] sm:$0xff]  ;;  %v6185_v63 = vld [vmem:[#allocation3 + $0x19a] sm:$0xff]  ;;  %v14465_v24 = vmul.f32 %v14355_v51, %v6176_v16  ;;  %v14468_v33 = vmul.f32 %v14355_v51, %v6177_v17  ;;  %v14471_v53 = vmul.f32 %v14355_v51, %v6178_v45  ;;  %v14474_v13 = vmul.f32 %v14355_v51, %v6179_v60 }
 0x7dc   :  { %v6186_v11 = vld [vmem:[#allocation3 + $0x1a2] sm:$0xff]  ;;  %v6188_v18 = vld [vmem:[#allocation3 + $0x1ea] sm:$0xff]  ;;  %v6189_v27 = vld [vmem:[#allocation3 + $0x1fa] sm:$0xff]  ;;  %16343 = vst [vmem:[#allocation21_spill] sm:$0xff] %v14456_v41  ;;  %v14477_v8 = vmul.f32 %v14355_v51, %v6180_v12  ;;  %v14483_v16 = vmul.f32 %v14355_v51, %v6182_v43  ;;  %v14486_v17 = vmul.f32 %v14355_v51, %v6183_v48  ;;  %v14489_v60 = vmul.f32 %v14355_v51, %v6184_v7 }
 0x7dd   :  { %v6187_v59 = vld [vmem:[#allocation3 + $0x1e2] sm:$0xff]  ;;  %v6191_v6 = vld [vmem:[#allocation3 + $0x212] sm:$0xff]  ;;  %v6192_v4 = vld [vmem:[#allocation3 + $0x21a] sm:$0xff]  ;;  %16344 = vst [vmem:[#allocation10_spill] sm:$0xff] %v14459_v47  ;;  %v14495_v12 = vmul.f32 %v14355_v51, %v6186_v11  ;;  %v14501_v48 = vmul.f32 %v14355_v51, %v6188_v18 }
 0x7de   :  { %v6190_v36 = vld [vmem:[#allocation3 + $0x202] sm:$0xff]  ;;  %v6193_v20 = vld [vmem:[#allocation3 + $0x22a] sm:$0xff]  ;;  %v6194_v9 = vld [vmem:[#allocation3 + $0x232] sm:$0xff]  ;;  %16345 = vst [vmem:[#allocation15_spill] sm:$0xff] %v14462_v1  ;;  %v14480_v1 = vmul.f32 %v14355_v51, %v6181_v40  ;;  %v14498_v40 = vmul.f32 %v14355_v51, %v6187_v59  ;;  %v14513_v59 = vmul.f32 %v14355_v51, %v6192_v4 }
 0x7df   :  { %v6195_v22 = vld [vmem:[#allocation3 + $0x242] sm:$0xff]  ;;  %v6196_v15 = vld [vmem:[#allocation3 + $0x24a] sm:$0xff]  ;;  %v6197_v44 = vld [vmem:[#allocation3 + $0x25a] sm:$0xff]  ;;  %16346 = vst [vmem:[#allocation5_spill] sm:$0xff] %v14468_v33  ;;  %v14507_v7 = vmul.f32 %v14355_v51, %v6190_v36  ;;  %v14519_v18 = vmul.f32 %v14355_v51, %v6194_v9 }
 0x7e0   :  { %16347 = vst [vmem:[#allocation22_spill] sm:$0xff] %v14471_v53  ;;  %16348 = vst [vmem:[#allocation67_spill] sm:$0xff] %v14474_v13  ;;  %v6198_v21 = vld [vmem:[#allocation3 + $0x262] sm:$0xff]  ;;  %v6199_v47 = vld [vmem:[#allocation3 + $0x272] sm:$0xff]  ;;  %v14492_v13 = vmul.f32 %v14355_v51, %v6185_v63  ;;  %v14510_v63 = vmul.f32 %v14355_v51, %v6191_v6  ;;  %v14525_v6 = vmul.f32 %v14355_v51, %v6196_v15 }
 0x7e1   :  { %v6200_v41 = vld [vmem:[#allocation3 + $0x27a] sm:$0xff]  ;;  %16349 = vst [vmem:[#allocation19_spill] sm:$0xff] %v14480_v1  ;;  %16350 = vst [vmem:[#allocation41_spill] sm:$0xff] %v14483_v16  ;;  %v6201_v45 = vld [vmem:[#allocation3 + $0x28a] sm:$0xff]  ;;  %v14531_v4 = vmul.f32 %v14355_v51, %v6198_v21 }
 0x7e2   :  { %16351 = vst [vmem:[#allocation36_spill] sm:$0xff] %v14486_v17  ;;  %v6202_v53 = vld [vmem:[#allocation3 + $0x292] sm:$0xff]  ;;  %v6203_v33 = vld [vmem:[#allocation3 + $0x2a2] sm:$0xff]  ;;  %16352 = vst [vmem:[#allocation49_spill] sm:$0xff] %v14492_v13  ;;  %v14504_v17 = vmul.f32 %v14355_v51, %v6189_v27  ;;  %v14522_v27 = vmul.f32 %v14355_v51, %v6195_v22  ;;  %v14537_v22 = vmul.f32 %v14355_v51, %v6200_v41 }
 0x7e3   :  { %16353 = vst [vmem:[#allocation63_spill] sm:$0xff] %v14495_v12  ;;  %16354 = vst [vmem:[#allocation46_spill] sm:$0xff] %v14498_v40  ;;  %v6204_v43 = vld [vmem:[#allocation3 + $0x2aa] sm:$0xff]  ;;  %v6205_v16 = vld [vmem:[#allocation3 + $0x2ba] sm:$0xff]  ;;  %v14516_v40 = vmul.f32 %v14355_v51, %v6193_v20  ;;  %v14534_v20 = vmul.f32 %v14355_v51, %v6199_v47  ;;  %v14543_v15 = vmul.f32 %v14355_v51, %v6202_v53 }
 0x7e4   :  { %v6206_v1 = vld [vmem:[#allocation3 + $0x2c2] sm:$0xff]  ;;  %16355 = vst [vmem:[#allocation30_spill] sm:$0xff] %v14504_v17  ;;  %16356 = vst [vmem:[#allocation8_spill] sm:$0xff] %v14507_v7  ;;  %v6207_v11 = vld [vmem:[#allocation3 + $0x2d2] sm:$0xff]  ;;  %v14549_v47 = vmul.f32 %v14355_v51, %v6204_v43 }
 0x7e5   :  { %16357 = vst [vmem:[#allocation50_spill] sm:$0xff] %v14510_v63  ;;  %v6208_v12 = vld [vmem:[#allocation3 + $0x2da] sm:$0xff]  ;;  %v6209_v13 = vld [vmem:[#allocation3 + $0x2ea] sm:$0xff]  ;;  %16358 = vst [vmem:[#allocation70_spill] sm:$0xff] %v14516_v40  ;;  %v14528_v63 = vmul.f32 %v14355_v51, %v6197_v44  ;;  %v14546_v44 = vmul.f32 %v14355_v51, %v6203_v33  ;;  %v14555_v41 = vmul.f32 %v14355_v51, %v6206_v1 }
 0x7e6   :  { %16359 = vst [vmem:[#allocation53_spill] sm:$0xff] %v14519_v18  ;;  %16360 = vst [vmem:[#allocation37_spill] sm:$0xff] %v14522_v27  ;;  %v6210_v36 = vld [vmem:[#allocation3 + $0x2f2] sm:$0xff]  ;;  %v6211_v7 = vld [vmem:[#allocation3 + $0x302] sm:$0xff]  ;;  %v14540_v27 = vmul.f32 %v14355_v51, %v6201_v45  ;;  %v14558_v45 = vmul.f32 %v14355_v51, %v6207_v11  ;;  %v14561_v53 = vmul.f32 %v14355_v51, %v6208_v12 }
 0x7e7   :  { %v6212_v17 = vld [vmem:[#allocation3 + $0x30a] sm:$0xff]  ;;  %16361 = vst [vmem:[#allocation23_spill] sm:$0xff] %v14528_v63  ;;  %16362 = vst [vmem:[#allocation72_spill] sm:$0xff] %v14531_v4  ;;  %v6213_v9 = vld [vmem:[#allocation3 + $0x31a] sm:$0xff]  ;;  %v14564_v33 = vmul.f32 %v14355_v51, %v6209_v13  ;;  %v14570_v43 = vmul.f32 %v14355_v51, %v6211_v7 }
 0x7e8   :  { %16363 = vst [vmem:[#allocation7_spill] sm:$0xff] %v14534_v20  ;;  %v6214_v18 = vld [vmem:[#allocation3 + $0x322] sm:$0xff]  ;;  %v6215_v40 = vld [vmem:[#allocation3 + $0x332] sm:$0xff]  ;;  %16364 = vst [vmem:[#allocation34_spill] sm:$0xff] %v14546_v44  ;;  %v14552_v20 = vmul.f32 %v14355_v51, %v6205_v16  ;;  %v14567_v44 = vmul.f32 %v14355_v51, %v6210_v36  ;;  %v14573_v16 = vmul.f32 %v14355_v51, %v6212_v17 }
 0x7e9   :  { %v6216_v21 = vld [vmem:[#allocation3 + $0x33a] sm:$0xff]  ;;  %v6217_v4 = vld [vmem:[#allocation3 + $0x34a] sm:$0xff]  ;;  %v6218_v63 = vld [vmem:[#allocation3 + $0x352] sm:$0xff]  ;;  %v14576_v1 = vmul.f32 %v14355_v51, %v6213_v9  ;;  %v14579_v11 = vmul.f32 %v14355_v51, %v6214_v18  ;;  %v14582_v12 = vmul.f32 %v14355_v51, %v6215_v40  ;;  %v14595_v17 = vadd.f32 %v14402_v34, %v14142_v5 }
 0x7ea   :  { %v14585_v13 = vmul.f32 %v14355_v51, %v6216_v21  ;;  %v14588_v36 = vmul.f32 %v14355_v51, %v6217_v4  ;;  %v14591_v7 = vmul.f32 %v14355_v51, %v6218_v63  ;;  %v14599_v18 = vadd.f32 %v14405_v3, %v14146_v28  ;;  %v16368_v34 = vld [vmem:[#allocation76_spill] sm:$0xff]  ;;  %v16370_v3 = vld [vmem:[#allocation21_spill] sm:$0xff]  ;;  %v16379_v63 = vld [vmem:[#allocation22_spill] sm:$0xff] }
 0x7eb   :  { %v14603_v40 = vadd.f32 %v14408_v49, %v14150_v31  ;;  %v14607_v9 = vadd.f32 %v14411_v56, %v14154_v39  ;;  %v14611_v51 = vadd.f32 %v14414_v26, %v14158_v0  ;;  %v14615_v5 = vadd.f32 %v14417_v10, %v14162_v19  ;;  %v16369_v10 = vld [vmem:[#allocation9_spill] sm:$0xff]  ;;  %v16372_v49 = vld [vmem:[#allocation10_spill] sm:$0xff]  ;;  %v16374_v56 = vld [vmem:[#allocation15_spill] sm:$0xff] }
 0x7ec   :  { %v14619_v28 = vadd.f32 %v14420_v50, %v14166_v57  ;;  %v14623_v31 = vadd.f32 %v14423_v46, %v14170_v54  ;;  %v14627_v39 = vadd.f32 %v14426_v25, %v14174_v42  ;;  %v14631_v0 = vadd.f32 %v14429_v37, %v14178_v30  ;;  %v16365_v37 = vld [vmem:[#allocation24_spill] sm:$0xff]  ;;  %v16375_v26 = vld [vmem:[#allocation74_spill] sm:$0xff] }
 0x7ed   :  { %v14635_v19 = vadd.f32 %v14432_v38, %v14182_v2  ;;  %v14639_v57 = vadd.f32 %v14435_v52, %v14186_v62  ;;  %v14643_v54 = vadd.f32 %v14438_v23, %v14190_v58  ;;  %v14647_v42 = vadd.f32 %v14441_v35, %v14194_v32  ;;  %v16366_v38 = vld [vmem:[#allocation6_spill] sm:$0xff]  ;;  %v16367_v50 = vld [vmem:[#allocation20_spill] sm:$0xff]  ;;  %v16371_v35 = vld [vmem:[#allocation57_spill] sm:$0xff] }
 0x7ee   :  { %v14651_v30 = vadd.f32 %v14444_v61, %v14198_v29  ;;  %v14655_v2 = vadd.f32 %v16365_v37, %v14202_v14  ;;  %v14659_v62 = vadd.f32 %v16367_v50, %v16366_v38  ;;  %v14663_v58 = vadd.f32 %v14453_v55, %v16368_v34  ;;  %v16373_v61 = vld [vmem:[#allocation60_spill] sm:$0xff]  ;;  %v16376_v25 = vld [vmem:[#allocation54_spill] sm:$0xff]  ;;  %v16377_v52 = vld [vmem:[#allocation5_spill] sm:$0xff] }
 0x7ef   :  { %v14667_v32 = vadd.f32 %v16370_v3, %v16369_v10  ;;  %v14671_v29 = vadd.f32 %v16372_v49, %v16371_v35  ;;  %v14675_v14 = vadd.f32 %v16374_v56, %v16373_v61  ;;  %v14679_v46 = vadd.f32 %v14465_v24, %v16375_v26  ;;  %v16378_v23 = vld [vmem:[#allocation65_spill] sm:$0xff]  ;;  %v16380_v21 = vld [vmem:[#allocation64_spill] sm:$0xff]  ;;  %v16381_v37 = vld [vmem:[#allocation67_spill] sm:$0xff] }
 0x7f0   :  { %v14683_v55 = vadd.f32 %v16377_v52, %v16376_v25  ;;  %v14687_v4 = vadd.f32 %v16379_v63, %v16378_v23  ;;  %v14691_v38 = vadd.f32 %v16381_v37, %v16380_v21  ;;  %v16382_v50 = vld [vmem:[#allocation47_spill] sm:$0xff]  ;;  %v16383_v10 = vld [vmem:[#allocation68_spill] sm:$0xff]  ;;  %v16387_v49 = vld [vmem:[#allocation41_spill] sm:$0xff] }
 0x7f1   :  { %v14695_v34 = vadd.f32 %v14477_v8, %v16382_v50  ;;  %v16384_v3 = vld [vmem:[#allocation19_spill] sm:$0xff]  ;;  %v16386_v35 = vld [vmem:[#allocation48_spill] sm:$0xff]  ;;  %v16388_v56 = vld [vmem:[#allocation29_spill] sm:$0xff] }
 0x7f2   :  { %v14699_v24 = vadd.f32 %v16384_v3, %v16383_v10  ;;  %v14703_v61 = vadd.f32 %v16387_v49, %v16386_v35  ;;  %v16389_v26 = vld [vmem:[#allocation36_spill] sm:$0xff]  ;;  %v16391_v52 = vld [vmem:[#allocation13_spill] sm:$0xff]  ;;  %v16396_v37 = vld [vmem:[#allocation38_spill] sm:$0xff] }
 0x7f3   :  { %v14707_v25 = vadd.f32 %v16389_v26, %v16388_v56  ;;  %v14711_v23 = vadd.f32 %v14489_v60, %v16391_v52  ;;  %v16393_v63 = vld [vmem:[#allocation56_spill] sm:$0xff]  ;;  %v16394_v21 = vld [vmem:[#allocation49_spill] sm:$0xff]  ;;  %v16397_v50 = vld [vmem:[#allocation63_spill] sm:$0xff] }
 0x7f4   :  { %16385 = vst [vmem:[#allocation4_spill] sm:$0xff] %v14699_v24  ;;  %v14715_v8 = vadd.f32 %v16394_v21, %v16393_v63  ;;  %v14719_v10 = vadd.f32 %v16397_v50, %v16396_v37  ;;  %v16398_v3 = vld [vmem:[#allocation42_spill] sm:$0xff]  ;;  %v16406_v52 = vld [vmem:[#allocation33_spill] sm:$0xff]  ;;  %v16408_v21 = vld [vmem:[#allocation28_spill] sm:$0xff] }
 0x7f5   :  { %16390 = vst [vmem:[#allocation24_spill] sm:$0xff] %v14707_v25  ;;  %16392 = vst [vmem:[#allocation6_spill] sm:$0xff] %v14711_v23  ;;  %v16399_v24 = vld [vmem:[#allocation46_spill] sm:$0xff]  ;;  %v16407_v23 = vld [vmem:[#allocation8_spill] sm:$0xff] }
 0x7f6   :  { %16395 = vst [vmem:[#allocation20_spill] sm:$0xff] %v14715_v8  ;;  %v14723_v35 = vadd.f32 %v16399_v24, %v16398_v3  ;;  %v16401_v49 = vld [vmem:[#allocation58_spill] sm:$0xff]  ;;  %v14735_v63 = vadd.f32 %v16407_v23, %v16406_v52  ;;  %v16413_v3 = vld [vmem:[#allocation55_spill] sm:$0xff]  ;;  %v16420_v52 = vld [vmem:[#allocation44_spill] sm:$0xff] }
 0x7f7   :  { %v14727_v56 = vadd.f32 %v14501_v48, %v16401_v49  ;;  %v16403_v26 = vld [vmem:[#allocation62_spill] sm:$0xff]  ;;  %v16416_v49 = vld [vmem:[#allocation69_spill] sm:$0xff] }
 0x7f8   :  { %16400 = vst [vmem:[#allocation76_spill] sm:$0xff] %v14723_v35  ;;  %v16404_v25 = vld [vmem:[#allocation30_spill] sm:$0xff] }
 0x7f9   :  { %16402 = vst [vmem:[#allocation9_spill] sm:$0xff] %v14727_v56  ;;  %v14731_v60 = vadd.f32 %v16404_v25, %v16403_v26  ;;  %v16409_v8 = vld [vmem:[#allocation50_spill] sm:$0xff]  ;;  %v16417_v56 = vld [vmem:[#allocation53_spill] sm:$0xff]  ;;  %v16418_v26 = vld [vmem:[#allocation71_spill] sm:$0xff] }
 0x7fa   :  { %v14739_v37 = vadd.f32 %v16409_v8, %v16408_v21  ;;  %v16411_v50 = vld [vmem:[#allocation14_spill] sm:$0xff]  ;;  %v14751_v25 = vadd.f32 %v16417_v56, %v16416_v49  ;;  %v14759_v8 = vadd.f32 %v14525_v6, %v16420_v52  ;;  %v16428_v49 = vld [vmem:[#allocation39_spill] sm:$0xff]  ;;  %v16430_v52 = vld [vmem:[#allocation32_spill] sm:$0xff] }
 0x7fb   :  { %16405 = vst [vmem:[#allocation21_spill] sm:$0xff] %v14731_v60  ;;  %v14743_v24 = vadd.f32 %v14513_v59, %v16411_v50  ;;  %v16414_v35 = vld [vmem:[#allocation70_spill] sm:$0xff]  ;;  %v16419_v60 = vld [vmem:[#allocation37_spill] sm:$0xff]  ;;  %v16424_v50 = vld [vmem:[#allocation12_spill] sm:$0xff] }
 0x7fc   :  { %16410 = vst [vmem:[#allocation57_spill] sm:$0xff] %v14739_v37  ;;  %v14747_v48 = vadd.f32 %v16414_v35, %v16413_v3  ;;  %v14755_v23 = vadd.f32 %v16419_v60, %v16418_v26  ;;  %v16421_v21 = vld [vmem:[#allocation26_spill] sm:$0xff]  ;;  %v16422_v37 = vld [vmem:[#allocation23_spill] sm:$0xff]  ;;  %v16426_v3 = vld [vmem:[#allocation52_spill] sm:$0xff]  ;;  %v14775_v60 = vadd.f32 %v14537_v22, %v16428_v49 }
 0x7fd   :  { %16412 = vst [vmem:[#allocation10_spill] sm:$0xff] %v14743_v24  ;;  %v14763_v59 = vadd.f32 %v16422_v37, %v16421_v21  ;;  %v16425_v24 = vld [vmem:[#allocation72_spill] sm:$0xff]  ;;  %v16429_v26 = vld [vmem:[#allocation11_spill] sm:$0xff]  ;;  %v14783_v37 = vadd.f32 %v14543_v15, %v16430_v52  ;;  %v16431_v21 = vld [vmem:[#allocation66_spill] sm:$0xff] }
 0x7fe   :  { %16415 = vst [vmem:[#allocation60_spill] sm:$0xff] %v14747_v48  ;;  %v14767_v35 = vadd.f32 %v16425_v24, %v16424_v50  ;;  %v16427_v48 = vld [vmem:[#allocation7_spill] sm:$0xff]  ;;  %v14779_v6 = vadd.f32 %v14540_v27, %v16429_v26  ;;  %v16433_v50 = vld [vmem:[#allocation17_spill] sm:$0xff] }
 0x7ff   :  { %16423 = vst [vmem:[#allocation15_spill] sm:$0xff] %v14763_v59  ;;  %v14771_v56 = vadd.f32 %v16427_v48, %v16426_v3  ;;  %v16432_v59 = vld [vmem:[#allocation34_spill] sm:$0xff]  ;;  %v14791_v48 = vadd.f32 %v14549_v47, %v16433_v50  ;;  %v16434_v3 = vld [vmem:[#allocation75_spill] sm:$0xff]  ;;  %v16439_v50 = vld [vmem:[#allocation25_spill] sm:$0xff] }
 0x800   :  { %v14787_v24 = vadd.f32 %v16432_v59, %v16431_v21  ;;  %v14795_v22 = vadd.f32 %v14552_v20, %v16434_v3  ;;  %v16435_v49 = vld [vmem:[#allocation31_spill] sm:$0xff]  ;;  %v16438_v21 = vld [vmem:[#allocation40_spill] sm:$0xff]  ;;  %v14815_v20 = vadd.f32 %v14567_v44, %v16439_v50  ;;  %v16440_v3 = vld [vmem:[#allocation61_spill] sm:$0xff] }
 0x801   :  { %v14799_v27 = vadd.f32 %v14555_v41, %v16435_v49  ;;  %v16436_v26 = vld [vmem:[#allocation59_spill] sm:$0xff]  ;;  %v14811_v47 = vadd.f32 %v14564_v33, %v16438_v21  ;;  %v14819_v41 = vadd.f32 %v14570_v43, %v16440_v3  ;;  %v16441_v49 = vld [vmem:[#allocation18_spill] sm:$0xff]  ;;  %v16444_v21 = vld [vmem:[#allocation45_spill] sm:$0xff] }
 0x802   :  { %v14803_v15 = vadd.f32 %v14558_v45, %v16436_v26  ;;  %v16437_v52 = vld [vmem:[#allocation43_spill] sm:$0xff]  ;;  %v14823_v45 = vadd.f32 %v14573_v16, %v16441_v49  ;;  %v14835_v44 = vadd.f32 %v14582_v12, %v16444_v21  ;;  %v16446_v3 = vld [vmem:[#allocation16_spill] sm:$0xff]  ;;  %v6355_v12 = vmax.f32 %v14607_v9, 0.0 }
 0x803   :  { %v14807_v59 = vadd.f32 %v14561_v53, %v16437_v52  ;;  %v16442_v26 = vld [vmem:[#allocation27_spill] sm:$0xff]  ;;  %v16443_v52 = vld [vmem:[#allocation73_spill] sm:$0xff]  ;;  %v14843_v16 = vadd.f32 %v14588_v36, %v16446_v3  ;;  %v6356_v21 = vmax.f32 %v14611_v51, 0.0  ;;  %v6359_v36 = vmax.f32 %v14623_v31, 0.0 }
 0x804   :  { %v14827_v53 = vadd.f32 %v14576_v1, %v16442_v26  ;;  %v14831_v33 = vadd.f32 %v14579_v11, %v16443_v52  ;;  %v16445_v50 = vld [vmem:[#allocation51_spill] sm:$0xff]  ;;  %v6352_v26 = vmax.f32 %v14595_v17, 0.0  ;;  %v6353_v11 = vmax.f32 %v14599_v18, 0.0  ;;  %6419 = vst.msk [vmem:[%s15175_s6 + $0x18] sm:$0xff] %vm3826_vm2, %v6355_v12 }
 0x805   :  { %v14839_v43 = vadd.f32 %v14585_v13, %v16445_v50  ;;  %v16447_v49 = vld [vmem:[#allocation35_spill] sm:$0xff]  ;;  %v6354_v52 = vmax.f32 %v14603_v40, 0.0  ;;  %v6357_v13 = vmax.f32 %v14615_v5, 0.0  ;;  %v6358_v50 = vmax.f32 %v14619_v28, 0.0  ;;  %6420 = vst.msk [vmem:[%s15175_s6 + $0x20] sm:$0xff] %vm3826_vm2, %v6356_v21  ;;  %6423 = vst.msk [vmem:[%s15175_s6 + $0x38] sm:$0xff] %vm3826_vm2, %v6359_v36 }
 0x806   :  { %v14847_v1 = vadd.f32 %v14591_v7, %v16447_v49  ;;  %v6360_v3 = vmax.f32 %v14627_v39, 0.0  ;;  %6416 = vst.msk [vmem:[%s15175_s6] sm:$0xff] %vm3826_vm2, %v6352_v26  ;;  %v6361_v7 = vmax.f32 %v14631_v0, 0.0  ;;  %v6362_v17 = vmax.f32 %v14635_v19, 0.0  ;;  %6417 = vst.msk [vmem:[%s15175_s6 + $0x8] sm:$0xff] %vm3826_vm2, %v6353_v11  ;;  %v16454_v11 = vld [vmem:[#allocation21_spill] sm:$0xff] }
 0x807   :  { %v6363_v18 = vmax.f32 %v14639_v57, 0.0  ;;  %v6364_v40 = vmax.f32 %v14643_v54, 0.0  ;;  %6418 = vst.msk [vmem:[%s15175_s6 + $0x10] sm:$0xff] %vm3826_vm2, %v6354_v52  ;;  %v6365_v9 = vmax.f32 %v14647_v42, 0.0  ;;  %v6366_v51 = vmax.f32 %v14651_v30, 0.0  ;;  %6421 = vst.msk [vmem:[%s15175_s6 + $0x28] sm:$0xff] %vm3826_vm2, %v6357_v13 }
 0x808   :  { %v6367_v5 = vmax.f32 %v14655_v2, 0.0  ;;  %v6368_v28 = vmax.f32 %v14659_v62, 0.0  ;;  %6422 = vst.msk [vmem:[%s15175_s6 + $0x30] sm:$0xff] %vm3826_vm2, %v6358_v50  ;;  %6424 = vst.msk [vmem:[%s15175_s6 + $0x40] sm:$0xff] %vm3826_vm2, %v6360_v3  ;;  %v6369_v31 = vmax.f32 %v14663_v58, 0.0  ;;  %v6370_v39 = vmax.f32 %v14667_v32, 0.0 }
 0x809   :  { %v6371_v0 = vmax.f32 %v14671_v29, 0.0  ;;  %v6372_v19 = vmax.f32 %v14675_v14, 0.0  ;;  %6425 = vst.msk [vmem:[%s15175_s6 + $0x48] sm:$0xff] %vm3826_vm2, %v6361_v7  ;;  %6426 = vst.msk [vmem:[%s15175_s6 + $0x50] sm:$0xff] %vm3826_vm2, %v6362_v17  ;;  %v6373_v57 = vmax.f32 %v14679_v46, 0.0  ;;  %v6374_v54 = vmax.f32 %v14683_v55, 0.0 }
 0x80a   :  { %6427 = vst.msk [vmem:[%s15175_s6 + $0x58] sm:$0xff] %vm3826_vm2, %v6363_v18  ;;  %6428 = vst.msk [vmem:[%s15175_s6 + $0x60] sm:$0xff] %vm3826_vm2, %v6364_v40  ;;  %v6375_v42 = vmax.f32 %v14687_v4, 0.0  ;;  %v6376_v30 = vmax.f32 %v14691_v38, 0.0  ;;  %v6377_v2 = vmax.f32 %v14695_v34, 0.0  ;;  %v16448_v62 = vld [vmem:[#allocation4_spill] sm:$0xff] }
 0x80b   :  { %6429 = vst.msk [vmem:[%s15175_s6 + $0x68] sm:$0xff] %vm3826_vm2, %v6365_v9  ;;  %6430 = vst.msk [vmem:[%s15175_s6 + $0x70] sm:$0xff] %vm3826_vm2, %v6366_v51  ;;  %v6378_v58 = vmax.f32 %v16448_v62, 0.0  ;;  %v6379_v32 = vmax.f32 %v14703_v61, 0.0  ;;  %v16449_v29 = vld [vmem:[#allocation24_spill] sm:$0xff]  ;;  %v16450_v46 = vld [vmem:[#allocation6_spill] sm:$0xff] }
 0x80c   :  { %6431 = vst.msk [vmem:[%s15175_s6 + $0x78] sm:$0xff] %vm3826_vm2, %v6367_v5  ;;  %6432 = vst.msk [vmem:[%s15175_s6 + $0x80] sm:$0xff] %vm3826_vm2, %v6368_v28  ;;  %v6380_v14 = vmax.f32 %v16449_v29, 0.0  ;;  %v6381_v55 = vmax.f32 %v16450_v46, 0.0  ;;  %v16451_v4 = vld [vmem:[#allocation20_spill] sm:$0xff]  ;;  %v6383_v34 = vmax.f32 %v14719_v10, 0.0 }
 0x80d   :  { %6433 = vst.msk [vmem:[%s15175_s6 + $0x88] sm:$0xff] %vm3826_vm2, %v6369_v31  ;;  %6434 = vst.msk [vmem:[%s15175_s6 + $0x90] sm:$0xff] %vm3826_vm2, %v6370_v39  ;;  %v6382_v38 = vmax.f32 %v16451_v4, 0.0  ;;  %v16452_v61 = vld [vmem:[#allocation76_spill] sm:$0xff]  ;;  %v16453_v10 = vld [vmem:[#allocation9_spill] sm:$0xff]  ;;  %v6386_v52 = vmax.f32 %v16454_v11, 0.0 }
 0x80e   :  { %6435 = vst.msk [vmem:[%s15175_s6 + $0x98] sm:$0xff] %vm3826_vm2, %v6371_v0  ;;  %6436 = vst.msk [vmem:[%s15175_s6 + $0xa0] sm:$0xff] %vm3826_vm2, %v6372_v19  ;;  %v6384_v49 = vmax.f32 %v16452_v61, 0.0  ;;  %v6385_v26 = vmax.f32 %v16453_v10, 0.0  ;;  %v6387_v12 = vmax.f32 %v14735_v63, 0.0  ;;  %v16455_v21 = vld [vmem:[#allocation57_spill] sm:$0xff] }
 0x80f   :  { %6437 = vst.msk [vmem:[%s15175_s6 + $0xa8] sm:$0xff] %vm3826_vm2, %v6373_v57  ;;  %6438 = vst.msk [vmem:[%s15175_s6 + $0xb0] sm:$0xff] %vm3826_vm2, %v6374_v54  ;;  %v6388_v13 = vmax.f32 %v16455_v21, 0.0  ;;  %v16456_v63 = vld [vmem:[#allocation10_spill] sm:$0xff]  ;;  %v16457_v36 = vld [vmem:[#allocation60_spill] sm:$0xff]  ;;  %v6391_v7 = vmax.f32 %v14751_v25, 0.0 }
 0x810   :  { %6439 = vst.msk [vmem:[%s15175_s6 + $0xb8] sm:$0xff] %vm3826_vm2, %v6375_v42  ;;  %6440 = vst.msk [vmem:[%s15175_s6 + $0xc0] sm:$0xff] %vm3826_vm2, %v6376_v30  ;;  %v6389_v50 = vmax.f32 %v16456_v63, 0.0  ;;  %v6390_v3 = vmax.f32 %v16457_v36, 0.0  ;;  %v6392_v17 = vmax.f32 %v14755_v23, 0.0  ;;  %v6393_v25 = vmax.f32 %v14759_v8, 0.0 }
 0x811   :  { %6441 = vst.msk [vmem:[%s15175_s6 + $0xc8] sm:$0xff] %vm3826_vm2, %v6377_v2  ;;  %6442 = vst.msk [vmem:[%s15175_s6 + $0xd0] sm:$0xff] %vm3826_vm2, %v6378_v58  ;;  %v16458_v23 = vld [vmem:[#allocation15_spill] sm:$0xff]  ;;  %v6395_v40 = vmax.f32 %v14767_v35, 0.0  ;;  %v6396_v9 = vmax.f32 %v14771_v56, 0.0  ;;  %v6397_v8 = vmax.f32 %v14775_v60, 0.0 }
 0x812   :  { %6443 = vst.msk [vmem:[%s15175_s6 + $0xd8] sm:$0xff] %vm3826_vm2, %v6379_v32  ;;  %6444 = vst.msk [vmem:[%s15175_s6 + $0xe0] sm:$0xff] %vm3826_vm2, %v6380_v14  ;;  %v6394_v18 = vmax.f32 %v16458_v23, 0.0  ;;  %v6398_v35 = vmax.f32 %v14779_v6, 0.0  ;;  %v6399_v56 = vmax.f32 %v14783_v37, 0.0  ;;  %v6400_v51 = vmax.f32 %v14787_v24, 0.0 }
 0x813   :  { %6445 = vst.msk [vmem:[%s15175_s6 + $0xe8] sm:$0xff] %vm3826_vm2, %v6381_v55  ;;  %6446 = vst.msk [vmem:[%s15175_s6 + $0xf0] sm:$0xff] %vm3826_vm2, %v6382_v38  ;;  %v6401_v60 = vmax.f32 %v14791_v48, 0.0  ;;  %v6402_v6 = vmax.f32 %v14795_v22, 0.0  ;;  %v6403_v37 = vmax.f32 %v14799_v27, 0.0  ;;  %v6404_v24 = vmax.f32 %v14803_v15, 0.0 }
 0x814   :  { %6447 = vst.msk [vmem:[%s15175_s6 + $0xf8] sm:$0xff] %vm3826_vm2, %v6383_v34  ;;  %6448 = vst.msk [vmem:[%s15175_s6 + $0x100] sm:$0xff] %vm3826_vm2, %v6384_v49  ;;  %v6405_v48 = vmax.f32 %v14807_v59, 0.0  ;;  %v6406_v22 = vmax.f32 %v14811_v47, 0.0  ;;  %v6407_v27 = vmax.f32 %v14815_v20, 0.0  ;;  %v6408_v15 = vmax.f32 %v14819_v41, 0.0 }
 0x815   :  { %6449 = vst.msk [vmem:[%s15175_s6 + $0x108] sm:$0xff] %vm3826_vm2, %v6385_v26  ;;  %6450 = vst.msk [vmem:[%s15175_s6 + $0x110] sm:$0xff] %vm3826_vm2, %v6386_v52  ;;  %v6409_v59 = vmax.f32 %v14823_v45, 0.0  ;;  %v6410_v47 = vmax.f32 %v14827_v53, 0.0  ;;  %v6411_v20 = vmax.f32 %v14831_v33, 0.0  ;;  %v6412_v41 = vmax.f32 %v14835_v44, 0.0 }
 0x816   :  { %6451 = vst.msk [vmem:[%s15175_s6 + $0x118] sm:$0xff] %vm3826_vm2, %v6387_v12  ;;  %6452 = vst.msk [vmem:[%s15175_s6 + $0x120] sm:$0xff] %vm3826_vm2, %v6388_v13  ;;  %v6413_v45 = vmax.f32 %v14839_v43, 0.0  ;;  %v6414_v53 = vmax.f32 %v14843_v16, 0.0  ;;  %v6415_v33 = vmax.f32 %v14847_v1, 0.0 }
 0x817   :  { %6453 = vst.msk [vmem:[%s15175_s6 + $0x128] sm:$0xff] %vm3826_vm2, %v6389_v50  ;;  %6454 = vst.msk [vmem:[%s15175_s6 + $0x130] sm:$0xff] %vm3826_vm2, %v6390_v3 }
 0x818   :  { %6455 = vst.msk [vmem:[%s15175_s6 + $0x138] sm:$0xff] %vm3826_vm2, %v6391_v7  ;;  %6456 = vst.msk [vmem:[%s15175_s6 + $0x140] sm:$0xff] %vm3826_vm2, %v6392_v17 }
 0x819   :  { %6457 = vst.msk [vmem:[%s15175_s6 + $0x148] sm:$0xff] %vm3826_vm2, %v6393_v25  ;;  %6458 = vst.msk [vmem:[%s15175_s6 + $0x150] sm:$0xff] %vm3826_vm2, %v6394_v18 }
 0x81a   :  { %6459 = vst.msk [vmem:[%s15175_s6 + $0x158] sm:$0xff] %vm3826_vm2, %v6395_v40  ;;  %6460 = vst.msk [vmem:[%s15175_s6 + $0x160] sm:$0xff] %vm3826_vm2, %v6396_v9 }
 0x81b   :  { %6461 = vst.msk [vmem:[%s15175_s6 + $0x168] sm:$0xff] %vm3826_vm2, %v6397_v8  ;;  %6462 = vst.msk [vmem:[%s15175_s6 + $0x170] sm:$0xff] %vm3826_vm2, %v6398_v35 }
 0x81c   :  { %6463 = vst.msk [vmem:[%s15175_s6 + $0x178] sm:$0xff] %vm3826_vm2, %v6399_v56  ;;  %6464 = vst.msk [vmem:[%s15175_s6 + $0x180] sm:$0xff] %vm3826_vm2, %v6400_v51 }
 0x81d   :  { %6465 = vst.msk [vmem:[%s15175_s6 + $0x188] sm:$0xff] %vm3826_vm2, %v6401_v60  ;;  %6466 = vst.msk [vmem:[%s15175_s6 + $0x190] sm:$0xff] %vm3826_vm2, %v6402_v6 }
 0x81e   :  { %6467 = vst.msk [vmem:[%s15175_s6 + $0x198] sm:$0xff] %vm3826_vm2, %v6403_v37  ;;  %6468 = vst.msk [vmem:[%s15175_s6 + $0x1a0] sm:$0xff] %vm3826_vm2, %v6404_v24 }
 0x81f   :  { %6469 = vst.msk [vmem:[%s15175_s6 + $0x1a8] sm:$0xff] %vm3826_vm2, %v6405_v48  ;;  %6470 = vst.msk [vmem:[%s15175_s6 + $0x1b0] sm:$0xff] %vm3826_vm2, %v6406_v22 }
 0x820   :  { %6471 = vst.msk [vmem:[%s15175_s6 + $0x1b8] sm:$0xff] %vm3826_vm2, %v6407_v27  ;;  %6472 = vst.msk [vmem:[%s15175_s6 + $0x1c0] sm:$0xff] %vm3826_vm2, %v6408_v15 }
 0x821   :  { %6473 = vst.msk [vmem:[%s15175_s6 + $0x1c8] sm:$0xff] %vm3826_vm2, %v6409_v59  ;;  %6474 = vst.msk [vmem:[%s15175_s6 + $0x1d0] sm:$0xff] %vm3826_vm2, %v6410_v47 }
 0x822   :  { %6475 = vst.msk [vmem:[%s15175_s6 + $0x1d8] sm:$0xff] %vm3826_vm2, %v6411_v20  ;;  %6476 = vst.msk [vmem:[%s15175_s6 + $0x1e0] sm:$0xff] %vm3826_vm2, %v6412_v41 }
 0x823   :  { %6477 = vst.msk [vmem:[%s15175_s6 + $0x1e8] sm:$0xff] %vm3826_vm2, %v6413_v45  ;;  %6478 = vst.msk [vmem:[%s15175_s6 + $0x1f0] sm:$0xff] %vm3826_vm2, %v6414_v53 }
 0x824   :  { %6479 = vst.msk [vmem:[%s15175_s6 + $0x1f8] sm:$0xff] %vm3826_vm2, %v6415_v33 }

</bundles_post_ra>
